<compile_context>
chip_gen: v6e
topology: v6e:2x2x1
jax: 0.10.0
libtpu: 0.0.40
codegen_flags: <defaults>
</compile_context>

<pallas_src>
import functools
import math

import jax
import jax.numpy as jnp
import numpy as np
from jax import lax
from jax.experimental import pallas as pl
from jax.experimental.pallas import tpu as pltpu


# ------------------------------ in-kernel helpers ------------------------------

def _gn_silu(x2, gamma, beta, M, MT, eps):
  """GroupNorm + SiLU on an (N, C) f32 slab.  M: (C, G), MT: (G, C) one-hot maps."""
  N, C = x2.shape
  G = M.shape[-1]
  n = float(N * (C // G))
  s_c = jnp.sum(x2, axis=0, keepdims=True)                              # (1, C)
  ss_c = jnp.sum(x2 * x2, axis=0, keepdims=True)                        # (1, C)
  mean_g = jnp.dot(s_c, M, preferred_element_type=jnp.float32) / n      # (1, G)
  ex2_g = jnp.dot(ss_c, M, preferred_element_type=jnp.float32) / n      # (1, G)
  var_g = ex2_g - mean_g * mean_g
  inv_g = lax.rsqrt(var_g + eps)
  mean_c = jnp.dot(mean_g, MT, preferred_element_type=jnp.float32)      # (1, C)
  inv_c = jnp.dot(inv_g, MT, preferred_element_type=jnp.float32)        # (1, C)
  y = (x2 - mean_c) * (inv_c * gamma) + beta
  return y * jax.nn.sigmoid(y)                                          # SiLU


def _conv3x3_mxu(h2, w9, bias, H, W):
  """3x3 SAME conv of an (H*W, Cin) f32 slab; w9: (9, Cin, Cout) bf16; bias: (1, Cout).

  H halo: zero-row concat on the (untiled) leading dim.  W halo: pltpu.roll on the
  sublane axis with tiny (W, 1) boundary masks -- no full-size int32 iota temporaries.
  The masks come from rolling the tiny iota the same way as the data, so the selection
  is correct whatever the roll direction convention is.  Each of the three planes is
  cast to bf16 exactly once (no per-tap casts); MXU accumulation stays f32.
  """
  HW, Cin = h2.shape
  Cout = w9.shape[-1]
  h3 = h2.reshape(H, W, Cin)
  zrow = jnp.zeros((1, W, Cin), jnp.float32)
  hp = jnp.concatenate([zrow, h3, zrow], axis=0)              # (H+2, W, Cin): zero H-halo

  col = lax.broadcasted_iota(jnp.int32, (W, 1), 0)            # tiny (W, 1)
  h_r1 = pltpu.roll(hp, 1, axis=1)
  h_rm = pltpu.roll(hp, W - 1, axis=1)
  c_r1 = pltpu.roll(col, 1, axis=0)                           # tiny
  c_rm = pltpu.roll(col, W - 1, axis=0)                       # tiny

  def shifted(delta):                                         # hp[:, x+delta, :], 0 outside
    tgt = col + delta                                         # (W, 1) broadcast mask
    return jnp.where(c_r1 == tgt, h_r1, jnp.where(c_rm == tgt, h_rm, 0.0))

  planes = (shifted(-1).astype(jnp.bfloat16),                 # h[:, x-1]
            hp.astype(jnp.bfloat16),                          # h[:, x]
            shifted(+1).astype(jnp.bfloat16))                 # h[:, x+1]

  acc = jnp.zeros((HW, Cout), jnp.float32)
  for i in range(3):            # kernel row offset
    for j in range(3):          # kernel col offset
      # leading-dim row slice + layout-preserving reshape: no strided-slice copy.
      patch = planes[j][i:i + H].reshape(HW, Cin)
      acc = acc + jnp.dot(patch, w9[3 * i + j],
                          preferred_element_type=jnp.float32)
  return acc + bias


# --------------------------------- fused kernel ---------------------------------

def resnet_block_kernel(x_ref, u_ref, tadd_ref,
                        g0_ref, be0_ref, m0_ref, mt0_ref, w0_ref, b0_ref,
                        g1_ref, be1_ref, m1_ref, mt1_ref, w1_ref, b1_ref,
                        wc_ref, bc_ref, o_ref, *, H, W, eps, rescale):
  Cin = x_ref.shape[-1]
  Cu = u_ref.shape[-1]
  Cout = b0_ref.shape[-1]

  # GroupNorm_0 + SiLU.  (The f32 residual slab is NOT kept live across the convs;
  # x is re-read right before the final combine -- lower peak VMEM/vreg pressure.)
  x2 = x_ref[...].astype(jnp.float32).reshape(H * W, Cin)
  h = _gn_silu(x2, g0_ref[...], be0_ref[...], m0_ref[...], mt0_ref[...], eps)
  # Conv_0 (3x3, SAME) + bias + Dense_0(SiLU(temb)) per-batch bias
  h = _conv3x3_mxu(h, w0_ref[...], b0_ref[...] + tadd_ref[0], H, W)
  # GroupNorm_1 + SiLU
  h = _gn_silu(h, g1_ref[...], be1_ref[...], m1_ref[...], mt1_ref[...], eps)
  # TODO(synk): Dropout_0 implemented as identity (eval mode).
  # Conv_1 (3x3, SAME) + bias
  h = _conv3x3_mxu(h, w1_ref[...], b1_ref[...], H, W)
  # Combine: Conv1x1(unet_input) + (x + h), optional 1/sqrt(2) rescale
  u2 = u_ref[...].reshape(H * W, Cu)                          # bf16 MXU operand
  comb = jnp.dot(u2, wc_ref[...], preferred_element_type=jnp.float32) + bc_ref[...]
  xres = x_ref[...].astype(jnp.float32).reshape(H * W, Cin)   # residual re-read
  out2 = (comb + xres + h) * rescale
  o_ref[...] = out2.reshape(1, H, W, Cout).astype(o_ref.dtype)


# ---------------------------------- wrapper ----------------------------------

@functools.lru_cache(maxsize=None)
def _vmem_limit_bytes():
  """Per-generation VMEM budget: ~75% of physical, capped at 100 MiB."""
  cap = 128 * 1024 * 1024
  try:
    info_cap = int(pltpu.get_tpu_info().vmem_capacity_bytes)
    if info_cap >= 16 * 1024 * 1024:
      cap = info_cap
  except Exception:
    pass
  return int(min(100 * 1024 * 1024, (cap * 3) // 4))


def resnet_block_biggan_forward(x_nchw, unet_nchw, temb, params, *,
                                num_groups_in, num_groups_out, skip_rescale=True):
  B, Cin, H, W = x_nchw.shape
  Cu = unet_nchw.shape[1]
  Cout = params["conv0_w"].shape[-1]
  assert Cin == Cout, "restricted path: in_ch == out_ch (no Conv_2)"
  assert Cin % num_groups_in == 0 and Cout % num_groups_out == 0
  assert W % 8 == 0, "W must be a multiple of the sublane tile (8)"

  # NCHW -> NHWC at the module boundary; bf16 inputs halve the kernel's HBM reads.
  x = jnp.transpose(x_nchw, (0, 2, 3, 1)).astype(jnp.bfloat16)
  u = jnp.transpose(unet_nchw, (0, 2, 3, 1)).astype(jnp.bfloat16)

  # Dense_0(SiLU(temb)): tiny (B x temb_dim) matmul -> plain jnp in the wrapper, fed to
  # the fused kernel as a per-batch bias.
  t = temb.astype(jnp.float32)
  t = t * jax.nn.sigmoid(t)
  tadd = (t @ params["dense_w"] + params["dense_b"]).reshape(B, 1, Cout)

  # One-hot channel<->group maps, hoisted out of the kernel (tiny constants).
  def group_onehot(C, G):
    c = np.arange(C)
    M = (c[:, None] // (C // G) == np.arange(G)[None, :]).astype(np.float32)
    return jnp.asarray(M), jnp.asarray(np.ascontiguousarray(M.T))

  M0, MT0 = group_onehot(Cin, num_groups_in)
  M1, MT1 = group_onehot(Cout, num_groups_out)
  Gin, Gout = num_groups_in, num_groups_out

  # bf16 MXU operands (f32 accumulation inside the kernel).
  w0 = params["conv0_w"].astype(jnp.bfloat16)
  w1 = params["conv1_w"].astype(jnp.bfloat16)
  wc = params["comb_w"].astype(jnp.bfloat16)
  rescale = (1.0 / math.sqrt(2.0)) if skip_rescale else 1.0

  kern = functools.partial(resnet_block_kernel, H=H, W=W, eps=1e-6, rescale=rescale)
  out = pl.pallas_call(
      kern,
      out_shape=jax.ShapeDtypeStruct((B, H, W, Cout), jnp.float32),
      grid=(B,),
      in_specs=[
          pl.BlockSpec((1, H, W, Cin), lambda b: (b, 0, 0, 0)),    # x (bf16)
          pl.BlockSpec((1, H, W, Cu), lambda b: (b, 0, 0, 0)),     # unet_input (bf16)
          pl.BlockSpec((1, 1, Cout), lambda b: (b, 0, 0)),         # temb bias (f32)
          pl.BlockSpec((1, Cin), lambda b: (0, 0)),                # gn0 gamma
          pl.BlockSpec((1, Cin), lambda b: (0, 0)),                # gn0 beta
          pl.BlockSpec((Cin, Gin), lambda b: (0, 0)),              # M0
          pl.BlockSpec((Gin, Cin), lambda b: (0, 0)),              # MT0
          pl.BlockSpec((9, Cin, Cout), lambda b: (0, 0, 0)),       # conv0 w (bf16)
          pl.BlockSpec((1, Cout), lambda b: (0, 0)),               # conv0 b
          pl.BlockSpec((1, Cout), lambda b: (0, 0)),               # gn1 gamma
          pl.BlockSpec((1, Cout), lambda b: (0, 0)),               # gn1 beta
          pl.BlockSpec((Cout, Gout), lambda b: (0, 0)),            # M1
          pl.BlockSpec((Gout, Cout), lambda b: (0, 0)),            # MT1
          pl.BlockSpec((9, Cout, Cout), lambda b: (0, 0, 0)),      # conv1 w (bf16)
          pl.BlockSpec((1, Cout), lambda b: (0, 0)),               # conv1 b
          pl.BlockSpec((Cu, Cout), lambda b: (0, 0)),              # combine w (bf16)
          pl.BlockSpec((1, Cout), lambda b: (0, 0)),               # combine b
      ],
      out_specs=pl.BlockSpec((1, H, W, Cout), lambda b: (b, 0, 0, 0)),
      compiler_params=pltpu.CompilerParams(
          dimension_semantics=("parallel",),
          vmem_limit_bytes=_vmem_limit_bytes()),
  )(x, u, tadd,
    params["gn0_gamma"], params["gn0_beta"], M0, MT0, w0, params["conv0_b"],
    params["gn1_gamma"], params["gn1_beta"], M1, MT1, w1, params["conv1_b"],
    wc, params["comb_b"])

  out_nchw = jnp.transpose(out, (0, 3, 1, 2))                   # NHWC -> NCHW
  return out_nchw, unet_nchw                                    # unet_out_data == unet_input


# ------------------------------- pure-JAX reference -------------------------------

def _gn_ref(x, G, gamma, beta, eps=1e-6):
  B, H, W, C = x.shape
  xg = x.reshape(B, H, W, G, C // G)
  mean = xg.mean(axis=(1, 2, 4), keepdims=True)
  var = ((xg - mean) ** 2).mean(axis=(1, 2, 4), keepdims=True)
  xn = ((xg - mean) / jnp.sqrt(var + eps)).reshape(B, H, W, C)
  return xn * gamma.reshape(1, 1, 1, C) + beta.reshape(1, 1, 1, C)


def _silu(x):
  return x * jax.nn.sigmoid(x)


def _conv3x3_ref(x, w9, b):
  w = w9.reshape(3, 3, w9.shape[1], w9.shape[2])
  y = jax.lax.conv_general_dilated(x, w, (1, 1), "SAME",
                                   dimension_numbers=("NHWC", "HWIO", "NHWC"))
  return y + b.reshape(1, 1, 1, -1)


def reference_forward(x_nchw, unet_nchw, temb, params, *, G_in, G_out):
  x = jnp.transpose(x_nchw, (0, 2, 3, 1))
  u = jnp.transpose(unet_nchw, (0, 2, 3, 1))
  h = _silu(_gn_ref(x, G_in, params["gn0_gamma"][0], params["gn0_beta"][0]))
  h = _conv3x3_ref(h, params["conv0_w"], params["conv0_b"][0])
  d = _silu(temb) @ params["dense_w"] + params["dense_b"][0]
  h = h + d[:, None, None, :]
  h = _silu(_gn_ref(h, G_out, params["gn1_gamma"][0], params["gn1_beta"][0]))
  h = _conv3x3_ref(h, params["conv1_w"], params["conv1_b"][0])
  comb = jnp.einsum("bhwc,cd->bhwd", u, params["comb_w"]) + params["comb_b"][0]
  out = (comb + x + h) / math.sqrt(2.0)
  return jnp.transpose(out, (0, 3, 1, 2)), unet_nchw


# ------------------------------------ main ------------------------------------

if __name__ == "__main__":
  B, in_ch, H, W = 2, 8, 16, 16
  out_ch = in_ch
  unet_in_ch = unet_out_ch = 8
  temb_dim = 32
  G_in = min(in_ch // 4, 32)    # = 2
  G_out = min(out_ch // 4, 32)  # = 2

  key = jax.random.PRNGKey(0)
  ks = jax.random.split(key, 16)

  params = {
      "gn0_gamma": (1.0 + 0.1 * jax.random.normal(ks[0], (1, in_ch))).astype(jnp.float32),
      "gn0_beta": (0.1 * jax.random.normal(ks[1], (1, in_ch))).astype(jnp.float32),
      "conv0_w": (0.1 * jax.random.normal(ks[2], (9, in_ch, out_ch))).astype(jnp.float32),
      "conv0_b": (0.05 * jax.random.normal(ks[3], (1, out_ch))).astype(jnp.float32),
      "dense_w": (0.1 * jax.random.normal(ks[4], (temb_dim, out_ch))).astype(jnp.float32),
      "dense_b": jnp.zeros((1, out_ch), jnp.float32),  # nn.init.zeros_
      "gn1_gamma": (1.0 + 0.1 * jax.random.normal(ks[5], (1, out_ch))).astype(jnp.float32),
      "gn1_beta": (0.1 * jax.random.normal(ks[6], (1, out_ch))).astype(jnp.float32),
      "conv1_w": (0.01 * jax.random.normal(ks[7], (9, out_ch, out_ch))).astype(jnp.float32),
      "conv1_b": (0.01 * jax.random.normal(ks[8], (1, out_ch))).astype(jnp.float32),
      "comb_w": (0.1 * jax.random.normal(ks[9], (unet_out_ch, out_ch))).astype(jnp.float32),
      "comb_b": (0.05 * jax.random.normal(ks[10], (1, out_ch))).astype(jnp.float32),
  }

  x = jax.random.normal(ks[11], (B, in_ch, H, W), jnp.float32)
  unet_input = jax.random.normal(ks[12], (B, unet_in_ch, H, W), jnp.float32)
  temb = jax.random.normal(ks[13], (B, temb_dim), jnp.float32)

  fwd = jax.jit(functools.partial(resnet_block_biggan_forward,
                                  num_groups_in=G_in, num_groups_out=G_out,
                                  skip_rescale=True))
  out, unet_out = fwd(x, unet_input, temb, params)
  jax.block_until_ready(out)
  jax.block_until_ready(unet_out)

  ref_out, ref_unet = reference_forward(x, unet_input, temb, params,
                                        G_in=G_in, G_out=G_out)
  # bf16 x/u inputs + bf16 MXU operands (f32 accumulation) vs the f32 reference ->
  # relaxed tolerance.
  np.testing.assert_allclose(np.asarray(out), np.asarray(ref_out),
                             rtol=2e-2, atol=3e-2)
  np.testing.assert_allclose(np.asarray(unet_out), np.asarray(ref_unet),
                             rtol=0, atol=0)

  print("KERNEL_OK")
</pallas_src>

<mosaic_0001>
module attributes {stable_mosaic.version = 11 : i64} {
  func.func @resnet_block_kernel(%arg0: i32, %arg1: memref<1x16x16x8xbf16, #tpu.memory_space<vmem>>, %arg2: memref<1x16x16x8xbf16, #tpu.memory_space<vmem>>, %arg3: memref<1x1x8xf32, #tpu.memory_space<vmem>>, %arg4: memref<1x8xf32, #tpu.memory_space<vmem>>, %arg5: memref<1x8xf32, #tpu.memory_space<vmem>>, %arg6: memref<8x2xf32, #tpu.memory_space<vmem>>, %arg7: memref<2x8xf32, #tpu.memory_space<vmem>>, %arg8: memref<9x8x8xbf16, #tpu.memory_space<vmem>>, %arg9: memref<1x8xf32, #tpu.memory_space<vmem>>, %arg10: memref<1x8xf32, #tpu.memory_space<vmem>>, %arg11: memref<1x8xf32, #tpu.memory_space<vmem>>, %arg12: memref<8x2xf32, #tpu.memory_space<vmem>>, %arg13: memref<2x8xf32, #tpu.memory_space<vmem>>, %arg14: memref<9x8x8xbf16, #tpu.memory_space<vmem>>, %arg15: memref<1x8xf32, #tpu.memory_space<vmem>>, %arg16: memref<8x8xbf16, #tpu.memory_space<vmem>>, %arg17: memref<1x8xf32, #tpu.memory_space<vmem>>, %arg18: memref<1x16x16x8xf32, #tpu.memory_space<vmem>>) attributes {dimension_semantics = [#tpu.dimension_semantics<parallel>], iteration_bounds = array<i64: 2>, scalar_prefetch = 0 : i64, scratch_operands = 0 : i64, tpu.core_type = #tpu.core_type<tc>, window_params = [{transform_indices = @transform_0, window_bounds = array<i64: 1, 16, 16, 8>}, {transform_indices = @transform_1, window_bounds = array<i64: 1, 16, 16, 8>}, {transform_indices = @transform_2, window_bounds = array<i64: 1, 1, 8>}, {pipeline_mode = #tpu.pipeline_mode<synchronous>, transform_indices = @transform_3, window_bounds = array<i64: 1, 8>}, {pipeline_mode = #tpu.pipeline_mode<synchronous>, transform_indices = @transform_4, window_bounds = array<i64: 1, 8>}, {pipeline_mode = #tpu.pipeline_mode<synchronous>, transform_indices = @transform_5, window_bounds = array<i64: 8, 2>}, {pipeline_mode = #tpu.pipeline_mode<synchronous>, transform_indices = @transform_6, window_bounds = array<i64: 2, 8>}, {pipeline_mode = #tpu.pipeline_mode<synchronous>, transform_indices = @transform_7, window_bounds = array<i64: 9, 8, 8>}, {pipeline_mode = #tpu.pipeline_mode<synchronous>, transform_indices = @transform_8, window_bounds = array<i64: 1, 8>}, {pipeline_mode = #tpu.pipeline_mode<synchronous>, transform_indices = @transform_9, window_bounds = array<i64: 1, 8>}, {pipeline_mode = #tpu.pipeline_mode<synchronous>, transform_indices = @transform_10, window_bounds = array<i64: 1, 8>}, {pipeline_mode = #tpu.pipeline_mode<synchronous>, transform_indices = @transform_11, window_bounds = array<i64: 8, 2>}, {pipeline_mode = #tpu.pipeline_mode<synchronous>, transform_indices = @transform_12, window_bounds = array<i64: 2, 8>}, {pipeline_mode = #tpu.pipeline_mode<synchronous>, transform_indices = @transform_13, window_bounds = array<i64: 9, 8, 8>}, {pipeline_mode = #tpu.pipeline_mode<synchronous>, transform_indices = @transform_14, window_bounds = array<i64: 1, 8>}, {pipeline_mode = #tpu.pipeline_mode<synchronous>, transform_indices = @transform_15, window_bounds = array<i64: 8, 8>}, {pipeline_mode = #tpu.pipeline_mode<synchronous>, transform_indices = @transform_16, window_bounds = array<i64: 1, 8>}, {transform_indices = @transform_17, window_bounds = array<i64: 1, 16, 16, 8>}]} {
    %c0 = arith.constant 0 : index
    %c0_0 = arith.constant 0 : index
    %c0_1 = arith.constant 0 : index
    %c0_2 = arith.constant 0 : index
    %0 = vector.load %arg1[%c0, %c0_0, %c0_1, %c0_2] : memref<1x16x16x8xbf16, #tpu.memory_space<vmem>>, vector<1x16x16x8xbf16>
    %1 = arith.extf %0 : vector<1x16x16x8xbf16> to vector<1x16x16x8xf32>
    %2 = vector.shape_cast %1 : vector<1x16x16x8xf32> to vector<256x8xf32>
    %c0_3 = arith.constant 0 : index
    %c0_4 = arith.constant 0 : index
    %3 = vector.load %arg4[%c0_3, %c0_4] : memref<1x8xf32, #tpu.memory_space<vmem>>, vector<1x8xf32>
    %c0_5 = arith.constant 0 : index
    %c0_6 = arith.constant 0 : index
    %4 = vector.load %arg5[%c0_5, %c0_6] : memref<1x8xf32, #tpu.memory_space<vmem>>, vector<1x8xf32>
    %c0_7 = arith.constant 0 : index
    %c0_8 = arith.constant 0 : index
    %5 = vector.load %arg6[%c0_7, %c0_8] : memref<8x2xf32, #tpu.memory_space<vmem>>, vector<8x2xf32>
    %c0_9 = arith.constant 0 : index
    %c0_10 = arith.constant 0 : index
    %6 = vector.load %arg7[%c0_9, %c0_10] : memref<2x8xf32, #tpu.memory_space<vmem>>, vector<2x8xf32>
    %cst = arith.constant dense<0.000000e+00> : vector<8xf32>
    %7 = vector.multi_reduction <add>, %2, %cst [0] : vector<256x8xf32> to vector<8xf32>
    %8 = vector.shape_cast %7 : vector<8xf32> to vector<1x8xf32>
    %9 = arith.mulf %2, %2 : vector<256x8xf32>
    %cst_11 = arith.constant dense<0.000000e+00> : vector<8xf32>
    %10 = vector.multi_reduction <add>, %9, %cst_11 [0] : vector<256x8xf32> to vector<8xf32>
    %11 = vector.shape_cast %10 : vector<8xf32> to vector<1x8xf32>
    %cst_12 = arith.constant dense<0.000000e+00> : vector<1x2xf32>
    %12 = tpu.matmul %8, %5, %cst_12 {dimension_numbers = #tpu.dot_dimension_numbers<[1], [0], [0], [1], [0, 0, 1, 1], [], []>} : vector<1x8xf32>, vector<8x2xf32>, vector<1x2xf32> -> vector<1x2xf32>
    %cst_13 = arith.constant 1.024000e+03 : f32
    %13 = vector.broadcast %cst_13 : f32 to vector<1x2xf32>
    %14 = arith.divf %12, %13 : vector<1x2xf32>
    %cst_14 = arith.constant dense<0.000000e+00> : vector<1x2xf32>
    %15 = tpu.matmul %11, %5, %cst_14 {dimension_numbers = #tpu.dot_dimension_numbers<[1], [0], [0], [1], [0, 0, 1, 1], [], []>} : vector<1x8xf32>, vector<8x2xf32>, vector<1x2xf32> -> vector<1x2xf32>
    %cst_15 = arith.constant 1.024000e+03 : f32
    %16 = vector.broadcast %cst_15 : f32 to vector<1x2xf32>
    %17 = arith.divf %15, %16 : vector<1x2xf32>
    %18 = arith.mulf %14, %14 : vector<1x2xf32>
    %19 = arith.subf %17, %18 : vector<1x2xf32>
    %cst_16 = arith.constant 9.99999997E-7 : f32
    %20 = vector.broadcast %cst_16 : f32 to vector<1x2xf32>
    %21 = arith.addf %19, %20 : vector<1x2xf32>
    %22 = math.rsqrt %21 : vector<1x2xf32>
    %cst_17 = arith.constant dense<0.000000e+00> : vector<1x8xf32>
    %23 = tpu.matmul %14, %6, %cst_17 {dimension_numbers = #tpu.dot_dimension_numbers<[1], [0], [0], [1], [0, 0, 1, 1], [], []>} : vector<1x2xf32>, vector<2x8xf32>, vector<1x8xf32> -> vector<1x8xf32>
    %cst_18 = arith.constant dense<0.000000e+00> : vector<1x8xf32>
    %24 = tpu.matmul %22, %6, %cst_18 {dimension_numbers = #tpu.dot_dimension_numbers<[1], [0], [0], [1], [0, 0, 1, 1], [], []>} : vector<1x2xf32>, vector<2x8xf32>, vector<1x8xf32> -> vector<1x8xf32>
    %25 = vector.broadcast %23 : vector<1x8xf32> to vector<256x8xf32>
    %26 = arith.subf %2, %25 : vector<256x8xf32>
    %27 = arith.mulf %24, %3 : vector<1x8xf32>
    %28 = vector.broadcast %27 : vector<1x8xf32> to vector<256x8xf32>
    %29 = arith.mulf %26, %28 : vector<256x8xf32>
    %30 = vector.broadcast %4 : vector<1x8xf32> to vector<256x8xf32>
    %31 = arith.addf %29, %30 : vector<256x8xf32>
    %32 = arith.negf %31 : vector<256x8xf32>
    %33 = math.exp %32 : vector<256x8xf32>
    %cst_19 = arith.constant 1.000000e+00 : f32
    %34 = vector.broadcast %cst_19 : f32 to vector<256x8xf32>
    %35 = arith.addf %34, %33 : vector<256x8xf32>
    %36 = arith.divf %34, %35 : vector<256x8xf32>
    %37 = arith.mulf %31, %36 : vector<256x8xf32>
    %c0_20 = arith.constant 0 : index
    %c0_21 = arith.constant 0 : index
    %c0_22 = arith.constant 0 : index
    %38 = vector.load %arg8[%c0_20, %c0_21, %c0_22] : memref<9x8x8xbf16, #tpu.memory_space<vmem>>, vector<9x8x8xbf16>
    %c0_23 = arith.constant 0 : index
    %c0_24 = arith.constant 0 : index
    %39 = vector.load %arg9[%c0_23, %c0_24] : memref<1x8xf32, #tpu.memory_space<vmem>>, vector<1x8xf32>
    %c0_25 = arith.constant 0 : index
    %c0_26 = arith.constant 0 : index
    %c0_27 = arith.constant 0 : index
    %40 = vector.load %arg3[%c0_25, %c0_26, %c0_27] : memref<1x1x8xf32, #tpu.memory_space<vmem>>, vector<1x1x8xf32>
    %41 = vector.shape_cast %40 : vector<1x1x8xf32> to vector<1x8xf32>
    %42 = arith.addf %39, %41 : vector<1x8xf32>
    %43 = vector.shape_cast %37 : vector<256x8xf32> to vector<16x16x8xf32>
    %cst_28 = arith.constant 0.000000e+00 : f32
    %44 = vector.broadcast %cst_28 : f32 to vector<1x16x8xf32>
    %45 = tpu.concatenate %44, %43, %44 in 0 : vector<1x16x8xf32>, vector<16x16x8xf32>, vector<1x16x8xf32> -> vector<18x16x8xf32>
    %46 = tpu.iota {dimensions = array<i32: 0>} : vector<16x1xi32>
    %c1_i32 = arith.constant 1 : i32
    %47 = tpu.dynamic_rotate %45 by %c1_i32 dim 1 : vector<18x16x8xf32>, i32 -> vector<18x16x8xf32>
    %c15_i32 = arith.constant 15 : i32
    %48 = tpu.dynamic_rotate %45 by %c15_i32 dim 1 : vector<18x16x8xf32>, i32 -> vector<18x16x8xf32>
    %c1_i32_29 = arith.constant 1 : i32
    %49 = tpu.dynamic_rotate %46 by %c1_i32_29 dim 0 : vector<16x1xi32>, i32 -> vector<16x1xi32>
    %c15_i32_30 = arith.constant 15 : i32
    %50 = tpu.dynamic_rotate %46 by %c15_i32_30 dim 0 : vector<16x1xi32>, i32 -> vector<16x1xi32>
    %c-1_i32 = arith.constant -1 : i32
    %51 = vector.broadcast %c-1_i32 : i32 to vector<16x1xi32>
    %52 = arith.addi %46, %51 : vector<16x1xi32>
    %53 = arith.cmpi eq, %49, %52 : vector<16x1xi32>
    %54 = arith.cmpi eq, %50, %52 : vector<16x1xi32>
    %cst_31 = arith.constant 0.000000e+00 : f32
    %55 = vector.shape_cast %54 : vector<16x1xi1> to vector<1x16x1xi1>
    %56 = vector.broadcast %55 : vector<1x16x1xi1> to vector<18x16x8xi1>
    %57 = vector.broadcast %cst_31 : f32 to vector<18x16x8xf32>
    %58 = arith.select %56, %48, %57 : vector<18x16x8xi1>, vector<18x16x8xf32>
    %59 = vector.shape_cast %53 : vector<16x1xi1> to vector<1x16x1xi1>
    %60 = vector.broadcast %59 : vector<1x16x1xi1> to vector<18x16x8xi1>
    %61 = arith.select %60, %47, %58 : vector<18x16x8xi1>, vector<18x16x8xf32>
    %62 = arith.truncf %61 : vector<18x16x8xf32> to vector<18x16x8xbf16>
    %63 = arith.truncf %45 : vector<18x16x8xf32> to vector<18x16x8xbf16>
    %c1_i32_32 = arith.constant 1 : i32
    %64 = vector.broadcast %c1_i32_32 : i32 to vector<16x1xi32>
    %65 = arith.addi %46, %64 : vector<16x1xi32>
    %66 = arith.cmpi eq, %49, %65 : vector<16x1xi32>
    %67 = arith.cmpi eq, %50, %65 : vector<16x1xi32>
    %cst_33 = arith.constant 0.000000e+00 : f32
    %68 = vector.shape_cast %67 : vector<16x1xi1> to vector<1x16x1xi1>
    %69 = vector.broadcast %68 : vector<1x16x1xi1> to vector<18x16x8xi1>
    %70 = vector.broadcast %cst_33 : f32 to vector<18x16x8xf32>
    %71 = arith.select %69, %48, %70 : vector<18x16x8xi1>, vector<18x16x8xf32>
    %72 = vector.shape_cast %66 : vector<16x1xi1> to vector<1x16x1xi1>
    %73 = vector.broadcast %72 : vector<1x16x1xi1> to vector<18x16x8xi1>
    %74 = arith.select %73, %47, %71 : vector<18x16x8xi1>, vector<18x16x8xf32>
    %75 = arith.truncf %74 : vector<18x16x8xf32> to vector<18x16x8xbf16>
    %cst_34 = arith.constant 0.000000e+00 : f32
    %76 = vector.broadcast %cst_34 : f32 to vector<256x8xf32>
    %77 = vector.extract_strided_slice %62 {offsets = [0, 0, 0], sizes = [16, 16, 8], strides = [1, 1, 1]} : vector<18x16x8xbf16> to vector<16x16x8xbf16>
    %78 = vector.shape_cast %77 : vector<16x16x8xbf16> to vector<256x8xbf16>
    %79 = vector.extract_strided_slice %38 {offsets = [0, 0, 0], sizes = [1, 8, 8], strides = [1, 1, 1]} : vector<9x8x8xbf16> to vector<1x8x8xbf16>
    %80 = vector.shape_cast %79 : vector<1x8x8xbf16> to vector<8x8xbf16>
    %cst_35 = arith.constant dense<0.000000e+00> : vector<256x8xf32>
    %81 = tpu.matmul %78, %80, %cst_35 {dimension_numbers = #tpu.dot_dimension_numbers<[1], [0], [0], [1], [0, 0, 1, 1], [], []>} : vector<256x8xbf16>, vector<8x8xbf16>, vector<256x8xf32> -> vector<256x8xf32>
    %82 = arith.addf %76, %81 : vector<256x8xf32>
    %83 = vector.extract_strided_slice %63 {offsets = [0, 0, 0], sizes = [16, 16, 8], strides = [1, 1, 1]} : vector<18x16x8xbf16> to vector<16x16x8xbf16>
    %84 = vector.shape_cast %83 : vector<16x16x8xbf16> to vector<256x8xbf16>
    %85 = vector.extract_strided_slice %38 {offsets = [1, 0, 0], sizes = [1, 8, 8], strides = [1, 1, 1]} : vector<9x8x8xbf16> to vector<1x8x8xbf16>
    %86 = vector.shape_cast %85 : vector<1x8x8xbf16> to vector<8x8xbf16>
    %cst_36 = arith.constant dense<0.000000e+00> : vector<256x8xf32>
    %87 = tpu.matmul %84, %86, %cst_36 {dimension_numbers = #tpu.dot_dimension_numbers<[1], [0], [0], [1], [0, 0, 1, 1], [], []>} : vector<256x8xbf16>, vector<8x8xbf16>, vector<256x8xf32> -> vector<256x8xf32>
    %88 = arith.addf %82, %87 : vector<256x8xf32>
    %89 = vector.extract_strided_slice %75 {offsets = [0, 0, 0], sizes = [16, 16, 8], strides = [1, 1, 1]} : vector<18x16x8xbf16> to vector<16x16x8xbf16>
    %90 = vector.shape_cast %89 : vector<16x16x8xbf16> to vector<256x8xbf16>
    %91 = vector.extract_strided_slice %38 {offsets = [2, 0, 0], sizes = [1, 8, 8], strides = [1, 1, 1]} : vector<9x8x8xbf16> to vector<1x8x8xbf16>
    %92 = vector.shape_cast %91 : vector<1x8x8xbf16> to vector<8x8xbf16>
    %cst_37 = arith.constant dense<0.000000e+00> : vector<256x8xf32>
    %93 = tpu.matmul %90, %92, %cst_37 {dimension_numbers = #tpu.dot_dimension_numbers<[1], [0], [0], [1], [0, 0, 1, 1], [], []>} : vector<256x8xbf16>, vector<8x8xbf16>, vector<256x8xf32> -> vector<256x8xf32>
    %94 = arith.addf %88, %93 : vector<256x8xf32>
    %95 = vector.extract_strided_slice %62 {offsets = [1, 0, 0], sizes = [16, 16, 8], strides = [1, 1, 1]} : vector<18x16x8xbf16> to vector<16x16x8xbf16>
    %96 = vector.shape_cast %95 : vector<16x16x8xbf16> to vector<256x8xbf16>
    %97 = vector.extract_strided_slice %38 {offsets = [3, 0, 0], sizes = [1, 8, 8], strides = [1, 1, 1]} : vector<9x8x8xbf16> to vector<1x8x8xbf16>
    %98 = vector.shape_cast %97 : vector<1x8x8xbf16> to vector<8x8xbf16>
    %cst_38 = arith.constant dense<0.000000e+00> : vector<256x8xf32>
    %99 = tpu.matmul %96, %98, %cst_38 {dimension_numbers = #tpu.dot_dimension_numbers<[1], [0], [0], [1], [0, 0, 1, 1], [], []>} : vector<256x8xbf16>, vector<8x8xbf16>, vector<256x8xf32> -> vector<256x8xf32>
    %100 = arith.addf %94, %99 : vector<256x8xf32>
    %101 = vector.extract_strided_slice %63 {offsets = [1, 0, 0], sizes = [16, 16, 8], strides = [1, 1, 1]} : vector<18x16x8xbf16> to vector<16x16x8xbf16>
    %102 = vector.shape_cast %101 : vector<16x16x8xbf16> to vector<256x8xbf16>
    %103 = vector.extract_strided_slice %38 {offsets = [4, 0, 0], sizes = [1, 8, 8], strides = [1, 1, 1]} : vector<9x8x8xbf16> to vector<1x8x8xbf16>
    %104 = vector.shape_cast %103 : vector<1x8x8xbf16> to vector<8x8xbf16>
    %cst_39 = arith.constant dense<0.000000e+00> : vector<256x8xf32>
    %105 = tpu.matmul %102, %104, %cst_39 {dimension_numbers = #tpu.dot_dimension_numbers<[1], [0], [0], [1], [0, 0, 1, 1], [], []>} : vector<256x8xbf16>, vector<8x8xbf16>, vector<256x8xf32> -> vector<256x8xf32>
    %106 = arith.addf %100, %105 : vector<256x8xf32>
    %107 = vector.extract_strided_slice %75 {offsets = [1, 0, 0], sizes = [16, 16, 8], strides = [1, 1, 1]} : vector<18x16x8xbf16> to vector<16x16x8xbf16>
    %108 = vector.shape_cast %107 : vector<16x16x8xbf16> to vector<256x8xbf16>
    %109 = vector.extract_strided_slice %38 {offsets = [5, 0, 0], sizes = [1, 8, 8], strides = [1, 1, 1]} : vector<9x8x8xbf16> to vector<1x8x8xbf16>
    %110 = vector.shape_cast %109 : vector<1x8x8xbf16> to vector<8x8xbf16>
    %cst_40 = arith.constant dense<0.000000e+00> : vector<256x8xf32>
    %111 = tpu.matmul %108, %110, %cst_40 {dimension_numbers = #tpu.dot_dimension_numbers<[1], [0], [0], [1], [0, 0, 1, 1], [], []>} : vector<256x8xbf16>, vector<8x8xbf16>, vector<256x8xf32> -> vector<256x8xf32>
    %112 = arith.addf %106, %111 : vector<256x8xf32>
    %113 = vector.extract_strided_slice %62 {offsets = [2, 0, 0], sizes = [16, 16, 8], strides = [1, 1, 1]} : vector<18x16x8xbf16> to vector<16x16x8xbf16>
    %114 = vector.shape_cast %113 : vector<16x16x8xbf16> to vector<256x8xbf16>
    %115 = vector.extract_strided_slice %38 {offsets = [6, 0, 0], sizes = [1, 8, 8], strides = [1, 1, 1]} : vector<9x8x8xbf16> to vector<1x8x8xbf16>
    %116 = vector.shape_cast %115 : vector<1x8x8xbf16> to vector<8x8xbf16>
    %cst_41 = arith.constant dense<0.000000e+00> : vector<256x8xf32>
    %117 = tpu.matmul %114, %116, %cst_41 {dimension_numbers = #tpu.dot_dimension_numbers<[1], [0], [0], [1], [0, 0, 1, 1], [], []>} : vector<256x8xbf16>, vector<8x8xbf16>, vector<256x8xf32> -> vector<256x8xf32>
    %118 = arith.addf %112, %117 : vector<256x8xf32>
    %119 = vector.extract_strided_slice %63 {offsets = [2, 0, 0], sizes = [16, 16, 8], strides = [1, 1, 1]} : vector<18x16x8xbf16> to vector<16x16x8xbf16>
    %120 = vector.shape_cast %119 : vector<16x16x8xbf16> to vector<256x8xbf16>
    %121 = vector.extract_strided_slice %38 {offsets = [7, 0, 0], sizes = [1, 8, 8], strides = [1, 1, 1]} : vector<9x8x8xbf16> to vector<1x8x8xbf16>
    %122 = vector.shape_cast %121 : vector<1x8x8xbf16> to vector<8x8xbf16>
    %cst_42 = arith.constant dense<0.000000e+00> : vector<256x8xf32>
    %123 = tpu.matmul %120, %122, %cst_42 {dimension_numbers = #tpu.dot_dimension_numbers<[1], [0], [0], [1], [0, 0, 1, 1], [], []>} : vector<256x8xbf16>, vector<8x8xbf16>, vector<256x8xf32> -> vector<256x8xf32>
    %124 = arith.addf %118, %123 : vector<256x8xf32>
    %125 = vector.extract_strided_slice %75 {offsets = [2, 0, 0], sizes = [16, 16, 8], strides = [1, 1, 1]} : vector<18x16x8xbf16> to vector<16x16x8xbf16>
    %126 = vector.shape_cast %125 : vector<16x16x8xbf16> to vector<256x8xbf16>
    %127 = vector.extract_strided_slice %38 {offsets = [8, 0, 0], sizes = [1, 8, 8], strides = [1, 1, 1]} : vector<9x8x8xbf16> to vector<1x8x8xbf16>
    %128 = vector.shape_cast %127 : vector<1x8x8xbf16> to vector<8x8xbf16>
    %cst_43 = arith.constant dense<0.000000e+00> : vector<256x8xf32>
    %129 = tpu.matmul %126, %128, %cst_43 {dimension_numbers = #tpu.dot_dimension_numbers<[1], [0], [0], [1], [0, 0, 1, 1], [], []>} : vector<256x8xbf16>, vector<8x8xbf16>, vector<256x8xf32> -> vector<256x8xf32>
    %130 = arith.addf %124, %129 : vector<256x8xf32>
    %131 = vector.broadcast %42 : vector<1x8xf32> to vector<256x8xf32>
    %132 = arith.addf %130, %131 : vector<256x8xf32>
    %c0_44 = arith.constant 0 : index
    %c0_45 = arith.constant 0 : index
    %133 = vector.load %arg10[%c0_44, %c0_45] : memref<1x8xf32, #tpu.memory_space<vmem>>, vector<1x8xf32>
    %c0_46 = arith.constant 0 : index
    %c0_47 = arith.constant 0 : index
    %134 = vector.load %arg11[%c0_46, %c0_47] : memref<1x8xf32, #tpu.memory_space<vmem>>, vector<1x8xf32>
    %c0_48 = arith.constant 0 : index
    %c0_49 = arith.constant 0 : index
    %135 = vector.load %arg12[%c0_48, %c0_49] : memref<8x2xf32, #tpu.memory_space<vmem>>, vector<8x2xf32>
    %c0_50 = arith.constant 0 : index
    %c0_51 = arith.constant 0 : index
    %136 = vector.load %arg13[%c0_50, %c0_51] : memref<2x8xf32, #tpu.memory_space<vmem>>, vector<2x8xf32>
    %cst_52 = arith.constant dense<0.000000e+00> : vector<8xf32>
    %137 = vector.multi_reduction <add>, %132, %cst_52 [0] : vector<256x8xf32> to vector<8xf32>
    %138 = vector.shape_cast %137 : vector<8xf32> to vector<1x8xf32>
    %139 = arith.mulf %132, %132 : vector<256x8xf32>
    %cst_53 = arith.constant dense<0.000000e+00> : vector<8xf32>
    %140 = vector.multi_reduction <add>, %139, %cst_53 [0] : vector<256x8xf32> to vector<8xf32>
    %141 = vector.shape_cast %140 : vector<8xf32> to vector<1x8xf32>
    %cst_54 = arith.constant dense<0.000000e+00> : vector<1x2xf32>
    %142 = tpu.matmul %138, %135, %cst_54 {dimension_numbers = #tpu.dot_dimension_numbers<[1], [0], [0], [1], [0, 0, 1, 1], [], []>} : vector<1x8xf32>, vector<8x2xf32>, vector<1x2xf32> -> vector<1x2xf32>
    %cst_55 = arith.constant 1.024000e+03 : f32
    %143 = vector.broadcast %cst_55 : f32 to vector<1x2xf32>
    %144 = arith.divf %142, %143 : vector<1x2xf32>
    %cst_56 = arith.constant dense<0.000000e+00> : vector<1x2xf32>
    %145 = tpu.matmul %141, %135, %cst_56 {dimension_numbers = #tpu.dot_dimension_numbers<[1], [0], [0], [1], [0, 0, 1, 1], [], []>} : vector<1x8xf32>, vector<8x2xf32>, vector<1x2xf32> -> vector<1x2xf32>
    %cst_57 = arith.constant 1.024000e+03 : f32
    %146 = vector.broadcast %cst_57 : f32 to vector<1x2xf32>
    %147 = arith.divf %145, %146 : vector<1x2xf32>
    %148 = arith.mulf %144, %144 : vector<1x2xf32>
    %149 = arith.subf %147, %148 : vector<1x2xf32>
    %cst_58 = arith.constant 9.99999997E-7 : f32
    %150 = vector.broadcast %cst_58 : f32 to vector<1x2xf32>
    %151 = arith.addf %149, %150 : vector<1x2xf32>
    %152 = math.rsqrt %151 : vector<1x2xf32>
    %cst_59 = arith.constant dense<0.000000e+00> : vector<1x8xf32>
    %153 = tpu.matmul %144, %136, %cst_59 {dimension_numbers = #tpu.dot_dimension_numbers<[1], [0], [0], [1], [0, 0, 1, 1], [], []>} : vector<1x2xf32>, vector<2x8xf32>, vector<1x8xf32> -> vector<1x8xf32>
    %cst_60 = arith.constant dense<0.000000e+00> : vector<1x8xf32>
    %154 = tpu.matmul %152, %136, %cst_60 {dimension_numbers = #tpu.dot_dimension_numbers<[1], [0], [0], [1], [0, 0, 1, 1], [], []>} : vector<1x2xf32>, vector<2x8xf32>, vector<1x8xf32> -> vector<1x8xf32>
    %155 = vector.broadcast %153 : vector<1x8xf32> to vector<256x8xf32>
    %156 = arith.subf %132, %155 : vector<256x8xf32>
    %157 = arith.mulf %154, %133 : vector<1x8xf32>
    %158 = vector.broadcast %157 : vector<1x8xf32> to vector<256x8xf32>
    %159 = arith.mulf %156, %158 : vector<256x8xf32>
    %160 = vector.broadcast %134 : vector<1x8xf32> to vector<256x8xf32>
    %161 = arith.addf %159, %160 : vector<256x8xf32>
    %162 = arith.negf %161 : vector<256x8xf32>
    %163 = math.exp %162 : vector<256x8xf32>
    %cst_61 = arith.constant 1.000000e+00 : f32
    %164 = vector.broadcast %cst_61 : f32 to vector<256x8xf32>
    %165 = arith.addf %164, %163 : vector<256x8xf32>
    %166 = arith.divf %164, %165 : vector<256x8xf32>
    %167 = arith.mulf %161, %166 : vector<256x8xf32>
    %c0_62 = arith.constant 0 : index
    %c0_63 = arith.constant 0 : index
    %c0_64 = arith.constant 0 : index
    %168 = vector.load %arg14[%c0_62, %c0_63, %c0_64] : memref<9x8x8xbf16, #tpu.memory_space<vmem>>, vector<9x8x8xbf16>
    %c0_65 = arith.constant 0 : index
    %c0_66 = arith.constant 0 : index
    %169 = vector.load %arg15[%c0_65, %c0_66] : memref<1x8xf32, #tpu.memory_space<vmem>>, vector<1x8xf32>
    %170 = vector.shape_cast %167 : vector<256x8xf32> to vector<16x16x8xf32>
    %cst_67 = arith.constant 0.000000e+00 : f32
    %171 = vector.broadcast %cst_67 : f32 to vector<1x16x8xf32>
    %172 = tpu.concatenate %171, %170, %171 in 0 : vector<1x16x8xf32>, vector<16x16x8xf32>, vector<1x16x8xf32> -> vector<18x16x8xf32>
    %173 = tpu.iota {dimensions = array<i32: 0>} : vector<16x1xi32>
    %c1_i32_68 = arith.constant 1 : i32
    %174 = tpu.dynamic_rotate %172 by %c1_i32_68 dim 1 : vector<18x16x8xf32>, i32 -> vector<18x16x8xf32>
    %c15_i32_69 = arith.constant 15 : i32
    %175 = tpu.dynamic_rotate %172 by %c15_i32_69 dim 1 : vector<18x16x8xf32>, i32 -> vector<18x16x8xf32>
    %c1_i32_70 = arith.constant 1 : i32
    %176 = tpu.dynamic_rotate %173 by %c1_i32_70 dim 0 : vector<16x1xi32>, i32 -> vector<16x1xi32>
    %c15_i32_71 = arith.constant 15 : i32
    %177 = tpu.dynamic_rotate %173 by %c15_i32_71 dim 0 : vector<16x1xi32>, i32 -> vector<16x1xi32>
    %c-1_i32_72 = arith.constant -1 : i32
    %178 = vector.broadcast %c-1_i32_72 : i32 to vector<16x1xi32>
    %179 = arith.addi %173, %178 : vector<16x1xi32>
    %180 = arith.cmpi eq, %176, %179 : vector<16x1xi32>
    %181 = arith.cmpi eq, %177, %179 : vector<16x1xi32>
    %cst_73 = arith.constant 0.000000e+00 : f32
    %182 = vector.shape_cast %181 : vector<16x1xi1> to vector<1x16x1xi1>
    %183 = vector.broadcast %182 : vector<1x16x1xi1> to vector<18x16x8xi1>
    %184 = vector.broadcast %cst_73 : f32 to vector<18x16x8xf32>
    %185 = arith.select %183, %175, %184 : vector<18x16x8xi1>, vector<18x16x8xf32>
    %186 = vector.shape_cast %180 : vector<16x1xi1> to vector<1x16x1xi1>
    %187 = vector.broadcast %186 : vector<1x16x1xi1> to vector<18x16x8xi1>
    %188 = arith.select %187, %174, %185 : vector<18x16x8xi1>, vector<18x16x8xf32>
    %189 = arith.truncf %188 : vector<18x16x8xf32> to vector<18x16x8xbf16>
    %190 = arith.truncf %172 : vector<18x16x8xf32> to vector<18x16x8xbf16>
    %c1_i32_74 = arith.constant 1 : i32
    %191 = vector.broadcast %c1_i32_74 : i32 to vector<16x1xi32>
    %192 = arith.addi %173, %191 : vector<16x1xi32>
    %193 = arith.cmpi eq, %176, %192 : vector<16x1xi32>
    %194 = arith.cmpi eq, %177, %192 : vector<16x1xi32>
    %cst_75 = arith.constant 0.000000e+00 : f32
    %195 = vector.shape_cast %194 : vector<16x1xi1> to vector<1x16x1xi1>
    %196 = vector.broadcast %195 : vector<1x16x1xi1> to vector<18x16x8xi1>
    %197 = vector.broadcast %cst_75 : f32 to vector<18x16x8xf32>
    %198 = arith.select %196, %175, %197 : vector<18x16x8xi1>, vector<18x16x8xf32>
    %199 = vector.shape_cast %193 : vector<16x1xi1> to vector<1x16x1xi1>
    %200 = vector.broadcast %199 : vector<1x16x1xi1> to vector<18x16x8xi1>
    %201 = arith.select %200, %174, %198 : vector<18x16x8xi1>, vector<18x16x8xf32>
    %202 = arith.truncf %201 : vector<18x16x8xf32> to vector<18x16x8xbf16>
    %cst_76 = arith.constant 0.000000e+00 : f32
    %203 = vector.broadcast %cst_76 : f32 to vector<256x8xf32>
    %204 = vector.extract_strided_slice %189 {offsets = [0, 0, 0], sizes = [16, 16, 8], strides = [1, 1, 1]} : vector<18x16x8xbf16> to vector<16x16x8xbf16>
    %205 = vector.shape_cast %204 : vector<16x16x8xbf16> to vector<256x8xbf16>
    %206 = vector.extract_strided_slice %168 {offsets = [0, 0, 0], sizes = [1, 8, 8], strides = [1, 1, 1]} : vector<9x8x8xbf16> to vector<1x8x8xbf16>
    %207 = vector.shape_cast %206 : vector<1x8x8xbf16> to vector<8x8xbf16>
    %cst_77 = arith.constant dense<0.000000e+00> : vector<256x8xf32>
    %208 = tpu.matmul %205, %207, %cst_77 {dimension_numbers = #tpu.dot_dimension_numbers<[1], [0], [0], [1], [0, 0, 1, 1], [], []>} : vector<256x8xbf16>, vector<8x8xbf16>, vector<256x8xf32> -> vector<256x8xf32>
    %209 = arith.addf %203, %208 : vector<256x8xf32>
    %210 = vector.extract_strided_slice %190 {offsets = [0, 0, 0], sizes = [16, 16, 8], strides = [1, 1, 1]} : vector<18x16x8xbf16> to vector<16x16x8xbf16>
    %211 = vector.shape_cast %210 : vector<16x16x8xbf16> to vector<256x8xbf16>
    %212 = vector.extract_strided_slice %168 {offsets = [1, 0, 0], sizes = [1, 8, 8], strides = [1, 1, 1]} : vector<9x8x8xbf16> to vector<1x8x8xbf16>
    %213 = vector.shape_cast %212 : vector<1x8x8xbf16> to vector<8x8xbf16>
    %cst_78 = arith.constant dense<0.000000e+00> : vector<256x8xf32>
    %214 = tpu.matmul %211, %213, %cst_78 {dimension_numbers = #tpu.dot_dimension_numbers<[1], [0], [0], [1], [0, 0, 1, 1], [], []>} : vector<256x8xbf16>, vector<8x8xbf16>, vector<256x8xf32> -> vector<256x8xf32>
    %215 = arith.addf %209, %214 : vector<256x8xf32>
    %216 = vector.extract_strided_slice %202 {offsets = [0, 0, 0], sizes = [16, 16, 8], strides = [1, 1, 1]} : vector<18x16x8xbf16> to vector<16x16x8xbf16>
    %217 = vector.shape_cast %216 : vector<16x16x8xbf16> to vector<256x8xbf16>
    %218 = vector.extract_strided_slice %168 {offsets = [2, 0, 0], sizes = [1, 8, 8], strides = [1, 1, 1]} : vector<9x8x8xbf16> to vector<1x8x8xbf16>
    %219 = vector.shape_cast %218 : vector<1x8x8xbf16> to vector<8x8xbf16>
    %cst_79 = arith.constant dense<0.000000e+00> : vector<256x8xf32>
    %220 = tpu.matmul %217, %219, %cst_79 {dimension_numbers = #tpu.dot_dimension_numbers<[1], [0], [0], [1], [0, 0, 1, 1], [], []>} : vector<256x8xbf16>, vector<8x8xbf16>, vector<256x8xf32> -> vector<256x8xf32>
    %221 = arith.addf %215, %220 : vector<256x8xf32>
    %222 = vector.extract_strided_slice %189 {offsets = [1, 0, 0], sizes = [16, 16, 8], strides = [1, 1, 1]} : vector<18x16x8xbf16> to vector<16x16x8xbf16>
    %223 = vector.shape_cast %222 : vector<16x16x8xbf16> to vector<256x8xbf16>
    %224 = vector.extract_strided_slice %168 {offsets = [3, 0, 0], sizes = [1, 8, 8], strides = [1, 1, 1]} : vector<9x8x8xbf16> to vector<1x8x8xbf16>
    %225 = vector.shape_cast %224 : vector<1x8x8xbf16> to vector<8x8xbf16>
    %cst_80 = arith.constant dense<0.000000e+00> : vector<256x8xf32>
    %226 = tpu.matmul %223, %225, %cst_80 {dimension_numbers = #tpu.dot_dimension_numbers<[1], [0], [0], [1], [0, 0, 1, 1], [], []>} : vector<256x8xbf16>, vector<8x8xbf16>, vector<256x8xf32> -> vector<256x8xf32>
    %227 = arith.addf %221, %226 : vector<256x8xf32>
    %228 = vector.extract_strided_slice %190 {offsets = [1, 0, 0], sizes = [16, 16, 8], strides = [1, 1, 1]} : vector<18x16x8xbf16> to vector<16x16x8xbf16>
    %229 = vector.shape_cast %228 : vector<16x16x8xbf16> to vector<256x8xbf16>
    %230 = vector.extract_strided_slice %168 {offsets = [4, 0, 0], sizes = [1, 8, 8], strides = [1, 1, 1]} : vector<9x8x8xbf16> to vector<1x8x8xbf16>
    %231 = vector.shape_cast %230 : vector<1x8x8xbf16> to vector<8x8xbf16>
    %cst_81 = arith.constant dense<0.000000e+00> : vector<256x8xf32>
    %232 = tpu.matmul %229, %231, %cst_81 {dimension_numbers = #tpu.dot_dimension_numbers<[1], [0], [0], [1], [0, 0, 1, 1], [], []>} : vector<256x8xbf16>, vector<8x8xbf16>, vector<256x8xf32> -> vector<256x8xf32>
    %233 = arith.addf %227, %232 : vector<256x8xf32>
    %234 = vector.extract_strided_slice %202 {offsets = [1, 0, 0], sizes = [16, 16, 8], strides = [1, 1, 1]} : vector<18x16x8xbf16> to vector<16x16x8xbf16>
    %235 = vector.shape_cast %234 : vector<16x16x8xbf16> to vector<256x8xbf16>
    %236 = vector.extract_strided_slice %168 {offsets = [5, 0, 0], sizes = [1, 8, 8], strides = [1, 1, 1]} : vector<9x8x8xbf16> to vector<1x8x8xbf16>
    %237 = vector.shape_cast %236 : vector<1x8x8xbf16> to vector<8x8xbf16>
    %cst_82 = arith.constant dense<0.000000e+00> : vector<256x8xf32>
    %238 = tpu.matmul %235, %237, %cst_82 {dimension_numbers = #tpu.dot_dimension_numbers<[1], [0], [0], [1], [0, 0, 1, 1], [], []>} : vector<256x8xbf16>, vector<8x8xbf16>, vector<256x8xf32> -> vector<256x8xf32>
    %239 = arith.addf %233, %238 : vector<256x8xf32>
    %240 = vector.extract_strided_slice %189 {offsets = [2, 0, 0], sizes = [16, 16, 8], strides = [1, 1, 1]} : vector<18x16x8xbf16> to vector<16x16x8xbf16>
    %241 = vector.shape_cast %240 : vector<16x16x8xbf16> to vector<256x8xbf16>
    %242 = vector.extract_strided_slice %168 {offsets = [6, 0, 0], sizes = [1, 8, 8], strides = [1, 1, 1]} : vector<9x8x8xbf16> to vector<1x8x8xbf16>
    %243 = vector.shape_cast %242 : vector<1x8x8xbf16> to vector<8x8xbf16>
    %cst_83 = arith.constant dense<0.000000e+00> : vector<256x8xf32>
    %244 = tpu.matmul %241, %243, %cst_83 {dimension_numbers = #tpu.dot_dimension_numbers<[1], [0], [0], [1], [0, 0, 1, 1], [], []>} : vector<256x8xbf16>, vector<8x8xbf16>, vector<256x8xf32> -> vector<256x8xf32>
    %245 = arith.addf %239, %244 : vector<256x8xf32>
    %246 = vector.extract_strided_slice %190 {offsets = [2, 0, 0], sizes = [16, 16, 8], strides = [1, 1, 1]} : vector<18x16x8xbf16> to vector<16x16x8xbf16>
    %247 = vector.shape_cast %246 : vector<16x16x8xbf16> to vector<256x8xbf16>
    %248 = vector.extract_strided_slice %168 {offsets = [7, 0, 0], sizes = [1, 8, 8], strides = [1, 1, 1]} : vector<9x8x8xbf16> to vector<1x8x8xbf16>
    %249 = vector.shape_cast %248 : vector<1x8x8xbf16> to vector<8x8xbf16>
    %cst_84 = arith.constant dense<0.000000e+00> : vector<256x8xf32>
    %250 = tpu.matmul %247, %249, %cst_84 {dimension_numbers = #tpu.dot_dimension_numbers<[1], [0], [0], [1], [0, 0, 1, 1], [], []>} : vector<256x8xbf16>, vector<8x8xbf16>, vector<256x8xf32> -> vector<256x8xf32>
    %251 = arith.addf %245, %250 : vector<256x8xf32>
    %252 = vector.extract_strided_slice %202 {offsets = [2, 0, 0], sizes = [16, 16, 8], strides = [1, 1, 1]} : vector<18x16x8xbf16> to vector<16x16x8xbf16>
    %253 = vector.shape_cast %252 : vector<16x16x8xbf16> to vector<256x8xbf16>
    %254 = vector.extract_strided_slice %168 {offsets = [8, 0, 0], sizes = [1, 8, 8], strides = [1, 1, 1]} : vector<9x8x8xbf16> to vector<1x8x8xbf16>
    %255 = vector.shape_cast %254 : vector<1x8x8xbf16> to vector<8x8xbf16>
    %cst_85 = arith.constant dense<0.000000e+00> : vector<256x8xf32>
    %256 = tpu.matmul %253, %255, %cst_85 {dimension_numbers = #tpu.dot_dimension_numbers<[1], [0], [0], [1], [0, 0, 1, 1], [], []>} : vector<256x8xbf16>, vector<8x8xbf16>, vector<256x8xf32> -> vector<256x8xf32>
    %257 = arith.addf %251, %256 : vector<256x8xf32>
    %258 = vector.broadcast %169 : vector<1x8xf32> to vector<256x8xf32>
    %259 = arith.addf %257, %258 : vector<256x8xf32>
    %c0_86 = arith.constant 0 : index
    %c0_87 = arith.constant 0 : index
    %c0_88 = arith.constant 0 : index
    %c0_89 = arith.constant 0 : index
    %260 = vector.load %arg2[%c0_86, %c0_87, %c0_88, %c0_89] : memref<1x16x16x8xbf16, #tpu.memory_space<vmem>>, vector<1x16x16x8xbf16>
    %261 = vector.shape_cast %260 : vector<1x16x16x8xbf16> to vector<256x8xbf16>
    %c0_90 = arith.constant 0 : index
    %c0_91 = arith.constant 0 : index
    %262 = vector.load %arg16[%c0_90, %c0_91] : memref<8x8xbf16, #tpu.memory_space<vmem>>, vector<8x8xbf16>
    %cst_92 = arith.constant dense<0.000000e+00> : vector<256x8xf32>
    %263 = tpu.matmul %261, %262, %cst_92 {dimension_numbers = #tpu.dot_dimension_numbers<[1], [0], [0], [1], [0, 0, 1, 1], [], []>} : vector<256x8xbf16>, vector<8x8xbf16>, vector<256x8xf32> -> vector<256x8xf32>
    %c0_93 = arith.constant 0 : index
    %c0_94 = arith.constant 0 : index
    %264 = vector.load %arg17[%c0_93, %c0_94] : memref<1x8xf32, #tpu.memory_space<vmem>>, vector<1x8xf32>
    %265 = vector.broadcast %264 : vector<1x8xf32> to vector<256x8xf32>
    %266 = arith.addf %263, %265 : vector<256x8xf32>
    %c0_95 = arith.constant 0 : index
    %c0_96 = arith.constant 0 : index
    %c0_97 = arith.constant 0 : index
    %c0_98 = arith.constant 0 : index
    %267 = vector.load %arg1[%c0_95, %c0_96, %c0_97, %c0_98] : memref<1x16x16x8xbf16, #tpu.memory_space<vmem>>, vector<1x16x16x8xbf16>
    %268 = arith.extf %267 : vector<1x16x16x8xbf16> to vector<1x16x16x8xf32>
    %269 = vector.shape_cast %268 : vector<1x16x16x8xf32> to vector<256x8xf32>
    %270 = arith.addf %266, %269 : vector<256x8xf32>
    %271 = arith.addf %270, %259 : vector<256x8xf32>
    %cst_99 = arith.constant 0.707106769 : f32
    %272 = vector.broadcast %cst_99 : f32 to vector<256x8xf32>
    %273 = arith.mulf %271, %272 : vector<256x8xf32>
    %274 = vector.shape_cast %273 : vector<256x8xf32> to vector<1x16x16x8xf32>
    %c0_100 = arith.constant 0 : index
    %c0_101 = arith.constant 0 : index
    %c0_102 = arith.constant 0 : index
    %c0_103 = arith.constant 0 : index
    %275 = vector.load %arg18[%c0_100, %c0_101, %c0_102, %c0_103] : memref<1x16x16x8xf32, #tpu.memory_space<vmem>>, vector<1x16x16x8xf32>
    tpu.vector_store %arg18[%c0_100, %c0_101, %c0_102, %c0_103], %274 {strides = array<i32>} : memref<1x16x16x8xf32, #tpu.memory_space<vmem>>, vector<1x16x16x8xf32>,
    return
  }
  func.func @transform_0(%arg0: i32) -> (i32, i32, i32, i32) {
    %c0_i32 = arith.constant 0 : i32
    %c0_i32_0 = arith.constant 0 : i32
    %c0_i32_1 = arith.constant 0 : i32
    %c0_i32_2 = arith.constant 0 : i32
    return %arg0, %c0_i32, %c0_i32_0, %c0_i32_1 : i32, i32, i32, i32
  }
  func.func @transform_1(%arg0: i32) -> (i32, i32, i32, i32) {
    %c0_i32 = arith.constant 0 : i32
    %c0_i32_0 = arith.constant 0 : i32
    %c0_i32_1 = arith.constant 0 : i32
    %c0_i32_2 = arith.constant 0 : i32
    return %arg0, %c0_i32, %c0_i32_0, %c0_i32_1 : i32, i32, i32, i32
  }
  func.func @transform_2(%arg0: i32) -> (i32, i32, i32) {
    %c0_i32 = arith.constant 0 : i32
    %c0_i32_0 = arith.constant 0 : i32
    %c0_i32_1 = arith.constant 0 : i32
    return %arg0, %c0_i32, %c0_i32_0 : i32, i32, i32
  }
  func.func @transform_3(%arg0: i32) -> (i32, i32) {
    %c0_i32 = arith.constant 0 : i32
    %c0_i32_0 = arith.constant 0 : i32
    %c0_i32_1 = arith.constant 0 : i32
    return %c0_i32, %c0_i32_0 : i32, i32
  }
  func.func @transform_4(%arg0: i32) -> (i32, i32) {
    %c0_i32 = arith.constant 0 : i32
    %c0_i32_0 = arith.constant 0 : i32
    %c0_i32_1 = arith.constant 0 : i32
    return %c0_i32, %c0_i32_0 : i32, i32
  }
  func.func @transform_5(%arg0: i32) -> (i32, i32) {
    %c0_i32 = arith.constant 0 : i32
    %c0_i32_0 = arith.constant 0 : i32
    %c0_i32_1 = arith.constant 0 : i32
    return %c0_i32, %c0_i32_0 : i32, i32
  }
  func.func @transform_6(%arg0: i32) -> (i32, i32) {
    %c0_i32 = arith.constant 0 : i32
    %c0_i32_0 = arith.constant 0 : i32
    %c0_i32_1 = arith.constant 0 : i32
    return %c0_i32, %c0_i32_0 : i32, i32
  }
  func.func @transform_7(%arg0: i32) -> (i32, i32, i32) {
    %c0_i32 = arith.constant 0 : i32
    %c0_i32_0 = arith.constant 0 : i32
    %c0_i32_1 = arith.constant 0 : i32
    %c0_i32_2 = arith.constant 0 : i32
    return %c0_i32, %c0_i32_0, %c0_i32_1 : i32, i32, i32
  }
  func.func @transform_8(%arg0: i32) -> (i32, i32) {
    %c0_i32 = arith.constant 0 : i32
    %c0_i32_0 = arith.constant 0 : i32
    %c0_i32_1 = arith.constant 0 : i32
    return %c0_i32, %c0_i32_0 : i32, i32
  }
  func.func @transform_9(%arg0: i32) -> (i32, i32) {
    %c0_i32 = arith.constant 0 : i32
    %c0_i32_0 = arith.constant 0 : i32
    %c0_i32_1 = arith.constant 0 : i32
    return %c0_i32, %c0_i32_0 : i32, i32
  }
  func.func @transform_10(%arg0: i32) -> (i32, i32) {
    %c0_i32 = arith.constant 0 : i32
    %c0_i32_0 = arith.constant 0 : i32
    %c0_i32_1 = arith.constant 0 : i32
    return %c0_i32, %c0_i32_0 : i32, i32
  }
  func.func @transform_11(%arg0: i32) -> (i32, i32) {
    %c0_i32 = arith.constant 0 : i32
    %c0_i32_0 = arith.constant 0 : i32
    %c0_i32_1 = arith.constant 0 : i32
    return %c0_i32, %c0_i32_0 : i32, i32
  }
  func.func @transform_12(%arg0: i32) -> (i32, i32) {
    %c0_i32 = arith.constant 0 : i32
    %c0_i32_0 = arith.constant 0 : i32
    %c0_i32_1 = arith.constant 0 : i32
    return %c0_i32, %c0_i32_0 : i32, i32
  }
  func.func @transform_13(%arg0: i32) -> (i32, i32, i32) {
    %c0_i32 = arith.constant 0 : i32
    %c0_i32_0 = arith.constant 0 : i32
    %c0_i32_1 = arith.constant 0 : i32
    %c0_i32_2 = arith.constant 0 : i32
    return %c0_i32, %c0_i32_0, %c0_i32_1 : i32, i32, i32
  }
  func.func @transform_14(%arg0: i32) -> (i32, i32) {
    %c0_i32 = arith.constant 0 : i32
    %c0_i32_0 = arith.constant 0 : i32
    %c0_i32_1 = arith.constant 0 : i32
    return %c0_i32, %c0_i32_0 : i32, i32
  }
  func.func @transform_15(%arg0: i32) -> (i32, i32) {
    %c0_i32 = arith.constant 0 : i32
    %c0_i32_0 = arith.constant 0 : i32
    %c0_i32_1 = arith.constant 0 : i32
    return %c0_i32, %c0_i32_0 : i32, i32
  }
  func.func @transform_16(%arg0: i32) -> (i32, i32) {
    %c0_i32 = arith.constant 0 : i32
    %c0_i32_0 = arith.constant 0 : i32
    %c0_i32_1 = arith.constant 0 : i32
    return %c0_i32, %c0_i32_0 : i32, i32
  }
  func.func @transform_17(%arg0: i32) -> (i32, i32, i32, i32) {
    %c0_i32 = arith.constant 0 : i32
    %c0_i32_0 = arith.constant 0 : i32
    %c0_i32_1 = arith.constant 0 : i32
    %c0_i32_2 = arith.constant 0 : i32
    return %arg0, %c0_i32, %c0_i32_0, %c0_i32_1 : i32, i32, i32, i32
  }
}

</mosaic_0001>

<bundles_post_ra>
// kernel: resnet_block_biggan_forward.1
= control target key start
LH: loop header
LB: loop body
LE: loop exit
PB: predicated region body
PF: predicated region fallthrough
CT: control target
= control target key end

     0   :  { %s9211_s24 = smov 0   ;;  %s13985_s0 = inlined_call_operand.vmem [shape: bf16[2,16,16,8], index: 0, kind: input, shape index: {}]   ;;  %s13986_s1 = inlined_call_operand.vmem [shape: bf16[2,16,16,8], index: 1, kind: input, shape index: {}]   ;;  %s13987_s2 = inlined_call_operand.vmem [shape: f32[2,1,8], index: 2, kind: input, shape index: {}]   ;;  %s13988_s3 = inlined_call_operand.vmem [shape: f32[1,8], index: 3, kind: input, shape index: {}]   ;;  %s13989_s4 = inlined_call_operand.vmem [shape: f32[1,8], index: 4, kind: input, shape index: {}]   ;;  %s13990_s5 = inlined_call_operand.vmem [shape: f32[8,2], index: 5, kind: input, shape index: {}, may-alias: {5,11}]   ;;  %s13991_s6 = inlined_call_operand.vmem [shape: f32[2,8], index: 6, kind: input, shape index: {}, may-alias: {6,12}]   ;;  %s13992_s7 = inlined_call_operand.vmem [shape: bf16[9,8,8], index: 7, kind: input, shape index: {}]   ;;  %s13993_s8 = inlined_call_operand.vmem [shape: f32[1,8], index: 8, kind: input, shape index: {}]   ;;  %s13994_s9 = inlined_call_operand.vmem [shape: f32[1,8], index: 9, kind: input, shape index: {}]   ;;  %s13995_s10 = inlined_call_operand.vmem [shape: f32[1,8], index: 10, kind: input, shape index: {}]   ;;  %s13996_s11 = inlined_call_operand.vmem [shape: f32[8,2], index: 11, kind: input, shape index: {}, may-alias: {5,11}]   ;;  %s13997_s12 = inlined_call_operand.vmem [shape: f32[2,8], index: 12, kind: input, shape index: {}, may-alias: {6,12}]   ;;  %s13998_s13 = inlined_call_operand.vmem [shape: bf16[9,8,8], index: 13, kind: input, shape index: {}]   ;;  %s13999_s14 = inlined_call_operand.vmem [shape: f32[1,8], index: 14, kind: input, shape index: {}]   ;;  %s14000_s15 = inlined_call_operand.vmem [shape: bf16[8,8], index: 15, kind: input, shape index: {}]   ;;  %s14001_s16 = inlined_call_operand.vmem [shape: f32[1,8], index: 16, kind: input, shape index: {}]   ;;  %s14002_s17 = inlined_call_operand.vmem [shape: f32[2,16,16,8], index: 17, kind: output, shape index: {}]  }
   0x1   :  { %14184 = sst [smem:[#allocation88_spill]] %s13985_s0 }
   0x2   :  { %14185 = sst [smem:[#allocation89_spill]] %s13986_s1 }
   0x3 LB: > { %s7288_s25 = sadd.s32 4294967295, %s9115_s24   ;;  %p7292_p0 = scmp.ge.s32.totalorder %s9115_s24, 1  ;;  %s9115_s24 = sphi %s9211_s24, %s27_s24  }
   0x4   : > { %p505_p1 = scmp.lt.s32.totalorder %s9115_s24, 3 }
   0x6   : > { %p506_p2 = pnand %p7292_p0, %p505_p1 }
   0x8   : > { %509 = sbr.rel (%p506_p2) target bundleno = 2102 (0x836), region = 88 }
   0xd   : > { %v650_v0 = vld [vmem:[%s13990_s5] sm:$0xff]  ;;  %p565_p3 = scmp.lt.s32.totalorder %s7288_s25, 1  ;;  %v14003_v1 = vmov 0.0   ;;  %vm9118_vm0 = vmmov 0   ;;  %s14186_s30 = sld [smem:[#allocation88_spill]]  ;;  %vm652_vm1 = vcmask 64512  }
   0xe   : > { %8110 = vmatprep.subr.mxu0 %v14003_v1  ;;  %8112 = vmatprep.mubr.msk.f32.mxu0 %vm9118_vm0, %v14003_v1  ;;  %s14187_s20 = sld [smem:[#allocation89_spill]]  ;;  %vm980_vm2 = vcmask 1041408   ;;  %vm976_vm13 = vcmask 15360   ;;  %vm1902_vm14 = vcmask 1043456  }
   0xf   : > { %8111 = vmatpush3.msra.mxu0 %v650_v0  ;;  %s14655_s25 = smov (!%p565_p3, %s7288_s25), 1  ;;  %8115 = vmatprep.subr.mxu1 %v14003_v1 }
  0x10   : > { %8116 = vmatpush3.msra.mxu1 %v650_v0  ;;  %8117 = vmatprep.mubr.msk.f32.mxu1 %vm9118_vm0, %v14003_v1  ;;  %s7689_s28 = sshll.u32 %s14655_s25, 7  ;;  %s7691_s26 = sshll.u32 %s14655_s25, 8 }
  0x11   : > { %8120 = vmatprep.subr.mxu0 %v14003_v1  ;;  %8125 = vmatprep.subr.mxu1 %v14003_v1 }
  0x13   : > { %s9236_s18 = scalar_lea.vmem %s14186_s30, %s7689_s28 }
  0x14   : > { %v7693_v2 = vld [vmem:[%s9236_s18] sm:$0xff]   ;;  %v7756_v3 = vld [vmem:[%s9236_s18 + $0x8] sm:$0xff]   ;;  %s9243_s21 = scalar_lea.vmem %s14187_s20, %s7689_s28  ;;  %v7757_v7 = vld [vmem:[%s9236_s18 + $0x10] sm:$0xff]   ;;  %s577_s28 = scalar_lea.vmem %s13987_s2, %s14655_s25 }
  0x15   : > { %v9245_v4 = vunpack.c.l.bf16 %v7693_v2  ;;  %v9247_v5 = vunpack.c.h.bf16 %v7693_v2  ;;  %v9249_v6 = vunpack.c.l.bf16 %v7756_v3  ;;  %v9252_v8 = vunpack.c.h.bf16 %v7756_v3  ;;  %v7758_v13 = vld [vmem:[%s9236_s18 + $0x18] sm:$0xff]   ;;  %v7759_v14 = vld [vmem:[%s9236_s18 + $0x20] sm:$0xff]   ;;  %v7760_v26 = vld [vmem:[%s9236_s18 + $0x28] sm:$0xff]  }
  0x16   : > { %v9254_v9 = vunpack.c.l.bf16 %v7757_v7  ;;  %v9264_v16 = vunpack.c.h.bf16 %v7757_v7  ;;  %v9268_v19 = vunpack.c.l.bf16 %v7758_v13  ;;  %v9270_v20 = vunpack.c.h.bf16 %v7758_v13  ;;  %v7761_v35 = vld [vmem:[%s9236_s18 + $0x30] sm:$0xff]   ;;  %v7762_v46 = vld [vmem:[%s9236_s18 + $0x38] sm:$0xff]   ;;  %v7763_v59 = vld [vmem:[%s9236_s18 + $0x40] sm:$0xff]  }
  0x17   : > { %14188 = vst [vmem:[#allocation2_spill] sm:$0xff] %v9245_v4  ;;  %14189 = vst [vmem:[#allocation3_spill] sm:$0xff] %v9247_v5  ;;  %v653_v10 = vsel %vm652_vm1, %v9245_v4, 0.0  ;;  %v654_v11 = vsel %vm652_vm1, %v9247_v5, 0.0  ;;  %v656_v12 = vsel %vm652_vm1, %v9249_v6, 0.0  ;;  %v658_v17 = vsel %vm652_vm1, %v9252_v8, 0.0 }
  0x18   : > { %14190 = vst [vmem:[#allocation4_spill] sm:$0xff] %v9249_v6  ;;  %14191 = vst [vmem:[#allocation5_spill] sm:$0xff] %v9252_v8  ;;  %v655_v15 = vadd.f32 %v654_v11, %v653_v10  ;;  %v9272_v21 = vunpack.c.l.bf16 %v7759_v14  ;;  %v660_v22 = vsel %vm652_vm1, %v9254_v9, 0.0  ;;  %v662_v24 = vsel %vm652_vm1, %v9264_v16, 0.0 }
  0x19   : > { %14192 = vst [vmem:[#allocation6_spill] sm:$0xff] %v9254_v9  ;;  %14193 = vst [vmem:[#allocation7_spill] sm:$0xff] %v9264_v16  ;;  %v664_v27 = vsel %vm652_vm1, %v9268_v19, 0.0  ;;  %v666_v28 = vsel %vm652_vm1, %v9270_v20, 0.0  ;;  %v9285_v31 = vunpack.c.h.bf16 %v7759_v14  ;;  %v9287_v33 = vunpack.c.l.bf16 %v7760_v26  ;;  %v7764_v14 = vld [vmem:[%s9236_s18 + $0x48] sm:$0xff]  }
  0x1a   : > { %v657_v18 = vadd.f32 %v656_v12, %v655_v15  ;;  %14194 = vst [vmem:[#allocation8_spill] sm:$0xff] %v9268_v19  ;;  %14195 = vst [vmem:[#allocation9_spill] sm:$0xff] %v9270_v20  ;;  %v668_v29 = vsel %vm652_vm1, %v9272_v21, 0.0  ;;  %v9289_v34 = vunpack.c.h.bf16 %v7760_v26  ;;  %v722_v38 = vmul.f32 %v9245_v4, %v9245_v4 }
  0x1b   : > { %14196 = vst [vmem:[#allocation10_spill] sm:$0xff] %v9272_v21  ;;  %14197 = vst [vmem:[#allocation11_spill] sm:$0xff] %v9285_v31  ;;  %v670_v37 = vsel %vm652_vm1, %v9285_v31, 0.0  ;;  %v723_v39 = vmul.f32 %v9247_v5, %v9247_v5  ;;  %v724_v40 = vmul.f32 %v9249_v6, %v9249_v6  ;;  %v9300_v42 = vunpack.c.l.bf16 %v7761_v35 }
  0x1c   : > { %v659_v23 = vadd.f32 %v658_v17, %v657_v18  ;;  %14198 = vst [vmem:[#allocation12_spill] sm:$0xff] %v9287_v33  ;;  %14199 = vst [vmem:[#allocation13_spill] sm:$0xff] %v9289_v34  ;;  %v672_v43 = vsel %vm652_vm1, %v9287_v33, 0.0  ;;  %v725_v44 = vmul.f32 %v9252_v8, %v9252_v8  ;;  %v9306_v45 = vunpack.c.h.bf16 %v7761_v35 }
  0x1d   : > { %14200 = vst [vmem:[#allocation14_spill] sm:$0xff] %v9300_v42  ;;  %v674_v48 = vsel %vm652_vm1, %v9289_v34, 0.0  ;;  %v726_v49 = vmul.f32 %v9254_v9, %v9254_v9  ;;  %v754_v50 = vsel %vm652_vm1, %v722_v38, 0.0  ;;  %v755_v51 = vsel %vm652_vm1, %v723_v39, 0.0 }
  0x1e   : > { %v661_v25 = vadd.f32 %v660_v22, %v659_v23  ;;  %14201 = vst [vmem:[#allocation15_spill] sm:$0xff] %v9306_v45  ;;  %v757_v52 = vsel %vm652_vm1, %v724_v40, 0.0  ;;  %v756_v54 = vadd.f32 %v755_v51, %v754_v50  ;;  %v9316_v55 = vunpack.c.l.bf16 %v7762_v46 }
  0x1f   : > { %v676_v56 = vsel %vm652_vm1, %v9300_v42, 0.0  ;;  %v727_v57 = vmul.f32 %v9264_v16, %v9264_v16  ;;  %v759_v58 = vsel %vm652_vm1, %v725_v44, 0.0  ;;  %v9324_v62 = vunpack.c.h.bf16 %v7762_v46 }
  0x20   : > { %v663_v30 = vadd.f32 %v662_v24, %v661_v25  ;;  %14202 = vst [vmem:[#allocation16_spill] sm:$0xff] %v9316_v55  ;;  %v758_v61 = vadd.f32 %v757_v52, %v756_v54  ;;  %v678_v63 = vsel %vm652_vm1, %v9306_v45, 0.0  ;;  %v728_v0 = vmul.f32 %v9268_v19, %v9268_v19 }
  0x21   : > { %14203 = vst [vmem:[#allocation17_spill] sm:$0xff] %v9324_v62  ;;  %v761_v2 = vsel %vm652_vm1, %v726_v49, 0.0  ;;  %v9331_v10 = vunpack.c.l.bf16 %v7763_v59  ;;  %v680_v11 = vsel %vm652_vm1, %v9316_v55, 0.0  ;;  %v729_v12 = vmul.f32 %v9270_v20, %v9270_v20  ;;  %v7766_v49 = vld [vmem:[%s9236_s18 + $0x58] sm:$0xff]  }
  0x22   : > { %v665_v32 = vadd.f32 %v664_v27, %v663_v30  ;;  %v760_v7 = vadd.f32 %v759_v58, %v758_v61  ;;  %v763_v13 = vsel %vm652_vm1, %v727_v57, 0.0  ;;  %v9339_v18 = vunpack.c.h.bf16 %v7763_v59 }
  0x23   : > { %14204 = vst [vmem:[#allocation18_spill] sm:$0xff] %v9331_v10  ;;  %v682_v22 = vsel %vm652_vm1, %v9324_v62, 0.0  ;;  %v730_v23 = vmul.f32 %v9272_v21, %v9272_v21  ;;  %v765_v24 = vsel %vm652_vm1, %v728_v0, 0.0  ;;  %v9346_v27 = vunpack.c.l.bf16 %v7764_v14  ;;  %v7767_v0 = vld [vmem:[%s9236_s18 + $0x60] sm:$0xff]  }
  0x24   : > { %v667_v36 = vadd.f32 %v666_v28, %v665_v32  ;;  %v762_v17 = vadd.f32 %v761_v2, %v760_v7  ;;  %14205 = vst [vmem:[#allocation19_spill] sm:$0xff] %v9339_v18  ;;  %v684_v28 = vsel %vm652_vm1, %v9331_v10, 0.0  ;;  %v767_v30 = vsel %vm652_vm1, %v729_v12, 0.0  ;;  %v7765_v32 = vld [vmem:[%s9236_s18 + $0x50] sm:$0xff]  }
  0x25   : > { %14206 = vst [vmem:[#allocation20_spill] sm:$0xff] %v9346_v27  ;;  %v686_v38 = vsel %vm652_vm1, %v9339_v18, 0.0  ;;  %v732_v39 = vmul.f32 %v9287_v33, %v9287_v33  ;;  %v769_v40 = vsel %vm652_vm1, %v730_v23, 0.0  ;;  %v9361_v44 = vunpack.c.l.bf16 %v7765_v32 }
  0x26   : > { %v669_v41 = vadd.f32 %v668_v29, %v667_v36  ;;  %v764_v26 = vadd.f32 %v763_v13, %v762_v17  ;;  %v731_v29 = vmul.f32 %v9285_v31, %v9285_v31  ;;  %v688_v46 = vsel %vm652_vm1, %v9346_v27, 0.0 }
  0x27   : > { %14208 = vst [vmem:[#allocation22_spill] sm:$0xff] %v9361_v44  ;;  %v9369_v52 = vunpack.c.h.bf16 %v7765_v32  ;;  %v734_v54 = vmul.f32 %v9300_v42, %v9300_v42  ;;  %v9376_v59 = vunpack.c.l.bf16 %v7766_v49  ;;  %v735_v61 = vmul.f32 %v9306_v45, %v9306_v45 }
  0x28   : > { %v671_v47 = vadd.f32 %v670_v37, %v669_v41  ;;  %v766_v36 = vadd.f32 %v765_v24, %v764_v26  ;;  %v9354_v37 = vunpack.c.h.bf16 %v7764_v14  ;;  %v9384_v7 = vunpack.c.h.bf16 %v7766_v49 }
  0x29   : > { %14209 = vst [vmem:[#allocation23_spill] sm:$0xff] %v9369_v52  ;;  %14210 = vst [vmem:[#allocation24_spill] sm:$0xff] %v9376_v59  ;;  %v736_v12 = vmul.f32 %v9316_v55, %v9316_v55  ;;  %v777_v13 = vsel %vm652_vm1, %v734_v54, 0.0  ;;  %v9391_v17 = vunpack.c.l.bf16 %v7767_v0  ;;  %v737_v23 = vmul.f32 %v9324_v62, %v9324_v62 }
  0x2a   : > { %v673_v53 = vadd.f32 %v672_v43, %v671_v47  ;;  %14207 = vst [vmem:[#allocation21_spill] sm:$0xff] %v9354_v37  ;;  %v768_v43 = vadd.f32 %v767_v30, %v766_v36  ;;  %v733_v47 = vmul.f32 %v9289_v34, %v9289_v34  ;;  %14211 = vst [vmem:[#allocation25_spill] sm:$0xff] %v9384_v7  ;;  %v779_v24 = vsel %vm652_vm1, %v735_v61, 0.0 }
  0x2b   : > { %14212 = vst [vmem:[#allocation26_spill] sm:$0xff] %v9391_v17  ;;  %v698_v30 = vsel %vm652_vm1, %v9384_v7, 0.0  ;;  %v738_v32 = vmul.f32 %v9331_v10, %v9331_v10 }
  0x2c   : > { %v675_v60 = vadd.f32 %v674_v48, %v673_v53  ;;  %v771_v48 = vsel %vm652_vm1, %v731_v29, 0.0  ;;  %v770_v51 = vadd.f32 %v769_v40, %v768_v43  ;;  %v690_v53 = vsel %vm652_vm1, %v9354_v37, 0.0 }
  0x2d   : > { %v9399_v29 = vunpack.c.h.bf16 %v7767_v0  ;;  %v700_v40 = vsel %vm652_vm1, %v9391_v17, 0.0  ;;  %v783_v43 = vsel %vm652_vm1, %v737_v23, 0.0 }
  0x2e   : > { %v677_v3 = vadd.f32 %v676_v56, %v675_v60  ;;  %v773_v56 = vsel %vm652_vm1, %v732_v39, 0.0  ;;  %v772_v58 = vadd.f32 %v771_v48, %v770_v51  ;;  %v692_v60 = vsel %vm652_vm1, %v9361_v44, 0.0 }
  0x2f   : > { %14213 = vst [vmem:[#allocation27_spill] sm:$0xff] %v9399_v29  ;;  %v740_v51 = vmul.f32 %v9346_v27, %v9346_v27 }
  0x30   : > { %v679_v15 = vadd.f32 %v678_v63, %v677_v3  ;;  %v775_v63 = vsel %vm652_vm1, %v733_v47, 0.0  ;;  %v774_v3 = vadd.f32 %v773_v56, %v772_v58 }
  0x32   : > { %v681_v25 = vadd.f32 %v680_v11, %v679_v15  ;;  %v694_v11 = vsel %vm652_vm1, %v9369_v52, 0.0  ;;  %v776_v15 = vadd.f32 %v775_v63, %v774_v3  ;;  %v7770_v63 = vld [vmem:[%s9236_s18 + $0x78] sm:$0xff]  }
  0x34   : > { %v683_v35 = vadd.f32 %v682_v22, %v681_v25  ;;  %v696_v22 = vsel %vm652_vm1, %v9376_v59, 0.0  ;;  %v7768_v25 = vld [vmem:[%s9236_s18 + $0x68] sm:$0xff]  }
  0x35   : > { %v9406_v39 = vunpack.c.l.bf16 %v7768_v25  ;;  %v9414_v49 = vunpack.c.h.bf16 %v7768_v25 }
  0x36   : > { %v685_v41 = vadd.f32 %v684_v28, %v683_v35  ;;  %v778_v28 = vadd.f32 %v777_v13, %v776_v15  ;;  %v781_v35 = vsel %vm652_vm1, %v736_v12, 0.0  ;;  %v742_v12 = vmul.f32 %v9361_v44, %v9361_v44 }
  0x37   : > { %14214 = vst [vmem:[#allocation28_spill] sm:$0xff] %v9406_v39  ;;  %14215 = vst [vmem:[#allocation29_spill] sm:$0xff] %v9414_v49  ;;  %v704_v58 = vsel %vm652_vm1, %v9406_v39, 0.0  ;;  %v789_v13 = vsel %vm652_vm1, %v740_v51, 0.0  ;;  %v746_v51 = vmul.f32 %v9391_v17, %v9391_v17 }
  0x38   : > { %v687_v50 = vadd.f32 %v686_v38, %v685_v41  ;;  %v780_v38 = vadd.f32 %v779_v24, %v778_v28  ;;  %v739_v41 = vmul.f32 %v9339_v18, %v9339_v18  ;;  %v743_v24 = vmul.f32 %v9369_v52, %v9369_v52 }
  0x3a   : > { %v689_v57 = vadd.f32 %v688_v46, %v687_v50  ;;  %v7769_v46 = vld [vmem:[%s9236_s18 + $0x70] sm:$0xff]   ;;  %v782_v48 = vadd.f32 %v781_v35, %v780_v38  ;;  %v702_v50 = vsel %vm652_vm1, %v9399_v29, 0.0  ;;  %v787_v61 = vsel %vm652_vm1, %v739_v41, 0.0 }
  0x3b   : > { %v9429_v3 = vunpack.c.h.bf16 %v7769_v46  ;;  %v744_v35 = vmul.f32 %v9376_v59, %v9376_v59 }
  0x3c   : > { %v691_v2 = vadd.f32 %v690_v53, %v689_v57  ;;  %v785_v53 = vsel %vm652_vm1, %v738_v32, 0.0  ;;  %v784_v56 = vadd.f32 %v783_v43, %v782_v48  ;;  %v9421_v57 = vunpack.c.l.bf16 %v7769_v46 }
  0x3d   : > { %14217 = vst [vmem:[#allocation31_spill] sm:$0xff] %v9429_v3  ;;  %v710_v32 = vsel %vm652_vm1, %v9429_v3, 0.0  ;;  %v745_v43 = vmul.f32 %v9384_v7, %v9384_v7  ;;  %v795_v46 = vsel %vm652_vm1, %v743_v24, 0.0 }
  0x3e   : > { %v693_v14 = vadd.f32 %v692_v60, %v691_v2  ;;  %14216 = vst [vmem:[#allocation30_spill] sm:$0xff] %v9421_v57  ;;  %v741_v60 = vmul.f32 %v9354_v37, %v9354_v37  ;;  %v786_v2 = vadd.f32 %v785_v53, %v784_v56  ;;  %v708_v23 = vsel %vm652_vm1, %v9421_v57, 0.0 }
  0x3f   : > { %v797_v53 = vsel %vm652_vm1, %v744_v35, 0.0  ;;  %v750_v24 = vmul.f32 %v9421_v57, %v9421_v57 }
  0x40   : > { %v695_v26 = vadd.f32 %v694_v11, %v693_v14  ;;  %v706_v11 = vsel %vm652_vm1, %v9414_v49, 0.0  ;;  %v788_v15 = vadd.f32 %v787_v61, %v786_v2  ;;  %v791_v25 = vsel %vm652_vm1, %v741_v60, 0.0 }
  0x41   : > { %v799_v60 = vsel %vm652_vm1, %v745_v43, 0.0  ;;  %v801_v2 = vsel %vm652_vm1, %v746_v51, 0.0 }
  0x42   : > { %v697_v36 = vadd.f32 %v696_v22, %v695_v26  ;;  %v9436_v22 = vunpack.c.l.bf16 %v7770_v63  ;;  %v790_v28 = vadd.f32 %v789_v13, %v788_v15  ;;  %v749_v13 = vmul.f32 %v9414_v49, %v9414_v49 }
  0x44   : > { %v699_v47 = vadd.f32 %v698_v30, %v697_v36  ;;  %14218 = vst [vmem:[#allocation32_spill] sm:$0xff] %v9436_v22  ;;  %v9443_v30 = vunpack.c.h.bf16 %v7770_v63  ;;  %v793_v36 = vsel %vm652_vm1, %v742_v12, 0.0  ;;  %v712_v41 = vsel %vm652_vm1, %v9436_v22, 0.0 }
  0x45   : > { %v807_v35 = vsel %vm652_vm1, %v749_v13, 0.0  ;;  %v651_v13 = vld [vmem:[%s13991_s6] sm:$0x3] }
  0x46   : > { %v701_v54 = vadd.f32 %v700_v40, %v699_v47  ;;  %14219 = vst [vmem:[#allocation33_spill] sm:$0xff] %v9443_v30  ;;  %v792_v40 = vadd.f32 %v791_v25, %v790_v28 }
  0x48   : > { %v703_v0 = vadd.f32 %v702_v50, %v701_v54  ;;  %v794_v48 = vadd.f32 %v793_v36, %v792_v40  ;;  %v714_v50 = vsel %vm652_vm1, %v9443_v30, 0.0  ;;  %v752_v40 = vmul.f32 %v9436_v22, %v9436_v22 }
  0x4a   : > { %v705_v14 = vadd.f32 %v704_v58, %v703_v0  ;;  %v796_v56 = vadd.f32 %v795_v46, %v794_v48  ;;  %v747_v58 = vmul.f32 %v9399_v29, %v9399_v29  ;;  %v748_v0 = vmul.f32 %v9406_v39, %v9406_v39 }
  0x4c   : > { %v707_v26 = vadd.f32 %v706_v11, %v705_v14  ;;  %v798_v63 = vadd.f32 %v797_v53, %v796_v56  ;;  %v803_v14 = vsel %vm652_vm1, %v747_v58, 0.0  ;;  %v805_v25 = vsel %vm652_vm1, %v748_v0, 0.0 }
  0x4d   : > { %v813_v53 = vsel %vm652_vm1, %v752_v40, 0.0 }
  0x4e   : > { %v709_v38 = vadd.f32 %v708_v23, %v707_v26  ;;  %v800_v12 = vadd.f32 %v799_v60, %v798_v63 }
  0x50   : > { %v711_v47 = vadd.f32 %v710_v32, %v709_v38  ;;  %v802_v23 = vadd.f32 %v801_v2, %v800_v12  ;;  %v751_v32 = vmul.f32 %v9429_v3, %v9429_v3 }
  0x52   : > { %v713_v54 = vadd.f32 %v712_v41, %v711_v47  ;;  %v804_v28 = vadd.f32 %v803_v14, %v802_v23  ;;  %v809_v41 = vsel %vm652_vm1, %v750_v24, 0.0  ;;  %v753_v47 = vmul.f32 %v9443_v30, %v9443_v30 }
  0x53   : > { %v811_v48 = vsel %vm652_vm1, %v751_v32, 0.0  ;;  %v1127_v14 = vlaneseq }
  0x54   : > { %v715_v61 = vadd.f32 %v714_v50, %v713_v54  ;;  %v806_v38 = vadd.f32 %v805_v25, %v804_v28  ;;  %v815_v56 = vsel %vm652_vm1, %v753_v47, 0.0 }
  0x55   : > { %v9494_v23 = vshrl.u32 %v1127_v14, 7 }
  0x56   : > { %v716_v11 = vrot.slane %v715_v61, 4  ;;  %v808_v46 = vadd.f32 %v807_v35, %v806_v38 }
  0x57   : > { %14220 = vst [vmem:[#allocation34_spill] sm:$0xff] %v9494_v23  ;;  %v1476_v24 = vadd.s32 8, %v9494_v23  ;;  %v1611_v25 = vrot.slane %v9494_v23, 1  ;;  %vm1509_vm3 = vcmp.lt.s32.totalorder %v9494_v23, 1  ;;  %vm1574_vm4 = vcmp.lt.s32.totalorder %v9494_v23, 7 }
  0x58   : > { %v717_v15 = vadd.f32 %v716_v11, %v715_v61  ;;  %v810_v51 = vadd.f32 %v809_v41, %v808_v46  ;;  %v1607_v28 = vrot.slane %v9494_v23, 7  ;;  %v1743_v38 = vadd.s32 1, %v9494_v23 }
  0x59   : > { %v1612_v32 = vrot.slane %v1476_v24, 1  ;;  %v1608_v35 = vrot.slane %v1476_v24, 7  ;;  %v1744_v40 = vadd.s32 1, %v1476_v24 }
  0x5a   : > { %v718_v26 = vrot.slane %v717_v15, 2  ;;  %v812_v54 = vadd.f32 %v811_v48, %v810_v51 }
  0x5b   : > { %v1613_v41 = vsel %vm1574_vm4, %v1611_v25, %v1612_v32  ;;  %v1614_v46 = vsel %vm1574_vm4, %v1612_v32, %v1611_v25  ;;  %v1609_v47 = vsel %vm1509_vm3, %v1607_v28, %v1608_v35  ;;  %v14005_v32 = vmov 0.0|0.0  }
  0x5c   : > { %v719_v36 = vadd.f32 %v718_v26, %v717_v15  ;;  %v814_v58 = vadd.f32 %v813_v53, %v812_v54  ;;  %v9119_v15 = vmov 0   ;;  %v1615_v26 = vadd.s32 4294967295, %v9494_v23 }
  0x5d   : > { %8831 = vset.pattern.permute.xlu1 %v9119_v15  ;;  %8830 = vset.pattern.permute.xlu0 %v9119_v15  ;;  %vm1747_vm9 = vcmp.eq.s32.totalorder %v1613_v41, %v1743_v38  ;;  %vm1748_vm10 = vcmp.eq.s32.totalorder %v1614_v46, %v1744_v40  ;;  %vm1746_vm12 = vcmp.eq.s32.totalorder %v1609_v47, %v1744_v40  ;;  %v9535_v40 = vsub.s32 0, %v9494_v23 }
  0x5e   : > { %v720_v43 = vrot.slane %v719_v36, 1  ;;  %v816_v60 = vadd.f32 %v815_v56, %v814_v58  ;;  %vm1619_vm5 = vcmp.eq.s32.totalorder %v1613_v41, %v1615_v26  ;;  %v1749_v54 = vsel %vm1747_vm9, 1, %v9119_v15 }
  0x5f   : > { %v1621_v48 = vsel %vm1619_vm5, 1, %v9119_v15  ;;  %v1750_v56 = vsel %vm1748_vm10, 1, %v9119_v15  ;;  %14221 = vst [vmem:[#allocation35_spill] sm:$0xff] %v9535_v40 }
  0x60   : > { %v721_v50 = vadd.f32 %v720_v43, %v719_v36  ;;  %v817_v61 = vrot.slane %v816_v60, 4  ;;  %v1616_v36 = vadd.s32 4294967295, %v1476_v24  ;;  %v1610_v43 = vsel %vm1509_vm3, %v1608_v35, %v1607_v28  ;;  %1624 = vperm.xlu0 %8830, %v1621_v48   ;;  %v9530_v35 = vld [vmem:[%s13992_s7] sm:$0xf] }
  0x61   : > { %vm1617_vm6 = vcmp.eq.s32.totalorder %v1610_v43, %v1615_v26  ;;  %vm1745_vm11 = vcmp.eq.s32.totalorder %v1610_v43, %v1743_v38  ;;  %v9519_v26 = vld [vmem:[%s13992_s7 + $0x8] sm:$0xf]  ;;  %v648_v43 = vld [vmem:[%s13988_s3] sm:$0x1] }
  0x62   : > { %8113 = vmatmul.mubr.msk.f32.vlgmr.msra.gmra.mxu0 %vm652_vm1, %v721_v50  ;;  %v818_v63 = vadd.f32 %v817_v61, %v816_v60  ;;  %vm1620_vm7 = vcmp.eq.s32.totalorder %v1614_v46, %v1616_v36  ;;  %vm1618_vm8 = vcmp.eq.s32.totalorder %v1609_v47, %v1616_v36  ;;  %v1665_v50 = vsel %vm1617_vm6, 1, %v9119_v15 }
  0x63   : > { %8122 = vmatprep.mubr.msk.f32.mxu0 %vm9118_vm0, %v14003_v1  ;;  %8121 = vmatpush3.msk.msra.mxu0 %vm980_vm2, %v651_v13  ;;  %v1622_v51 = vsel %vm1620_vm7, 1, %v9119_v15  ;;  %v1666_v53 = vsel %vm1618_vm8, 1, %v9119_v15  ;;  %v1793_v58 = vsel %vm1745_vm11, 1, %v9119_v15  ;;  %v1794_v60 = vsel %vm1746_vm12, 1, %v9119_v15  ;;  %v1463_v15 = vld [vmem:[%s13992_s7 + $0x4] sm:$0xf] }
  0x64   : > { %v819_v0 = vrot.slane %v818_v63, 2  ;;  %1668 = vperm.xlu1 %8831, %v1665_v50   ;;  %1627 = vperm.xlu0 %8830, %v1622_v51   ;;  %v1904_v28 = vsel %vm1902_vm14, %v1463_v15, 0 }
  0x65   : > { %8798 = vmatprep.subr.msk.bf16.mxu0 %vm1902_vm14, %v1463_v15 }
  0x66   : > { %v820_v2 = vadd.f32 %v819_v0, %v818_v63 }
  0x68   : > { %v821_v11 = vrot.slane %v820_v2, 1  ;;  %1671 = vperm.xlu1 %8831, %v1666_v53   ;;  %1752 = vperm.xlu0 %8830, %v1749_v54  }
  0x6a   : > { %v822_v12 = vadd.f32 %v821_v11, %v820_v2 }
  0x6c   : > { %8118 = vmatmul.mubr.msk.f32.vlgmr.msra.gmra.mxu1 %vm652_vm1, %v822_v12  ;;  %1755 = vperm.xlu1 %8831, %v1750_v56  }
  0x6d   : > { %8127 = vmatprep.mubr.msk.f32.mxu1 %vm9118_vm0, %v14003_v1  ;;  %8126 = vmatpush3.msk.msra.mxu1 %vm980_vm2, %v651_v13 }
  0x6e   : > { %1796 = vperm.xlu0 %8830, %v1793_v58   ;;  %8799 = vmatprep.subr.msk.bf16.mxu1 %vm1902_vm14, %v1463_v15 }
  0x70   : > { %1799 = vperm.xlu1 %8831, %v1794_v60  }
 0x122   : > { %v892_v61 = vpop.f32.mrf.mxu0 }
 0x123   : > { %v897_v63 = vmul.f32 0.0009765625, %v892_v61 }
 0x124   : > { %v8114_v0 = vpop.f32.mrf.mxu0 }
 0x125   : > { %8123 = vmatmul.mubr.msk.f32.vlgmr.msra.gmra.mxu0 %vm976_vm13, %v897_v63  ;;  %v972_v2 = vmul.f32 %v897_v63, %v897_v63 }
 0x126   : > { %8131 = vmatpush3.bf16.msra.mxu0 %v1904_v28  ;;  %8132 = vmatprep.mubr.bf16.mxu0 %v14005_v32 }
 0x127   : > { %8801 = vmatprep.subr.msk.bf16.mxu0 %vm1902_vm14, %v9519_v26 }
 0x12c   : > { %v967_v11 = vpop.f32.mrf.mxu1 }
 0x12d   : > { %v971_v12 = vmul.f32 0.0009765625, %v967_v11  ;;  %v9569_v11 = vld [vmem:[%s13989_s4] ss:$0 sm:$0xff] }
 0x12e   : > { %v8119_v13 = vpop.f32.mrf.mxu1 }
 0x12f   : > { %v973_v14 = vsub.f32 %v971_v12, %v972_v2 }
 0x131   : > { %v974_v24 = vadd.f32 1e-06, %v973_v14 }
 0x133   : > { %8848 = vrsqrt.f32 %v974_v24 }
 0x140   : > { %v8849_v25 = vpop.eup %8848 }
 0x141   : > { %8128 = vmatmul.mubr.msk.f32.vlgmr.msra.gmra.mxu1 %vm976_vm13, %v8849_v25 }
 0x142   : > { %8797 = vmatpush3.bf16.msra.mxu1 %v1904_v28 }
 0x143   : > { %8800 = vmatprep.subr.msk.bf16.mxu1 %vm1902_vm14, %v9530_v35 }
 0x1e5   : > { %v1050_v36 = vpop.f32.mrf.mxu0 }
 0x1e6   : > { %v9538_v41 = vrot.slane %v1050_v36, %v9535_v40 }
 0x1e7   : > { %v8124_v38 = vpop.f32.mrf.mxu0 }
 0x1e8   : > { %v1131_v48 = vsub.f32 %v9245_v4, %v9538_v41  ;;  %v1132_v50 = vsub.f32 %v9247_v5, %v9538_v41  ;;  %v1149_v51 = vsub.f32 %v9346_v27, %v9538_v41  ;;  %v1150_v54 = vsub.f32 %v9354_v37, %v9538_v41 }
 0x1e9   : > { %v1133_v56 = vsub.f32 %v9249_v6, %v9538_v41  ;;  %v1134_v58 = vsub.f32 %v9252_v8, %v9538_v41  ;;  %v1151_v60 = vsub.f32 %v9361_v44, %v9538_v41  ;;  %v1152_v63 = vsub.f32 %v9369_v52, %v9538_v41 }
 0x1ea   : > { %v1153_v0 = vsub.f32 %v9376_v59, %v9538_v41  ;;  %v1154_v2 = vsub.f32 %v9384_v7, %v9538_v41  ;;  %v1135_v12 = vsub.f32 %v9254_v9, %v9538_v41  ;;  %v1136_v13 = vsub.f32 %v9264_v16, %v9538_v41 }
 0x1eb   : > { %v1137_v14 = vsub.f32 %v9268_v19, %v9538_v41  ;;  %v1138_v24 = vsub.f32 %v9270_v20, %v9538_v41 }
 0x201   : > { %v1123_v46 = vpop.f32.mrf.mxu1 }
 0x202   : > { %v1163_v47 = vmul.f32 %v1123_v46, %v648_v43 }
 0x203   : > { %v8129_v53 = vpop.f32.mrf.mxu1 }
 0x204   : > { %v9558_v61 = vrot.slane %v1163_v47, %v9535_v40 }
 0x206   : > { %v1168_v25 = vmul.f32 %v9558_v61, %v1131_v48  ;;  %v1169_v15 = vmul.f32 %v9558_v61, %v1132_v50  ;;  %v1186_v28 = vmul.f32 %v9558_v61, %v1149_v51  ;;  %v1187_v36 = vmul.f32 %v9558_v61, %v1150_v54 }
 0x207   : > { %v1170_v38 = vmul.f32 %v9558_v61, %v1133_v56  ;;  %v1171_v43 = vmul.f32 %v9558_v61, %v1134_v58  ;;  %v1188_v46 = vmul.f32 %v9558_v61, %v1151_v60  ;;  %v1189_v47 = vmul.f32 %v9558_v61, %v1152_v63 }
 0x208   : > { %v9588_v53 = vadd.f32 %v9569_v11, %v1168_v25  ;;  %v9591_v1 = vadd.f32 %v9569_v11, %v1169_v15  ;;  %v9594_v48 = vadd.f32 %v9569_v11, %v1186_v28  ;;  %v9597_v50 = vadd.f32 %v9569_v11, %v1187_v36 }
 0x209   : > { %v9600_v51 = vadd.f32 %v9569_v11, %v1170_v38  ;;  %v9603_v54 = vadd.f32 %v9569_v11, %v1171_v43  ;;  %v9606_v56 = vadd.f32 %v9569_v11, %v1188_v46  ;;  %v1155_v58 = vsub.f32 %v9391_v17, %v9538_v41 }
 0x20a   : > { %v7306_v60 = vmul.f32 -1.442695, %v9588_v53  ;;  %v7307_v63 = vmul.f32 -1.442695, %v9591_v1  ;;  %v7324_v25 = vmul.f32 -1.442695, %v9594_v48  ;;  %v1190_v15 = vmul.f32 %v9558_v61, %v1153_v0 }
 0x20b   : > { %v7325_v28 = vmul.f32 -1.442695, %v9597_v50  ;;  %v9616_v36 = vadd.f32 %v9569_v11, %v1189_v47  ;;  %v1191_v38 = vmul.f32 %v9558_v61, %v1154_v2  ;;  %v1156_v43 = vsub.f32 %v9399_v29, %v9538_v41 }
 0x20c   : > { %8850 = vpow2.f32 %v7306_v60  ;;  %v7308_v46 = vmul.f32 -1.442695, %v9600_v51  ;;  %v7309_v32 = vmul.f32 -1.442695, %v9603_v54  ;;  %v9624_v17 = vadd.f32 %v9569_v11, %v1190_v15 }
 0x20d   : > { %8852 = vpow2.f32 %v7307_v63  ;;  %v9627_v0 = vadd.f32 %v9569_v11, %v1191_v38  ;;  %v1172_v47 = vmul.f32 %v9558_v61, %v1135_v12  ;;  %v1173_v52 = vmul.f32 %v9558_v61, %v1136_v13 }
 0x20e   : > { %8854 = vpow2.f32 %v7324_v25  ;;  %v7326_v2 = vmul.f32 -1.442695, %v9606_v56  ;;  %v1174_v60 = vmul.f32 %v9558_v61, %v1137_v14  ;;  %v1175_v29 = vmul.f32 %v9558_v61, %v1138_v24 }
 0x20f   : > { %8856 = vpow2.f32 %v7325_v28  ;;  %v7327_v7 = vmul.f32 -1.442695, %v9616_v36  ;;  %v9636_v15 = vadd.f32 %v9569_v11, %v1172_v47  ;;  %v9639_v63 = vadd.f32 %v9569_v11, %v1173_v52 }
 0x210   : > { %8858 = vpow2.f32 %v7308_v46  ;;  %v7328_v12 = vmul.f32 -1.442695, %v9624_v17  ;;  %v9643_v13 = vadd.f32 %v9569_v11, %v1174_v60  ;;  %v1192_v25 = vmul.f32 %v9558_v61, %v1155_v58 }
 0x211   : > { %8860 = vpow2.f32 %v7309_v32  ;;  %v7329_v14 = vmul.f32 -1.442695, %v9627_v0  ;;  %v9648_v24 = vadd.f32 %v9569_v11, %v1175_v29  ;;  %v1193_v28 = vmul.f32 %v9558_v61, %v1156_v43 }
 0x212   : > { %8862 = vpow2.f32 %v7326_v2  ;;  %v7310_v52 = vmul.f32 -1.442695, %v9636_v15  ;;  %v9653_v38 = vadd.f32 %v9569_v11, %v1192_v25  ;;  %v7311_v46 = vmul.f32 -1.442695, %v9639_v63 }
 0x213   : > { %8864 = vpow2.f32 %v7327_v7  ;;  %v9657_v47 = vadd.f32 %v9569_v11, %v1193_v28  ;;  %v9661_v32 = vsel %vm1902_vm14, %v9519_v26, 0  ;;  %v7312_v29 = vmul.f32 -1.442695, %v9643_v13 }
 0x214   : > { %8866 = vpow2.f32 %v7328_v12  ;;  %v7313_v58 = vmul.f32 -1.442695, %v9648_v24  ;;  %v1157_v43 = vsub.f32 %v9406_v39, %v9538_v41  ;;  %v9669_v7 = vsel %vm1902_vm14, %v9530_v35, 0 }
 0x215   : > { %8868 = vpow2.f32 %v7329_v14  ;;  %v7330_v2 = vmul.f32 -1.442695, %v9653_v38  ;;  %v1158_v26 = vsub.f32 %v9414_v49, %v9538_v41  ;;  %v1139_v60 = vsub.f32 %v9272_v21, %v9538_v41 }
 0x216   : > { %8870 = vpow2.f32 %v7310_v52  ;;  %v7331_v12 = vmul.f32 -1.442695, %v9657_v47  ;;  %v1140_v25 = vsub.f32 %v9285_v31, %v9538_v41  ;;  %v1141_v14 = vsub.f32 %v9287_v33, %v9538_v41 }
 0x217   : > { %8872 = vpow2.f32 %v7311_v46  ;;  %v1142_v35 = vsub.f32 %v9289_v34, %v9538_v41  ;;  %v1159_v28 = vsub.f32 %v9421_v57, %v9538_v41  ;;  %v1194_v46 = vmul.f32 %v9558_v61, %v1157_v43 }
 0x218   : > { %8874 = vpow2.f32 %v7312_v29  ;;  %v1195_v37 = vmul.f32 %v9558_v61, %v1158_v26  ;;  %v1177_v44 = vmul.f32 %v9558_v61, %v1140_v25 }
 0x219   : > { %v8851_v49 = vpop.eup %8850  ;;  %8876 = vpow2.f32 %v7313_v58  ;;  %v1176_v58 = vmul.f32 %v9558_v61, %v1139_v60  ;;  %v9702_v57 = vadd.f32 %v9569_v11, %v1194_v46 }
 0x21a   : > { %v8853_v29 = vpop.eup %8852  ;;  %v1334_v59 = vadd.f32 1.0, %v8851_v49  ;;  %8878 = vpow2.f32 %v7330_v2 }
 0x21b   : > { %v8855_v27 = vpop.eup %8854  ;;  %v1335_v52 = vadd.f32 1.0, %v8853_v29  ;;  %8880 = vpow2.f32 %v7331_v12 }
 0x21c   : > { %v8857_v39 = vpop.eup %8856  ;;  %8882 = vrcp.f32 %v1334_v59  ;;  %v1352_v31 = vadd.f32 1.0, %v8855_v27  ;;  %v9707_v59 = vadd.f32 %v9569_v11, %v1195_v37  ;;  %v1178_v27 = vmul.f32 %v9558_v61, %v1141_v14 }
 0x21d   : > { %v8859_v2 = vpop.eup %8858  ;;  %8884 = vrcp.f32 %v1335_v52  ;;  %v1353_v26 = vadd.f32 1.0, %v8857_v39  ;;  %v9711_v52 = vadd.f32 %v9569_v11, %v1176_v58  ;;  %v1161_v39 = vsub.f32 %v9436_v22, %v9538_v41 }
 0x21e   : > { %v8861_v12 = vpop.eup %8860  ;;  %8886 = vrcp.f32 %v1352_v31  ;;  %v1336_v29 = vadd.f32 1.0, %v8859_v2  ;;  %v9716_v31 = vadd.f32 %v9569_v11, %v1177_v44  ;;  %v1179_v37 = vmul.f32 %v9558_v61, %v1142_v35 }
 0x21f   : > { %v8863_v25 = vpop.eup %8862  ;;  %8888 = vrcp.f32 %v1353_v26  ;;  %v1337_v49 = vadd.f32 1.0, %v8861_v12  ;;  %v7332_v26 = vmul.f32 -1.442695, %v9702_v57  ;;  %v1162_v58 = vsub.f32 %v9443_v30, %v9538_v41 }
 0x220   : > { %v8865_v46 = vpop.eup %8864  ;;  %8890 = vrcp.f32 %v1336_v29  ;;  %v1354_v60 = vadd.f32 1.0, %v8863_v25  ;;  %v7333_v22 = vmul.f32 -1.442695, %v9707_v59  ;;  %v9724_v29 = vadd.f32 %v9569_v11, %v1178_v27 }
 0x221   : > { %v8867_v2 = vpop.eup %8866  ;;  %8892 = vrcp.f32 %v1337_v49  ;;  %v1355_v14 = vadd.f32 1.0, %v8865_v46  ;;  %v9727_v35 = vmul.f32 -1.442695, %v9711_v52  ;;  %v1196_v49 = vmul.f32 %v9558_v61, %v1159_v28 }
 0x222   : > { %v8869_v12 = vpop.eup %8868  ;;  %8894 = vrcp.f32 %v1354_v60  ;;  %v1356_v43 = vadd.f32 1.0, %v8867_v2  ;;  %v9731_v30 = vmul.f32 -1.442695, %v9716_v31  ;;  %v9734_v60 = vadd.f32 %v9569_v11, %v1179_v37 }
 0x223   : > { %v8871_v44 = vpop.eup %8870  ;;  %8896 = vrcp.f32 %v1355_v14  ;;  %v1357_v25 = vadd.f32 1.0, %v8869_v12  ;;  %v14222_v14 = vsub.f32 %v9429_v3, %v9538_v41  ;;  %v1198_v21 = vmul.f32 %v9558_v61, %v1161_v39 }
 0x224   : > { %v8873_v46 = vpop.eup %8872  ;;  %8898 = vrcp.f32 %v1356_v43  ;;  %v1338_v34 = vadd.f32 1.0, %v8871_v44  ;;  %v7316_v44 = vmul.f32 -1.442695, %v9724_v29  ;;  %v1199_v33 = vmul.f32 %v9558_v61, %v1162_v58 }
 0x225   : > { %v8875_v2 = vpop.eup %8874  ;;  %8900 = vrcp.f32 %v1357_v25  ;;  %v1339_v27 = vadd.f32 1.0, %v8873_v46  ;;  %v1197_v12 = vmul.f32 %v9558_v61, %v14222_v14  ;;  %v9744_v25 = vadd.f32 %v9569_v11, %v1196_v49 }
 0x226   : > { %v8877_v28 = vpop.eup %8876  ;;  %8902 = vrcp.f32 %v1338_v34  ;;  %v1340_v43 = vadd.f32 1.0, %v8875_v2  ;;  %v9747_v46 = vadd.f32 %v9569_v11, %v1198_v21  ;;  %v14224_v34 = vsub.f32 %v9300_v42, %v9538_v41 }
 0x227   : > { %v8879_v16 = vpop.eup %8878  ;;  %8904 = vrcp.f32 %v1339_v27  ;;  %v1341_v37 = vadd.f32 1.0, %v8877_v28  ;;  %v9754_v2 = vadd.f32 %v9569_v11, %v1199_v33  ;;  %v7317_v49 = vmul.f32 -1.442695, %v9734_v60 }
 0x228   : > { %14223 = vst [vmem:[#allocation36_spill] sm:$0xff] %v9747_v46  ;;  %v8881_v3 = vpop.eup %8880  ;;  %8906 = vrcp.f32 %v1340_v43  ;;  %v1358_v14 = vadd.f32 1.0, %v8879_v16  ;;  %v1180_v39 = vmul.f32 %v9558_v61, %v14224_v34  ;;  %v9758_v28 = vadd.f32 %v9569_v11, %v1197_v12 }
 0x229   : > { %14225 = vst [vmem:[#allocation37_spill] sm:$0xff] %v9754_v2  ;;  %v8883_v58 = vpop.eup %8882  ;;  %8908 = vrcp.f32 %v1341_v37  ;;  %v1359_v27 = vadd.f32 1.0, %v8881_v3  ;;  %v14226_v16 = vsub.f32 %v9306_v45, %v9538_v41  ;;  %v14227_v33 = vsub.f32 %v9316_v55, %v9538_v41 }
 0x22a   : > { %v8885_v21 = vpop.eup %8884  ;;  %v9761_v43 = vmul.f32 %v8883_v58, %v9588_v53  ;;  %8910 = vrcp.f32 %v1358_v14  ;;  %v7334_v12 = vmul.f32 -1.442695, %v9744_v25  ;;  %v14228_v53 = vsub.f32 %v9324_v62, %v9538_v41 }
 0x22b   : > { %v1181_v34 = vmul.f32 %v9558_v61, %v14226_v16  ;;  %v1182_v3 = vmul.f32 %v9558_v61, %v14227_v33  ;;  %v8887_v37 = vpop.eup %8886  ;;  %v9772_v42 = vmul.f32 %v8885_v21, %v9591_v1  ;;  %8912 = vrcp.f32 %v1359_v27 }
 0x22c   : > { %v1183_v14 = vmul.f32 %v9558_v61, %v14228_v53  ;;  %v8889_v58 = vpop.eup %8888  ;;  %v9780_v16 = vmul.f32 %v8887_v37, %v9594_v48  ;;  %8914 = vpow2.f32 %v7332_v26  ;;  %v14229_v33 = vsub.f32 %v9331_v10, %v9538_v41 }
 0x22d   : > { %v14230_v1 = vsub.f32 %v9339_v18, %v9538_v41  ;;  %v8891_v21 = vpop.eup %8890  ;;  %v9792_v62 = vpack.c.bf16 %v9772_v42, %v9761_v43  ;;  %v9795_v53 = vmul.f32 %v8889_v58, %v9597_v50  ;;  %v7335_v48 = vmul.f32 -1.442695, %v9758_v28  ;;  %v9813_v50 = vld [vmem:[%s13992_s7 + $0x10] sm:$0xf] }
 0x22e   : > { %v1184_v45 = vmul.f32 %v9558_v61, %v14229_v33  ;;  %v9799_v26 = vadd.f32 %v9569_v11, %v1180_v39  ;;  %v8893_v37 = vpop.eup %8892  ;;  %v9802_v33 = vmul.f32 %v8891_v21, %v9600_v51  ;;  %8916 = vpow2.f32 %v7333_v22  ;;  %v9817_v39 = vpop.permute.xlu1 %1668 }
 0x22f   : > { %v1185_v27 = vmul.f32 %v9558_v61, %v14230_v1  ;;  %14231 = vst [vmem:[#allocation38_spill] sm:$0xff] %v9792_v62  ;;  %v9805_v41 = vadd.f32 %v9569_v11, %v1181_v34  ;;  %v9808_v61 = vadd.f32 %v9569_v11, %v1182_v3  ;;  %v8895_v58 = vpop.eup %8894  ;;  %v9815_v1 = vpop.permute.xlu0 %1624  ;;  %14233 = vst [vmem:[#allocation40_spill] sm:$0xff] %v9817_v39  ;;  %8133 = vmatmul.mubr.msk.bf16.vlgmr.msra.gmra.mxu0 %vm652_vm1, %v9792_v62 }
 0x230   : > { %14232 = vst [vmem:[#allocation39_spill] sm:$0xff] %v9815_v1  ;;  %v9823_v22 = vpack.c.bf16 %v9795_v53, %v9780_v16  ;;  %v9826_v51 = vmul.f32 %v8893_v37, %v9603_v54  ;;  %8918 = vpow2.f32 %v9727_v35  ;;  %v9830_v34 = vadd.f32 %v9569_v11, %v1183_v14  ;;  %v8897_v3 = vpop.eup %8896  ;;  %8199 = vmatpush3.bf16.msra.mxu0 %v9661_v32 }
 0x231   : > { %v9834_v21 = vmul.f32 %v8895_v58, %v9606_v56  ;;  %8920 = vpow2.f32 %v9731_v30  ;;  %v9838_v18 = vadd.f32 %v9569_v11, %v1184_v45  ;;  %v9841_v10 = vadd.f32 %v9569_v11, %v1185_v27  ;;  %v8899_v54 = vpop.eup %8898  ;;  %8803 = vmatprep.subr.msk.bf16.mxu0 %vm1902_vm14, %v9813_v50 }
 0x232   : > { %14234 = vst [vmem:[#allocation41_spill] sm:$0xff] %v9823_v22  ;;  %8152 = vmatprep.mubr.msk.bf16.mxu1 %vm652_vm1, %v9823_v22  ;;  %v9847_v35 = vpack.c.bf16 %v9826_v51, %v9802_v33  ;;  %v9850_v32 = vmul.f32 %v8897_v3, %v9616_v36  ;;  %8922 = vpow2.f32 %v7316_v44  ;;  %v7318_v30 = vmul.f32 -1.442695, %v9799_v26  ;;  %v8901_v45 = vpop.eup %8900 }
 0x233   : > { %vm1629_vm15 = vcmp.eq.s32.totalorder %v9815_v1, 1  ;;  %v9857_v11 = vmul.f32 %v8899_v54, %v9624_v17  ;;  %8924 = vpow2.f32 %v7317_v49  ;;  %v7319_v56 = vmul.f32 -1.442695, %v9805_v41  ;;  %v8903_v27 = vpop.eup %8902  ;;  %v1465_v54 = vld [vmem:[%s13992_s7 + $0xc] sm:$0xf]  ;;  %v9879_v20 = vpop.permute.xlu0 %1627 }
 0x234   : > { %14235 = vst [vmem:[#allocation42_spill] sm:$0xff] %v9847_v35  ;;  %v7320_v14 = vmul.f32 -1.442695, %v9808_v61  ;;  %8136 = vmatprep.mubr.msk.bf16.mxu0 %vm652_vm1, %v9847_v35  ;;  %v9865_v36 = vpack.c.bf16 %v9850_v32, %v9834_v21  ;;  %v9868_v44 = vmul.f32 %v8901_v45, %v9627_v0  ;;  %8926 = vpow2.f32 %v7334_v12  ;;  %v8905_v37 = vpop.eup %8904  ;;  %14237 = vst [vmem:[#allocation44_spill] sm:$0xff] %v9879_v20  ;;  %v9881_v0 = vpop.permute.xlu1 %1671 }
 0x235   : > { %v7321_v17 = vmul.f32 -1.442695, %v9830_v34  ;;  %v9872_v49 = vmul.f32 %v8903_v27, %v9636_v15  ;;  %8928 = vpow2.f32 %v7335_v48  ;;  %v7322_v58 = vmul.f32 -1.442695, %v9838_v18  ;;  %v8907_v55 = vpop.eup %8906  ;;  %14238 = vst [vmem:[#allocation45_spill] sm:$0xff] %v9881_v0 }
 0x236   : > { %14236 = vst [vmem:[#allocation43_spill] sm:$0xff] %v9865_v36  ;;  %v7323_v3 = vmul.f32 -1.442695, %v9841_v10  ;;  %v1477_v12 = vrot.slane %v9761_v43, 7  ;;  %8153 = vmatmul.mubr.msk.bf16.vlgmr.msra.gmra.mxu1 %vm652_vm1, %v9865_v36  ;;  %v9888_v15 = vpack.c.bf16 %v9868_v44, %v9857_v11  ;;  %v9891_v48 = vmul.f32 %v8905_v37, %v9639_v63  ;;  %v8909_v45 = vpop.eup %8908 }
 0x237   : > { %8930 = vpow2.f32 %v7318_v30  ;;  %v1542_v27 = vrot.slane %v9761_v43, 1  ;;  %v1558_v9 = vrot.slane %v9772_v42, 1  ;;  %v9896_v19 = vmul.f32 %v8907_v55, %v9643_v13  ;;  %8165 = vmatpush3.bf16.msra.mxu1 %v9669_v7  ;;  %v8911_v5 = vpop.eup %8910 }
 0x238   : > { %14239 = vst [vmem:[#allocation46_spill] sm:$0xff] %v9888_v15  ;;  %8932 = vpow2.f32 %v7319_v56  ;;  %v1493_v8 = vrot.slane %v9772_v42, 7  ;;  %8156 = vmatprep.mubr.msk.bf16.mxu1 %vm652_vm1, %v9888_v15  ;;  %v9904_v63 = vpack.c.bf16 %v9891_v48, %v9872_v49  ;;  %v9907_v43 = vmul.f32 %v8909_v45, %v9648_v24  ;;  %8802 = vmatprep.subr.msk.bf16.mxu1 %vm1902_vm14, %v1465_v54  ;;  %v8913_v55 = vpop.eup %8912  ;;  %v9938_v37 = vpop.permute.xlu1 %1755 }
 0x239   : > { %8934 = vpow2.f32 %v7320_v14  ;;  %vm1673_vm5 = vcmp.eq.s32.totalorder %v9817_v39, 1  ;;  %vm1630_vm6 = vcmp.eq.s32.totalorder %v9879_v20, 1  ;;  %v9913_v42 = vmul.f32 %v8911_v5, %v9653_v38  ;;  %v8915_v13 = vpop.eup %8914  ;;  %14244 = vst [vmem:[#allocation51_spill] sm:$0xff] %v9938_v37 }
 0x23a   : > { %14240 = vst [vmem:[#allocation47_spill] sm:$0xff] %v9904_v63  ;;  %8936 = vpow2.f32 %v7321_v17  ;;  %vm1674_vm7 = vcmp.eq.s32.totalorder %v9881_v0, 1  ;;  %8137 = vmatmul.mubr.msk.bf16.gmra.mxu0 %vm652_vm1, %v9904_v63  ;;  %v9920_v24 = vpack.c.bf16 %v9907_v43, %v9896_v19  ;;  %v9923_v7 = vmul.f32 %v8913_v55, %v9657_v47  ;;  %v9936_v17 = vpop.permute.xlu0 %1752 }
 0x23b   : > { %v9926_v30 = vsel %vm1902_vm14, %v1465_v54, 0  ;;  %v1360_v56 = vadd.f32 1.0, %v8915_v13  ;;  %v9930_v5 = vsel %vm1574_vm4, %v1542_v27, %v1558_v9  ;;  %v9934_v38 = vsel %vm1574_vm4, %v1558_v9, %v1542_v27  ;;  %v8917_v14 = vpop.eup %8916  ;;  %14243 = vst [vmem:[#allocation50_spill] sm:$0xff] %v9936_v17 }
 0x23c   : > { %14241 = vst [vmem:[#allocation48_spill] sm:$0xff] %v9920_v24  ;;  %14242 = vst [vmem:[#allocation49_spill] sm:$0xff] %v9923_v7  ;;  %8938 = vpow2.f32 %v7322_v58  ;;  %8140 = vmatprep.mubr.msk.bf16.mxu0 %vm652_vm1, %v9920_v24  ;;  %v9944_v47 = vpack.c.bf16 %v9923_v7, %v9913_v42  ;;  %v9948_v54 = vsel %vm1509_vm3, %v1477_v12, %v1493_v8  ;;  %v9952_v9 = vsel %vm1902_vm14, %v9813_v50, 0 }
 0x23d   : > { %8940 = vpow2.f32 %v7323_v3  ;;  %v8919_v58 = vpop.eup %8918  ;;  %v1361_v45 = vadd.f32 1.0, %v8917_v14  ;;  %v1543_v27 = vrot.slane %v9802_v33, 1  ;;  %v1559_v55 = vrot.slane %v9826_v51, 1 }
 0x23e   : > { %14245 = vst [vmem:[#allocation52_spill] sm:$0xff] %v9944_v47  ;;  %8942 = vrcp.f32 %v1360_v56  ;;  %v8921_v13 = vpop.eup %8920  ;;  %8157 = vmatmul.mubr.msk.bf16.gmra.mxu1 %vm652_vm1, %v9944_v47  ;;  %v1342_v4 = vadd.f32 1.0, %v8919_v58  ;;  %v9960_v6 = vsel %vm1509_vm3, %v1493_v8, %v1477_v12  ;;  %v1633_v50 = vsel %vm1629_vm15, %v9930_v5, 0.0 }
 0x23f   : > { %v1634_v3 = vsel %vm1630_vm6, %v9934_v38, 0.0  ;;  %v8923_v56 = vpop.eup %8922  ;;  %8944 = vrcp.f32 %v1361_v45  ;;  %v1343_v14 = vadd.f32 1.0, %v8921_v13  ;;  %v1478_v40 = vrot.slane %v9802_v33, 7 }
 0x240   : > { %v1494_v47 = vrot.slane %v9826_v51, 7  ;;  %v8925_v58 = vpop.eup %8924  ;;  %8946 = vrcp.f32 %v1342_v4  ;;  %v1344_v15 = vadd.f32 1.0, %v8923_v56  ;;  %v9974_v24 = vsel %vm1574_vm4, %v1543_v27, %v1559_v55  ;;  %v9982_v4 = vpop.permute.xlu0 %1796 }
 0x241   : > { %v8927_v36 = vpop.eup %8926  ;;  %8948 = vrcp.f32 %v1343_v14  ;;  %v1345_v22 = vadd.f32 1.0, %v8925_v58  ;;  %v9978_v45 = vsel %vm1574_vm4, %v1559_v55, %v1543_v27  ;;  %vm1757_vm8 = vcmp.eq.s32.totalorder %v9936_v17, 1  ;;  %14246 = vst [vmem:[#allocation53_spill] sm:$0xff] %v9982_v4  ;;  %v9984_v51 = vpop.permute.xlu1 %1799 }
 0x242   : > { %v8929_v33 = vpop.eup %8928  ;;  %vm1758_vm9 = vcmp.eq.s32.totalorder %v9938_v37, 1  ;;  %14247 = vst [vmem:[#allocation54_spill] sm:$0xff] %v9984_v51  ;;  %8950 = vrcp.f32 %v1344_v15  ;;  %v1362_v13 = vadd.f32 1.0, %v8927_v36  ;;  %v1677_v56 = vsel %vm1673_vm5, %v9960_v6, %v1633_v50 }
 0x243   : > { %v1678_v27 = vsel %vm1674_vm7, %v9948_v54, %v1634_v3  ;;  %8952 = vrcp.f32 %v1345_v22  ;;  %v1363_v14 = vadd.f32 1.0, %v8929_v33  ;;  %v9994_v58 = vsel %vm1509_vm3, %v1478_v40, %v1494_v47 }
 0x244   : > { %v8931_v55 = vpop.eup %8930  ;;  %v9998_v12 = vsel %vm1509_vm3, %v1494_v47, %v1478_v40  ;;  %8954 = vrcp.f32 %v1362_v13  ;;  %v1635_v50 = vsel %vm1629_vm15, %v9974_v24, 0.0  ;;  %v1636_v22 = vsel %vm1630_vm6, %v9978_v45, 0.0 }
 0x245   : > { %v8933_v36 = vpop.eup %8932  ;;  %v1346_v15 = vadd.f32 1.0, %v8931_v55  ;;  %vm1801_vm10 = vcmp.eq.s32.totalorder %v9982_v4, 1  ;;  %vm1802_vm11 = vcmp.eq.s32.totalorder %v9984_v51, 1  ;;  %8956 = vrcp.f32 %v1363_v14 }
 0x246   : > { %v8935_v3 = vpop.eup %8934  ;;  %v1347_v33 = vadd.f32 1.0, %v8933_v36  ;;  %v1544_v40 = vrot.slane %v9872_v49, 1  ;;  %v1560_v47 = vrot.slane %v9891_v48, 1  ;;  %v1479_v8 = vrot.slane %v9872_v49, 7 }
 0x247   : > { %v8937_v13 = vpop.eup %8936  ;;  %8958 = vrcp.f32 %v1346_v15  ;;  %v1348_v55 = vadd.f32 1.0, %v8935_v3  ;;  %v1495_v63 = vrot.slane %v9891_v48, 7  ;;  %v1545_v62 = vrot.slane %v9896_v19, 1 }
 0x248   : > { %8960 = vrcp.f32 %v1347_v33  ;;  %v1349_v35 = vadd.f32 1.0, %v8937_v13  ;;  %v1561_v2 = vrot.slane %v9907_v43, 1  ;;  %v10014_v14 = vpack.c.bf16 %v1678_v27, %v1677_v56 }
 0x249   : > { %v8939_v46 = vpop.eup %8938  ;;  %8962 = vrcp.f32 %v1348_v55  ;;  %v1480_v36 = vrot.slane %v9896_v19, 7  ;;  %v1496_v7 = vrot.slane %v9907_v43, 7  ;;  %v1577_v49 = vsel %vm1574_vm4, %v1544_v40, %v1560_v47 }
 0x24a   : > { %v8941_v15 = vpop.eup %8940  ;;  %8964 = vrcp.f32 %v1349_v35  ;;  %v1350_v3 = vadd.f32 1.0, %v8939_v46  ;;  %v10022_v48 = vsel %vm1574_vm4, %v1560_v47, %v1544_v40  ;;  %v1679_v56 = vsel %vm1673_vm5, %v9998_v12, %v1635_v50 }
 0x24b   : > { %v8943_v33 = vpop.eup %8942  ;;  %v1680_v19 = vsel %vm1674_vm7, %v9994_v58, %v1636_v22  ;;  %v1351_v43 = vadd.f32 1.0, %v8941_v15  ;;  %v10032_v46 = vsel %vm1509_vm3, %v1479_v8, %v1495_v63  ;;  %v10039_v27 = vsel %vm1574_vm4, %v1545_v62, %v1561_v2 }
 0x24c   : > { %v10035_v35 = vmul.f32 %v8943_v33, %v9702_v57  ;;  %8966 = vrcp.f32 %v1350_v3  ;;  %v10043_v50 = vsel %vm1574_vm4, %v1561_v2, %v1545_v62  ;;  %v8945_v40 = vpop.eup %8944  ;;  %v1528_v22 = vsel %vm1509_vm3, %v1495_v63, %v1479_v8 }
 0x24d   : > { %8968 = vrcp.f32 %v1351_v43  ;;  %v1637_v47 = vsel %vm1629_vm15, %v1577_v49, 0.0  ;;  %v1638_v57 = vsel %vm1630_vm6, %v10022_v48, 0.0  ;;  %v8947_v13 = vpop.eup %8946  ;;  %v10053_v55 = vmul.f32 %v8945_v40, %v9707_v59 }
 0x24e   : > { %v10057_v62 = vsel %vm1509_vm3, %v1480_v36, %v1496_v7  ;;  %v1761_v2 = vsel %vm1757_vm8, %v9930_v5, 0.0  ;;  %v1762_v63 = vsel %vm1758_vm9, %v9934_v38, 0.0  ;;  %v8949_v8 = vpop.eup %8948  ;;  %v10066_v15 = vmul.f32 %v8947_v13, %v9711_v52 }
 0x24f   : > { %14248 = vst [vmem:[#allocation55_spill] sm:$0xff] %v10053_v55  ;;  %v10070_v59 = vsel %vm1509_vm3, %v1496_v7, %v1480_v36  ;;  %v1639_v3 = vsel %vm1629_vm15, %v10039_v27, 0.0  ;;  %v1640_v5 = vsel %vm1630_vm6, %v10043_v50, 0.0  ;;  %v8951_v33 = vpop.eup %8950  ;;  %v10080_v38 = vpack.c.bf16 %v10053_v55, %v10035_v35 }
 0x250   : > { %v10083_v52 = vmul.f32 %v8949_v8, %v9716_v31  ;;  %v1681_v7 = vsel %vm1673_vm5, %v1528_v22, %v1637_v47  ;;  %v1682_v36 = vsel %vm1674_vm7, %v10032_v46, %v1638_v57  ;;  %v8953_v43 = vpop.eup %8952  ;;  %v10091_v40 = vmul.f32 %v8951_v33, %v9724_v29 }
 0x251   : > { %14249 = vst [vmem:[#allocation56_spill] sm:$0xff] %v10080_v38  ;;  %v10093_v13 = vpack.c.bf16 %v1680_v19, %v1679_v56  ;;  %v1805_v55 = vsel %vm1801_vm10, %v9960_v6, %v1761_v2  ;;  %v1806_v31 = vsel %vm1802_vm11, %v9948_v54, %v1762_v63  ;;  %v8955_v8 = vpop.eup %8954  ;;  %8160 = vmatprep.mubr.msk.bf16.mxu1 %vm652_vm1, %v10080_v38  ;;  %v1763_v2 = vsel %vm1757_vm8, %v9974_v24, 0.0 }
 0x252   : > { %v10105_v47 = vpack.c.bf16 %v10083_v52, %v10066_v15  ;;  %v10108_v29 = vmul.f32 %v8953_v43, %v9734_v60  ;;  %v1683_v56 = vsel %vm1673_vm5, %v10070_v59, %v1639_v3  ;;  %v1684_v6 = vsel %vm1674_vm7, %v10057_v62, %v1640_v5  ;;  %v8957_v54 = vpop.eup %8956 }
 0x253   : > { %v10117_v19 = vmul.f32 %v8955_v8, %v9744_v25  ;;  %v10119_v57 = vpack.c.bf16 %v1682_v36, %v1681_v7  ;;  %v1764_v60 = vsel %vm1758_vm9, %v9978_v45, 0.0  ;;  %v10134_v25 = vmul.f32 %v8957_v54, %v9758_v28 }
 0x254   : > { %14250 = vst [vmem:[#allocation57_spill] sm:$0xff] %v10105_v47  ;;  %v8959_v63 = vpop.eup %8958  ;;  %8141 = vmatmul.mubr.msk.bf16.gmra.mxu0 %vm652_vm1, %v10105_v47  ;;  %v10131_v3 = vpack.c.bf16 %v10108_v29, %v10091_v40  ;;  %v1546_v5 = vrot.slane %v10066_v15, 1  ;;  %v1562_v33 = vrot.slane %v10083_v52, 1  ;;  %v10138_v7 = vpack.c.bf16 %v1684_v6, %v1683_v56 }
 0x255   : > { %14251 = vst [vmem:[#allocation58_spill] sm:$0xff] %v10119_v57  ;;  %v8961_v24 = vpop.eup %8960  ;;  %v10140_v36 = vpack.c.bf16 %v1806_v31, %v1805_v55  ;;  %v1481_v45 = vrot.slane %v10066_v15, 7  ;;  %v1765_v43 = vsel %vm1757_vm8, %v1577_v49, 0.0  ;;  %v10149_v28 = vpack.c.bf16 %v10134_v25, %v10117_v19 }
 0x256   : > { %14252 = vst [vmem:[#allocation59_spill] sm:$0xff] %v10131_v3  ;;  %v8963_v8 = vpop.eup %8962  ;;  %8144 = vmatprep.mubr.msk.bf16.mxu0 %vm652_vm1, %v10131_v3  ;;  %v1442_v54 = vmul.f32 %v8959_v63, %v9799_v26  ;;  %v1443_v56 = vmul.f32 %v8961_v24, %v9805_v41  ;;  %v1497_v55 = vrot.slane %v10083_v52, 7  ;;  %v1807_v49 = vsel %vm1801_vm10, %v9998_v12, %v1763_v2 }
 0x257   : > { %14253 = vst [vmem:[#allocation60_spill] sm:$0xff] %v10140_v36  ;;  %14254 = vst [vmem:[#allocation61_spill] sm:$0xff] %v10149_v28  ;;  %v8965_v31 = vpop.eup %8964  ;;  %v10155_v15 = vmul.f32 %v8963_v8, %v9808_v61  ;;  %v1808_v6 = vsel %vm1802_vm11, %v9994_v58, %v1764_v60  ;;  %v1766_v26 = vsel %vm1758_vm9, %v10022_v48, 0.0  ;;  %8161 = vmatmul.mubr.msk.bf16.gmra.mxu1 %vm652_vm1, %v10149_v28  ;;  %v1767_v58 = vsel %vm1757_vm8, %v10039_v27, 0.0 }
 0x258   : > { %v10169_v41 = vmul.f32 %v8965_v31, %v9830_v34  ;;  %v1579_v61 = vsel %vm1574_vm4, %v1546_v5, %v1562_v33  ;;  %v1809_v12 = vsel %vm1801_vm10, %v1528_v22, %v1765_v43  ;;  %v14255_v2 = vmov 0.0|0.0  }
 0x259   : > { %v8967_v52 = vpop.eup %8966  ;;  %8166 = vmatprep.mubr.bf16.mxu1 %v14255_v2  ;;  %v1595_v48 = vsel %vm1574_vm4, %v1562_v33, %v1546_v5  ;;  %v1547_v60 = vrot.slane %v10091_v40, 1  ;;  %v1563_v34 = vrot.slane %v10108_v29, 1  ;;  %v1768_v63 = vsel %vm1758_vm9, %v10043_v50, 0.0 }
 0x25a   : > { %v8969_v24 = vpop.eup %8968  ;;  %v10186_v22 = vpack.c.bf16 %v1443_v56, %v1442_v54  ;;  %v1530_v27 = vsel %vm1509_vm3, %v1497_v55, %v1481_v45  ;;  %v1482_v43 = vrot.slane %v10091_v40, 7  ;;  %v1498_v8 = vrot.slane %v10108_v29, 7 }
 0x25b   : > { %v10194_v5 = vpack.c.bf16 %v10169_v41, %v10155_v15  ;;  %v1641_v33 = vsel %vm1629_vm15, %v1579_v61, 0.0  ;;  %v1548_v31 = vrot.slane %v1442_v54, 1  ;;  %v1564_v28 = vrot.slane %v1443_v56, 1 }
 0x25c   : > { %14256 = vst [vmem:[#allocation62_spill] sm:$0xff] %v10186_v22  ;;  %8145 = vmatmul.mubr.msk.bf16.gmra.mxu0 %vm652_vm1, %v10186_v22  ;;  %v1514_v50 = vsel %vm1509_vm3, %v1481_v45, %v1497_v55  ;;  %v1642_v40 = vsel %vm1630_vm6, %v1595_v48, 0.0  ;;  %v1483_v38 = vrot.slane %v1442_v54, 7  ;;  %v1499_v29 = vrot.slane %v1443_v56, 7 }
 0x25d   : > { %14257 = vst [vmem:[#allocation63_spill] sm:$0xff] %v10194_v5  ;;  %8148 = vmatprep.mubr.msk.bf16.mxu0 %vm652_vm1, %v10194_v5  ;;  %v10207_v3 = vmul.f32 %v8967_v52, %v9838_v18  ;;  %v10210_v47 = vmul.f32 %v8969_v24, %v9841_v10  ;;  %v10214_v22 = vsel %vm1574_vm4, %v1547_v60, %v1563_v34  ;;  %v1549_v24 = vrot.slane %v10155_v15, 1 }
 0x25e   : > { %v10218_v45 = vsel %vm1574_vm4, %v1563_v34, %v1547_v60  ;;  %v1685_v54 = vsel %vm1673_vm5, %v1530_v27, %v1641_v33  ;;  %v1810_v56 = vsel %vm1802_vm11, %v10032_v46, %v1766_v26  ;;  %v1811_v10 = vsel %vm1801_vm10, %v10070_v59, %v1767_v58  ;;  %v10248_v59 = vld [vmem:[%s13992_s7 + $0x14] sm:$0xf] }
 0x25f   : > { %v1812_v18 = vsel %vm1802_vm11, %v10057_v62, %v1768_v63  ;;  %v1686_v55 = vsel %vm1674_vm7, %v1514_v50, %v1642_v40  ;;  %v10235_v52 = vsel %vm1509_vm3, %v1482_v43, %v1498_v8  ;;  %v10239_v60 = vsel %vm1574_vm4, %v1548_v31, %v1564_v28  ;;  %8167 = vmatmul.mubr.msk.bf16.vlgmr.msra.gmra.mxu1 %vm652_vm1, %v10014_v14 }
 0x260   : > { %v10243_v46 = vsel %vm1574_vm4, %v1564_v28, %v1548_v31  ;;  %v10254_v62 = vsel %vm1509_vm3, %v1498_v8, %v1482_v43  ;;  %v1643_v26 = vsel %vm1629_vm15, %v10214_v22, 0.0  ;;  %v1644_v28 = vsel %vm1630_vm6, %v10218_v45, 0.0  ;;  %8170 = vmatprep.mubr.msk.bf16.mxu1 %vm652_vm1, %v10093_v13  ;;  %8233 = vmatpush3.bf16.msra.mxu1 %v9926_v30 }
 0x261   : > { %v10264_v58 = vsel %vm1509_vm3, %v1483_v38, %v1499_v29  ;;  %v10270_v34 = vpack.c.bf16 %v10210_v47, %v10207_v3  ;;  %v10275_v63 = vsel %vm1509_vm3, %v1499_v29, %v1483_v38  ;;  %v1565_v43 = vrot.slane %v10169_v41, 1  ;;  %8804 = vmatprep.subr.msk.bf16.mxu1 %vm1902_vm14, %v10248_v59 }
 0x262   : > { %v1645_v8 = vsel %vm1629_vm15, %v10239_v60, 0.0  ;;  %v1646_v33 = vsel %vm1630_vm6, %v10243_v46, 0.0  ;;  %v1484_v31 = vrot.slane %v10155_v15, 7  ;;  %v1500_v30 = vrot.slane %v10169_v41, 7 }
 0x263   : > { %14258 = vst [vmem:[#allocation64_spill] sm:$0xff] %v10270_v34  ;;  %v10289_v38 = vpack.c.bf16 %v1686_v55, %v1685_v54  ;;  %v10291_v40 = vpack.c.bf16 %v1808_v6, %v1807_v49  ;;  %v10293_v29 = vpack.c.bf16 %v1810_v56, %v1809_v12  ;;  %v10295_v5 = vpack.c.bf16 %v1812_v18, %v1811_v10 }
 0x264   : > { %8149 = vmatmul.mubr.msk.bf16.gmra.mxu0 %vm652_vm1, %v10270_v34  ;;  %v1687_v15 = vsel %vm1673_vm5, %v10254_v62, %v1643_v26  ;;  %v1688_v41 = vsel %vm1674_vm7, %v10235_v52, %v1644_v28  ;;  %v1769_v54 = vsel %vm1757_vm8, %v1579_v61, 0.0  ;;  %v1770_v49 = vsel %vm1758_vm9, %v1595_v48, 0.0 }
 0x265   : > { %14259 = vst [vmem:[#allocation65_spill] sm:$0xff] %v10291_v40  ;;  %14260 = vst [vmem:[#allocation66_spill] sm:$0xff] %v10293_v29  ;;  %8200 = vmatprep.mubr.bf16.mxu0 %v14255_v2  ;;  %v1689_v6 = vsel %vm1673_vm5, %v10275_v63, %v1645_v8  ;;  %v1690_v12 = vsel %vm1674_vm7, %v10264_v58, %v1646_v33  ;;  %v10318_v56 = vsel %vm1574_vm4, %v1549_v24, %v1565_v43 }
 0x266   : > { %14261 = vst [vmem:[#allocation67_spill] sm:$0xff] %v10295_v5  ;;  %v10322_v61 = vsel %vm1574_vm4, %v1565_v43, %v1549_v24  ;;  %v10326_v48 = vsel %vm1509_vm3, %v1484_v31, %v1500_v30  ;;  %v10330_v10 = vsel %vm1509_vm3, %v1500_v30, %v1484_v31  ;;  %v1502_v18 = vrot.slane %v9795_v53, 7 }
 0x267   : > { %v1567_v55 = vrot.slane %v9795_v53, 1  ;;  %v1813_v26 = vsel %vm1801_vm10, %v1530_v27, %v1769_v54  ;;  %v1814_v28 = vsel %vm1802_vm11, %v1514_v50, %v1770_v49  ;;  %v1485_v24 = vrot.slane %v10207_v3, 7  ;;  %8171 = vmatmul.mubr.msk.bf16.gmra.mxu1 %vm652_vm1, %v10119_v57 }
 0x268   : > { %v1501_v43 = vrot.slane %v10210_v47, 7  ;;  %v1647_v8 = vsel %vm1629_vm15, %v10318_v56, 0.0  ;;  %v1648_v53 = vsel %vm1630_vm6, %v10322_v61, 0.0  ;;  %v14262_v27 = vrot.slane %v9780_v16, 7  ;;  %8174 = vmatprep.mubr.msk.bf16.mxu1 %vm652_vm1, %v10138_v7 }
 0x269   : > { %v10362_v30 = vpack.c.bf16 %v1688_v41, %v1687_v15  ;;  %v10364_v54 = vpack.c.bf16 %v1690_v12, %v1689_v6  ;;  %v14264_v49 = vrot.slane %v9780_v16, 1  ;;  %v10374_v57 = vpack.c.bf16 %v1814_v28, %v1813_v26 }
 0x26a   : > { %v10352_v50 = vsel %vm1509_vm3, %v14262_v27, %v1502_v18  ;;  %v14263_v33 = vmov %v14262_v27  ;;  %v1691_v6 = vsel %vm1673_vm5, %v10330_v10, %v1647_v8  ;;  %v1692_v16 = vsel %vm1674_vm7, %v10326_v48, %v1648_v53 }
 0x26b   : > { %v10358_v31 = vsel %vm1509_vm3, %v1502_v18, %v14263_v33  ;;  %v1584_v2 = vsel %vm1574_vm4, %v14264_v49, %v1567_v55  ;;  %v14265_v27 = vmov %v14264_v49  ;;  %v1550_v18 = vrot.slane %v10207_v3, 1 }
 0x26c   : > { %v1600_v34 = vsel %vm1574_vm4, %v1567_v55, %v14265_v27  ;;  %v1651_v15 = vsel %vm1629_vm15, %v1584_v2, 0.0  ;;  %v10396_v55 = vld [vmem:[%s13992_s7 + $0x18] sm:$0xf]  ;;  %8201 = vmatmul.mubr.msk.bf16.vlgmr.msra.gmra.mxu0 %vm652_vm1, %v10140_v36  ;;  %v10402_v26 = vsel %vm1509_vm3, %v1485_v24, %v1501_v43  ;;  %v1487_v8 = vrot.slane %v9834_v21, 7 }
 0x26d   : > { %v1652_v41 = vsel %vm1630_vm6, %v1600_v34, 0.0  ;;  %v1695_v12 = vsel %vm1673_vm5, %v10358_v31, %v1651_v15  ;;  %v1503_v53 = vrot.slane %v9850_v32, 7  ;;  %8267 = vmatpush3.bf16.msra.mxu0 %v9952_v9  ;;  %8204 = vmatprep.mubr.msk.bf16.mxu0 %vm652_vm1, %v10291_v40  ;;  %v10413_v33 = vsel %vm1509_vm3, %v1501_v43, %v1485_v24 }
 0x26e   : > { %v1696_v3 = vsel %vm1674_vm7, %v10352_v50, %v1652_v41  ;;  %v1566_v49 = vrot.slane %v10210_v47, 1  ;;  %v1552_v27 = vrot.slane %v9834_v21, 1  ;;  %v1568_v15 = vrot.slane %v9850_v32, 1  ;;  %8805 = vmatprep.subr.msk.bf16.mxu0 %vm1902_vm14, %v10396_v55 }
 0x26f   : > { %v10404_v28 = vpack.c.bf16 %v1696_v3, %v1695_v12  ;;  %v10418_v41 = vpack.c.bf16 %v1692_v16, %v1691_v6  ;;  %v1771_v12 = vsel %vm1757_vm8, %v10214_v22, 0.0  ;;  %v10425_v9 = vsel %vm1509_vm3, %v1487_v8, %v1503_v53  ;;  %8175 = vmatmul.mubr.msk.bf16.gmra.mxu1 %vm652_vm1, %v10289_v38 }
 0x270   : > { %v1536_v24 = vsel %vm1509_vm3, %v1503_v53, %v1487_v8  ;;  %v1772_v21 = vsel %vm1758_vm9, %v10218_v45, 0.0  ;;  %v1585_v32 = vsel %vm1574_vm4, %v1552_v27, %v1568_v15  ;;  %v1601_v47 = vsel %vm1574_vm4, %v1568_v15, %v1552_v27  ;;  %8178 = vmatprep.mubr.msk.bf16.mxu1 %vm652_vm1, %v10362_v30 }
 0x271   : > { %v1488_v22 = vrot.slane %v9857_v11, 7  ;;  %v1653_v43 = vsel %vm1629_vm15, %v1585_v32, 0.0  ;;  %v1654_v6 = vsel %vm1630_vm6, %v1601_v47, 0.0  ;;  %v1504_v16 = vrot.slane %v9868_v44, 7 }
 0x272   : > { %v1553_v45 = vrot.slane %v9857_v11, 1  ;;  %v10451_v3 = vsel %vm1574_vm4, %v1550_v18, %v1566_v49  ;;  %v1697_v8 = vsel %vm1673_vm5, %v1536_v24, %v1653_v43  ;;  %v1698_v53 = vsel %vm1674_vm7, %v10425_v9, %v1654_v6 }
 0x273   : > { %v1569_v27 = vrot.slane %v9868_v44, 1  ;;  %v1815_v11 = vsel %vm1801_vm10, %v10254_v62, %v1771_v12  ;;  %v10462_v15 = vpack.c.bf16 %v1698_v53, %v1697_v8  ;;  %v1521_v40 = vsel %vm1509_vm3, %v1488_v22, %v1504_v16 }
 0x274   : > { %v1537_v36 = vsel %vm1509_vm3, %v1504_v16, %v1488_v22  ;;  %v10470_v43 = vsel %vm1574_vm4, %v1566_v49, %v1550_v18  ;;  %v1816_v44 = vsel %vm1802_vm11, %v10235_v52, %v1772_v21  ;;  %8205 = vmatmul.mubr.msk.bf16.gmra.mxu0 %vm652_vm1, %v10293_v29  ;;  %v1649_v12 = vsel %vm1629_vm15, %v10451_v3, 0.0  ;;  %v14266_v16 = vld [vmem:[#allocation49_spill] sm:$0xff] }
 0x275   : > { %v1586_v6 = vsel %vm1574_vm4, %v1553_v45, %v1569_v27  ;;  %v1602_v62 = vsel %vm1574_vm4, %v1569_v27, %v1553_v45  ;;  %v1489_v52 = vrot.slane %v9913_v42, 7  ;;  %8208 = vmatprep.mubr.msk.bf16.mxu0 %vm652_vm1, %v10295_v5  ;;  %v1505_v45 = vrot.slane %v14266_v16, 7 }
 0x276   : > { %v1655_v18 = vsel %vm1629_vm15, %v1586_v6, 0.0  ;;  %v1656_v49 = vsel %vm1630_vm6, %v1602_v62, 0.0  ;;  %v1554_v8 = vrot.slane %v9913_v42, 1  ;;  %v1570_v27 = vrot.slane %v14266_v16, 1 }
 0x277   : > { %v1699_v21 = vsel %vm1673_vm5, %v1537_v36, %v1655_v18  ;;  %v1700_v22 = vsel %vm1674_vm7, %v1521_v40, %v1656_v49  ;;  %v1779_v29 = vsel %vm1757_vm8, %v1584_v2, 0.0  ;;  %v1780_v5 = vsel %vm1758_vm9, %v1600_v34, 0.0  ;;  %8179 = vmatmul.mubr.msk.bf16.gmra.mxu1 %vm652_vm1, %v10364_v54 }
 0x278   : > { %v10497_v53 = vpack.c.bf16 %v1700_v22, %v1699_v21  ;;  %v1522_v18 = vsel %vm1509_vm3, %v1489_v52, %v1505_v45  ;;  %v1538_v49 = vsel %vm1509_vm3, %v1505_v45, %v1489_v52  ;;  %v1823_v42 = vsel %vm1801_vm10, %v10358_v31, %v1779_v29  ;;  %8182 = vmatprep.mubr.msk.bf16.mxu1 %vm652_vm1, %v10418_v41 }
 0x279   : > { %v1824_v21 = vsel %vm1802_vm11, %v10352_v50, %v1780_v5  ;;  %v1650_v2 = vsel %vm1630_vm6, %v10470_v43, 0.0  ;;  %v1587_v34 = vsel %vm1574_vm4, %v1554_v8, %v1570_v27  ;;  %v1603_v52 = vsel %vm1574_vm4, %v1570_v27, %v1554_v8 }
 0x27a   : > { %v10523_v22 = vpack.c.bf16 %v1824_v21, %v1823_v42  ;;  %v10527_v29 = vpack.c.bf16 %v1816_v44, %v1815_v11  ;;  %v1773_v5 = vsel %vm1757_vm8, %v10239_v60, 0.0  ;;  %v1657_v50 = vsel %vm1629_vm15, %v1587_v34, 0.0 }
 0x27b   : > { %v1658_v31 = vsel %vm1630_vm6, %v1603_v52, 0.0  ;;  %v1693_v16 = vsel %vm1673_vm5, %v10413_v33, %v1649_v12  ;;  %v1701_v45 = vsel %vm1673_vm5, %v1538_v49, %v1657_v50  ;;  %v1781_v44 = vsel %vm1757_vm8, %v1585_v32, 0.0 }
 0x27c   : > { %v1702_v11 = vsel %vm1674_vm7, %v1522_v18, %v1658_v31  ;;  %v1694_v60 = vsel %vm1674_vm7, %v10402_v26, %v1650_v2  ;;  %v1774_v8 = vsel %vm1758_vm9, %v10243_v46, 0.0  ;;  %v1782_v12 = vsel %vm1758_vm9, %v1601_v47, 0.0  ;;  %8209 = vmatmul.mubr.msk.bf16.gmra.mxu0 %vm652_vm1, %v10374_v57  ;;  %v14267_v31 = vld [vmem:[#allocation36_spill] sm:$0xff] }
 0x27d   : > { %v10551_v27 = vpack.c.bf16 %v1702_v11, %v1701_v45  ;;  %v1825_v42 = vsel %vm1801_vm10, %v1536_v24, %v1781_v44  ;;  %v1826_v32 = vsel %vm1802_vm11, %v10425_v9, %v1782_v12  ;;  %8212 = vmatprep.mubr.msk.bf16.mxu0 %vm652_vm1, %v10527_v29  ;;  %v1775_v46 = vsel %vm1757_vm8, %v10318_v56, 0.0  ;;  %v14268_v45 = vld [vmem:[#allocation37_spill] sm:$0xff]  ;;  %v14269_v44 = vld [vmem:[#allocation55_spill] sm:$0xff] }
 0x27e   : > { %v1776_v47 = vsel %vm1758_vm9, %v10322_v61, 0.0  ;;  %v10570_v21 = vpack.c.bf16 %v1826_v32, %v1825_v42  ;;  %v10572_v2 = vpack.c.bf16 %v1694_v60, %v1693_v16  ;;  %v1817_v24 = vsel %vm1801_vm10, %v10275_v63, %v1773_v5 }
 0x27f   : > { %v1818_v9 = vsel %vm1802_vm11, %v10264_v58, %v1774_v8  ;;  %v1783_v50 = vsel %vm1757_vm8, %v1586_v6, 0.0  ;;  %v1784_v56 = vsel %vm1758_vm9, %v1602_v62, 0.0  ;;  %v7336_v61 = vmul.f32 -1.442695, %v14267_v31 }
 0x280   : > { %8183 = vmatmul.mubr.msk.bf16.gmra.mxu1 %vm652_vm1, %v10572_v2  ;;  %v1819_v16 = vsel %vm1801_vm10, %v10330_v10, %v1775_v46  ;;  %v1820_v63 = vsel %vm1802_vm11, %v10326_v48, %v1776_v47  ;;  %v1827_v58 = vsel %vm1801_vm10, %v1537_v36, %v1783_v50  ;;  %v1828_v6 = vsel %vm1802_vm11, %v1521_v40, %v1784_v56 }
 0x281   : > { %8186 = vmatprep.mubr.msk.bf16.mxu1 %vm652_vm1, %v10404_v28  ;;  %v10599_v62 = vpack.c.bf16 %v1818_v9, %v1817_v24  ;;  %v10601_v5 = vpack.c.bf16 %v1828_v6, %v1827_v58  ;;  %v1785_v10 = vsel %vm1757_vm8, %v1587_v34, 0.0  ;;  %v7337_v11 = vmul.f32 -1.442695, %v14268_v45 }
 0x282   : > { %v1555_v48 = vrot.slane %v10035_v35, 1  ;;  %v1571_v60 = vrot.slane %v14269_v44, 1  ;;  %v1786_v36 = vsel %vm1758_vm9, %v1603_v52, 0.0  ;;  %v1829_v40 = vsel %vm1801_vm10, %v1538_v49, %v1785_v10 }
 0x283   : > { %v10612_v8 = vpack.c.bf16 %v1820_v63, %v1819_v16  ;;  %v1777_v12 = vsel %vm1757_vm8, %v10451_v3, 0.0  ;;  %v1830_v34 = vsel %vm1802_vm11, %v1522_v18, %v1786_v36  ;;  %v1778_v42 = vsel %vm1758_vm9, %v10470_v43, 0.0 }
 0x284   : > { %8213 = vmatmul.mubr.msk.bf16.gmra.mxu0 %vm652_vm1, %v10599_v62  ;;  %v1490_v52 = vrot.slane %v10035_v35, 7  ;;  %v1506_v49 = vrot.slane %v14269_v44, 7  ;;  %v10626_v32 = vpack.c.bf16 %v1830_v34, %v1829_v40  ;;  %8970 = vpow2.f32 %v7336_v61 }
 0x285   : > { %8216 = vmatprep.mubr.msk.bf16.mxu0 %vm652_vm1, %v10612_v8  ;;  %v1588_v3 = vsel %vm1574_vm4, %v1555_v48, %v1571_v60  ;;  %v1604_v18 = vsel %vm1574_vm4, %v1571_v60, %v1555_v48  ;;  %8972 = vpow2.f32 %v7337_v11  ;;  %v1821_v43 = vsel %vm1801_vm10, %v10413_v33, %v1777_v12 }
 0x286   : > { %v1822_v35 = vsel %vm1802_vm11, %v10402_v26, %v1778_v42  ;;  %v1523_v46 = vsel %vm1509_vm3, %v1490_v52, %v1506_v49  ;;  %v1539_v47 = vsel %vm1509_vm3, %v1506_v49, %v1490_v52  ;;  %v1659_v24 = vsel %vm1629_vm15, %v1588_v3, 0.0 }
 0x287   : > { %v1660_v33 = vsel %vm1630_vm6, %v1604_v18, 0.0  ;;  %v1556_v26 = vrot.slane %v10117_v19, 1  ;;  %v1572_v9 = vrot.slane %v10134_v25, 1  ;;  %v10654_v50 = vpack.c.bf16 %v1822_v35, %v1821_v43 }
 0x288   : > { %8187 = vmatmul.mubr.msk.bf16.gmra.mxu1 %vm652_vm1, %v10462_v15  ;;  %v1703_v56 = vsel %vm1673_vm5, %v1539_v47, %v1659_v24  ;;  %v1704_v61 = vsel %vm1674_vm7, %v1523_v46, %v1660_v33  ;;  %v1491_v16 = vrot.slane %v10117_v19, 7  ;;  %v1507_v63 = vrot.slane %v10134_v25, 7  ;;  %v10725_v33 = vld [vmem:[%s13992_s7 + $0x1c] sm:$0xf] }
 0x289   : > { %8190 = vmatprep.mubr.msk.bf16.mxu1 %vm652_vm1, %v10497_v53  ;;  %v1589_v58 = vsel %vm1574_vm4, %v1556_v26, %v1572_v9  ;;  %v1605_v6 = vsel %vm1574_vm4, %v1572_v9, %v1556_v26  ;;  %v10670_v10 = vpack.c.bf16 %v1704_v61, %v1703_v56  ;;  %v1787_v42 = vsel %vm1757_vm8, %v1588_v3, 0.0  ;;  %v14270_v26 = vld [vmem:[#allocation58_spill] sm:$0xff] }
 0x28a   : > { %v1524_v11 = vsel %vm1509_vm3, %v1491_v16, %v1507_v63  ;;  %v1540_v19 = vsel %vm1509_vm3, %v1507_v63, %v1491_v16  ;;  %v1661_v25 = vsel %vm1629_vm15, %v1589_v58, 0.0  ;;  %v1662_v48 = vsel %vm1630_vm6, %v1605_v6, 0.0  ;;  %v14271_v63 = vld [vmem:[#allocation38_spill] sm:$0xff] }
 0x28b   : > { %v1705_v36 = vsel %vm1673_vm5, %v1540_v19, %v1661_v25  ;;  %v1706_v40 = vsel %vm1674_vm7, %v1524_v11, %v1662_v48  ;;  %v1788_v52 = vsel %vm1758_vm9, %v1604_v18, 0.0  ;;  %v1831_v43 = vsel %vm1801_vm10, %v1539_v47, %v1787_v42 }
 0x28c   : > { %8217 = vmatmul.mubr.msk.bf16.gmra.mxu0 %vm652_vm1, %v10654_v50  ;;  %v10696_v49 = vpack.c.bf16 %v1706_v40, %v1705_v36  ;;  %v1832_v35 = vsel %vm1802_vm11, %v1523_v46, %v1788_v52  ;;  %v1789_v18 = vsel %vm1757_vm8, %v1589_v58, 0.0  ;;  %v1790_v24 = vsel %vm1758_vm9, %v1605_v6, 0.0 }
 0x28d   : > { %8220 = vmatprep.mubr.msk.bf16.mxu0 %vm652_vm1, %v10523_v22  ;;  %v10706_v3 = vpack.c.bf16 %v1832_v35, %v1831_v43  ;;  %v2925_v46 = vsel %vm1902_vm14, %v10248_v59, 0  ;;  %v1834_v47 = vsel %vm1802_vm11, %v1524_v11, %v1790_v24  ;;  %v3121_v48 = vsel %vm1902_vm14, %v10396_v55, 0 }
 0x290   : > { %8191 = vmatmul.mubr.msk.bf16.gmra.mxu1 %vm652_vm1, %v10551_v27 }
 0x291   : > { %8194 = vmatprep.mubr.msk.bf16.mxu1 %vm652_vm1, %v10670_v10  ;;  %v8971_v44 = vpop.eup %8970 }
 0x292   : > { %v8973_v60 = vpop.eup %8972  ;;  %v1364_v12 = vadd.f32 1.0, %v8971_v44 }
 0x293   : > { %v1365_v34 = vadd.f32 1.0, %v8973_v60 }
 0x294   : > { %8221 = vmatmul.mubr.msk.bf16.gmra.mxu0 %vm652_vm1, %v10570_v21  ;;  %8974 = vrcp.f32 %v1364_v12 }
 0x295   : > { %8224 = vmatprep.mubr.msk.bf16.mxu0 %vm652_vm1, %v10601_v5  ;;  %8976 = vrcp.f32 %v1365_v34 }
 0x298   : > { %8195 = vmatmul.mubr.msk.bf16.gmra.mxu1 %vm652_vm1, %v10696_v49 }
 0x299   : > { %8234 = vmatprep.mubr.msk.bf16.mxu1 %vm652_vm1, %v10014_v14  ;;  %v1833_v14 = vsel %vm1801_vm10, %v1540_v19, %v1789_v18  ;;  %v1470_v18 = vld [vmem:[%s13992_s7 + $0x20] sm:$0xf] }
 0x29a   : > { %v10731_v59 = vpack.c.bf16 %v1834_v47, %v1833_v14  ;;  %v14273_v14 = vld [vmem:[#allocation47_spill] sm:$0xff]  ;;  %v14274_v47 = vld [vmem:[#allocation48_spill] sm:$0xff] }
 0x29c   : > { %8225 = vmatmul.mubr.msk.bf16.gmra.mxu0 %vm652_vm1, %v10626_v32 }
 0x29d   : > { %8228 = vmatprep.mubr.msk.bf16.mxu0 %vm652_vm1, %v10706_v3 }
 0x2a0   : > { %8235 = vmatmul.mubr.msk.bf16.vlgmr.msra.gmra.mxu1 %vm652_vm1, %v10093_v13 }
 0x2a1   : > { %8238 = vmatprep.mubr.msk.bf16.mxu1 %vm652_vm1, %v14270_v26  ;;  %8301 = vmatpush3.bf16.msra.mxu1 %v2925_v46  ;;  %v8975_v9 = vpop.eup %8974  ;;  %v14272_v46 = vld [vmem:[#allocation42_spill] sm:$0xff] }
 0x2a2   : > { %8806 = vmatprep.subr.msk.bf16.mxu1 %vm1902_vm14, %v10725_v33  ;;  %v8977_v56 = vpop.eup %8976  ;;  %v1460_v61 = vmul.f32 %v8975_v9, %v14267_v31  ;;  %v14275_v9 = vld [vmem:[#allocation57_spill] sm:$0xff] }
 0x2a3   : > { %v1461_v16 = vmul.f32 %v8977_v56, %v14268_v45  ;;  %v14276_v56 = vld [vmem:[#allocation59_spill] sm:$0xff] }
 0x2a4   : > { %8229 = vmatmul.mubr.msk.bf16.gmra.mxu0 %vm652_vm1, %v10731_v59  ;;  %v1492_v58 = vrot.slane %v1460_v61, 7  ;;  %v1557_v6 = vrot.slane %v1460_v61, 1 }
 0x2a5   : > { %8268 = vmatprep.mubr.msk.bf16.mxu0 %vm652_vm1, %v14271_v63  ;;  %v1508_v11 = vrot.slane %v1461_v16, 7  ;;  %v1573_v19 = vrot.slane %v1461_v16, 1  ;;  %v10741_v25 = vpack.c.bf16 %v1461_v16, %v1460_v61  ;;  %v14277_v61 = vld [vmem:[#allocation62_spill] sm:$0xff]  ;;  %v14278_v16 = vld [vmem:[#allocation63_spill] sm:$0xff]  ;;  %v14279_v63 = vld [vmem:[#allocation64_spill] sm:$0xff] }
 0x2a7   : > { %v1525_v31 = vsel %vm1509_vm3, %v1492_v58, %v1508_v11  ;;  %v1541_v45 = vsel %vm1509_vm3, %v1508_v11, %v1492_v58  ;;  %v1590_v44 = vsel %vm1574_vm4, %v1557_v6, %v1573_v19  ;;  %v1606_v60 = vsel %vm1574_vm4, %v1573_v19, %v1557_v6  ;;  %v14280_v58 = vld [vmem:[#allocation41_spill] sm:$0xff]  ;;  %v14281_v6 = vld [vmem:[#allocation43_spill] sm:$0xff]  ;;  %v14282_v11 = vld [vmem:[#allocation46_spill] sm:$0xff] }
 0x2a8   : > { %8239 = vmatmul.mubr.msk.bf16.gmra.mxu1 %vm652_vm1, %v10138_v7  ;;  %v1663_v55 = vsel %vm1629_vm15, %v1590_v44, 0.0  ;;  %v1664_v36 = vsel %vm1630_vm6, %v1606_v60, 0.0  ;;  %v1791_v40 = vsel %vm1757_vm8, %v1590_v44, 0.0  ;;  %v1792_v12 = vsel %vm1758_vm9, %v1606_v60, 0.0  ;;  %v14283_v19 = vld [vmem:[#allocation52_spill] sm:$0xff]  ;;  %v14287_v60 = vld [vmem:[#allocation65_spill] sm:$0xff] }
 0x2a9   : > { %8242 = vmatprep.mubr.msk.bf16.mxu1 %vm652_vm1, %v10289_v38  ;;  %v1707_v34 = vsel %vm1673_vm5, %v1541_v45, %v1663_v55  ;;  %v1708_v42 = vsel %vm1674_vm7, %v1525_v31, %v1664_v36  ;;  %v1835_v52 = vsel %vm1801_vm10, %v1541_v45, %v1791_v40  ;;  %v1836_v43 = vsel %vm1802_vm11, %v1525_v31, %v1792_v12  ;;  %v14285_v31 = vld [vmem:[#allocation56_spill] sm:$0xff]  ;;  %v14286_v45 = vld [vmem:[#allocation61_spill] sm:$0xff]  ;;  %v14288_v55 = vld [vmem:[#allocation66_spill] sm:$0xff] }
 0x2aa   : > { %v10773_v35 = vpack.c.bf16 %v1708_v42, %v1707_v34  ;;  %v10778_v24 = vpack.c.bf16 %v1836_v43, %v1835_v52  ;;  %v3317_v44 = vsel %vm1902_vm14, %v10725_v33, 0  ;;  %v14289_v36 = vmov 0.0   ;;  %v14290_v40 = vld [vmem:[#allocation67_spill] sm:$0xff] }
 0x2ab   : > { %v3513_v33 = vsel %vm1902_vm14, %v1470_v18, 0 }
 0x2ac   : > { %8269 = vmatmul.mubr.msk.bf16.vlgmr.msra.gmra.mxu0 %vm652_vm1, %v14272_v46 }
 0x2ad   : > { %8335 = vmatpush3.bf16.msra.mxu0 %v3121_v48  ;;  %8272 = vmatprep.mubr.msk.bf16.mxu0 %vm652_vm1, %v14273_v14  ;;  %v14284_v48 = vld [vmem:[#allocation60_spill] sm:$0xff] }
 0x2ae   : > { %8807 = vmatprep.subr.msk.bf16.mxu0 %vm1902_vm14, %v1470_v18 }
 0x2b0   : > { %8243 = vmatmul.mubr.msk.bf16.gmra.mxu1 %vm652_vm1, %v10362_v30 }
 0x2b1   : > { %8246 = vmatprep.mubr.msk.bf16.mxu1 %vm652_vm1, %v10364_v54 }
 0x2b4   : > { %8273 = vmatmul.mubr.msk.bf16.gmra.mxu0 %vm652_vm1, %v14274_v47 }
 0x2b5   : > { %8276 = vmatprep.mubr.msk.bf16.mxu0 %vm652_vm1, %v14275_v9 }
 0x2b8   : > { %8247 = vmatmul.mubr.msk.bf16.gmra.mxu1 %vm652_vm1, %v10418_v41 }
 0x2b9   : > { %8250 = vmatprep.mubr.msk.bf16.mxu1 %vm652_vm1, %v10572_v2 }
 0x2bc   : > { %8277 = vmatmul.mubr.msk.bf16.gmra.mxu0 %vm652_vm1, %v14276_v56 }
 0x2bd   : > { %8280 = vmatprep.mubr.msk.bf16.mxu0 %vm652_vm1, %v14277_v61 }
 0x2c0   : > { %8251 = vmatmul.mubr.msk.bf16.gmra.mxu1 %vm652_vm1, %v10404_v28 }
 0x2c1   : > { %8254 = vmatprep.mubr.msk.bf16.mxu1 %vm652_vm1, %v10462_v15 }
 0x2c4   : > { %8281 = vmatmul.mubr.msk.bf16.gmra.mxu0 %vm652_vm1, %v14278_v16 }
 0x2c5   : > { %8284 = vmatprep.mubr.msk.bf16.mxu0 %vm652_vm1, %v14279_v63 }
 0x2c8   : > { %8255 = vmatmul.mubr.msk.bf16.gmra.mxu1 %vm652_vm1, %v10497_v53 }
 0x2c9   : > { %8258 = vmatprep.mubr.msk.bf16.mxu1 %vm652_vm1, %v10551_v27 }
 0x2cc   : > { %8285 = vmatmul.mubr.msk.bf16.gmra.mxu0 %vm652_vm1, %v14280_v58 }
 0x2cd   : > { %8288 = vmatprep.mubr.msk.bf16.mxu0 %vm652_vm1, %v14281_v6 }
 0x2d0   : > { %8259 = vmatmul.mubr.msk.bf16.gmra.mxu1 %vm652_vm1, %v10670_v10 }
 0x2d1   : > { %8262 = vmatprep.mubr.msk.bf16.mxu1 %vm652_vm1, %v10696_v49 }
 0x2d4   : > { %8289 = vmatmul.mubr.msk.bf16.gmra.mxu0 %vm652_vm1, %v14282_v11 }
 0x2d5   : > { %8292 = vmatprep.mubr.msk.bf16.mxu0 %vm652_vm1, %v14283_v19 }
 0x2d8   : > { %8263 = vmatmul.mubr.msk.bf16.gmra.mxu1 %vm652_vm1, %v10773_v35 }
 0x2d9   : > { %8302 = vmatprep.mubr.msk.bf16.mxu1 %vm652_vm1, %v14284_v48 }
 0x2dc   : > { %8293 = vmatmul.mubr.msk.bf16.gmra.mxu0 %vm652_vm1, %v14285_v31 }
 0x2dd   : > { %8296 = vmatprep.mubr.msk.bf16.mxu0 %vm652_vm1, %v14286_v45 }
 0x2e0   : > { %8303 = vmatmul.mubr.msk.bf16.vlgmr.msra.gmra.mxu1 %vm652_vm1, %v14287_v60 }
 0x2e1   : > { %8306 = vmatprep.mubr.msk.bf16.mxu1 %vm652_vm1, %v14288_v55  ;;  %8369 = vmatpush3.bf16.msra.mxu1 %v3317_v44 }
 0x2e2   : > { %8436 = vmatprep.subr.mxu1 %v14289_v36 }
 0x2e4   : > { %8297 = vmatmul.mubr.msk.bf16.gmra.mxu0 %vm652_vm1, %v10741_v25 }
 0x2e5   : > { %8336 = vmatprep.mubr.msk.bf16.mxu0 %vm652_vm1, %v10093_v13 }
 0x2e8   : > { %8307 = vmatmul.mubr.msk.bf16.gmra.mxu1 %vm652_vm1, %v14290_v40 }
 0x2e9   : > { %8310 = vmatprep.mubr.msk.bf16.mxu1 %vm652_vm1, %v10374_v57 }
 0x2ec   : > { %8337 = vmatmul.mubr.msk.bf16.vlgmr.msra.gmra.mxu0 %vm652_vm1, %v14270_v26 }
 0x2ed   : > { %8403 = vmatpush3.bf16.msra.mxu0 %v3513_v33  ;;  %8340 = vmatprep.mubr.msk.bf16.mxu0 %vm652_vm1, %v10138_v7 }
 0x2ef   : > { %v8134_v13 = vpop.f32.mrf.mxu0 }
 0x2f0   : > { %8311 = vmatmul.mubr.msk.bf16.gmra.mxu1 %vm652_vm1, %v10527_v29 }
 0x2f1   : > { %8314 = vmatprep.mubr.msk.bf16.mxu1 %vm652_vm1, %v10599_v62  ;;  %v1940_v12 = vpop.f32.mrf.mxu0 }
 0x2f3   : > { %v8135_v34 = vpop.f32.mrf.mxu0 }
 0x2f4   : > { %8341 = vmatmul.mubr.msk.bf16.gmra.mxu0 %vm652_vm1, %v10289_v38 }
 0x2f5   : > { %8344 = vmatprep.mubr.msk.bf16.mxu0 %vm652_vm1, %v10362_v30  ;;  %v1943_v30 = vpop.f32.mrf.mxu0 }
 0x2f6   : > { %v10863_v26 = vpop.f32.mrf.mxu1 }
 0x2f8   : > { %8315 = vmatmul.mubr.msk.bf16.gmra.mxu1 %vm652_vm1, %v10612_v8  ;;  %v10869_v7 = vpop.f32.mrf.mxu1 }
 0x2f9   : > { %8318 = vmatprep.mubr.msk.bf16.mxu1 %vm652_vm1, %v10654_v50  ;;  %14291 = vst [vmem:[#allocation49_spill] sm:$0xff] %v10869_v7 }
 0x2fa   : > { %v10875_v38 = vpop.f32.mrf.mxu1 }
 0x2fc   : > { %8345 = vmatmul.mubr.msk.bf16.gmra.mxu0 %vm652_vm1, %v10364_v54  ;;  %v10881_v42 = vpop.f32.mrf.mxu1  ;;  %v8138_v54 = vpop.f32.mrf.mxu0 }
 0x2fd   : > { %8348 = vmatprep.mubr.msk.bf16.mxu0 %vm652_vm1, %v10418_v41  ;;  %14292 = vst [vmem:[#allocation36_spill] sm:$0xff] %v10881_v42 }
 0x2fe   : > { %v10887_v41 = vpop.f32.mrf.mxu1  ;;  %v1956_v52 = vpop.f32.mrf.mxu0 }
 0x300   : > { %8319 = vmatmul.mubr.msk.bf16.gmra.mxu1 %vm652_vm1, %v10523_v22  ;;  %v10893_v43 = vpop.f32.mrf.mxu1 }
 0x301   : > { %8322 = vmatprep.mubr.msk.bf16.mxu1 %vm652_vm1, %v10570_v21 }
 0x304   : > { %8349 = vmatmul.mubr.msk.bf16.gmra.mxu0 %vm652_vm1, %v10572_v2  ;;  %v8139_v2 = vpop.f32.mrf.mxu0 }
 0x305   : > { %8352 = vmatprep.mubr.msk.bf16.mxu0 %vm652_vm1, %v10404_v28  ;;  %v10899_v28 = vpop.f32.mrf.mxu1 }
 0x306   : > { %14293 = vst [vmem:[#allocation37_spill] sm:$0xff] %v10899_v28  ;;  %v1959_v18 = vpop.f32.mrf.mxu0 }
 0x307   : > { %v10903_v48 = vpop.f32.mrf.mxu1 }
 0x308   : > { %8323 = vmatmul.mubr.msk.bf16.gmra.mxu1 %vm652_vm1, %v10601_v5  ;;  %14294 = vst [vmem:[#allocation55_spill] sm:$0xff] %v10903_v48 }
 0x309   : > { %8326 = vmatprep.mubr.msk.bf16.mxu1 %vm652_vm1, %v10626_v32 }
 0x30c   : > { %8353 = vmatmul.mubr.msk.bf16.gmra.mxu0 %vm652_vm1, %v10462_v15 }
 0x30d   : > { %8356 = vmatprep.mubr.msk.bf16.mxu0 %vm652_vm1, %v10497_v53 }
 0x310   : > { %8327 = vmatmul.mubr.msk.bf16.gmra.mxu1 %vm652_vm1, %v10706_v3 }
 0x311   : > { %8330 = vmatprep.mubr.msk.bf16.mxu1 %vm652_vm1, %v10731_v59 }
 0x314   : > { %v8142_v44 = vpop.f32.mrf.mxu0  ;;  %8357 = vmatmul.mubr.msk.bf16.gmra.mxu0 %vm652_vm1, %v10551_v27 }
 0x315   : > { %8360 = vmatprep.mubr.msk.bf16.mxu0 %vm652_vm1, %v10670_v10 }
 0x316   : > { %v1972_v15 = vpop.f32.mrf.mxu0 }
 0x317   : > { %v10909_v53 = vpop.f32.mrf.mxu1 }
 0x318   : > { %8331 = vmatmul.mubr.msk.bf16.gmra.mxu1 %vm652_vm1, %v10778_v24  ;;  %v8143_v33 = vpop.f32.mrf.mxu0 }
 0x319   : > { %8370 = vmatprep.mubr.msk.bf16.mxu1 %vm652_vm1, %v14272_v46  ;;  %v10915_v51 = vpop.f32.mrf.mxu1 }
 0x31a   : > { %v1975_v4 = vpop.f32.mrf.mxu0 }
 0x31b   : > { %v10917_v37 = vpop.f32.mrf.mxu1 }
 0x31c   : > { %v8146_v17 = vpop.f32.mrf.mxu0  ;;  %8361 = vmatmul.mubr.msk.bf16.gmra.mxu0 %vm652_vm1, %v10696_v49 }
 0x31d   : > { %8364 = vmatprep.mubr.msk.bf16.mxu0 %vm652_vm1, %v10773_v35  ;;  %v10923_v27 = vpop.f32.mrf.mxu1 }
 0x31e   : > { %14295 = vst [vmem:[#allocation58_spill] sm:$0xff] %v10923_v27  ;;  %v10925_v10 = vpop.f32.mrf.mxu0  ;;  %v14296_v27 = vmov 0.0|0.0  }
 0x31f   : > { %v8168_v0 = vpop.f32.mrf.mxu1 }
 0x320   : > { %8371 = vmatmul.mubr.msk.bf16.vlgmr.msra.gmra.mxu1 %vm652_vm1, %v14273_v14  ;;  %v10929_v46 = vpop.f32.mrf.mxu0  ;;  %v2161_v39 = vadd.f32 %v8168_v0, %v8134_v13 }
 0x321   : > { %8374 = vmatprep.mubr.msk.bf16.mxu1 %vm652_vm1, %v14274_v47  ;;  %v2152_v20 = vpop.f32.mrf.mxu1 }
 0x322   : > { %v10933_v1 = vpop.f32.mrf.mxu0  ;;  %v2153_v49 = vadd.f32 %v2152_v20, %v1940_v12 }
 0x323   : > { %v8169_v23 = vpop.f32.mrf.mxu1 }
 0x324   : > { %v10935_v35 = vpop.f32.mrf.mxu0  ;;  %8365 = vmatmul.mubr.bf16.gmra.mxu0 %v14296_v27  ;;  %v2164_v48 = vadd.f32 %v8169_v23, %v8135_v34 }
 0x325   : > { %8404 = vmatprep.mubr.msk.bf16.mxu0 %vm652_vm1, %v14287_v60  ;;  %v2155_v14 = vpop.f32.mrf.mxu1 }
 0x326   : > { %v10940_v42 = vpop.f32.mrf.mxu0  ;;  %v2156_v0 = vadd.f32 %v2155_v14, %v1943_v30 }
 0x327   : > { %v8172_v13 = vpop.f32.mrf.mxu1 }
 0x328   : > { %8375 = vmatmul.mubr.msk.bf16.gmra.mxu1 %vm652_vm1, %v14275_v9  ;;  %v10944_v47 = vpop.f32.mrf.mxu0  ;;  %v2177_v20 = vadd.f32 %v8172_v13, %v8138_v54 }
 0x329   : > { %8378 = vmatprep.mubr.msk.bf16.mxu1 %vm652_vm1, %v14276_v56  ;;  %v2168_v12 = vpop.f32.mrf.mxu1 }
 0x32a   : > { %v10948_v7 = vpop.f32.mrf.mxu0  ;;  %v2169_v23 = vadd.f32 %v2168_v12, %v1956_v52 }
 0x32b   : > { %v8173_v34 = vpop.f32.mrf.mxu1 }
 0x32c   : > { %v8202_v60 = vpop.f32.mrf.mxu0  ;;  %8405 = vmatmul.mubr.msk.bf16.vlgmr.msra.gmra.mxu0 %vm652_vm1, %v14288_v55  ;;  %v2180_v30 = vadd.f32 %v8173_v34, %v8139_v2 }
 0x32d   : > { %v10952_v14 = vadd.f32 %v8202_v60, %v2161_v39  ;;  %8408 = vmatprep.mubr.msk.bf16.mxu0 %vm652_vm1, %v14290_v40  ;;  %v2171_v9 = vpop.f32.mrf.mxu1 }
 0x32e   : > { %v2364_v54 = vpop.f32.mrf.mxu0  ;;  %v2172_v13 = vadd.f32 %v2171_v9, %v1959_v18 }
 0x32f   : > { %v10956_v28 = vadd.f32 %v2364_v54, %v2153_v49  ;;  %v8176_v56 = vpop.f32.mrf.mxu1 }
 0x330   : > { %8379 = vmatmul.mubr.msk.bf16.gmra.mxu1 %vm652_vm1, %v14277_v61  ;;  %v8203_v52 = vpop.f32.mrf.mxu0  ;;  %v2193_v12 = vadd.f32 %v8176_v56, %v8142_v44 }
 0x331   : > { %8382 = vmatprep.mubr.msk.bf16.mxu1 %vm652_vm1, %v14278_v16  ;;  %v10962_v55 = vadd.f32 %v8203_v52, %v2164_v48  ;;  %v2184_v39 = vpop.f32.mrf.mxu1 }
 0x332   : > { %v2367_v2 = vpop.f32.mrf.mxu0  ;;  %v2185_v34 = vadd.f32 %v2184_v39, %v1972_v15 }
 0x333   : > { %v10964_v40 = vadd.f32 %v2367_v2, %v2156_v0  ;;  %v8177_v60 = vpop.f32.mrf.mxu1 }
 0x334   : > { %v8206_v18 = vpop.f32.mrf.mxu0  ;;  %8409 = vmatmul.mubr.msk.bf16.gmra.mxu0 %vm652_vm1, %v10374_v57  ;;  %v2196_v49 = vadd.f32 %v8177_v60, %v8143_v33 }
 0x335   : > { %v10968_v9 = vadd.f32 %v8206_v18, %v2177_v20  ;;  %8412 = vmatprep.mubr.msk.bf16.mxu0 %vm652_vm1, %v10527_v29  ;;  %v2187_v61 = vpop.f32.mrf.mxu1 }
 0x336   : > { %v2380_v16 = vpop.f32.mrf.mxu0  ;;  %v2188_v48 = vadd.f32 %v2187_v61, %v1975_v4 }
 0x337   : > { %v10972_v44 = vadd.f32 %v2380_v16, %v2169_v23  ;;  %v8180_v54 = vpop.f32.mrf.mxu1 }
 0x338   : > { %8383 = vmatmul.mubr.msk.bf16.gmra.mxu1 %vm652_vm1, %v14279_v63  ;;  %v8207_v15 = vpop.f32.mrf.mxu0  ;;  %v2209_v0 = vadd.f32 %v8180_v54, %v8146_v17 }
 0x339   : > { %8386 = vmatprep.mubr.msk.bf16.mxu1 %vm652_vm1, %v14280_v58  ;;  %v10978_v57 = vadd.f32 %v8207_v15, %v2180_v30  ;;  %v2200_v33 = vpop.f32.mrf.mxu1 }
 0x33a   : > { %v2383_v20 = vpop.f32.mrf.mxu0  ;;  %v2201_v29 = vadd.f32 %v2200_v33, %v10925_v10 }
 0x33b   : > { %v10981_v56 = vadd.f32 %v2383_v20, %v2172_v13  ;;  %v8181_v4 = vpop.f32.mrf.mxu1 }
 0x33c   : > { %v8210_v23 = vpop.f32.mrf.mxu0  ;;  %8413 = vmatmul.mubr.msk.bf16.gmra.mxu0 %vm652_vm1, %v10599_v62  ;;  %v2212_v63 = vadd.f32 %v8181_v4, %v10929_v46 }
 0x33d   : > { %v10986_v52 = vadd.f32 %v8210_v23, %v2193_v12  ;;  %8416 = vmatprep.mubr.msk.bf16.mxu0 %vm652_vm1, %v10612_v8  ;;  %v2203_v17 = vpop.f32.mrf.mxu1 }
 0x33e   : > { %v2396_v58 = vpop.f32.mrf.mxu0  ;;  %v2204_v30 = vadd.f32 %v2203_v17, %v10933_v1 }
 0x33f   : > { %v10991_v39 = vadd.f32 %v2396_v58, %v2185_v34 }
 0x340   : > { %v8184_v10 = vpop.f32.mrf.mxu1  ;;  %8387 = vmatmul.mubr.msk.bf16.gmra.mxu1 %vm652_vm1, %v14281_v6  ;;  %v8211_v13 = vpop.f32.mrf.mxu0 }
 0x341   : > { %v2225_v62 = vadd.f32 %v8184_v10, %v10935_v35  ;;  %8390 = vmatprep.mubr.msk.bf16.mxu1 %vm652_vm1, %v14282_v11  ;;  %v10998_v46 = vadd.f32 %v8211_v13, %v2196_v49 }
 0x342   : > { %v2216_v12 = vpop.f32.mrf.mxu1  ;;  %v2399_v8 = vpop.f32.mrf.mxu0 }
 0x343   : > { %v11000_v2 = vadd.f32 %v2399_v8, %v2188_v48  ;;  %v2217_v15 = vadd.f32 %v2216_v12, %v10940_v42 }
 0x344   : > { %v8185_v60 = vpop.f32.mrf.mxu1  ;;  %v8214_v1 = vpop.f32.mrf.mxu0  ;;  %8417 = vmatmul.mubr.msk.bf16.gmra.mxu0 %vm652_vm1, %v10654_v50 }
 0x345   : > { %v2228_v34 = vadd.f32 %v8185_v60, %v10944_v47  ;;  %v11005_v6 = vadd.f32 %v8214_v1, %v2209_v0  ;;  %8420 = vmatprep.mubr.msk.bf16.mxu0 %vm652_vm1, %v10523_v22 }
 0x346   : > { %v11009_v35 = vpop.f32.mrf.mxu1  ;;  %v2412_v11 = vpop.f32.mrf.mxu0 }
 0x347   : > { %v11011_v18 = vadd.f32 %v2412_v11, %v2201_v29 }
 0x348   : > { %v8188_v49 = vpop.f32.mrf.mxu1  ;;  %8391 = vmatmul.mubr.msk.bf16.gmra.mxu1 %vm652_vm1, %v14283_v19  ;;  %v8215_v61 = vpop.f32.mrf.mxu0 }
 0x349   : > { %8394 = vmatprep.mubr.msk.bf16.mxu1 %vm652_vm1, %v14285_v31  ;;  %v11017_v50 = vadd.f32 %v8215_v61, %v2212_v63 }
 0x34a   : > { %v11019_v47 = vpop.f32.mrf.mxu1  ;;  %v2415_v16 = vpop.f32.mrf.mxu0 }
 0x34b   : > { %v11021_v48 = vadd.f32 %v2415_v16, %v2204_v30 }
 0x34c   : > { %v8189_v22 = vpop.f32.mrf.mxu1  ;;  %v8218_v54 = vpop.f32.mrf.mxu0  ;;  %8421 = vmatmul.mubr.msk.bf16.gmra.mxu0 %vm652_vm1, %v10570_v21 }
 0x34d   : > { %v11026_v0 = vadd.f32 %v8218_v54, %v2225_v62  ;;  %8424 = vmatprep.mubr.msk.bf16.mxu0 %vm652_vm1, %v10601_v5  ;;  %v2241_v5 = vadd.f32 %v8188_v49, %v10863_v26  ;;  %v2244_v58 = vadd.f32 %v8189_v22, %v10875_v38 }
 0x34e   : > { %v11030_v19 = vpop.f32.mrf.mxu1  ;;  %v2428_v31 = vpop.f32.mrf.mxu0 }
 0x34f   : > { %v11032_v33 = vadd.f32 %v2428_v31, %v2217_v15 }
 0x350   : > { %v8192_v20 = vpop.f32.mrf.mxu1  ;;  %8395 = vmatmul.mubr.msk.bf16.gmra.mxu1 %vm652_vm1, %v14286_v45  ;;  %v8219_v29 = vpop.f32.mrf.mxu0 }
 0x351   : > { %8398 = vmatprep.mubr.msk.bf16.mxu1 %vm652_vm1, %v10741_v25  ;;  %v11038_v21 = vadd.f32 %v8219_v29, %v2228_v34 }
 0x352   : > { %v2248_v42 = vpop.f32.mrf.mxu1  ;;  %v11040_v4 = vpop.f32.mrf.mxu0 }
 0x353   : > { %v2249_v60 = vadd.f32 %v2248_v42, %v10893_v43 }
 0x354   : > { %v8193_v23 = vpop.f32.mrf.mxu1  ;;  %v8222_v63 = vpop.f32.mrf.mxu0  ;;  %8425 = vmatmul.mubr.msk.bf16.gmra.mxu0 %vm652_vm1, %v10626_v32 }
 0x355   : > { %v11045_v17 = vadd.f32 %v8222_v63, %v2241_v5  ;;  %8428 = vmatprep.mubr.msk.bf16.mxu0 %vm652_vm1, %v10706_v3  ;;  %v2257_v3 = vadd.f32 %v8192_v20, %v10887_v41  ;;  %v14297_v41 = vld [vmem:[#allocation37_spill] sm:$0xff] }
 0x356   : > { %v11049_v45 = vpop.f32.mrf.mxu1  ;;  %v11051_v25 = vpop.f32.mrf.mxu0  ;;  %v2260_v49 = vadd.f32 %v8193_v23, %v14297_v41 }
 0x358   : > { %v8196_v30 = vpop.f32.mrf.mxu1  ;;  %8399 = vmatmul.mubr.bf16.gmra.mxu1 %v14296_v27  ;;  %v8223_v26 = vpop.f32.mrf.mxu0 }
 0x359   : > { %v2273_v10 = vadd.f32 %v8196_v30, %v10909_v53  ;;  %v11056_v13 = vadd.f32 %v8223_v26, %v2244_v58  ;;  %8438 = vmatprep.mubr.msk.f32.mxu1 %vm9118_vm0, %v14289_v36 }
 0x35a   : > { %v2264_v32 = vpop.f32.mrf.mxu1  ;;  %v11060_v62 = vpop.f32.mrf.mxu0 }
 0x35b   : > { %v2265_v12 = vadd.f32 %v2264_v32, %v10915_v51 }
 0x35c   : > { %v8197_v8 = vpop.f32.mrf.mxu1  ;;  %v8226_v38 = vpop.f32.mrf.mxu0  ;;  %8429 = vmatmul.mubr.msk.bf16.gmra.mxu0 %vm652_vm1, %v10731_v59 }
 0x35d   : > { %v2276_v53 = vadd.f32 %v8197_v8, %v10917_v37  ;;  %v11068_v1 = vadd.f32 %v8226_v38, %v2257_v3  ;;  %8432 = vmatprep.mubr.msk.bf16.mxu0 %vm652_vm1, %v10778_v24 }
 0x35e   : > { %v11072_v34 = vpop.f32.mrf.mxu1  ;;  %v2460_v11 = vpop.f32.mrf.mxu0 }
 0x35f   : > { %v11075_v51 = vadd.f32 %v2460_v11, %v2249_v60 }
 0x360   : > { %v8236_v61 = vpop.f32.mrf.mxu1  ;;  %v8227_v16 = vpop.f32.mrf.mxu0 }
 0x361   : > { %v2692_v59 = vadd.f32 %v8236_v61, %v10952_v14  ;;  %v11078_v22 = vadd.f32 %v8227_v16, %v2260_v49 }
 0x362   : > { %v2563_v43 = vpop.f32.mrf.mxu1  ;;  %v11080_v37 = vpop.f32.mrf.mxu0 }
 0x363   : > { %v2690_v54 = vadd.f32 %v2563_v43, %v10956_v28 }
 0x364   : > { %v8237_v15 = vpop.f32.mrf.mxu1  ;;  %v8230_v24 = vpop.f32.mrf.mxu0  ;;  %8433 = vmatmul.mubr.bf16.gmra.mxu0 %v14296_v27 }
 0x365   : > { %v2693_v31 = vadd.f32 %v8237_v15, %v10962_v55  ;;  %v11085_v20 = vadd.f32 %v8230_v24, %v2273_v10  ;;  %8492 = vmatprep.mubr.bf16.mxu0 %v14296_v27 }
 0x366   : > { %v11088_v29 = vpop.f32.mrf.mxu1  ;;  %v2476_v14 = vpop.f32.mrf.mxu0 }
 0x367   : > { %v11090_v42 = vadd.f32 %v2476_v14, %v2265_v12 }
 0x368   : > { %v8240_v5 = vpop.f32.mrf.mxu1  ;;  %v8231_v23 = vpop.f32.mrf.mxu0 }
 0x369   : > { %v2696_v63 = vadd.f32 %v8240_v5, %v10968_v9  ;;  %v11093_v28 = vadd.f32 %v8231_v23, %v2276_v53 }
 0x36a   : > { %v2579_v58 = vpop.f32.mrf.mxu1  ;;  %v11095_v30 = vpop.f32.mrf.mxu0 }
 0x36b   : > { %v2694_v55 = vadd.f32 %v2579_v58, %v10972_v44 }
 0x36c   : > { %v8241_v26 = vpop.f32.mrf.mxu1  ;;  %v8270_v10 = vpop.f32.mrf.mxu0 }
 0x36d   : > { %v2697_v32 = vadd.f32 %v8241_v26, %v10978_v57  ;;  %v11099_v3 = vadd.f32 %v8270_v10, %v2692_v59 }
 0x36e   : > { %v11101_v8 = vpop.f32.mrf.mxu1  ;;  %v2762_v12 = vpop.f32.mrf.mxu0 }
 0x36f   : > { %v11103_v38 = vadd.f32 %v2762_v12, %v2690_v54 }
 0x370   : > { %v8244_v60 = vpop.f32.mrf.mxu1  ;;  %v8271_v9 = vpop.f32.mrf.mxu0 }
 0x371   : > { %v2700_v53 = vadd.f32 %v8244_v60, %v10986_v52  ;;  %v11106_v11 = vadd.f32 %v8271_v9, %v2693_v31 }
 0x372   : > { %v2595_v41 = vpop.f32.mrf.mxu1  ;;  %v11108_v49 = vpop.f32.mrf.mxu0 }
 0x373   : > { %v2698_v44 = vadd.f32 %v2595_v41, %v10991_v39 }
 0x374   : > { %v8245_v61 = vpop.f32.mrf.mxu1  ;;  %v8274_v57 = vpop.f32.mrf.mxu0 }
 0x375   : > { %v2701_v16 = vadd.f32 %v8245_v61, %v10998_v46  ;;  %v11112_v59 = vadd.f32 %v8274_v57, %v2696_v63 }
 0x376   : > { %v11114_v43 = vpop.f32.mrf.mxu1  ;;  %v2778_v54 = vpop.f32.mrf.mxu0 }
 0x377   : > { %v11116_v15 = vadd.f32 %v2778_v54, %v2694_v55 }
 0x378   : > { %v8248_v24 = vpop.f32.mrf.mxu1  ;;  %v8275_v52 = vpop.f32.mrf.mxu0 }
 0x379   : > { %v2704_v31 = vadd.f32 %v8248_v24, %v11005_v6  ;;  %v11119_v14 = vadd.f32 %v8275_v52, %v2697_v32  ;;  %v14299_v52 = vld [vmem:[#allocation49_spill] sm:$0xff] }
 0x37a   : > { %v2611_v5 = vpop.f32.mrf.mxu1  ;;  %v11121_v23 = vpop.f32.mrf.mxu0 }
 0x37b   : > { %v2702_v39 = vadd.f32 %v2611_v5, %v11011_v18  ;;  %v2233_v5 = vadd.f32 %v11019_v47, %v14299_v52  ;;  %v3748_v47 = vld [vmem:[%s13996_s11] sm:$0xff] }
 0x37c   : > { %v8249_v58 = vpop.f32.mrf.mxu1  ;;  %v8278_v46 = vpop.f32.mrf.mxu0  ;;  %8437 = vmatpush3.msra.mxu1 %v3748_v47 }
 0x37d   : > { %v2705_v63 = vadd.f32 %v8249_v58, %v11017_v50  ;;  %v11125_v26 = vadd.f32 %v8278_v46, %v2700_v53  ;;  %v2511_v46 = vadd.f32 %v11051_v25, %v2233_v5  ;;  %8441 = vmatprep.subr.mxu1 %v14289_v36 }
 0x37e   : > { %v11127_v10 = vpop.f32.mrf.mxu1  ;;  %v2794_v55 = vpop.f32.mrf.mxu0 }
 0x37f   : > { %v11129_v12 = vadd.f32 %v2794_v55, %v2698_v44 }
 0x380   : > { %v8252_v60 = vpop.f32.mrf.mxu1  ;;  %v8279_v6 = vpop.f32.mrf.mxu0 }
 0x381   : > { %14298 = vst [vmem:[#allocation38_spill] sm:$0xff] %v11129_v12  ;;  %v2708_v32 = vadd.f32 %v8252_v60, %v11026_v0  ;;  %v11132_v9 = vadd.f32 %v8279_v6, %v2701_v16 }
 0x382   : > { %v2627_v41 = vpop.f32.mrf.mxu1  ;;  %v11134_v61 = vpop.f32.mrf.mxu0 }
 0x383   : > { %v2706_v18 = vadd.f32 %v2627_v41, %v11032_v33 }
 0x384   : > { %v8253_v57 = vpop.f32.mrf.mxu1  ;;  %v8282_v50 = vpop.f32.mrf.mxu0 }
 0x385   : > { %v2709_v53 = vadd.f32 %v8253_v57, %v11038_v21  ;;  %v11138_v54 = vadd.f32 %v8282_v50, %v2704_v31 }
 0x386   : > { %v11140_v24 = vpop.f32.mrf.mxu1  ;;  %v2810_v44 = vpop.f32.mrf.mxu0 }
 0x387   : > { %v11144_v0 = vadd.f32 %v2810_v44, %v2702_v39 }
 0x388   : > { %v8256_v16 = vpop.f32.mrf.mxu1  ;;  %v8283_v58 = vpop.f32.mrf.mxu0 }
 0x389   : > { %14300 = vst [vmem:[#allocation42_spill] sm:$0xff] %v11144_v0  ;;  %v2712_v33 = vadd.f32 %v8256_v16, %v11045_v17  ;;  %v11148_v55 = vadd.f32 %v8283_v58, %v2705_v63 }
 0x38a   : > { %v2643_v60 = vpop.f32.mrf.mxu1  ;;  %v11150_v21 = vpop.f32.mrf.mxu0 }
 0x38b   : > { %v2710_v31 = vadd.f32 %v2643_v60, %v2511_v46 }
 0x38c   : > { %v8257_v6 = vpop.f32.mrf.mxu1  ;;  %v8286_v41 = vpop.f32.mrf.mxu0 }
 0x38d   : > { %v2713_v57 = vadd.f32 %v8257_v6, %v11056_v13  ;;  %v11153_v50 = vadd.f32 %v8286_v41, %v2708_v32 }
 0x38e   : > { %v11158_v39 = vpop.f32.mrf.mxu1  ;;  %v2826_v25 = vpop.f32.mrf.mxu0 }
 0x38f   : > { %v11160_v17 = vadd.f32 %v2826_v25, %v2706_v18 }
 0x390   : > { %v8260_v63 = vpop.f32.mrf.mxu1  ;;  %v8287_v44 = vpop.f32.mrf.mxu0 }
 0x391   : > { %14301 = vst [vmem:[#allocation47_spill] sm:$0xff] %v11160_v17  ;;  %v2716_v52 = vadd.f32 %v8260_v63, %v11068_v1  ;;  %v11164_v5 = vadd.f32 %v8287_v44, %v2709_v53 }
 0x392   : > { %v2659_v13 = vpop.f32.mrf.mxu1  ;;  %v11166_v32 = vpop.f32.mrf.mxu0 }
 0x393   : > { %v2714_v16 = vadd.f32 %v2659_v13, %v11075_v51 }
 0x394   : > { %v8261_v58 = vpop.f32.mrf.mxu1  ;;  %v8290_v46 = vpop.f32.mrf.mxu0 }
 0x395   : > { %v2717_v60 = vadd.f32 %v8261_v58, %v11078_v22  ;;  %v11170_v6 = vadd.f32 %v8290_v46, %v2712_v33 }
 0x396   : > { %v11172_v18 = vpop.f32.mrf.mxu1  ;;  %v2842_v41 = vpop.f32.mrf.mxu0 }
 0x397   : > { %v11174_v47 = vadd.f32 %v2842_v41, %v2710_v31 }
 0x398   : > { %v8264_v25 = vpop.f32.mrf.mxu1  ;;  %v8291_v1 = vpop.f32.mrf.mxu0 }
 0x399   : > { %14302 = vst [vmem:[#allocation48_spill] sm:$0xff] %v11174_v47  ;;  %v2720_v53 = vadd.f32 %v8264_v25, %v11085_v20  ;;  %v11177_v63 = vadd.f32 %v8291_v1, %v2713_v57 }
 0x39a   : > { %v2675_v44 = vpop.f32.mrf.mxu1  ;;  %v11179_v27 = vpop.f32.mrf.mxu0 }
 0x39b   : > { %v2718_v51 = vadd.f32 %v2675_v44, %v11090_v42 }
 0x39c   : > { %v8265_v13 = vpop.f32.mrf.mxu1  ;;  %v8294_v22 = vpop.f32.mrf.mxu0 }
 0x39d   : > { %v2721_v33 = vadd.f32 %v8265_v13, %v11093_v28  ;;  %v11183_v58 = vadd.f32 %v8294_v22, %v2716_v52 }
 0x39e   : > { %v11185_v46 = vpop.f32.mrf.mxu1  ;;  %v2858_v31 = vpop.f32.mrf.mxu0 }
 0x39f   : > { %v11187_v41 = vadd.f32 %v2858_v31, %v2714_v16 }
 0x3a0   : > { %v8304_v36 = vpop.f32.mrf.mxu1  ;;  %v8295_v20 = vpop.f32.mrf.mxu0 }
 0x3a1   : > { %14303 = vst [vmem:[#allocation57_spill] sm:$0xff] %v11187_v41  ;;  %v3090_v57 = vadd.f32 %v8304_v36, %v11099_v3  ;;  %v11190_v25 = vadd.f32 %v8295_v20, %v2717_v60 }
 0x3a2   : > { %v2961_v1 = vpop.f32.mrf.mxu1  ;;  %v11192_v47 = vpop.f32.mrf.mxu0 }
 0x3a3   : > { %v3088_v42 = vadd.f32 %v2961_v1, %v11103_v38 }
 0x3a4   : > { %v8305_v44 = vpop.f32.mrf.mxu1  ;;  %v8298_v28 = vpop.f32.mrf.mxu0 }
 0x3a5   : > { %v3091_v52 = vadd.f32 %v8305_v44, %v11106_v11  ;;  %v11196_v13 = vadd.f32 %v8298_v28, %v2720_v53 }
 0x3a6   : > { %v11198_v22 = vpop.f32.mrf.mxu1  ;;  %v2874_v16 = vpop.f32.mrf.mxu0 }
 0x3a7   : > { %v11200_v31 = vadd.f32 %v2874_v16, %v2718_v51 }
 0x3a8   : > { %v8308_v41 = vpop.f32.mrf.mxu1  ;;  %v8299_v36 = vpop.f32.mrf.mxu0 }
 0x3a9   : > { %14304 = vst [vmem:[#allocation59_spill] sm:$0xff] %v11200_v31  ;;  %v3094_v3 = vadd.f32 %v8308_v41, %v11112_v59  ;;  %v11203_v60 = vadd.f32 %v8299_v36, %v2721_v33 }
 0x3aa   : > { %v11205_v20 = vpop.f32.mrf.mxu1  ;;  %v11207_v38 = vpop.f32.mrf.mxu0 }
 0x3ac   : > { %v8309_v1 = vpop.f32.mrf.mxu1  ;;  %v8338_v17 = vpop.f32.mrf.mxu0 }
 0x3ad   : > { %v3095_v11 = vadd.f32 %v8309_v1, %v11119_v14  ;;  %v11210_v53 = vadd.f32 %v8338_v17, %v3090_v57 }
 0x3ae   : > { %v11212_v44 = vpop.f32.mrf.mxu1  ;;  %v3157_v51 = vpop.f32.mrf.mxu0 }
 0x3af   : > { %v11214_v28 = vadd.f32 %v3157_v51, %v3088_v42 }
 0x3b0   : > { %v8312_v16 = vpop.f32.mrf.mxu1  ;;  %v8339_v31 = vpop.f32.mrf.mxu0 }
 0x3b1   : > { %14305 = vst [vmem:[#allocation62_spill] sm:$0xff] %v11214_v28  ;;  %v3098_v59 = vadd.f32 %v8312_v16, %v11125_v26  ;;  %v11217_v33 = vadd.f32 %v8339_v31, %v3091_v52 }
 0x3b2   : > { %v11219_v41 = vpop.f32.mrf.mxu1  ;;  %v11221_v36 = vpop.f32.mrf.mxu0 }
 0x3b3   : > { %14306 = vst [vmem:[#allocation63_spill] sm:$0xff] %v11217_v33 }
 0x3b4   : > { %v8313_v0 = vpop.f32.mrf.mxu1  ;;  %v8342_v12 = vpop.f32.mrf.mxu0 }
 0x3b5   : > { %v3099_v14 = vadd.f32 %v8313_v0, %v11132_v9  ;;  %v11224_v17 = vadd.f32 %v8342_v12, %v3094_v3 }
 0x3b6   : > { %v11226_v57 = vpop.f32.mrf.mxu1  ;;  %v11228_v42 = vpop.f32.mrf.mxu0 }
 0x3b7   : > { %14307 = vst [vmem:[#allocation64_spill] sm:$0xff] %v11224_v17  ;;  %14308 = vst [vmem:[#allocation41_spill] sm:$0xff] %v11228_v42 }
 0x3b8   : > { %v8316_v1 = vpop.f32.mrf.mxu1  ;;  %v8343_v51 = vpop.f32.mrf.mxu0 }
 0x3b9   : > { %v3102_v26 = vadd.f32 %v8316_v1, %v11138_v54  ;;  %v11231_v52 = vadd.f32 %v8343_v51, %v3095_v11 }
 0x3ba   : > { %v11233_v31 = vpop.f32.mrf.mxu1  ;;  %v11235_v16 = vpop.f32.mrf.mxu0 }
 0x3bb   : > { %14309 = vst [vmem:[#allocation43_spill] sm:$0xff] %v11231_v52  ;;  %14310 = vst [vmem:[#allocation46_spill] sm:$0xff] %v11235_v16 }
 0x3bc   : > { %v8317_v33 = vpop.f32.mrf.mxu1  ;;  %v8346_v28 = vpop.f32.mrf.mxu0 }
 0x3bd   : > { %v3103_v9 = vadd.f32 %v8317_v33, %v11148_v55  ;;  %v11238_v12 = vadd.f32 %v8346_v28, %v3098_v59 }
 0x3be   : > { %v11240_v0 = vpop.f32.mrf.mxu1  ;;  %v11242_v3 = vpop.f32.mrf.mxu0 }
 0x3bf   : > { %14311 = vst [vmem:[#allocation52_spill] sm:$0xff] %v11238_v12  ;;  %14312 = vst [vmem:[#allocation60_spill] sm:$0xff] %v11242_v3 }
 0x3c0   : > { %v8320_v17 = vpop.f32.mrf.mxu1  ;;  %v8347_v42 = vpop.f32.mrf.mxu0 }
 0x3c1   : > { %v3106_v54 = vadd.f32 %v8320_v17, %v11153_v50  ;;  %v11245_v11 = vadd.f32 %v8347_v42, %v3099_v14 }
 0x3c2   : > { %v11247_v1 = vpop.f32.mrf.mxu1  ;;  %v11249_v51 = vpop.f32.mrf.mxu0 }
 0x3c3   : > { %14313 = vst [vmem:[#allocation56_spill] sm:$0xff] %v11245_v11  ;;  %14314 = vst [vmem:[#allocation61_spill] sm:$0xff] %v11249_v51 }
 0x3c4   : > { %v8321_v52 = vpop.f32.mrf.mxu1  ;;  %v8350_v16 = vpop.f32.mrf.mxu0 }
 0x3c5   : > { %v3107_v55 = vadd.f32 %v8321_v52, %v11164_v5  ;;  %v11252_v28 = vadd.f32 %v8350_v16, %v3102_v26 }
 0x3c6   : > { %v11254_v59 = vpop.f32.mrf.mxu1  ;;  %v11256_v33 = vpop.f32.mrf.mxu0 }
 0x3c7   : > { %14315 = vst [vmem:[#allocation65_spill] sm:$0xff] %v11252_v28  ;;  %14316 = vst [vmem:[#allocation66_spill] sm:$0xff] %v11256_v33 }
 0x3c8   : > { %v8324_v12 = vpop.f32.mrf.mxu1  ;;  %v8351_v3 = vpop.f32.mrf.mxu0 }
 0x3c9   : > { %v3110_v50 = vadd.f32 %v8324_v12, %v11170_v6  ;;  %v11259_v14 = vadd.f32 %v8351_v3, %v3103_v9 }
 0x3ca   : > { %v11261_v17 = vpop.f32.mrf.mxu1  ;;  %v11263_v42 = vpop.f32.mrf.mxu0 }
 0x3cb   : > { %14317 = vst [vmem:[#allocation67_spill] sm:$0xff] %v11259_v14  ;;  %14318 = vst [vmem:[#allocation37_spill] sm:$0xff] %v11263_v42 }
 0x3cc   : > { %v8325_v11 = vpop.f32.mrf.mxu1  ;;  %v8354_v51 = vpop.f32.mrf.mxu0 }
 0x3cd   : > { %v3111_v5 = vadd.f32 %v8325_v11, %v11177_v63  ;;  %v11266_v26 = vadd.f32 %v8354_v51, %v3106_v54 }
 0x3ce   : > { %v11268_v52 = vpop.f32.mrf.mxu1  ;;  %v11270_v16 = vpop.f32.mrf.mxu0 }
 0x3cf   : > { %14319 = vst [vmem:[#allocation49_spill] sm:$0xff] %v11266_v26  ;;  %14320 = vst [vmem:[#allocation68_spill] sm:$0xff] %v11270_v16 }
 0x3d0   : > { %v8328_v28 = vpop.f32.mrf.mxu1  ;;  %v8355_v33 = vpop.f32.mrf.mxu0 }
 0x3d1   : > { %v3114_v6 = vadd.f32 %v8328_v28, %v11183_v58  ;;  %v11273_v9 = vadd.f32 %v8355_v33, %v3107_v55 }
 0x3d2   : > { %v11275_v12 = vpop.f32.mrf.mxu1  ;;  %v11277_v3 = vpop.f32.mrf.mxu0 }
 0x3d3   : > { %14321 = vst [vmem:[#allocation69_spill] sm:$0xff] %v11273_v9  ;;  %14322 = vst [vmem:[#allocation70_spill] sm:$0xff] %v11277_v3 }
 0x3d4   : > { %v8329_v14 = vpop.f32.mrf.mxu1  ;;  %v8358_v42 = vpop.f32.mrf.mxu0 }
 0x3d5   : > { %v3115_v63 = vadd.f32 %v8329_v14, %v11190_v25  ;;  %v11280_v54 = vadd.f32 %v8358_v42, %v3110_v50 }
 0x3d6   : > { %v11282_v11 = vpop.f32.mrf.mxu1  ;;  %v11284_v51 = vpop.f32.mrf.mxu0 }
 0x3d7   : > { %14323 = vst [vmem:[#allocation71_spill] sm:$0xff] %v11280_v54  ;;  %14324 = vst [vmem:[#allocation72_spill] sm:$0xff] %v11282_v11  ;;  %v14334_v11 = vld [vmem:[#allocation58_spill] sm:$0xff] }
 0x3d8   : > { %14325 = vst [vmem:[#allocation73_spill] sm:$0xff] %v11284_v51  ;;  %v8332_v26 = vpop.f32.mrf.mxu1  ;;  %v8359_v16 = vpop.f32.mrf.mxu0  ;;  %v2268_v3 = vadd.f32 %v11072_v34, %v14334_v11  ;;  %v2699_v11 = vadd.f32 %v11114_v43, %v11000_v2 }
 0x3d9   : > { %v3118_v58 = vadd.f32 %v8332_v26, %v11196_v13  ;;  %v11287_v55 = vadd.f32 %v8359_v16, %v3111_v5  ;;  %v1471_v13 = vld [vmem:[%s13993_s8] sm:$0x1] }
 0x3da   : > { %v11289_v28 = vpop.f32.mrf.mxu1  ;;  %v11291_v33 = vpop.f32.mrf.mxu0  ;;  %v1472_v5 = vld [vmem:[%s577_s28] sm:$0x1]  ;;  %s13748_s28 = scalar_lea.vmem %s14002_s17, %s7691_s26 }
 0x3db   : > { %14326 = vst [vmem:[#allocation74_spill] sm:$0xff] %v11287_v55  ;;  %14327 = vst [vmem:[#allocation75_spill] sm:$0xff] %v11289_v28 }
 0x3dc   : > { %14328 = vst [vmem:[#allocation76_spill] sm:$0xff] %v11291_v33  ;;  %v8333_v25 = vpop.f32.mrf.mxu1  ;;  %v8362_v50 = vpop.f32.mrf.mxu0  ;;  %v1473_v33 = vadd.f32 %v1472_v5, %v1471_v13  ;;  %v14335_v13 = vld [vmem:[#allocation35_spill] sm:$0xff] }
 0x3dd   : > { %v3119_v14 = vadd.f32 %v8333_v25, %v11203_v60  ;;  %v11298_v42 = vadd.f32 %v8362_v50, %v3114_v6  ;;  %v2220_v60 = vadd.f32 %v11009_v35, %v10948_v7  ;;  %v14332_v50 = vld [vmem:[#allocation36_spill] sm:$0xff]  ;;  %v2691_v7 = vadd.f32 %v11088_v29, %v10964_v40 }
 0x3de   : > { %v11300_v54 = vpop.f32.mrf.mxu1  ;;  %v11302_v9 = vpop.f32.mrf.mxu0  ;;  %v11322_v5 = vrot.slane %v1473_v33, %v14335_v13  ;;  %v2695_v35 = vadd.f32 %v11101_v8, %v10981_v56  ;;  %v2703_v40 = vadd.f32 %v11127_v10, %v11021_v48 }
 0x3df   : > { %14329 = vst [vmem:[#allocation77_spill] sm:$0xff] %v11298_v42  ;;  %14330 = vst [vmem:[#allocation78_spill] sm:$0xff] %v11300_v54  ;;  %v2236_v42 = vadd.f32 %v11030_v19, %v14332_v50 }
 0x3e0   : > { %14331 = vst [vmem:[#allocation79_spill] sm:$0xff] %v11302_v9  ;;  %v8372_v26 = vpop.f32.mrf.mxu1  ;;  %v8363_v16 = vpop.f32.mrf.mxu0  ;;  %v14333_v9 = vld [vmem:[#allocation55_spill] sm:$0xff]  ;;  %v2902_v2 = vadd.f32 %v11150_v21, %v2703_v40 }
 0x3e1   : > { %v11307_v55 = vadd.f32 %v8363_v16, %v3115_v63  ;;  %v2252_v54 = vadd.f32 %v11049_v45, %v14333_v9  ;;  %v2508_v16 = vadd.f32 %v11040_v4, %v2220_v60  ;;  %v2512_v45 = vadd.f32 %v11060_v62, %v2236_v42  ;;  %v14337_v42 = vld [vmem:[#allocation41_spill] sm:$0xff]  ;;  %v14338_v60 = vld [vmem:[#allocation62_spill] sm:$0xff]  ;;  %v14346_v40 = vld [vmem:[#allocation63_spill] sm:$0xff] }
 0x3e2   : > { %v3353_v28 = vpop.f32.mrf.mxu1  ;;  %v11309_v51 = vpop.f32.mrf.mxu0  ;;  %v2520_v9 = vadd.f32 %v11095_v30, %v2268_v3  ;;  %v2890_v4 = vadd.f32 %v11108_v49, %v2691_v7  ;;  %v2898_v62 = vadd.f32 %v11134_v61, %v2699_v11  ;;  %v14344_v11 = vld [vmem:[#allocation66_spill] sm:$0xff] }
 0x3e3   : > { %v2516_v34 = vadd.f32 %v11080_v37, %v2252_v54  ;;  %v2707_v56 = vadd.f32 %v11140_v24, %v2508_v16  ;;  %v2711_v37 = vadd.f32 %v11158_v39, %v2512_v45  ;;  %v3092_v39 = vadd.f32 %v11205_v20, %v11116_v15  ;;  %v14339_v20 = vld [vmem:[#allocation42_spill] sm:$0xff]  ;;  %v14341_v16 = vld [vmem:[#allocation60_spill] sm:$0xff]  ;;  %v14343_v45 = vld [vmem:[#allocation61_spill] sm:$0xff] }
 0x3e4   : > { %v8373_v6 = vpop.f32.mrf.mxu1  ;;  %v8366_v25 = vpop.f32.mrf.mxu0  ;;  %v2719_v43 = vadd.f32 %v11185_v46, %v2520_v9  ;;  %v3089_v48 = vadd.f32 %v11198_v22, %v2890_v4 }
 0x3e5   : > { %v11319_v63 = vadd.f32 %v8366_v25, %v3118_v58  ;;  %v2894_v58 = vadd.f32 %v11121_v23, %v2695_v35  ;;  %v2715_v30 = vadd.f32 %v11172_v18, %v2516_v34  ;;  %v2906_v49 = vadd.f32 %v11166_v32, %v2707_v56  ;;  %v14336_v32 = vld [vmem:[#allocation38_spill] sm:$0xff]  ;;  %v14342_v35 = vld [vmem:[#allocation47_spill] sm:$0xff] }
 0x3e6   : > { %v3356_v19 = vpop.f32.mrf.mxu1  ;;  %v11329_v50 = vpop.f32.mrf.mxu0  ;;  %v2910_v24 = vadd.f32 %v11179_v27, %v2711_v37  ;;  %v3482_v18 = vadd.f32 %v8372_v26, %v11210_v53  ;;  %v2918_v54 = vadd.f32 %v11207_v38, %v2719_v43  ;;  %v3096_v46 = vadd.f32 %v11219_v41, %v14336_v32  ;;  %v14340_v38 = vld [vmem:[#allocation46_spill] sm:$0xff] }
 0x3e7   : > { %v2914_v61 = vadd.f32 %v11192_v47, %v2715_v30  ;;  %v3093_v21 = vadd.f32 %v11212_v44, %v2894_v58  ;;  %v3285_v22 = vadd.f32 %v11221_v36, %v3089_v48  ;;  %v3097_v27 = vadd.f32 %v11226_v57, %v2898_v62 }
 0x3e8   : > { %v8376_v29 = vpop.f32.mrf.mxu1  ;;  %v8367_v8 = vpop.f32.mrf.mxu0  ;;  %v3288_v47 = vadd.f32 %v14337_v42, %v3092_v39  ;;  %v3480_v25 = vadd.f32 %v3353_v28, %v14338_v60  ;;  %v3100_v53 = vadd.f32 %v11233_v31, %v14339_v20  ;;  %v3101_v44 = vadd.f32 %v11240_v0, %v2902_v2  ;;  %v14345_v0 = vld [vmem:[#allocation48_spill] sm:$0xff]  ;;  %v14350_v39 = vld [vmem:[#allocation70_spill] sm:$0xff]  ;;  %v14354_v42 = vld [vmem:[#allocation75_spill] sm:$0xff] }
 0x3e9   : > { %v11344_v3 = vadd.f32 %v8367_v8, %v3119_v14  ;;  %v3289_v26 = vadd.f32 %v14340_v38, %v3093_v21  ;;  %v11368_v41 = vadd.f32 %v14341_v16, %v3096_v46  ;;  %v3104_v57 = vadd.f32 %v11247_v1, %v14342_v35  ;;  %v14347_v1 = vld [vmem:[#allocation37_spill] sm:$0xff]  ;;  %v14348_v2 = vld [vmem:[#allocation68_spill] sm:$0xff] }
 0x3ea   : > { %v3369_v23 = vpop.f32.mrf.mxu1  ;;  %v3272_v10 = vpop.f32.mrf.mxu0  ;;  %v11373_v34 = vadd.f32 %v14343_v45, %v3097_v27  ;;  %v3105_v31 = vadd.f32 %v11254_v59, %v2906_v49  ;;  %v11380_v4 = vadd.f32 %v14344_v11, %v3100_v53  ;;  %v3108_v58 = vadd.f32 %v11261_v17, %v14345_v0  ;;  %v14349_v49 = vld [vmem:[#allocation57_spill] sm:$0xff]  ;;  %v14351_v46 = vld [vmem:[#allocation72_spill] sm:$0xff] }
 0x3eb   : > { %v3483_v56 = vadd.f32 %v8373_v6, %v14346_v40  ;;  %v11386_v37 = vadd.f32 %v14347_v1, %v3101_v44  ;;  %v3109_v30 = vadd.f32 %v11268_v52, %v2910_v24  ;;  %v11390_v43 = vadd.f32 %v14348_v2, %v3104_v57  ;;  %v14352_v27 = vld [vmem:[#allocation73_spill] sm:$0xff]  ;;  %v14353_v24 = vld [vmem:[#allocation59_spill] sm:$0xff]  ;;  %v14356_v20 = vld [vmem:[#allocation76_spill] sm:$0xff] }
 0x3ec   : > { %v8377_v33 = vpop.f32.mrf.mxu1  ;;  %v8406_v14 = vpop.f32.mrf.mxu0  ;;  %v3112_v48 = vadd.f32 %v11275_v12, %v14349_v49  ;;  %v11398_v17 = vadd.f32 %v14350_v39, %v3105_v31  ;;  %v3481_v6 = vadd.f32 %v3356_v19, %v3285_v22  ;;  %v11402_v52 = vadd.f32 %v14352_v27, %v3108_v58  ;;  %v14357_v12 = vld [vmem:[#allocation78_spill] sm:$0xff]  ;;  %v14359_v58 = vld [vmem:[#allocation43_spill] sm:$0xff]  ;;  %v14360_v2 = vld [vmem:[#allocation52_spill] sm:$0xff] }
 0x3ed   : > { %v3678_v15 = vadd.f32 %v8406_v14, %v3482_v18  ;;  %v3113_v14 = vadd.f32 %v14351_v46, %v2914_v61  ;;  %v3116_v60 = vadd.f32 %v14354_v42, %v14353_v24  ;;  %v11408_v53 = vadd.f32 %v14356_v20, %v3109_v30  ;;  %v14358_v61 = vld [vmem:[#allocation79_spill] sm:$0xff] }
 0x3ee   : > { %v3372_v36 = vpop.f32.mrf.mxu1  ;;  %v3549_v7 = vpop.f32.mrf.mxu0  ;;  %v3117_v38 = vadd.f32 %v14357_v12, %v2918_v54  ;;  %v3484_v35 = vadd.f32 %v3369_v23, %v3288_v47  ;;  %v3487_v40 = vadd.f32 %v8377_v33, %v14359_v58 }
 0x3ef   : > { %v11376_v28 = vadd.f32 %v11322_v5, %v3678_v15  ;;  %v3676_v9 = vadd.f32 %v3549_v7, %v3480_v25  ;;  %v14355_v25 = vld [vmem:[#allocation64_spill] sm:$0xff]  ;;  %v11415_v7 = vadd.f32 %v14358_v61, %v3112_v48 }
 0x3f0   : > { %v8380_v8 = vpop.f32.mrf.mxu1  ;;  %v8407_v62 = vpop.f32.mrf.mxu0  ;;  %v3486_v15 = vadd.f32 %v8376_v29, %v14355_v25  ;;  %v11420_v29 = vadd.f32 %v11309_v51, %v3113_v14  ;;  %v11425_v54 = vadd.f32 %v3272_v10, %v3117_v38  ;;  %v14361_v38 = vld [vmem:[#allocation56_spill] sm:$0xff] }
 0x3f1   : > { %v11393_v59 = vadd.f32 %v11322_v5, %v3676_v9  ;;  %v3679_v21 = vadd.f32 %v8407_v62, %v3483_v56  ;;  %v11423_v9 = vadd.f32 %v11329_v50, %v3116_v60  ;;  %v3821_v23 = vmul.f32 %v11376_v28, %v11376_v28 }
 0x3f2   : > { %v3385_v18 = vpop.f32.mrf.mxu1  ;;  %v3552_v32 = vpop.f32.mrf.mxu0  ;;  %v3485_v56 = vadd.f32 %v3372_v36, %v3289_v26  ;;  %v3753_v33 = vsel %vm652_vm1, %v11376_v28, 0.0  ;;  %v3490_v49 = vadd.f32 %v8380_v8, %v14360_v2 }
 0x3f3   : > { %v11412_v19 = vadd.f32 %v11322_v5, %v3679_v21  ;;  %v3677_v44 = vadd.f32 %v3552_v32, %v3481_v6  ;;  %v3819_v57 = vmul.f32 %v11393_v59, %v11393_v59  ;;  %v3750_v50 = vsel %vm652_vm1, %v11393_v59, 0.0 }
 0x3f4   : > { %v8381_v22 = vpop.f32.mrf.mxu1  ;;  %v8410_v16 = vpop.f32.mrf.mxu0  ;;  %v3854_v14 = vsel %vm652_vm1, %v3821_v23, 0.0  ;;  %v3488_v27 = vadd.f32 %v3385_v18, %v11368_v41 }
 0x3f5   : > { %v3682_v45 = vadd.f32 %v8410_v16, %v3486_v15  ;;  %v11428_v31 = vadd.f32 %v11322_v5, %v3677_v44  ;;  %v3851_v48 = vsel %vm652_vm1, %v3819_v57, 0.0  ;;  %v3822_v26 = vmul.f32 %v11412_v19, %v11412_v19 }
 0x3f6   : > { %v3388_v11 = vpop.f32.mrf.mxu1  ;;  %v3565_v0 = vpop.f32.mrf.mxu0  ;;  %v3755_v42 = vsel %vm652_vm1, %v11412_v19, 0.0  ;;  %v3491_v44 = vadd.f32 %v8381_v22, %v14361_v38 }
 0x3f7   : > { %v11434_v47 = vadd.f32 %v11322_v5, %v3682_v45  ;;  %v3680_v51 = vadd.f32 %v3565_v0, %v3484_v35  ;;  %v3751_v10 = vsel %vm652_vm1, %v11428_v31, 0.0  ;;  %v3820_v62 = vmul.f32 %v11428_v31, %v11428_v31 }
 0x3f8   : > { %v8384_v1 = vpop.f32.mrf.mxu1  ;;  %v8411_v30 = vpop.f32.mrf.mxu0  ;;  %v3752_v39 = vadd.f32 %v3751_v10, %v3750_v50  ;;  %v3856_v41 = vsel %vm652_vm1, %v3822_v26, 0.0  ;;  %v3489_v18 = vadd.f32 %v3388_v11, %v11373_v34 }
 0x3f9   : > { %v3852_v36 = vsel %vm652_vm1, %v3820_v62, 0.0  ;;  %v11450_v6 = vadd.f32 %v11322_v5, %v3680_v51  ;;  %v3683_v32 = vadd.f32 %v8411_v30, %v3487_v40  ;;  %v3825_v40 = vmul.f32 %v11434_v47, %v11434_v47 }
 0x3fa   : > { %v3401_v21 = vpop.f32.mrf.mxu1  ;;  %v3568_v46 = vpop.f32.mrf.mxu0  ;;  %v3754_v24 = vadd.f32 %v3753_v33, %v3752_v39  ;;  %v3853_v8 = vadd.f32 %v3852_v36, %v3851_v48  ;;  %v3761_v30 = vsel %vm652_vm1, %v11434_v47, 0.0  ;;  %v14362_v33 = vld [vmem:[#allocation65_spill] sm:$0xff] }
 0x3fb   : > { %v3823_v60 = vmul.f32 %v11450_v6, %v11450_v6  ;;  %v11459_v25 = vadd.f32 %v11322_v5, %v3683_v32  ;;  %v3681_v20 = vadd.f32 %v3568_v46, %v3485_v56  ;;  %v3757_v57 = vsel %vm652_vm1, %v11450_v6, 0.0 }
 0x3fc   : > { %v8385_v15 = vpop.f32.mrf.mxu1  ;;  %v8414_v12 = vpop.f32.mrf.mxu0  ;;  %v3855_v16 = vadd.f32 %v3854_v14, %v3853_v8  ;;  %v3756_v61 = vadd.f32 %v3755_v42, %v3754_v24  ;;  %v3494_v2 = vadd.f32 %v8384_v1, %v14362_v33  ;;  %v3492_v24 = vadd.f32 %v3401_v21, %v11380_v4 }
 0x3fd   : > { %v3686_v35 = vadd.f32 %v8414_v12, %v3490_v49  ;;  %v11467_v45 = vadd.f32 %v11322_v5, %v3681_v20  ;;  %v3858_v56 = vsel %vm652_vm1, %v3823_v60, 0.0  ;;  %v3826_v39 = vmul.f32 %v11459_v25, %v11459_v25 }
 0x3fe   : > { %v3404_v0 = vpop.f32.mrf.mxu1  ;;  %v3581_v58 = vpop.f32.mrf.mxu0  ;;  %v3758_v23 = vadd.f32 %v3757_v57, %v3756_v61  ;;  %v3857_v22 = vadd.f32 %v3856_v41, %v3855_v16  ;;  %v3763_v1 = vsel %vm652_vm1, %v11459_v25, 0.0 }
 0x3ff   : > { %v11472_v51 = vadd.f32 %v11322_v5, %v3686_v35  ;;  %v3759_v34 = vsel %vm652_vm1, %v11467_v45, 0.0  ;;  %v3824_v11 = vmul.f32 %v11467_v45, %v11467_v45  ;;  %v3684_v10 = vadd.f32 %v3581_v58, %v3488_v27 }
 0x400   : > { %v8388_v50 = vpop.f32.mrf.mxu1  ;;  %v8415_v62 = vpop.f32.mrf.mxu0  ;;  %v3859_v49 = vadd.f32 %v3858_v56, %v3857_v22  ;;  %v3760_v48 = vadd.f32 %v3759_v34, %v3758_v23  ;;  %v3862_v27 = vsel %vm652_vm1, %v3825_v40, 0.0  ;;  %v3864_v4 = vsel %vm652_vm1, %v3826_v39, 0.0 }
 0x401   : > { %v3860_v26 = vsel %vm652_vm1, %v3824_v11, 0.0  ;;  %v11486_v36 = vadd.f32 %v11322_v5, %v3684_v10  ;;  %v3687_v46 = vadd.f32 %v8415_v62, %v3491_v44  ;;  %v14363_v44 = vld [vmem:[#allocation67_spill] sm:$0xff]  ;;  %v3493_v21 = vadd.f32 %v3404_v0, %v11386_v37 }
 0x402   : > { %v3417_v32 = vpop.f32.mrf.mxu1  ;;  %v3584_v14 = vpop.f32.mrf.mxu0  ;;  %v3762_v8 = vadd.f32 %v3761_v30, %v3760_v48  ;;  %v3861_v42 = vadd.f32 %v3860_v26, %v3859_v49  ;;  %v3495_v61 = vadd.f32 %v8385_v15, %v14363_v44  ;;  %v3769_v33 = vsel %vm652_vm1, %v11472_v51, 0.0 }
 0x403   : > { %v3827_v60 = vmul.f32 %v11486_v36, %v11486_v36  ;;  %v11495_v20 = vadd.f32 %v11322_v5, %v3687_v46  ;;  %v3685_v38 = vadd.f32 %v3584_v14, %v3489_v18  ;;  %v3765_v58 = vsel %vm652_vm1, %v11486_v36, 0.0 }
 0x404   : > { %v8389_v12 = vpop.f32.mrf.mxu1  ;;  %v8418_v16 = vpop.f32.mrf.mxu0  ;;  %v3863_v35 = vadd.f32 %v3862_v27, %v3861_v42  ;;  %v3764_v41 = vadd.f32 %v3763_v1, %v3762_v8  ;;  %v3829_v18 = vmul.f32 %v11472_v51, %v11472_v51  ;;  %v3496_v1 = vadd.f32 %v3417_v32, %v11390_v43 }
 0x405   : > { %v3690_v57 = vadd.f32 %v8418_v16, %v3494_v2  ;;  %v11503_v40 = vadd.f32 %v11322_v5, %v3685_v38  ;;  %v3866_v11 = vsel %vm652_vm1, %v3827_v60, 0.0  ;;  %v14364_v2 = vld [vmem:[#allocation49_spill] sm:$0xff]  ;;  %v3830_v26 = vmul.f32 %v11495_v20, %v11495_v20 }
 0x406   : > { %v3420_v23 = vpop.f32.mrf.mxu1  ;;  %v3597_v22 = vpop.f32.mrf.mxu0  ;;  %v3766_v56 = vadd.f32 %v3765_v58, %v3764_v41  ;;  %v3865_v15 = vadd.f32 %v3864_v4, %v3863_v35  ;;  %v3498_v49 = vadd.f32 %v8388_v50, %v14364_v2  ;;  %v3771_v50 = vsel %vm652_vm1, %v11495_v20, 0.0 }
 0x407   : > { %v11508_v34 = vadd.f32 %v11322_v5, %v3690_v57  ;;  %v3767_v37 = vsel %vm652_vm1, %v11503_v40, 0.0  ;;  %v3828_v0 = vmul.f32 %v11503_v40, %v11503_v40  ;;  %v3688_v62 = vadd.f32 %v3597_v22, %v3492_v24 }
 0x408   : > { %v8392_v10 = vpop.f32.mrf.mxu1  ;;  %v8419_v30 = vpop.f32.mrf.mxu0  ;;  %v3867_v48 = vadd.f32 %v3866_v11, %v3865_v15  ;;  %v3768_v39 = vadd.f32 %v3767_v37, %v3766_v56  ;;  %v3870_v24 = vsel %vm652_vm1, %v3829_v18, 0.0  ;;  %v3872_v43 = vsel %vm652_vm1, %v3830_v26, 0.0 }
 0x409   : > { %v3868_v46 = vsel %vm652_vm1, %v3828_v0, 0.0  ;;  %v11522_v14 = vadd.f32 %v11322_v5, %v3688_v62  ;;  %v3691_v8 = vadd.f32 %v8419_v30, %v3495_v61  ;;  %v14365_v61 = vld [vmem:[#allocation69_spill] sm:$0xff]  ;;  %v3497_v32 = vadd.f32 %v3420_v23, %v11398_v17 }
 0x40a   : > { %v3433_v27 = vpop.f32.mrf.mxu1  ;;  %v3600_v42 = vpop.f32.mrf.mxu0  ;;  %v3770_v60 = vadd.f32 %v3769_v33, %v3768_v39  ;;  %v3869_v38 = vadd.f32 %v3868_v46, %v3867_v48  ;;  %v3499_v4 = vadd.f32 %v8389_v12, %v14365_v61  ;;  %v3777_v48 = vsel %vm652_vm1, %v11508_v34, 0.0  ;;  %v14366_v39 = vld [vmem:[#allocation71_spill] sm:$0xff] }
 0x40b   : > { %v3831_v16 = vmul.f32 %v11522_v14, %v11522_v14  ;;  %v11531_v44 = vadd.f32 %v11322_v5, %v3691_v8  ;;  %v3689_v41 = vadd.f32 %v3600_v42, %v3493_v21  ;;  %v3773_v56 = vsel %vm652_vm1, %v11522_v14, 0.0 }
 0x40c   : > { %v8393_v35 = vpop.f32.mrf.mxu1  ;;  %v8422_v57 = vpop.f32.mrf.mxu0  ;;  %v3871_v58 = vadd.f32 %v3870_v24, %v3869_v38  ;;  %v3772_v22 = vadd.f32 %v3771_v50, %v3770_v60  ;;  %v3833_v21 = vmul.f32 %v11508_v34, %v11508_v34  ;;  %v3502_v26 = vadd.f32 %v8392_v10, %v14366_v39 }
 0x40d   : > { %v3694_v18 = vadd.f32 %v8422_v57, %v3498_v49  ;;  %v11539_v15 = vadd.f32 %v11322_v5, %v3689_v41  ;;  %v3874_v30 = vsel %vm652_vm1, %v3831_v16, 0.0  ;;  %v3834_v42 = vmul.f32 %v11531_v44, %v11531_v44 }
 0x40e   : > { %v3436_v11 = vpop.f32.mrf.mxu1  ;;  %v3613_v37 = vpop.f32.mrf.mxu0  ;;  %v3774_v0 = vadd.f32 %v3773_v56, %v3772_v22  ;;  %v3873_v12 = vadd.f32 %v3872_v43, %v3871_v58  ;;  %v3500_v41 = vadd.f32 %v3433_v27, %v11402_v52  ;;  %v3779_v10 = vsel %vm652_vm1, %v11531_v44, 0.0 }
 0x40f   : > { %v11544_v62 = vadd.f32 %v11322_v5, %v3694_v18  ;;  %v3775_v17 = vsel %vm652_vm1, %v11539_v15, 0.0  ;;  %v3832_v23 = vmul.f32 %v11539_v15, %v11539_v15  ;;  %v3692_v2 = vadd.f32 %v3613_v37, %v3496_v1 }
 0x410   : > { %v8396_v33 = vpop.f32.mrf.mxu1  ;;  %v8423_v49 = vpop.f32.mrf.mxu0  ;;  %v3875_v46 = vadd.f32 %v3874_v30, %v3873_v12  ;;  %v3776_v8 = vadd.f32 %v3775_v17, %v3774_v0  ;;  %v3878_v1 = vsel %vm652_vm1, %v3833_v21, 0.0  ;;  %v3880_v52 = vsel %vm652_vm1, %v3834_v42, 0.0 }
 0x411   : > { %v3876_v24 = vsel %vm652_vm1, %v3832_v23, 0.0  ;;  %v11558_v60 = vadd.f32 %v11322_v5, %v3692_v2  ;;  %v3695_v50 = vadd.f32 %v8423_v49, %v3499_v4  ;;  %v14367_v4 = vld [vmem:[#allocation74_spill] sm:$0xff]  ;;  %v3501_v27 = vadd.f32 %v3436_v11, %v11408_v53 }
 0x412   : > { %v3449_v38 = vpop.f32.mrf.mxu1  ;;  %v3616_v16 = vpop.f32.mrf.mxu0  ;;  %v3778_v57 = vadd.f32 %v3777_v48, %v3776_v8  ;;  %v3877_v61 = vadd.f32 %v3876_v24, %v3875_v46  ;;  %v3503_v37 = vadd.f32 %v8393_v35, %v14367_v4  ;;  %v3785_v42 = vsel %vm652_vm1, %v11544_v62, 0.0  ;;  %v14368_v24 = vld [vmem:[#allocation77_spill] sm:$0xff] }
 0x413   : > { %v3835_v58 = vmul.f32 %v11558_v60, %v11558_v60  ;;  %v11567_v22 = vadd.f32 %v11322_v5, %v3695_v50  ;;  %v3693_v43 = vadd.f32 %v3616_v16, %v3497_v32  ;;  %v3781_v30 = vsel %vm652_vm1, %v11558_v60, 0.0 }
 0x414   : > { %v8397_v18 = vpop.f32.mrf.mxu1  ;;  %v8426_v56 = vpop.f32.mrf.mxu0  ;;  %v3879_v0 = vadd.f32 %v3878_v1, %v3877_v61  ;;  %v3780_v21 = vadd.f32 %v3779_v10, %v3778_v57  ;;  %v3837_v32 = vmul.f32 %v11544_v62, %v11544_v62  ;;  %v3506_v50 = vadd.f32 %v8396_v33, %v14368_v24 }
 0x415   : > { %v3698_v12 = vadd.f32 %v8426_v56, %v3502_v26  ;;  %v11575_v17 = vadd.f32 %v11322_v5, %v3693_v43  ;;  %v3882_v39 = vsel %vm652_vm1, %v3835_v58, 0.0  ;;  %v3838_v57 = vmul.f32 %v11567_v22, %v11567_v22 }
 0x416   : > { %v3452_v23 = vpop.f32.mrf.mxu1  ;;  %v3629_v2 = vpop.f32.mrf.mxu0  ;;  %v3782_v49 = vadd.f32 %v3781_v30, %v3780_v21  ;;  %v3881_v35 = vadd.f32 %v3880_v52, %v3879_v0  ;;  %v3504_v56 = vadd.f32 %v3449_v38, %v11415_v7  ;;  %v3787_v33 = vsel %vm652_vm1, %v11567_v22, 0.0 }
 0x417   : > { %v11580_v48 = vadd.f32 %v11322_v5, %v3698_v12  ;;  %v3783_v53 = vsel %vm652_vm1, %v11575_v17, 0.0  ;;  %v3836_v11 = vmul.f32 %v11575_v17, %v11575_v17  ;;  %v3696_v46 = vadd.f32 %v3629_v2, %v3500_v41 }
 0x418   : > { %v8400_v26 = vpop.f32.mrf.mxu1  ;;  %v8427_v8 = vpop.f32.mrf.mxu0  ;;  %v3883_v16 = vadd.f32 %v3882_v39, %v3881_v35  ;;  %v3784_v1 = vadd.f32 %v3783_v53, %v3782_v49  ;;  %v3886_v41 = vsel %vm652_vm1, %v3837_v32, 0.0  ;;  %v3888_v7 = vsel %vm652_vm1, %v3838_v57, 0.0 }
 0x419   : > { %v3884_v61 = vsel %vm652_vm1, %v3836_v11, 0.0  ;;  %v11594_v10 = vadd.f32 %v11322_v5, %v3696_v46  ;;  %v3699_v58 = vadd.f32 %v8427_v8, %v3503_v37  ;;  %v3507_v37 = vadd.f32 %v8397_v18, %v11307_v55 }
 0x41a   : > { %v3632_v43 = vpop.f32.mrf.mxu0  ;;  %v3786_v4 = vadd.f32 %v3785_v42, %v3784_v1  ;;  %v3885_v0 = vadd.f32 %v3884_v61, %v3883_v16  ;;  %v3465_v21 = vpop.f32.mrf.mxu1  ;;  %v3505_v38 = vadd.f32 %v3452_v23, %v11420_v29  ;;  %v3793_v16 = vsel %vm652_vm1, %v11580_v48, 0.0 }
 0x41b   : > { %v3839_v12 = vmul.f32 %v11594_v10, %v11594_v10  ;;  %v11603_v52 = vadd.f32 %v11322_v5, %v3699_v58  ;;  %v3697_v30 = vadd.f32 %v3632_v43, %v3501_v27  ;;  %v3789_v39 = vsel %vm652_vm1, %v11594_v10, 0.0 }
 0x41c   : > { %v8430_v2 = vpop.f32.mrf.mxu0  ;;  %v3887_v49 = vadd.f32 %v3886_v41, %v3885_v0  ;;  %v3788_v32 = vadd.f32 %v3787_v33, %v3786_v4  ;;  %v3841_v27 = vmul.f32 %v11580_v48, %v11580_v48  ;;  %v8401_v55 = vpop.f32.mrf.mxu1  ;;  %v3510_v1 = vadd.f32 %v8400_v26, %v11319_v63 }
 0x41d   : > { %v3702_v35 = vadd.f32 %v8430_v2, %v3506_v50  ;;  %v11611_v53 = vadd.f32 %v11322_v5, %v3697_v30  ;;  %v3890_v42 = vsel %vm652_vm1, %v3839_v12, 0.0  ;;  %v3842_v58 = vmul.f32 %v11603_v52, %v11603_v52 }
 0x41e   : > { %v3645_v11 = vpop.f32.mrf.mxu0  ;;  %v3790_v46 = vadd.f32 %v3789_v39, %v3788_v32  ;;  %v3889_v8 = vadd.f32 %v3888_v7, %v3887_v49  ;;  %v3468_v30 = vpop.f32.mrf.mxu1  ;;  %v3508_v63 = vadd.f32 %v3465_v21, %v11423_v9  ;;  %v3795_v26 = vsel %vm652_vm1, %v11603_v52, 0.0 }
 0x41f   : > { %v11616_v18 = vadd.f32 %v11322_v5, %v3702_v35  ;;  %v3791_v29 = vsel %vm652_vm1, %v11611_v53, 0.0  ;;  %v3840_v23 = vmul.f32 %v11611_v53, %v11611_v53  ;;  %v3700_v24 = vadd.f32 %v3645_v11, %v3504_v56 }
 0x420   : > { %v8431_v50 = vpop.f32.mrf.mxu0  ;;  %v3891_v57 = vadd.f32 %v3890_v42, %v3889_v8  ;;  %v3792_v61 = vadd.f32 %v3791_v29, %v3790_v46  ;;  %v3894_v56 = vsel %vm652_vm1, %v3841_v27, 0.0  ;;  %v3511_v9 = vadd.f32 %v8401_v55, %v11344_v3 }
 0x421   : > { %v3892_v43 = vsel %vm652_vm1, %v3840_v23, 0.0  ;;  %v11630_v41 = vadd.f32 %v11322_v5, %v3700_v24  ;;  %v3703_v4 = vadd.f32 %v8431_v50, %v3507_v37  ;;  %v3509_v21 = vadd.f32 %v3468_v30, %v11425_v54 }
 0x422   : > { %v3648_v0 = vpop.f32.mrf.mxu0  ;;  %v3794_v33 = vadd.f32 %v3793_v16, %v3792_v61  ;;  %v3893_v12 = vadd.f32 %v3892_v43, %v3891_v57  ;;  %v3845_v24 = vmul.f32 %v11616_v18, %v11616_v18 }
 0x423   : > { %v3701_v2 = vadd.f32 %v3648_v0, %v3505_v38  ;;  %v3843_v49 = vmul.f32 %v11630_v41, %v11630_v41  ;;  %v11639_v32 = vadd.f32 %v11322_v5, %v3703_v4  ;;  %v3896_v38 = vsel %vm652_vm1, %v3842_v58, 0.0 }
 0x424   : > { %v8434_v35 = vpop.f32.mrf.mxu0  ;;  %v3895_v37 = vadd.f32 %v3894_v56, %v3893_v12  ;;  %v3796_v7 = vadd.f32 %v3795_v26, %v3794_v33  ;;  %v3797_v27 = vsel %vm652_vm1, %v11630_v41, 0.0  ;;  %v3801_v58 = vsel %vm652_vm1, %v11616_v18, 0.0 }
 0x425   : > { %v11642_v39 = vadd.f32 %v11322_v5, %v3701_v2  ;;  %v3706_v11 = vadd.f32 %v8434_v35, %v3510_v1  ;;  %v3898_v50 = vsel %vm652_vm1, %v3843_v49, 0.0  ;;  %v3846_v43 = vmul.f32 %v11639_v32, %v11639_v32 }
 0x426   : > { %v3661_v46 = vpop.f32.mrf.mxu0  ;;  %v3798_v8 = vadd.f32 %v3797_v27, %v3796_v7  ;;  %v3897_v42 = vadd.f32 %v3896_v38, %v3895_v37  ;;  %v3902_v2 = vsel %vm652_vm1, %v3845_v24, 0.0 }
 0x427   : > { %v3799_v29 = vsel %vm652_vm1, %v11642_v39, 0.0  ;;  %v3844_v23 = vmul.f32 %v11642_v39, %v11642_v39  ;;  %v11657_v3 = vadd.f32 %v11322_v5, %v3706_v11  ;;  %v3704_v54 = vadd.f32 %v3661_v46, %v3508_v63 }
 0x428   : > { %v8435_v55 = vpop.f32.mrf.mxu0  ;;  %v3899_v16 = vadd.f32 %v3898_v50, %v3897_v42  ;;  %v3800_v1 = vadd.f32 %v3799_v29, %v3798_v8  ;;  %v3803_v63 = vsel %vm652_vm1, %v11639_v32, 0.0  ;;  %v3904_v37 = vsel %vm652_vm1, %v3846_v43, 0.0 }
 0x429   : > { %v3900_v57 = vsel %vm652_vm1, %v3844_v23, 0.0  ;;  %v3707_v61 = vadd.f32 %v8435_v55, %v3511_v9  ;;  %v11665_v4 = vadd.f32 %v11322_v5, %v3704_v54  ;;  %v3809_v23 = vsel %vm652_vm1, %v11657_v3, 0.0 }
 0x42a   : > { %v3664_v0 = vpop.f32.mrf.mxu0  ;;  %v3802_v56 = vadd.f32 %v3801_v58, %v3800_v1  ;;  %v3901_v33 = vadd.f32 %v3900_v57, %v3899_v16 }
 0x42b   : > { %v11668_v12 = vadd.f32 %v11322_v5, %v3707_v61  ;;  %v3705_v30 = vadd.f32 %v3664_v0, %v3509_v21  ;;  %v3847_v26 = vmul.f32 %v11665_v4, %v11665_v4  ;;  %v3805_v7 = vsel %vm652_vm1, %v11665_v4, 0.0 }
 0x42c   : > { %v3903_v49 = vadd.f32 %v3902_v2, %v3901_v33  ;;  %v3804_v35 = vadd.f32 %v3803_v63, %v3802_v56  ;;  %v3849_v21 = vmul.f32 %v11657_v3, %v11657_v3 }
 0x42d   : > { %v11679_v11 = vadd.f32 %v11322_v5, %v3705_v30  ;;  %v3906_v27 = vsel %vm652_vm1, %v3847_v26, 0.0  ;;  %v3850_v5 = vmul.f32 %v11668_v12, %v11668_v12  ;;  %v3811_v16 = vsel %vm652_vm1, %v11668_v12, 0.0 }
 0x42e   : > { %v3806_v38 = vadd.f32 %v3805_v7, %v3804_v35  ;;  %v3905_v9 = vadd.f32 %v3904_v37, %v3903_v49  ;;  %v3910_v55 = vsel %vm652_vm1, %v3849_v21, 0.0  ;;  %v9108_v7 = vld [vmem:[%s13996_s11] sm:$0xff] }
 0x42f   : > { %v3807_v46 = vsel %vm652_vm1, %v11679_v11, 0.0  ;;  %v3848_v8 = vmul.f32 %v11679_v11, %v11679_v11  ;;  %v3912_v61 = vsel %vm652_vm1, %v3850_v5, 0.0  ;;  %v3749_v21 = vld [vmem:[%s13997_s12] sm:$0x3] }
 0x430   : > { %v3907_v42 = vadd.f32 %v3906_v27, %v3905_v9  ;;  %v3808_v29 = vadd.f32 %v3807_v46, %v3806_v38  ;;  %v14369_v38 = vmov 0.0  }
 0x431   : > { %v3908_v24 = vsel %vm652_vm1, %v3848_v8, 0.0 }
 0x432   : > { %v3810_v50 = vadd.f32 %v3809_v23, %v3808_v29  ;;  %v3909_v54 = vadd.f32 %v3908_v24, %v3907_v42 }
 0x434   : > { %v3812_v1 = vadd.f32 %v3811_v16, %v3810_v50  ;;  %v3911_v57 = vadd.f32 %v3910_v55, %v3909_v54  ;;  %v14370_v55 = vmov 0.0|0.0   ;;  %v4556_v16 = vld [vmem:[%s13998_s13] sm:$0xf] }
 0x435   : > { %8809 = vmatprep.subr.msk.bf16.mxu0 %vm1902_vm14, %v4556_v16 }
 0x436   : > { %v3813_v58 = vrot.slane %v3812_v1, 4  ;;  %v3913_v43 = vadd.f32 %v3912_v61, %v3911_v57  ;;  %v4557_v57 = vld [vmem:[%s13998_s13 + $0x4] sm:$0xf] }
 0x437   : > { %v4916_v61 = vsel %vm1902_vm14, %v4557_v57, 0 }
 0x438   : > { %v3814_v0 = vadd.f32 %v3813_v58, %v3812_v1  ;;  %v3914_v56 = vrot.slane %v3913_v43, 4  ;;  %v5125_v1 = vsel %vm1902_vm14, %v4556_v16, 0  ;;  %v11731_v58 = vld [vmem:[%s13998_s13 + $0x8] sm:$0xf] }
 0x439   : > { %8491 = vmatpush3.bf16.msra.mxu0 %v5125_v1 }
 0x43a   : > { %v3815_v33 = vrot.slane %v3814_v0, 2  ;;  %v3915_v30 = vadd.f32 %v3914_v56, %v3913_v43  ;;  %v11736_v43 = vld [vmem:[%s13998_s13 + $0xc] sm:$0xf] }
 0x43b   : > { %8811 = vmatprep.subr.msk.bf16.mxu0 %vm1902_vm14, %v11736_v43 }
 0x43c   : > { %v3816_v2 = vadd.f32 %v3815_v33, %v3814_v0  ;;  %v3916_v63 = vrot.slane %v3915_v30, 2 }
 0x43e   : > { %v3817_v26 = vrot.slane %v3816_v2, 1  ;;  %v3917_v49 = vadd.f32 %v3916_v63, %v3915_v30  ;;  %v3746_v30 = vld [vmem:[%s13994_s9] sm:$0x1] }
 0x440   : > { %v3818_v35 = vadd.f32 %v3817_v26, %v3816_v2  ;;  %v3918_v37 = vrot.slane %v3917_v49, 1 }
 0x442   : > { %8439 = vmatmul.mubr.msk.f32.vlgmr.msra.gmra.mxu1 %vm652_vm1, %v3818_v35  ;;  %v3919_v9 = vadd.f32 %v3918_v37, %v3917_v49 }
 0x443   : > { %8442 = vmatpush3.msra.mxu1 %v9108_v7  ;;  %8443 = vmatprep.mubr.msk.f32.mxu1 %vm9118_vm0, %v14369_v38 }
 0x444   : > { %8446 = vmatprep.subr.mxu1 %v14369_v38 }
 0x446   : > { %8444 = vmatmul.mubr.msk.f32.vlgmr.msra.gmra.mxu1 %vm652_vm1, %v3919_v9 }
 0x447   : > { %8448 = vmatprep.mubr.msk.f32.mxu1 %vm9118_vm0, %v14369_v38  ;;  %8447 = vmatpush3.msk.msra.mxu1 %vm980_vm2, %v3749_v21 }
 0x448   : > { %8451 = vmatprep.subr.mxu1 %v14369_v38 }
 0x502   : > { %v3989_v27 = vpop.f32.mrf.mxu1 }
 0x503   : > { %v3993_v46 = vmul.f32 0.0009765625, %v3989_v27 }
 0x504   : > { %v8440_v8 = vpop.f32.mrf.mxu1 }
 0x505   : > { %8449 = vmatmul.mubr.msk.f32.vlgmr.msra.gmra.mxu1 %vm976_vm13, %v3993_v46  ;;  %v4068_v29 = vmul.f32 %v3993_v46, %v3993_v46 }
 0x506   : > { %v4063_v42 = vpop.f32.mrf.mxu1  ;;  %8452 = vmatpush3.msk.msra.mxu1 %vm980_vm2, %v3749_v21  ;;  %8453 = vmatprep.mubr.msk.f32.mxu1 %vm9118_vm0, %v14369_v38 }
 0x507   : > { %v4067_v23 = vmul.f32 0.0009765625, %v4063_v42  ;;  %8808 = vmatprep.subr.msk.bf16.mxu1 %vm1902_vm14, %v4557_v57 }
 0x508   : > { %v8445_v5 = vpop.f32.mrf.mxu1 }
 0x509   : > { %v4069_v24 = vsub.f32 %v4067_v23, %v4068_v29 }
 0x50b   : > { %v4070_v50 = vadd.f32 1e-06, %v4069_v24 }
 0x50d   : > { %8978 = vrsqrt.f32 %v4070_v50 }
 0x51a   : > { %v8979_v54 = vpop.eup %8978 }
 0x51b   : > { %8454 = vmatmul.mubr.msk.f32.vlgmr.msra.gmra.mxu1 %vm976_vm13, %v8979_v54 }
 0x51c   : > { %8458 = vmatprep.mubr.bf16.mxu1 %v14370_v55  ;;  %8457 = vmatpush3.bf16.msra.mxu1 %v4916_v61 }
 0x51d   : > { %8810 = vmatprep.subr.msk.bf16.mxu1 %vm1902_vm14, %v11731_v58 }
 0x5c5   : > { %v4144_v0 = vpop.f32.mrf.mxu1 }
 0x5c6   : > { %v11746_v63 = vrot.slane %v4144_v0, %v14335_v13 }
 0x5c7   : > { %v8450_v56 = vpop.f32.mrf.mxu1 }
 0x5c8   : > { %v4225_v49 = vsub.f32 %v11393_v59, %v11746_v63  ;;  %v4226_v35 = vsub.f32 %v11428_v31, %v11746_v63  ;;  %v4227_v37 = vsub.f32 %v11376_v28, %v11746_v63  ;;  %v4228_v7 = vsub.f32 %v11412_v19, %v11746_v63 }
 0x5c9   : > { %v4229_v9 = vsub.f32 %v11450_v6, %v11746_v63  ;;  %v4230_v21 = vsub.f32 %v11467_v45, %v11746_v63  ;;  %v4231_v59 = vsub.f32 %v11434_v47, %v11746_v63  ;;  %v4232_v31 = vsub.f32 %v11459_v25, %v11746_v63 }
 0x5ca   : > { %v4253_v28 = vsub.f32 %v11665_v4, %v11746_v63  ;;  %v4254_v19 = vsub.f32 %v11679_v11, %v11746_v63  ;;  %v4256_v6 = vsub.f32 %v11668_v12, %v11746_v63  ;;  %v4233_v45 = vsub.f32 %v11486_v36, %v11746_v63 }
 0x5cb   : > { %v4234_v47 = vsub.f32 %v11503_v40, %v11746_v63  ;;  %v4235_v25 = vsub.f32 %v11472_v51, %v11746_v63  ;;  %v4236_v4 = vsub.f32 %v11495_v20, %v11746_v63  ;;  %v4237_v36 = vsub.f32 %v11522_v14, %v11746_v63  ;;  %v11796_v20 = vld [vmem:[%s13995_s10] ss:$0 sm:$0xff] }
 0x5cc   : > { %v4238_v40 = vsub.f32 %v11539_v15, %v11746_v63  ;;  %v4239_v8 = vsub.f32 %v11508_v34, %v11746_v63  ;;  %v4240_v42 = vsub.f32 %v11531_v44, %v11746_v63  ;;  %v4241_v14 = vsub.f32 %v11558_v60, %v11746_v63 }
 0x5cd   : > { %v4242_v29 = vsub.f32 %v11575_v17, %v11746_v63  ;;  %v4243_v23 = vsub.f32 %v11544_v62, %v11746_v63  ;;  %v4244_v34 = vsub.f32 %v11567_v22, %v11746_v63  ;;  %v4245_v44 = vsub.f32 %v11594_v10, %v11746_v63 }
 0x5ce   : > { %v4246_v60 = vsub.f32 %v11611_v53, %v11746_v63  ;;  %v4247_v50 = vsub.f32 %v11580_v48, %v11746_v63  ;;  %v4248_v17 = vsub.f32 %v11603_v52, %v11746_v63  ;;  %v4249_v22 = vsub.f32 %v11630_v41, %v11746_v63 }
 0x5cf   : > { %v4250_v1 = vsub.f32 %v11642_v39, %v11746_v63 }
 0x5db   : > { %v4217_v33 = vpop.f32.mrf.mxu1 }
 0x5dc   : > { %v4257_v26 = vmul.f32 %v4217_v33, %v3746_v30 }
 0x5dd   : > { %v8455_v2 = vpop.f32.mrf.mxu1 }
 0x5de   : > { %v11757_v38 = vrot.slane %v4257_v26, %v14335_v13  ;;  %v4255_v13 = vsub.f32 %v11657_v3, %v11746_v63 }
 0x5e0   : > { %v4290_v11 = vmul.f32 %v11757_v38, %v4253_v28  ;;  %v4291_v27 = vmul.f32 %v11757_v38, %v4254_v19  ;;  %v4292_v3 = vmul.f32 %v11757_v38, %v4255_v13  ;;  %v4293_v12 = vmul.f32 %v11757_v38, %v4256_v6 }
 0x5e1   : > { %v4262_v46 = vmul.f32 %v11757_v38, %v4225_v49  ;;  %v4263_v51 = vmul.f32 %v11757_v38, %v4226_v35  ;;  %v4264_v15 = vmul.f32 %v11757_v38, %v4227_v37  ;;  %v4265_v5 = vmul.f32 %v11757_v38, %v4228_v7 }
 0x5e2   : > { %v4266_v24 = vmul.f32 %v11757_v38, %v4229_v9  ;;  %v4267_v62 = vmul.f32 %v11757_v38, %v4230_v21  ;;  %v4268_v57 = vmul.f32 %v11757_v38, %v4231_v59  ;;  %v4269_v0 = vmul.f32 %v11757_v38, %v4232_v31 }
 0x5e3   : > { %v11823_v54 = vadd.f32 %v11796_v20, %v4262_v46  ;;  %v11826_v16 = vadd.f32 %v11796_v20, %v4263_v51  ;;  %v11834_v61 = vadd.f32 %v11796_v20, %v4264_v15  ;;  %v4270_v56 = vmul.f32 %v11757_v38, %v4233_v45 }
 0x5e4   : > { %v11839_v33 = vadd.f32 %v11796_v20, %v4265_v5  ;;  %v11842_v30 = vadd.f32 %v11796_v20, %v4266_v24  ;;  %v11845_v2 = vadd.f32 %v11796_v20, %v4290_v11  ;;  %v11848_v26 = vadd.f32 %v11796_v20, %v4291_v27 }
 0x5e5   : > { %v11851_v49 = vadd.f32 %v11796_v20, %v4292_v3  ;;  %v11854_v35 = vadd.f32 %v11796_v20, %v4293_v12  ;;  %v4271_v37 = vmul.f32 %v11757_v38, %v4234_v47  ;;  %v11858_v7 = vadd.f32 %v11796_v20, %v4267_v62 }
 0x5e6   : > { %v7483_v9 = vmul.f32 -1.442695, %v11823_v54  ;;  %v7484_v21 = vmul.f32 -1.442695, %v11826_v16  ;;  %v4251_v59 = vsub.f32 %v11616_v18, %v11746_v63  ;;  %v4272_v31 = vmul.f32 %v11757_v38, %v4235_v25 }
 0x5e7   : > { %14371 = vst [vmem:[#allocation36_spill] sm:$0xff] %v11851_v49  ;;  %14372 = vst [vmem:[#allocation55_spill] sm:$0xff] %v11854_v35  ;;  %v11866_v28 = vadd.f32 %v11796_v20, %v4268_v57  ;;  %v7485_v19 = vmul.f32 -1.442695, %v11834_v61  ;;  %v4252_v13 = vsub.f32 %v11639_v32, %v11746_v63  ;;  %v4273_v6 = vmul.f32 %v11757_v38, %v4236_v4 }
 0x5e8   : > { %v11873_v45 = vadd.f32 %v11796_v20, %v4269_v0  ;;  %v7486_v47 = vmul.f32 -1.442695, %v11839_v33  ;;  %v4274_v11 = vmul.f32 %v11757_v38, %v4237_v36  ;;  %v11878_v27 = vadd.f32 %v11796_v20, %v4270_v56 }
 0x5e9   : > { %8980 = vpow2.f32 %v7483_v9  ;;  %v7487_v25 = vmul.f32 -1.442695, %v11842_v30  ;;  %v4275_v3 = vmul.f32 %v11757_v38, %v4238_v40  ;;  %v11883_v12 = vadd.f32 %v11796_v20, %v4271_v37 }
 0x5ea   : > { %8982 = vpow2.f32 %v7484_v21  ;;  %v7488_v4 = vmul.f32 -1.442695, %v11858_v7  ;;  %v4276_v46 = vmul.f32 %v11757_v38, %v4239_v8  ;;  %v11888_v51 = vadd.f32 %v11796_v20, %v4272_v31 }
 0x5eb   : > { %8984 = vpow2.f32 %v7485_v19  ;;  %v7489_v36 = vmul.f32 -1.442695, %v11866_v28  ;;  %v4277_v15 = vmul.f32 %v11757_v38, %v4240_v42  ;;  %v11893_v5 = vadd.f32 %v11796_v20, %v4273_v6 }
 0x5ec   : > { %8986 = vpow2.f32 %v7486_v47  ;;  %v7490_v40 = vmul.f32 -1.442695, %v11873_v45  ;;  %v4278_v24 = vmul.f32 %v11757_v38, %v4241_v14  ;;  %v11898_v62 = vadd.f32 %v11796_v20, %v4274_v11 }
 0x5ed   : > { %8988 = vpow2.f32 %v7487_v25  ;;  %v7491_v8 = vmul.f32 -1.442695, %v11878_v27  ;;  %v4279_v57 = vmul.f32 %v11757_v38, %v4242_v29  ;;  %v11903_v0 = vadd.f32 %v11796_v20, %v4275_v3 }
 0x5ee   : > { %8990 = vpow2.f32 %v7488_v4  ;;  %v7492_v42 = vmul.f32 -1.442695, %v11883_v12  ;;  %v4280_v56 = vmul.f32 %v11757_v38, %v4243_v23  ;;  %v11908_v37 = vadd.f32 %v11796_v20, %v4276_v46 }
 0x5ef   : > { %8992 = vpow2.f32 %v7489_v36  ;;  %v7493_v14 = vmul.f32 -1.442695, %v11888_v51  ;;  %v4281_v9 = vmul.f32 %v11757_v38, %v4244_v34  ;;  %v11913_v21 = vadd.f32 %v11796_v20, %v4277_v15 }
 0x5f0   : > { %8994 = vpow2.f32 %v7490_v40  ;;  %v7494_v29 = vmul.f32 -1.442695, %v11893_v5  ;;  %v4282_v31 = vmul.f32 %v11757_v38, %v4245_v44  ;;  %v11921_v23 = vadd.f32 %v11796_v20, %v4278_v24 }
 0x5f1   : > { %8996 = vpow2.f32 %v7491_v8  ;;  %v7495_v19 = vmul.f32 -1.442695, %v11898_v62  ;;  %v4283_v34 = vmul.f32 %v11757_v38, %v4246_v60  ;;  %v11929_v6 = vadd.f32 %v11796_v20, %v4279_v57 }
 0x5f2   : > { %8998 = vpow2.f32 %v7492_v42  ;;  %v7496_v47 = vmul.f32 -1.442695, %v11903_v0  ;;  %v4284_v10 = vmul.f32 %v11757_v38, %v4247_v50  ;;  %v11937_v44 = vadd.f32 %v11796_v20, %v4280_v56 }
 0x5f3   : > { %9000 = vpow2.f32 %v7493_v14  ;;  %v7497_v11 = vmul.f32 -1.442695, %v11908_v37  ;;  %v4285_v53 = vmul.f32 %v11757_v38, %v4248_v17  ;;  %v11945_v60 = vadd.f32 %v11796_v20, %v4281_v9 }
 0x5f4   : > { %9002 = vpow2.f32 %v7494_v29  ;;  %v7498_v25 = vmul.f32 -1.442695, %v11913_v21  ;;  %v4286_v48 = vmul.f32 %v11757_v38, %v4249_v22  ;;  %v11953_v50 = vadd.f32 %v11796_v20, %v4282_v31 }
 0x5f5   : > { %9004 = vpow2.f32 %v7495_v19  ;;  %v7499_v3 = vmul.f32 -1.442695, %v11921_v23  ;;  %v4287_v17 = vmul.f32 %v11757_v38, %v4250_v1  ;;  %v11961_v4 = vadd.f32 %v11796_v20, %v4283_v34 }
 0x5f6   : > { %v8981_v52 = vpop.eup %8980  ;;  %9006 = vpow2.f32 %v7496_v47  ;;  %v7500_v41 = vmul.f32 -1.442695, %v11929_v6  ;;  %v4288_v22 = vmul.f32 %v11757_v38, %v4251_v59  ;;  %v11969_v36 = vadd.f32 %v11796_v20, %v4284_v10 }
 0x5f7   : > { %v8983_v46 = vpop.eup %8982  ;;  %9008 = vpow2.f32 %v7497_v11  ;;  %v7501_v39 = vmul.f32 -1.442695, %v11937_v44  ;;  %v4289_v1 = vmul.f32 %v11757_v38, %v4252_v13  ;;  %v11977_v40 = vadd.f32 %v11796_v20, %v4285_v53 }
 0x5f8   : > { %v8985_v15 = vpop.eup %8984  ;;  %9010 = vpow2.f32 %v7498_v25  ;;  %v7502_v18 = vmul.f32 -1.442695, %v11945_v60  ;;  %v11981_v59 = vadd.f32 %v11796_v20, %v4286_v48  ;;  %v7503_v8 = vmul.f32 -1.442695, %v11953_v50 }
 0x5f9   : > { %v8987_v24 = vpop.eup %8986  ;;  %9012 = vpow2.f32 %v7499_v3  ;;  %v11985_v42 = vadd.f32 %v11796_v20, %v4287_v17  ;;  %v7504_v32 = vmul.f32 -1.442695, %v11961_v4  ;;  %v11989_v38 = vadd.f32 %v11796_v20, %v4288_v22 }
 0x5fa   : > { %v8989_v57 = vpop.eup %8988  ;;  %9014 = vpow2.f32 %v7500_v41  ;;  %v7505_v13 = vmul.f32 -1.442695, %v11969_v36  ;;  %v11993_v14 = vadd.f32 %v11796_v20, %v4289_v1  ;;  %v7506_v9 = vmul.f32 -1.442695, %v11977_v40 }
 0x5fb   : > { %v8991_v63 = vpop.eup %8990  ;;  %14373 = vst [vmem:[#allocation58_spill] sm:$0xff] %v11989_v38  ;;  %9016 = vpow2.f32 %v7501_v39  ;;  %v7507_v31 = vmul.f32 -1.442695, %v11981_v59  ;;  %v7508_v34 = vmul.f32 -1.442695, %v11985_v42  ;;  %v4428_v39 = vadd.f32 1.0, %v8981_v52 }
 0x5fc   : > { %v8993_v56 = vpop.eup %8992  ;;  %14374 = vst [vmem:[#allocation35_spill] sm:$0xff] %v11993_v14  ;;  %9018 = vpow2.f32 %v7502_v18  ;;  %v7509_v10 = vmul.f32 -1.442695, %v11989_v38  ;;  %v7510_v20 = vmul.f32 -1.442695, %v11993_v14  ;;  %v4429_v18 = vadd.f32 1.0, %v8983_v46 }
 0x5fd   : > { %v8995_v29 = vpop.eup %8994  ;;  %9020 = vpow2.f32 %v7503_v8  ;;  %v7511_v25 = vmul.f32 -1.442695, %v11845_v2  ;;  %v7512_v3 = vmul.f32 -1.442695, %v11848_v26  ;;  %v7513_v41 = vmul.f32 -1.442695, %v11851_v49 }
 0x5fe   : > { %v8997_v19 = vpop.eup %8996  ;;  %9022 = vpow2.f32 %v7504_v32  ;;  %v7514_v32 = vmul.f32 -1.442695, %v11854_v35  ;;  %v4434_v14 = vadd.f32 1.0, %v8993_v56 }
 0x5ff   : > { %v8999_v47 = vpop.eup %8998  ;;  %9024 = vpow2.f32 %v7505_v13 }
 0x600   : > { %v9001_v11 = vpop.eup %9000  ;;  %9026 = vpow2.f32 %v7506_v9  ;;  %v4430_v9 = vadd.f32 1.0, %v8985_v15  ;;  %v4437_v35 = vadd.f32 1.0, %v8999_v47  ;;  %v4435_v15 = vadd.f32 1.0, %v8995_v29 }
 0x601   : > { %v9003_v53 = vpop.eup %9002  ;;  %9028 = vpow2.f32 %v7507_v31  ;;  %v5334_v29 = vsel %vm1902_vm14, %v11731_v58, 0 }
 0x602   : > { %v9005_v48 = vpop.eup %9004  ;;  %9030 = vpow2.f32 %v7508_v34  ;;  %v4431_v34 = vadd.f32 1.0, %v8987_v24 }
 0x603   : > { %v9007_v17 = vpop.eup %9006  ;;  %9032 = vpow2.f32 %v7509_v10  ;;  %v4432_v10 = vadd.f32 1.0, %v8989_v57 }
 0x604   : > { %v9009_v22 = vpop.eup %9008  ;;  %9034 = vpow2.f32 %v7510_v20  ;;  %v4433_v20 = vadd.f32 1.0, %v8991_v63  ;;  %v4441_v63 = vadd.f32 1.0, %v9007_v17 }
 0x605   : > { %v9011_v1 = vpop.eup %9010  ;;  %9036 = vpow2.f32 %v7511_v25  ;;  %v4436_v25 = vadd.f32 1.0, %v8997_v19 }
 0x606   : > { %v9013_v8 = vpop.eup %9012  ;;  %9038 = vpow2.f32 %v7512_v3 }
 0x607   : > { %v9015_v13 = vpop.eup %9014  ;;  %9040 = vpow2.f32 %v7513_v41 }
 0x608   : > { %v9017_v31 = vpop.eup %9016  ;;  %9042 = vrcp.f32 %v4428_v39  ;;  %v4438_v39 = vadd.f32 1.0, %v9001_v11  ;;  %v4445_v17 = vadd.f32 1.0, %v9015_v13 }
 0x609   : > { %v9019_v55 = vpop.eup %9018  ;;  %9044 = vrcp.f32 %v4429_v18  ;;  %v4440_v18 = vadd.f32 1.0, %v9005_v48  ;;  %v4444_v48 = vadd.f32 1.0, %v9013_v8 }
 0x60a   : > { %v9021_v49 = vpop.eup %9020  ;;  %9046 = vpow2.f32 %v7514_v32 }
 0x60b   : > { %v9023_v52 = vpop.eup %9022  ;;  %9048 = vrcp.f32 %v4430_v9  ;;  %v4439_v9 = vadd.f32 1.0, %v9003_v53 }
 0x60c   : > { %v9025_v46 = vpop.eup %9024  ;;  %9050 = vrcp.f32 %v4431_v34  ;;  %v4442_v34 = vadd.f32 1.0, %v9009_v22 }
 0x60d   : > { %v9027_v3 = vpop.eup %9026  ;;  %9052 = vrcp.f32 %v4432_v10  ;;  %v4443_v10 = vadd.f32 1.0, %v9011_v1 }
 0x60e   : > { %v9029_v41 = vpop.eup %9028  ;;  %9054 = vrcp.f32 %v4433_v20  ;;  %v4447_v20 = vadd.f32 1.0, %v9019_v55 }
 0x60f   : > { %v9031_v24 = vpop.eup %9030  ;;  %9056 = vrcp.f32 %v4434_v14  ;;  %v12008_v14 = vsel %vm1902_vm14, %v11736_v43, 0  ;;  %v4451_v43 = vadd.f32 1.0, %v9027_v3  ;;  %v4452_v38 = vadd.f32 1.0, %v9029_v41 }
 0x610   : > { %v9033_v57 = vpop.eup %9032  ;;  %9058 = vrcp.f32 %v4436_v25  ;;  %v4448_v25 = vadd.f32 1.0, %v9021_v49 }
 0x611   : > { %v9035_v32 = vpop.eup %9034  ;;  %9060 = vrcp.f32 %v4437_v35  ;;  %v4446_v35 = vadd.f32 1.0, %v9017_v31  ;;  %v4453_v31 = vadd.f32 1.0, %v9031_v24 }
 0x612   : > { %v9037_v56 = vpop.eup %9036  ;;  %9062 = vrcp.f32 %v4435_v15  ;;  %v4449_v15 = vadd.f32 1.0, %v9023_v52  ;;  %v4455_v3 = vadd.f32 1.0, %v9035_v32 }
 0x613   : > { %v9039_v19 = vpop.eup %9038  ;;  %9064 = vrcp.f32 %v4438_v39  ;;  %v4450_v39 = vadd.f32 1.0, %v9025_v46  ;;  %v4456_v41 = vadd.f32 1.0, %v9037_v56 }
 0x614   : > { %v9041_v47 = vpop.eup %9040  ;;  %9066 = vrcp.f32 %v4440_v18 }
 0x615   : > { %v9043_v11 = vpop.eup %9042  ;;  %9068 = vrcp.f32 %v4441_v63  ;;  %v12033_v56 = vadd.f32 1.0, %v9041_v47 }
 0x616   : > { %v9045_v53 = vpop.eup %9044  ;;  %9070 = vrcp.f32 %v4439_v9  ;;  %v4524_v22 = vmul.f32 %v9043_v11, %v11823_v54  ;;  %v4454_v9 = vadd.f32 1.0, %v9033_v57 }
 0x617   : > { %v9047_v1 = vpop.eup %9046  ;;  %9072 = vrcp.f32 %v4442_v34  ;;  %v4525_v58 = vmul.f32 %v9045_v53, %v11826_v16  ;;  %v12017_v16 = vld [vmem:[%s13998_s13 + $0x10] sm:$0xf]  ;;  %v4457_v34 = vadd.f32 1.0, %v9039_v19 }
 0x618   : > { %v9049_v18 = vpop.eup %9048  ;;  %9074 = vrcp.f32 %v4443_v10  ;;  %v4630_v8 = vrot.slane %v4524_v22, 1  ;;  %v4566_v54 = vrot.slane %v4524_v22, 7  ;;  %v12054_v53 = vadd.f32 1.0, %v9047_v1 }
 0x619   : > { %v9051_v13 = vpop.eup %9050  ;;  %9076 = vrcp.f32 %v4444_v48  ;;  %v4646_v63 = vrot.slane %v4525_v58, 1  ;;  %v12012_v55 = vpack.c.bf16 %v4525_v58, %v4524_v22  ;;  %v4582_v52 = vrot.slane %v4525_v58, 7 }
 0x61a   : > { %v9053_v49 = vpop.eup %9052  ;;  %9078 = vrcp.f32 %v4445_v17  ;;  %v12028_v11 = vmul.f32 %v9049_v18, %v11834_v61  ;;  %v12031_v48 = vmul.f32 %v9051_v13, %v11839_v33 }
 0x61b   : > { %14375 = vst [vmem:[#allocation38_spill] sm:$0xff] %v12012_v55  ;;  %v9055_v46 = vpop.eup %9054  ;;  %9080 = vrcp.f32 %v4446_v35  ;;  %8459 = vmatmul.mubr.msk.bf16.vlgmr.msra.gmra.mxu1 %vm652_vm1, %v12012_v55  ;;  %v12025_v10 = vsel %vm1574_vm4, %v4630_v8, %v4646_v63  ;;  %v12036_v19 = vmul.f32 %v9053_v49, %v11842_v30  ;;  %v12040_v17 = vsel %vm1574_vm4, %v4646_v63, %v4630_v8 }
 0x61c   : > { %v12021_v24 = vpop.eup %9056  ;;  %9082 = vrcp.f32 %v4447_v20  ;;  %8525 = vmatpush3.bf16.msra.mxu1 %v5334_v29  ;;  %v12045_v33 = vmul.f32 %v9055_v46, %v11858_v7  ;;  %v12049_v47 = vsel %vm1509_vm3, %v4582_v52, %v4566_v54  ;;  %v4694_v30 = vsel %vm1629_vm15, %v12025_v10, 0.0 }
 0x61d   : > { %v9059_v32 = vpop.eup %9058  ;;  %9084 = vrcp.f32 %v4448_v25  ;;  %8812 = vmatprep.subr.msk.bf16.mxu1 %vm1902_vm14, %v12017_v16  ;;  %v12058_v20 = vsel %vm1509_vm3, %v4566_v54, %v4582_v52  ;;  %v4695_v7 = vsel %vm1630_vm6, %v12040_v17, 0.0  ;;  %v12070_v58 = vpack.c.bf16 %v12031_v48, %v12028_v11 }
 0x61e   : > { %v9061_v61 = vpop.eup %9060  ;;  %9086 = vrcp.f32 %v4449_v15  ;;  %v12066_v15 = vmul.f32 %v9059_v32, %v11878_v27  ;;  %v4567_v1 = vrot.slane %v12028_v11, 7  ;;  %v4568_v8 = vrot.slane %v12036_v19, 7 }
 0x61f   : > { %v9063_v35 = vpop.eup %9062  ;;  %9088 = vrcp.f32 %v4450_v39  ;;  %14379 = vst [vmem:[#allocation41_spill] sm:$0xff] %v12070_v58  ;;  %v12074_v18 = vmul.f32 %v9061_v61, %v11883_v12  ;;  %v4584_v27 = vrot.slane %v12045_v33, 7  ;;  %v4632_v49 = vrot.slane %v12036_v19, 1  ;;  %8462 = vmatprep.mubr.msk.bf16.mxu1 %vm652_vm1, %v12070_v58 }
 0x620   : > { %v12063_v22 = vpop.eup %9064  ;;  %9090 = vrcp.f32 %v4452_v38  ;;  %v4726_v38 = vsel %vm1673_vm5, %v12049_v47, %v4694_v30  ;;  %v4727_v12 = vsel %vm1674_vm7, %v12058_v20, %v4695_v7  ;;  %v4648_v52 = vrot.slane %v12045_v33, 1 }
 0x621   : > { %v9067_v39 = vpop.eup %9066  ;;  %9092 = vrcp.f32 %v4453_v31  ;;  %v12090_v46 = vpack.c.bf16 %v4727_v12, %v4726_v38  ;;  %v4631_v58 = vrot.slane %v12028_v11, 1  ;;  %v4647_v12 = vrot.slane %v12031_v48, 1 }
 0x622   : > { %v9069_v63 = vpop.eup %9068  ;;  %9094 = vrcp.f32 %v4451_v43  ;;  %v4583_v43 = vrot.slane %v12031_v48, 7  ;;  %v12096_v61 = vmul.f32 %v9067_v39, %v11898_v62  ;;  %v12176_v30 = vsel %vm1509_vm3, %v4568_v8, %v4584_v27 }
 0x623   : > { %v12087_v54 = vpop.eup %9070  ;;  %9096 = vrcp.f32 %v4454_v9  ;;  %v12103_v9 = vld [vmem:[%s13998_s13 + $0x14] sm:$0xf]  ;;  %v12108_v38 = vmul.f32 %v9069_v63, %v11903_v0  ;;  %8493 = vmatmul.mubr.msk.bf16.vlgmr.msra.gmra.mxu0 %vm652_vm1, %v12090_v46  ;;  %v12140_v11 = vsel %vm1574_vm4, %v4631_v58, %v4647_v12  ;;  %14386 = vst [vmem:[#allocation47_spill] sm:$0xff] %v12176_v30 }
 0x624   : > { %v12093_v32 = vpop.eup %9072  ;;  %9098 = vrcp.f32 %v4456_v41  ;;  %14382 = vst [vmem:[#allocation62_spill] sm:$0xff] %v12103_v9  ;;  %8559 = vmatpush3.bf16.msra.mxu0 %v12008_v14  ;;  %v12123_v63 = vsel %vm1509_vm3, %v4567_v1, %v4583_v43  ;;  %v12127_v62 = vsel %vm1509_vm3, %v4583_v43, %v4567_v1  ;;  %v4531_v14 = vmul.f32 %v9063_v35, %v11873_v45 }
 0x625   : > { %v12105_v7 = vpop.eup %9074  ;;  %9100 = vrcp.f32 %v4455_v3  ;;  %v12119_v3 = vpack.c.bf16 %v12045_v33, %v12036_v19  ;;  %8813 = vmatprep.subr.msk.bf16.mxu0 %vm1902_vm14, %v12103_v9  ;;  %v12144_v1 = vsel %vm1574_vm4, %v4647_v12, %v4631_v58  ;;  %v4696_v35 = vsel %vm1629_vm15, %v12140_v11, 0.0 }
 0x626   : > { %v9077_v39 = vpop.eup %9076  ;;  %9102 = vrcp.f32 %v4457_v34  ;;  %v4530_v34 = vmul.f32 %v12021_v24, %v11866_v28  ;;  %v4697_v43 = vsel %vm1630_vm6, %v12144_v1, 0.0  ;;  %v4728_v12 = vsel %vm1673_vm5, %v12127_v62, %v4696_v35 }
 0x627   : > { %14383 = vst [vmem:[#allocation42_spill] sm:$0xff] %v12119_v3  ;;  %v9079_v0 = vpop.eup %9078  ;;  %8463 = vmatmul.mubr.msk.bf16.gmra.mxu1 %vm652_vm1, %v12119_v3  ;;  %v12151_v45 = vmul.f32 %v9077_v39, %v11921_v23  ;;  %9104 = vrcp.f32 %v12033_v56  ;;  %v4729_v23 = vsel %vm1674_vm7, %v12123_v63, %v4697_v43  ;;  %v12180_v56 = vsel %vm1509_vm3, %v4584_v27, %v4568_v8 }
 0x628   : > { %v12134_v48 = vpop.eup %9080  ;;  %v12167_v39 = vpack.c.bf16 %v4531_v14, %v4530_v34  ;;  %v12170_v19 = vmul.f32 %v9079_v0, %v11929_v6  ;;  %v12172_v24 = vpack.c.bf16 %v4729_v23, %v4728_v12  ;;  %14387 = vst [vmem:[#allocation61_spill] sm:$0xff] %v12180_v56  ;;  %9106 = vrcp.f32 %v12054_v53 }
 0x629   : > { %v12148_v28 = vpop.eup %9082  ;;  %v12190_v6 = vsel %vm1574_vm4, %v4632_v49, %v4648_v52  ;;  %v12194_v0 = vsel %vm1574_vm4, %v4648_v52, %v4632_v49  ;;  %v4585_v3 = vrot.slane %v4531_v14, 7  ;;  %v4633_v55 = vrot.slane %v4530_v34, 1 }
 0x62a   : > { %v9085_v58 = vpop.eup %9084  ;;  %14384 = vst [vmem:[#allocation46_spill] sm:$0xff] %v12167_v39  ;;  %14385 = vst [vmem:[#allocation60_spill] sm:$0xff] %v12172_v24  ;;  %8466 = vmatprep.mubr.msk.bf16.mxu1 %vm652_vm1, %v12167_v39  ;;  %8496 = vmatprep.mubr.msk.bf16.mxu0 %vm652_vm1, %v12172_v24  ;;  %v4698_v53 = vsel %vm1629_vm15, %v12190_v6, 0.0  ;;  %v4699_v23 = vsel %vm1630_vm6, %v12194_v0, 0.0  ;;  %v4649_v9 = vrot.slane %v4531_v14, 1  ;;  %v14393_v41 = vrot.slane %v12066_v15, 7 }
 0x62b   : > { %v9087_v33 = vpop.eup %9086  ;;  %v12197_v8 = vmul.f32 %v9085_v58, %v11953_v50  ;;  %v4730_v50 = vsel %vm1673_vm5, %v12180_v56, %v4698_v53  ;;  %v4731_v52 = vsel %vm1674_vm7, %v12176_v30, %v4699_v23  ;;  %v4569_v58 = vrot.slane %v4530_v34, 7 }
 0x62c   : > { %v12182_v35 = vpop.eup %9088  ;;  %v12218_v39 = vpack.c.bf16 %v4731_v52, %v4730_v50  ;;  %v12223_v49 = vmul.f32 %v9087_v33, %v11961_v4  ;;  %v12228_v23 = vpack.c.bf16 %v12074_v18, %v12066_v15  ;;  %v14392_v53 = vrot.slane %v12074_v18, 7 }
 0x62d   : > { %v9091_v12 = vpop.eup %9090  ;;  %v12241_v4 = vsel %vm1509_vm3, %v4585_v3, %v4569_v58  ;;  %v12247_v33 = vsel %vm1509_vm3, %v4569_v58, %v4585_v3 }
 0x62e   : > { %v9093_v43 = vpop.eup %9092  ;;  %14388 = vst [vmem:[#allocation66_spill] sm:$0xff] %v12218_v39  ;;  %14389 = vst [vmem:[#allocation48_spill] sm:$0xff] %v12228_v23  ;;  %v12231_v56 = vmul.f32 %v9091_v12, %v11981_v59  ;;  %8497 = vmatmul.mubr.msk.bf16.gmra.mxu0 %vm652_vm1, %v12218_v39  ;;  %v12251_v59 = vsel %vm1574_vm4, %v4633_v55, %v4649_v9 }
 0x62f   : > { %v12215_v27 = vpop.eup %9094  ;;  %v12234_v50 = vmul.f32 %v9093_v43, %v11985_v42  ;;  %v12255_v42 = vsel %vm1574_vm4, %v4649_v9, %v4633_v55  ;;  %8467 = vmatmul.mubr.msk.bf16.gmra.mxu1 %vm652_vm1, %v12228_v23  ;;  %v4534_v43 = vmul.f32 %v12063_v22, %v11888_v51  ;;  %v4700_v3 = vsel %vm1629_vm15, %v12251_v59, 0.0 }
 0x630   : > { %v12220_v24 = vpop.eup %9096  ;;  %v4701_v58 = vsel %vm1630_vm6, %v12255_v42, 0.0  ;;  %v4535_v55 = vmul.f32 %v12087_v54, %v11893_v5 }
 0x631   : > { %v9099_v30 = vpop.eup %9098  ;;  %v4733_v5 = vsel %vm1674_vm7, %v12247_v33, %v4701_v58  ;;  %v14395_v58 = vmov %v14392_v53 }
 0x632   : > { %v12243_v14 = vpop.eup %9100  ;;  %v12262_v52 = vmul.f32 %v9099_v30, %v11845_v2  ;;  %v4732_v2 = vsel %vm1673_vm5, %v12241_v4, %v4700_v3  ;;  %v12290_v9 = vpack.c.bf16 %v4535_v55, %v4534_v43  ;;  %v14397_v30 = vrot.slane %v12066_v15, 1 }
 0x633   : > { %v9103_v12 = vpop.eup %9102  ;;  %v12288_v51 = vpack.c.bf16 %v4733_v5, %v4732_v2  ;;  %v14396_v5 = vrot.slane %v12074_v18, 1  ;;  %v4587_v34 = vrot.slane %v4535_v55, 7  ;;  %v4651_v15 = vrot.slane %v4535_v55, 1 }
 0x634   : > { %v12285_v54 = vmul.f32 %v9103_v12, %v11848_v26  ;;  %14391 = vst [vmem:[#allocation37_spill] sm:$0xff] %v12290_v9  ;;  %v12292_v3 = vpop.eup %9104  ;;  %v12302_v26 = vsel %vm1509_vm3, %v14393_v41, %v14392_v53  ;;  %v14394_v12 = vmov %v14393_v41  ;;  %8470 = vmatprep.mubr.msk.bf16.mxu1 %vm652_vm1, %v12290_v9  ;;  %v14398_v53 = vmov %v14397_v30 }
 0x635   : > { %14390 = vst [vmem:[#allocation63_spill] sm:$0xff] %v12288_v51  ;;  %v12310_v2 = vsel %vm1509_vm3, %v14395_v58, %v14394_v12  ;;  %8500 = vmatprep.mubr.msk.bf16.mxu0 %vm652_vm1, %v12288_v51  ;;  %v12322_v41 = vsel %vm1574_vm4, %v14397_v30, %v14396_v5  ;;  %v14399_v22 = vmov %v14396_v5  ;;  %v4571_v58 = vrot.slane %v4534_v43, 7  ;;  %v12332_v23 = vpop.eup %9106 }
 0x636   : > { %v12330_v12 = vsel %vm1574_vm4, %v14399_v22, %v14398_v53  ;;  %v4702_v9 = vsel %vm1629_vm15, %v12322_v41, 0.0  ;;  %v4635_v5 = vrot.slane %v4534_v43, 1 }
 0x637   : > { %v4703_v30 = vsel %vm1630_vm6, %v12330_v12, 0.0  ;;  %v4734_v18 = vsel %vm1673_vm5, %v12310_v2, %v4702_v9  ;;  %v12348_v53 = vsel %vm1509_vm3, %v4571_v58, %v4587_v34  ;;  %v12352_v51 = vsel %vm1509_vm3, %v4587_v34, %v4571_v58 }
 0x638   : > { %v4735_v22 = vsel %vm1674_vm7, %v12302_v26, %v4703_v30  ;;  %14400 = vst [vmem:[#allocation68_spill] sm:$0xff] %v12348_v53  ;;  %14401 = vst [vmem:[#allocation57_spill] sm:$0xff] %v12352_v51  ;;  %v12358_v43 = vsel %vm1574_vm4, %v4635_v5, %v4651_v15  ;;  %v12362_v55 = vsel %vm1574_vm4, %v4651_v15, %v4635_v5 }
 0x639   : > { %v12354_v39 = vpack.c.bf16 %v4735_v22, %v4734_v18  ;;  %v12366_v9 = vpack.c.bf16 %v12108_v38, %v12096_v61  ;;  %v4704_v30 = vsel %vm1629_vm15, %v12358_v43, 0.0  ;;  %v4705_v34 = vsel %vm1630_vm6, %v12362_v55, 0.0 }
 0x63a   : > { %v4538_v58 = vmul.f32 %v12093_v32, %v11908_v37  ;;  %v4539_v18 = vmul.f32 %v12105_v7, %v11913_v21  ;;  %v4736_v15 = vsel %vm1673_vm5, %v12352_v51, %v4704_v30  ;;  %v4737_v22 = vsel %vm1674_vm7, %v12348_v53, %v4705_v34 }
 0x63b   : > { %14402 = vst [vmem:[#allocation70_spill] sm:$0xff] %v12354_v39  ;;  %14403 = vst [vmem:[#allocation72_spill] sm:$0xff] %v12366_v9  ;;  %8501 = vmatmul.mubr.msk.bf16.gmra.mxu0 %vm652_vm1, %v12354_v39  ;;  %8471 = vmatmul.mubr.msk.bf16.gmra.mxu1 %vm652_vm1, %v12366_v9  ;;  %v14404_v37 = vrot.slane %v12108_v38, 7  ;;  %v14405_v21 = vrot.slane %v12096_v61, 7  ;;  %v12397_v7 = vpack.c.bf16 %v4737_v22, %v4736_v15  ;;  %v14411_v9 = vrot.slane %v12108_v38, 1 }
 0x63c   : > { %v12399_v5 = vpack.c.bf16 %v4539_v18, %v4538_v58  ;;  %v14412_v53 = vrot.slane %v12096_v61, 1  ;;  %v4589_v51 = vrot.slane %v4539_v18, 7 }
 0x63d   : > { %v12395_v32 = vsel %vm1509_vm3, %v14405_v21, %v14404_v37  ;;  %14407 = vst [vmem:[#allocation59_spill] sm:$0xff] %v12397_v7  ;;  %v14409_v30 = vmov %v14405_v21  ;;  %v14410_v39 = vmov %v14404_v37  ;;  %v14414_v22 = vmov %v14411_v9  ;;  %8504 = vmatprep.mubr.msk.bf16.mxu0 %vm652_vm1, %v12397_v7 }
 0x63e   : > { %14406 = vst [vmem:[#allocation73_spill] sm:$0xff] %v12395_v32  ;;  %14408 = vst [vmem:[#allocation75_spill] sm:$0xff] %v12399_v5  ;;  %v12407_v34 = vsel %vm1509_vm3, %v14410_v39, %v14409_v30  ;;  %v12415_v37 = vsel %vm1574_vm4, %v14412_v53, %v14411_v9  ;;  %v14413_v15 = vmov %v14412_v53  ;;  %v4573_v30 = vrot.slane %v4538_v58, 7  ;;  %8474 = vmatprep.mubr.msk.bf16.mxu1 %vm652_vm1, %v12399_v5 }
 0x63f   : > { %v12423_v21 = vsel %vm1574_vm4, %v14414_v22, %v14413_v15  ;;  %v4706_v39 = vsel %vm1629_vm15, %v12415_v37, 0.0  ;;  %v4637_v53 = vrot.slane %v4538_v58, 1  ;;  %v4653_v9 = vrot.slane %v4539_v18, 1 }
 0x640   : > { %14415 = vst [vmem:[#allocation64_spill] sm:$0xff] %v12423_v21  ;;  %v4707_v61 = vsel %vm1630_vm6, %v12423_v21, 0.0  ;;  %v4738_v38 = vsel %vm1673_vm5, %v12407_v34, %v4706_v39  ;;  %v12443_v22 = vsel %vm1509_vm3, %v4573_v30, %v4589_v51  ;;  %v12447_v5 = vsel %vm1509_vm3, %v4589_v51, %v4573_v30 }
 0x641   : > { %v4739_v15 = vsel %vm1674_vm7, %v12395_v32, %v4707_v61  ;;  %14416 = vst [vmem:[#allocation76_spill] sm:$0xff] %v12443_v22  ;;  %v12451_v7 = vpack.c.bf16 %v12170_v19, %v12151_v45  ;;  %v12457_v58 = vsel %vm1574_vm4, %v4637_v53, %v4653_v9  ;;  %v12461_v18 = vsel %vm1574_vm4, %v4653_v9, %v4637_v53 }
 0x642   : > { %v12453_v21 = vpack.c.bf16 %v4739_v15, %v4738_v38  ;;  %v4542_v39 = vmul.f32 %v12134_v48, %v11937_v44  ;;  %v4708_v51 = vsel %vm1629_vm15, %v12457_v58, 0.0  ;;  %v4709_v30 = vsel %vm1630_vm6, %v12461_v18, 0.0 }
 0x643   : > { %14417 = vst [vmem:[#allocation78_spill] sm:$0xff] %v12451_v7  ;;  %v4543_v61 = vmul.f32 %v12148_v28, %v11945_v60  ;;  %v14419_v38 = vrot.slane %v12170_v19, 7  ;;  %v14420_v15 = vrot.slane %v12151_v45, 7  ;;  %v4740_v44 = vsel %vm1673_vm5, %v12447_v5, %v4708_v51  ;;  %8475 = vmatmul.mubr.msk.bf16.gmra.mxu1 %vm652_vm1, %v12451_v7 }
 0x644   : > { %14418 = vst [vmem:[#allocation79_spill] sm:$0xff] %v12453_v21  ;;  %v4741_v48 = vsel %vm1674_vm7, %v12443_v22, %v4709_v30  ;;  %v14425_v32 = vrot.slane %v12170_v19, 1  ;;  %8505 = vmatmul.mubr.msk.bf16.gmra.mxu0 %vm652_vm1, %v12453_v21  ;;  %v12537_v7 = vpack.c.bf16 %v12223_v49, %v12197_v8 }
 0x645   : > { %v12479_v53 = vsel %vm1509_vm3, %v14420_v15, %v14419_v38  ;;  %v14422_v9 = vmov %v14420_v15  ;;  %v14423_v60 = vmov %v14419_v38  ;;  %v14426_v38 = vrot.slane %v12151_v45, 1 }
 0x646   : > { %14421 = vst [vmem:[#allocation43_spill] sm:$0xff] %v12479_v53  ;;  %v12493_v28 = vsel %vm1509_vm3, %v14423_v60, %v14422_v9  ;;  %v12505_v51 = vpack.c.bf16 %v4741_v48, %v4740_v44  ;;  %v12509_v30 = vpack.c.bf16 %v4543_v61, %v4542_v39  ;;  %v14430_v60 = vmov %v14425_v32  ;;  %14431 = vst [vmem:[#allocation67_spill] sm:$0xff] %v12537_v7 }
 0x647   : > { %14424 = vst [vmem:[#allocation52_spill] sm:$0xff] %v12493_v28  ;;  %v12501_v15 = vsel %vm1574_vm4, %v14426_v38, %v14425_v32  ;;  %v14429_v9 = vmov %v14426_v38  ;;  %v4575_v38 = vrot.slane %v4542_v39, 7  ;;  %v4591_v45 = vrot.slane %v4543_v61, 7 }
 0x648   : > { %14427 = vst [vmem:[#allocation56_spill] sm:$0xff] %v12505_v51  ;;  %14428 = vst [vmem:[#allocation65_spill] sm:$0xff] %v12509_v30  ;;  %v12517_v22 = vsel %vm1574_vm4, %v14430_v60, %v14429_v9  ;;  %v4710_v32 = vsel %vm1629_vm15, %v12501_v15, 0.0  ;;  %8508 = vmatprep.mubr.msk.bf16.mxu0 %vm652_vm1, %v12505_v51  ;;  %8478 = vmatprep.mubr.msk.bf16.mxu1 %vm652_vm1, %v12509_v30  ;;  %v4639_v9 = vrot.slane %v4542_v39, 1  ;;  %v4655_v60 = vrot.slane %v4543_v61, 1 }
 0x649   : > { %v4711_v44 = vsel %vm1630_vm6, %v12517_v22, 0.0  ;;  %v4742_v48 = vsel %vm1673_vm5, %v12493_v28, %v4710_v32  ;;  %v12543_v32 = vsel %vm1509_vm3, %v4575_v38, %v4591_v45  ;;  %v12547_v51 = vsel %vm1509_vm3, %v4591_v45, %v4575_v38 }
 0x64a   : > { %v4743_v19 = vsel %vm1674_vm7, %v12479_v53, %v4711_v44  ;;  %v4546_v30 = vmul.f32 %v12182_v35, %v11969_v36  ;;  %v12553_v39 = vsel %vm1574_vm4, %v4639_v9, %v4655_v60  ;;  %v12557_v61 = vsel %vm1574_vm4, %v4655_v60, %v4639_v9 }
 0x64b   : > { %v12539_v21 = vpack.c.bf16 %v4743_v19, %v4742_v48  ;;  %14433 = vst [vmem:[#allocation69_spill] sm:$0xff] %v12557_v61  ;;  %v4547_v44 = vmul.f32 %v12215_v27, %v11977_v40  ;;  %v14434_v48 = vrot.slane %v12223_v49, 7  ;;  %v14435_v19 = vrot.slane %v12197_v8, 7  ;;  %8479 = vmatmul.mubr.msk.bf16.gmra.mxu1 %vm652_vm1, %v12537_v7 }
 0x64c   : > { %v4712_v36 = vsel %vm1629_vm15, %v12553_v39, 0.0  ;;  %v4713_v35 = vsel %vm1630_vm6, %v12557_v61, 0.0  ;;  %v14440_v9 = vrot.slane %v12223_v49, 1  ;;  %v14441_v60 = vrot.slane %v12197_v8, 1 }
 0x64d   : > { %14432 = vst [vmem:[#allocation49_spill] sm:$0xff] %v12539_v21  ;;  %v12567_v38 = vsel %vm1509_vm3, %v14435_v19, %v14434_v48  ;;  %v14437_v45 = vmov %v14435_v19  ;;  %v14438_v40 = vmov %v14434_v48  ;;  %v4744_v19 = vsel %vm1673_vm5, %v12547_v51, %v4712_v36  ;;  %8509 = vmatmul.mubr.msk.bf16.gmra.mxu0 %vm652_vm1, %v12539_v21 }
 0x64e   : > { %14436 = vst [vmem:[#allocation71_spill] sm:$0xff] %v12567_v38  ;;  %v12581_v27 = vsel %vm1509_vm3, %v14438_v40, %v14437_v45  ;;  %v12589_v48 = vsel %vm1574_vm4, %v14441_v60, %v14440_v9  ;;  %v4745_v53 = vsel %vm1674_vm7, %v12543_v32, %v4713_v35  ;;  %v12597_v28 = vpack.c.bf16 %v4547_v44, %v4546_v30 }
 0x64f   : > { %14439 = vst [vmem:[#allocation74_spill] sm:$0xff] %v12581_v27  ;;  %v14443_v45 = vmov %v14441_v60  ;;  %v14444_v40 = vmov %v14440_v9  ;;  %v12607_v9 = vpack.c.bf16 %v4745_v53, %v4744_v19  ;;  %v4714_v36 = vsel %vm1629_vm15, %v12589_v48, 0.0 }
 0x650   : > { %14442 = vst [vmem:[#allocation77_spill] sm:$0xff] %v12597_v28  ;;  %v12605_v61 = vsel %vm1574_vm4, %v14444_v40, %v14443_v45  ;;  %v4577_v60 = vrot.slane %v4546_v30, 7  ;;  %v4746_v8 = vsel %vm1673_vm5, %v12581_v27, %v4714_v36  ;;  %v4593_v53 = vrot.slane %v4547_v44, 7  ;;  %8482 = vmatprep.mubr.msk.bf16.mxu1 %vm652_vm1, %v12597_v28  ;;  %v14451_v27 = vld [vmem:[#allocation35_spill] sm:$0xff] }
 0x651   : > { %14445 = vst [vmem:[#allocation34_spill] sm:$0xff] %v12607_v9  ;;  %v4715_v35 = vsel %vm1630_vm6, %v12605_v61, 0.0  ;;  %v4641_v19 = vrot.slane %v4546_v30, 1  ;;  %v4660_v45 = vrot.slane %v12285_v54, 1  ;;  %8512 = vmatprep.mubr.msk.bf16.mxu0 %vm652_vm1, %v12607_v9  ;;  %v4657_v7 = vrot.slane %v4547_v44, 1 }
 0x652   : > { %v4747_v49 = vsel %vm1674_vm7, %v12567_v38, %v4715_v35  ;;  %v12634_v36 = vpack.c.bf16 %v12234_v50, %v12231_v56  ;;  %v12638_v35 = vsel %vm1509_vm3, %v4577_v60, %v4593_v53  ;;  %v12642_v30 = vsel %vm1509_vm3, %v4593_v53, %v4577_v60  ;;  %v14450_v38 = vld [vmem:[#allocation58_spill] sm:$0xff] }
 0x653   : > { %v12630_v40 = vpack.c.bf16 %v4747_v49, %v4746_v8  ;;  %14448 = vst [vmem:[#allocation40_spill] sm:$0xff] %v12638_v35  ;;  %14449 = vst [vmem:[#allocation45_spill] sm:$0xff] %v12642_v30  ;;  %v4550_v9 = vmul.f32 %v12220_v24, %v14450_v38  ;;  %v4551_v8 = vmul.f32 %v12243_v14, %v14451_v27  ;;  %v14454_v28 = vrot.slane %v12231_v56, 7 }
 0x654   : > { %14447 = vst [vmem:[#allocation44_spill] sm:$0xff] %v12634_v36  ;;  %v12650_v44 = vsel %vm1574_vm4, %v4641_v19, %v4657_v7  ;;  %v12654_v49 = vsel %vm1574_vm4, %v4657_v7, %v4641_v19  ;;  %v14455_v21 = vrot.slane %v12234_v50, 7  ;;  %v14457_v24 = vrot.slane %v12234_v50, 1  ;;  %8483 = vmatmul.mubr.msk.bf16.gmra.mxu1 %vm652_vm1, %v12634_v36 }
 0x655   : > { %14446 = vst [vmem:[#allocation39_spill] sm:$0xff] %v12630_v40  ;;  %14452 = vst [vmem:[#allocation58_spill] sm:$0xff] %v12650_v44  ;;  %v14458_v14 = vrot.slane %v12231_v56, 1  ;;  %v4716_v7 = vsel %vm1629_vm15, %v12650_v44, 0.0  ;;  %v4717_v27 = vsel %vm1630_vm6, %v12654_v49, 0.0  ;;  %8513 = vmatmul.mubr.msk.bf16.gmra.mxu0 %vm652_vm1, %v12630_v40 }
 0x656   : > { %14453 = vst [vmem:[#allocation35_spill] sm:$0xff] %v12654_v49  ;;  %v12662_v60 = vsel %vm1509_vm3, %v14455_v21, %v14454_v28  ;;  %v14460_v53 = vmov %v14455_v21  ;;  %v14461_v21 = vmov %v14454_v28  ;;  %v4748_v49 = vsel %vm1673_vm5, %v12642_v30, %v4716_v7 }
 0x657   : > { %14456 = vst [vmem:[#allocation80_spill] sm:$0xff] %v12662_v60  ;;  %v12670_v38 = vsel %vm1574_vm4, %v14458_v14, %v14457_v24  ;;  %v12684_v28 = vsel %vm1509_vm3, %v14461_v21, %v14460_v53  ;;  %v14463_v19 = vmov %v14458_v14  ;;  %v4749_v44 = vsel %vm1674_vm7, %v12638_v35, %v4717_v27 }
 0x658   : > { %14459 = vst [vmem:[#allocation81_spill] sm:$0xff] %v12670_v38  ;;  %14462 = vst [vmem:[#allocation82_spill] sm:$0xff] %v12684_v28  ;;  %v12692_v14 = vsel %vm1574_vm4, %v14457_v24, %v14463_v19  ;;  %v4718_v53 = vsel %vm1629_vm15, %v12670_v38, 0.0  ;;  %v12706_v50 = vpack.c.bf16 %v4749_v44, %v4748_v49  ;;  %v12708_v21 = vpack.c.bf16 %v4551_v8, %v4550_v9 }
 0x659   : > { %14464 = vst [vmem:[#allocation83_spill] sm:$0xff] %v12692_v14  ;;  %v4719_v56 = vsel %vm1630_vm6, %v12692_v14, 0.0  ;;  %v4750_v7 = vsel %vm1673_vm5, %v12662_v60, %v4718_v53  ;;  %v4579_v19 = vrot.slane %v4550_v9, 7  ;;  %v4595_v24 = vrot.slane %v4551_v8, 7 }
 0x65a   : > { %14465 = vst [vmem:[#allocation84_spill] sm:$0xff] %v12706_v50  ;;  %14466 = vst [vmem:[#allocation85_spill] sm:$0xff] %v12708_v21  ;;  %v4751_v27 = vsel %vm1674_vm7, %v12684_v28, %v4719_v56  ;;  %v4643_v35 = vrot.slane %v4550_v9, 1  ;;  %v4659_v38 = vrot.slane %v4551_v8, 1  ;;  %v4790_v14 = vsel %vm1757_vm8, %v12025_v10, 0.0  ;;  %8516 = vmatprep.mubr.msk.bf16.mxu0 %vm652_vm1, %v12706_v50  ;;  %8486 = vmatprep.mubr.msk.bf16.mxu1 %vm652_vm1, %v12708_v21 }
 0x65b   : > { %v12725_v44 = vpack.c.bf16 %v12285_v54, %v12262_v52  ;;  %v14468_v49 = vrot.slane %v12285_v54, 7  ;;  %v14469_v53 = vrot.slane %v12262_v52, 7  ;;  %v4791_v28 = vsel %vm1758_vm9, %v12040_v17, 0.0 }
 0x65c   : > { %v12754_v54 = vsel %vm1509_vm3, %v4595_v24, %v4579_v19  ;;  %v12762_v17 = vsel %vm1574_vm4, %v4659_v38, %v4643_v35  ;;  %v12801_v40 = vpack.c.bf16 %v4751_v27, %v4750_v7  ;;  %v14482_v7 = vld [vmem:[#allocation36_spill] sm:$0xff] }
 0x65d   : > { %v12733_v9 = vsel %vm1509_vm3, %v14469_v53, %v14468_v49  ;;  %v14470_v10 = vmov %v14469_v53  ;;  %v14471_v8 = vmov %v14468_v49  ;;  %v12750_v49 = vsel %vm1509_vm3, %v4579_v19, %v4595_v24  ;;  %14474 = vst [vmem:[#allocation51_spill] sm:$0xff] %v12754_v54  ;;  %14476 = vst [vmem:[#allocation87_spill] sm:$0xff] %v12762_v17  ;;  %8487 = vmatmul.mubr.msk.bf16.gmra.mxu1 %vm652_vm1, %v12725_v44 }
 0x65e   : > { %v4628_v56 = vsel %vm1509_vm3, %v14471_v8, %v14470_v10  ;;  %14473 = vst [vmem:[#allocation50_spill] sm:$0xff] %v12750_v49  ;;  %v12758_v53 = vsel %vm1574_vm4, %v4643_v35, %v4659_v38  ;;  %v14477_v8 = vrot.slane %v12262_v52, 1  ;;  %v4721_v50 = vsel %vm1630_vm6, %v12762_v17, 0.0  ;;  %8517 = vmatmul.mubr.msk.bf16.gmra.mxu0 %vm652_vm1, %v12801_v40  ;;  %v14520_v17 = vld [vmem:[#allocation38_spill] sm:$0xff] }
 0x65f   : > { %14475 = vst [vmem:[#allocation86_spill] sm:$0xff] %v12758_v53  ;;  %v4720_v10 = vsel %vm1629_vm15, %v12758_v53, 0.0  ;;  %v4753_v52 = vsel %vm1674_vm7, %v12750_v49, %v4721_v50  ;;  %v4823_v53 = vsel %vm1802_vm11, %v12058_v20, %v4791_v28  ;;  %v4792_v20 = vsel %vm1757_vm8, %v12140_v11, 0.0 }
 0x660   : > { %v4676_v21 = vsel %vm1574_vm4, %v14477_v8, %v4660_v45  ;;  %v14478_v19 = vmov %v14477_v8  ;;  %v4752_v35 = vsel %vm1673_vm5, %v12754_v54, %v4720_v10  ;;  %v4822_v10 = vsel %vm1801_vm10, %v12049_v47, %v4790_v14 }
 0x661   : > { %v4692_v24 = vsel %vm1574_vm4, %v4660_v45, %v14478_v19  ;;  %v4722_v38 = vsel %vm1629_vm15, %v4676_v21, 0.0  ;;  %v12803_v50 = vpack.c.bf16 %v4823_v53, %v4822_v10  ;;  %v12805_v49 = vpack.c.bf16 %v4753_v52, %v4752_v35  ;;  %v14483_v53 = vld [vmem:[#allocation55_spill] sm:$0xff] }
 0x662   : > { %v4723_v60 = vsel %vm1630_vm6, %v4692_v24, 0.0  ;;  %v4754_v45 = vsel %vm1673_vm5, %v4628_v56, %v4722_v38  ;;  %v14481_v47 = vmov 0.0|0.0   ;;  %v4824_v28 = vsel %vm1801_vm10, %v12127_v62, %v4792_v20  ;;  %v14486_v20 = vld [vmem:[#allocation62_spill] sm:$0xff] }
 0x663   : > { %v4755_v8 = vsel %vm1674_vm7, %v12733_v9, %v4723_v60  ;;  %8520 = vmatprep.mubr.msk.bf16.mxu0 %vm652_vm1, %v12805_v49  ;;  %8526 = vmatprep.mubr.bf16.mxu1 %v14481_v47  ;;  %v4793_v60 = vsel %vm1758_vm9, %v12144_v1, 0.0  ;;  %v4554_v27 = vmul.f32 %v12292_v3, %v14482_v7  ;;  %v4555_v35 = vmul.f32 %v12332_v23, %v14483_v53 }
 0x664   : > { %v12796_v54 = vpack.c.bf16 %v4755_v8, %v4754_v45  ;;  %v4825_v14 = vsel %vm1802_vm11, %v12123_v63, %v4793_v60  ;;  %v4794_v11 = vsel %vm1757_vm8, %v12190_v6, 0.0  ;;  %v4795_v1 = vsel %vm1758_vm9, %v12194_v0, 0.0  ;;  %v12853_v6 = vld [vmem:[%s13998_s13 + $0x18] sm:$0xf] }
 0x665   : > { %v12836_v38 = vpack.c.bf16 %v4825_v14, %v4824_v28  ;;  %v5732_v62 = vsel %vm1902_vm14, %v12017_v16, 0  ;;  %v4796_v63 = vsel %vm1757_vm8, %v12251_v59, 0.0  ;;  %v4797_v23 = vsel %vm1758_vm9, %v12255_v42, 0.0  ;;  %8527 = vmatmul.mubr.msk.bf16.vlgmr.msra.gmra.mxu1 %vm652_vm1, %v12803_v50  ;;  %v14484_v16 = vld [vmem:[#allocation61_spill] sm:$0xff]  ;;  %v14485_v59 = vld [vmem:[#allocation47_spill] sm:$0xff] }
 0x666   : > { %8521 = vmatmul.mubr.msk.bf16.gmra.mxu0 %vm652_vm1, %v12796_v54  ;;  %v4826_v0 = vsel %vm1801_vm10, %v14484_v16, %v4794_v11  ;;  %v4827_v42 = vsel %vm1802_vm11, %v14485_v59, %v4795_v1  ;;  %v4581_v3 = vrot.slane %v4554_v27, 7  ;;  %v4597_v52 = vrot.slane %v4555_v35, 7  ;;  %8593 = vmatpush3.bf16.msra.mxu1 %v5732_v62 }
 0x667   : > { %8560 = vmatprep.mubr.msk.bf16.mxu0 %vm652_vm1, %v12090_v46  ;;  %8530 = vmatprep.mubr.msk.bf16.mxu1 %vm652_vm1, %v12836_v38  ;;  %v4828_v45 = vsel %vm1801_vm10, %v12241_v4, %v4796_v63  ;;  %v4829_v46 = vsel %vm1802_vm11, %v12247_v33, %v4797_v23  ;;  %v4645_v8 = vrot.slane %v4554_v27, 1  ;;  %v4661_v10 = vrot.slane %v4555_v35, 1  ;;  %v14487_v63 = vld [vmem:[#allocation60_spill] sm:$0xff] }
 0x668   : > { %8814 = vmatprep.subr.msk.bf16.mxu1 %vm1902_vm14, %v12853_v6  ;;  %v5931_v60 = vsel %vm1902_vm14, %v14486_v20, 0  ;;  %v12875_v28 = vpack.c.bf16 %v4827_v42, %v4826_v0  ;;  %v4818_v14 = vsel %vm1757_vm8, %v4676_v21, 0.0  ;;  %v12879_v7 = vpack.c.bf16 %v4829_v46, %v4828_v45  ;;  %v14488_v0 = vld [vmem:[#allocation66_spill] sm:$0xff]  ;;  %v14490_v46 = vld [vmem:[#allocation68_spill] sm:$0xff] }
 0x669   : > { %v4798_v4 = vsel %vm1757_vm8, %v12322_v41, 0.0  ;;  %v4819_v33 = vsel %vm1758_vm9, %v4692_v24, 0.0  ;;  %v4850_v53 = vsel %vm1801_vm10, %v4628_v56, %v4818_v14  ;;  %v4799_v11 = vsel %vm1758_vm9, %v12330_v12, 0.0 }
 0x66a   : > { %v4851_v21 = vsel %vm1802_vm11, %v12733_v9, %v4819_v33  ;;  %v4613_v1 = vsel %vm1509_vm3, %v4581_v3, %v4597_v52  ;;  %v4629_v41 = vsel %vm1509_vm3, %v4597_v52, %v4581_v3  ;;  %v4800_v24 = vsel %vm1757_vm8, %v12358_v43, 0.0  ;;  %v12910_v9 = vld [vmem:[%s13998_s13 + $0x1c] sm:$0xf] }
 0x66b   : > { %v12901_v62 = vpack.c.bf16 %v4851_v21, %v4850_v53  ;;  %v4677_v56 = vsel %vm1574_vm4, %v4645_v8, %v4661_v10  ;;  %v4693_v12 = vsel %vm1574_vm4, %v4661_v10, %v4645_v8  ;;  %v4801_v43 = vsel %vm1758_vm9, %v12362_v55, 0.0  ;;  %v14489_v52 = vld [vmem:[#allocation57_spill] sm:$0xff] }
 0x66c   : > { %v4724_v23 = vsel %vm1629_vm15, %v4677_v56, 0.0  ;;  %v4725_v57 = vsel %vm1630_vm6, %v4693_v12, 0.0  ;;  %v12923_v16 = vpack.c.bf16 %v4555_v35, %v4554_v27  ;;  %v4820_v55 = vsel %vm1757_vm8, %v4677_v56, 0.0 }
 0x66d   : > { %8531 = vmatmul.mubr.msk.bf16.gmra.mxu1 %vm652_vm1, %v12875_v28  ;;  %v4756_v59 = vsel %vm1673_vm5, %v4629_v41, %v4724_v23  ;;  %v4757_v42 = vsel %vm1674_vm7, %v4613_v1, %v4725_v57  ;;  %v4821_v29 = vsel %vm1758_vm9, %v4693_v12, 0.0  ;;  %v4852_v13 = vsel %vm1801_vm10, %v4629_v41, %v4820_v55  ;;  %v14495_v41 = vld [vmem:[#allocation76_spill] sm:$0xff]  ;;  %v14497_v12 = vld [vmem:[#allocation79_spill] sm:$0xff]  ;;  %v14498_v23 = vld [vmem:[#allocation69_spill] sm:$0xff] }
 0x66e   : > { %8561 = vmatmul.mubr.msk.bf16.vlgmr.msra.gmra.mxu0 %vm652_vm1, %v14487_v63  ;;  %8534 = vmatprep.mubr.msk.bf16.mxu1 %vm652_vm1, %v12879_v7  ;;  %v12937_v25 = vpack.c.bf16 %v4757_v42, %v4756_v59  ;;  %v4853_v31 = vsel %vm1802_vm11, %v4613_v1, %v4821_v29  ;;  %v4830_v27 = vsel %vm1801_vm10, %v12310_v2, %v4798_v4  ;;  %v14492_v2 = vld [vmem:[#allocation64_spill] sm:$0xff]  ;;  %v14493_v4 = vld [vmem:[#allocation70_spill] sm:$0xff]  ;;  %v4804_v33 = vsel %vm1757_vm8, %v12457_v58, 0.0  ;;  %v14500_v42 = vld [vmem:[#allocation43_spill] sm:$0xff] }
 0x66f   : > { %8627 = vmatpush3.bf16.msra.mxu0 %v5931_v60  ;;  %8564 = vmatprep.mubr.msk.bf16.mxu0 %vm652_vm1, %v14488_v0  ;;  %v4831_v35 = vsel %vm1802_vm11, %v12302_v26, %v4799_v11  ;;  %v12951_v3 = vpack.c.bf16 %v4853_v31, %v4852_v13  ;;  %v4832_v45 = vsel %vm1801_vm10, %v14489_v52, %v4800_v24  ;;  %v14491_v60 = vld [vmem:[#allocation63_spill] sm:$0xff]  ;;  %v4802_v26 = vsel %vm1757_vm8, %v12415_v37, 0.0  ;;  %v14494_v11 = vld [vmem:[#allocation73_spill] sm:$0xff]  ;;  %v14499_v59 = vld [vmem:[#allocation52_spill] sm:$0xff] }
 0x670   : > { %8815 = vmatprep.subr.msk.bf16.mxu0 %vm1902_vm14, %v12910_v9  ;;  %v4833_v8 = vsel %vm1802_vm11, %v14490_v46, %v4801_v43  ;;  %v12959_v10 = vpack.c.bf16 %v4831_v35, %v4830_v27  ;;  %v4803_v14 = vsel %vm1758_vm9, %v14492_v2, 0.0  ;;  %v4805_v53 = vsel %vm1758_vm9, %v12461_v18, 0.0  ;;  %v14496_v18 = vld [vmem:[#allocation59_spill] sm:$0xff]  ;;  %v14501_v31 = vld [vmem:[#allocation56_spill] sm:$0xff]  ;;  %v14502_v35 = vld [vmem:[#allocation49_spill] sm:$0xff] }
 0x671   : > { %v12961_v20 = vpack.c.bf16 %v4833_v8, %v4832_v45  ;;  %v4834_v37 = vsel %vm1801_vm10, %v12407_v34, %v4802_v26  ;;  %v4835_v21 = vsel %vm1802_vm11, %v14494_v11, %v4803_v14  ;;  %v4836_v1 = vsel %vm1801_vm10, %v12447_v5, %v4804_v33  ;;  %v14504_v45 = vld [vmem:[#allocation35_spill] sm:$0xff]  ;;  %v14505_v8 = vld [vmem:[#allocation74_spill] sm:$0xff]  ;;  %v14507_v2 = vld [vmem:[#allocation45_spill] sm:$0xff] }
 0x672   : > { %v4837_v58 = vsel %vm1802_vm11, %v14495_v41, %v4805_v53  ;;  %v12995_v24 = vpack.c.bf16 %v4835_v21, %v4834_v37  ;;  %v4806_v34 = vsel %vm1757_vm8, %v12501_v15, 0.0  ;;  %v4807_v5 = vsel %vm1758_vm9, %v12517_v22, 0.0  ;;  %v14506_v26 = vld [vmem:[#allocation71_spill] sm:$0xff]  ;;  %v14508_v33 = vld [vmem:[#allocation40_spill] sm:$0xff]  ;;  %v14509_v21 = vld [vmem:[#allocation34_spill] sm:$0xff] }
 0x673   : > { %v12997_v56 = vpack.c.bf16 %v4837_v58, %v4836_v1  ;;  %v4808_v43 = vsel %vm1757_vm8, %v12553_v39, 0.0  ;;  %v4809_v57 = vsel %vm1758_vm9, %v14498_v23, 0.0  ;;  %v4838_v15 = vsel %vm1801_vm10, %v14499_v59, %v4806_v34  ;;  %v14510_v1 = vld [vmem:[#allocation81_spill] sm:$0xff]  ;;  %v14511_v58 = vld [vmem:[#allocation83_spill] sm:$0xff] }
 0x674   : > { %v4839_v22 = vsel %vm1802_vm11, %v14500_v42, %v4807_v5  ;;  %v4840_v55 = vsel %vm1801_vm10, %v12547_v51, %v4808_v43  ;;  %v4841_v39 = vsel %vm1802_vm11, %v12543_v32, %v4809_v57  ;;  %v4810_v27 = vsel %vm1757_vm8, %v12589_v48, 0.0  ;;  %v14503_v32 = vld [vmem:[#allocation58_spill] sm:$0xff]  ;;  %v14512_v5 = vld [vmem:[#allocation39_spill] sm:$0xff] }
 0x675   : > { %8535 = vmatmul.mubr.msk.bf16.gmra.mxu1 %vm652_vm1, %v12959_v10  ;;  %v13031_v29 = vpack.c.bf16 %v4839_v22, %v4838_v15  ;;  %v13033_v13 = vpack.c.bf16 %v4841_v39, %v4840_v55  ;;  %v4811_v51 = vsel %vm1758_vm9, %v12605_v61, 0.0  ;;  %v4812_v52 = vsel %vm1757_vm8, %v14503_v32, 0.0  ;;  %v14513_v43 = vld [vmem:[#allocation86_spill] sm:$0xff]  ;;  %v14514_v57 = vld [vmem:[#allocation87_spill] sm:$0xff]  ;;  %v14515_v15 = vld [vmem:[#allocation80_spill] sm:$0xff] }
 0x676   : > { %8565 = vmatmul.mubr.msk.bf16.gmra.mxu0 %vm652_vm1, %v14491_v60  ;;  %8538 = vmatprep.mubr.msk.bf16.mxu1 %vm652_vm1, %v12961_v20  ;;  %v4813_v46 = vsel %vm1758_vm9, %v14504_v45, 0.0  ;;  %v4842_v48 = vsel %vm1801_vm10, %v14505_v8, %v4810_v27  ;;  %v4843_v61 = vsel %vm1802_vm11, %v14506_v26, %v4811_v51  ;;  %v4844_v14 = vsel %vm1801_vm10, %v14507_v2, %v4812_v52  ;;  %v14516_v22 = vld [vmem:[#allocation82_spill] sm:$0xff]  ;;  %v14517_v39 = vld [vmem:[#allocation51_spill] sm:$0xff]  ;;  %v14519_v52 = vld [vmem:[#allocation84_spill] sm:$0xff] }
 0x677   : > { %8568 = vmatprep.mubr.msk.bf16.mxu0 %vm652_vm1, %v14493_v4  ;;  %v4845_v53 = vsel %vm1802_vm11, %v14508_v33, %v4813_v46  ;;  %v13067_v37 = vpack.c.bf16 %v4843_v61, %v4842_v48  ;;  %v4814_v41 = vsel %vm1757_vm8, %v14510_v1, 0.0  ;;  %v4815_v34 = vsel %vm1758_vm9, %v14511_v58, 0.0  ;;  %v14518_v51 = vld [vmem:[#allocation50_spill] sm:$0xff]  ;;  %v14521_v45 = vld [vmem:[#allocation41_spill] sm:$0xff]  ;;  %v14526_v61 = vld [vmem:[#allocation72_spill] sm:$0xff] }
 0x678   : > { %v13069_v11 = vpack.c.bf16 %v4845_v53, %v4844_v14  ;;  %v4816_v23 = vsel %vm1757_vm8, %v14513_v43, 0.0  ;;  %v4817_v59 = vsel %vm1758_vm9, %v14514_v57, 0.0  ;;  %v4846_v42 = vsel %vm1801_vm10, %v14515_v15, %v4814_v41  ;;  %v4564_v46 = vld [vmem:[%s13998_s13 + $0x20] sm:$0xf]  ;;  %v14527_v2 = vld [vmem:[#allocation75_spill] sm:$0xff]  ;;  %v14529_v33 = vld [vmem:[#allocation65_spill] sm:$0xff] }
 0x679   : > { %v4847_v55 = vsel %vm1802_vm11, %v14516_v22, %v4815_v34  ;;  %v4848_v27 = vsel %vm1801_vm10, %v14517_v39, %v4816_v23  ;;  %v4849_v30 = vsel %vm1802_vm11, %v14518_v51, %v4817_v59  ;;  %v6127_v19 = vsel %vm1902_vm14, %v12853_v6, 0  ;;  %v14522_v8 = vld [vmem:[#allocation42_spill] sm:$0xff]  ;;  %v14530_v53 = vld [vmem:[#allocation67_spill] sm:$0xff]  ;;  %v14531_v1 = vld [vmem:[#allocation77_spill] sm:$0xff] }
 0x67a   : > { %v13103_v32 = vpack.c.bf16 %v4847_v55, %v4846_v42  ;;  %v13105_v36 = vpack.c.bf16 %v4849_v30, %v4848_v27  ;;  %v6323_v6 = vsel %vm1902_vm14, %v12910_v9, 0  ;;  %v6784_v48 = vld [vmem:[%s14000_s15] sm:$0xf]  ;;  %v14525_v9 = vld [vmem:[#allocation37_spill] sm:$0xff]  ;;  %v14532_v41 = vld [vmem:[#allocation44_spill] sm:$0xff]  ;;  %v6519_v57 = vsel %vm1902_vm14, %v4564_v46, 0 }
 0x67b   : > { %v14523_v26 = vld [vmem:[#allocation46_spill] sm:$0xff]  ;;  %v14533_v58 = vld [vmem:[#allocation85_spill] sm:$0xff] }
 0x67c   : > { %v14528_v14 = vld [vmem:[#allocation78_spill] sm:$0xff] }
 0x67d   : > { %8539 = vmatmul.mubr.msk.bf16.gmra.mxu1 %vm652_vm1, %v12995_v24 }
 0x67e   : > { %8569 = vmatmul.mubr.msk.bf16.gmra.mxu0 %vm652_vm1, %v14496_v18  ;;  %8542 = vmatprep.mubr.msk.bf16.mxu1 %vm652_vm1, %v12997_v56 }
 0x67f   : > { %8572 = vmatprep.mubr.msk.bf16.mxu0 %vm652_vm1, %v14497_v12 }
 0x685   : > { %8543 = vmatmul.mubr.msk.bf16.gmra.mxu1 %vm652_vm1, %v13031_v29 }
 0x686   : > { %8573 = vmatmul.mubr.msk.bf16.gmra.mxu0 %vm652_vm1, %v14501_v31  ;;  %8546 = vmatprep.mubr.msk.bf16.mxu1 %vm652_vm1, %v13033_v13 }
 0x687   : > { %8576 = vmatprep.mubr.msk.bf16.mxu0 %vm652_vm1, %v14502_v35 }
 0x68d   : > { %8547 = vmatmul.mubr.msk.bf16.gmra.mxu1 %vm652_vm1, %v13067_v37 }
 0x68e   : > { %8577 = vmatmul.mubr.msk.bf16.gmra.mxu0 %vm652_vm1, %v14509_v21  ;;  %8550 = vmatprep.mubr.msk.bf16.mxu1 %vm652_vm1, %v13069_v11 }
 0x68f   : > { %8580 = vmatprep.mubr.msk.bf16.mxu0 %vm652_vm1, %v14512_v5 }
 0x695   : > { %8551 = vmatmul.mubr.msk.bf16.gmra.mxu1 %vm652_vm1, %v13103_v32 }
 0x696   : > { %8581 = vmatmul.mubr.msk.bf16.gmra.mxu0 %vm652_vm1, %v14519_v52  ;;  %8554 = vmatprep.mubr.msk.bf16.mxu1 %vm652_vm1, %v13105_v36 }
 0x697   : > { %8584 = vmatprep.mubr.msk.bf16.mxu0 %vm652_vm1, %v12801_v40 }
 0x69d   : > { %8555 = vmatmul.mubr.msk.bf16.gmra.mxu1 %vm652_vm1, %v12901_v62 }
 0x69e   : > { %8585 = vmatmul.mubr.msk.bf16.gmra.mxu0 %vm652_vm1, %v12805_v49  ;;  %8594 = vmatprep.mubr.msk.bf16.mxu1 %vm652_vm1, %v14520_v17 }
 0x69f   : > { %8588 = vmatprep.mubr.msk.bf16.mxu0 %vm652_vm1, %v12796_v54 }
 0x6a5   : > { %8595 = vmatmul.mubr.msk.bf16.vlgmr.msra.gmra.mxu1 %vm652_vm1, %v14521_v45 }
 0x6a6   : > { %8589 = vmatmul.mubr.msk.bf16.gmra.mxu0 %vm652_vm1, %v12937_v25  ;;  %8598 = vmatprep.mubr.msk.bf16.mxu1 %vm652_vm1, %v14522_v8 }
 0x6a7   : > { %8628 = vmatprep.mubr.msk.bf16.mxu0 %vm652_vm1, %v12803_v50  ;;  %8661 = vmatpush3.bf16.msra.mxu1 %v6127_v19  ;;  %v14524_v50 = vld [vmem:[#allocation48_spill] sm:$0xff] }
 0x6a8   : > { %8816 = vmatprep.subr.msk.bf16.mxu1 %vm1902_vm14, %v4564_v46 }
 0x6ad   : > { %8599 = vmatmul.mubr.msk.bf16.gmra.mxu1 %vm652_vm1, %v14523_v26 }
 0x6ae   : > { %8629 = vmatmul.mubr.msk.bf16.vlgmr.msra.gmra.mxu0 %vm652_vm1, %v12836_v38  ;;  %8602 = vmatprep.mubr.msk.bf16.mxu1 %vm652_vm1, %v14524_v50 }
 0x6af   : > { %8695 = vmatpush3.bf16.msra.mxu0 %v6323_v6  ;;  %8632 = vmatprep.mubr.msk.bf16.mxu0 %vm652_vm1, %v12875_v28 }
 0x6b0   : > { %8817 = vmatprep.subr.msk.bf16.mxu0 %vm1902_vm14, %v6784_v48 }
 0x6b5   : > { %8603 = vmatmul.mubr.msk.bf16.gmra.mxu1 %vm652_vm1, %v14525_v9 }
 0x6b6   : > { %8633 = vmatmul.mubr.msk.bf16.gmra.mxu0 %vm652_vm1, %v12879_v7  ;;  %8606 = vmatprep.mubr.msk.bf16.mxu1 %vm652_vm1, %v14526_v61 }
 0x6b7   : > { %8636 = vmatprep.mubr.msk.bf16.mxu0 %vm652_vm1, %v12959_v10 }
 0x6bd   : > { %8607 = vmatmul.mubr.msk.bf16.gmra.mxu1 %vm652_vm1, %v14527_v2 }
 0x6be   : > { %8637 = vmatmul.mubr.msk.bf16.gmra.mxu0 %vm652_vm1, %v12961_v20  ;;  %8610 = vmatprep.mubr.msk.bf16.mxu1 %vm652_vm1, %v14528_v14 }
 0x6bf   : > { %8640 = vmatprep.mubr.msk.bf16.mxu0 %vm652_vm1, %v12995_v24 }
 0x6c5   : > { %8611 = vmatmul.mubr.msk.bf16.gmra.mxu1 %vm652_vm1, %v14529_v33 }
 0x6c6   : > { %8641 = vmatmul.mubr.msk.bf16.gmra.mxu0 %vm652_vm1, %v12997_v56  ;;  %8614 = vmatprep.mubr.msk.bf16.mxu1 %vm652_vm1, %v14530_v53 }
 0x6c7   : > { %8644 = vmatprep.mubr.msk.bf16.mxu0 %vm652_vm1, %v13031_v29 }
 0x6cd   : > { %8615 = vmatmul.mubr.msk.bf16.gmra.mxu1 %vm652_vm1, %v14531_v1 }
 0x6ce   : > { %8645 = vmatmul.mubr.msk.bf16.gmra.mxu0 %vm652_vm1, %v13033_v13  ;;  %8618 = vmatprep.mubr.msk.bf16.mxu1 %vm652_vm1, %v14532_v41 }
 0x6cf   : > { %8648 = vmatprep.mubr.msk.bf16.mxu0 %vm652_vm1, %v13067_v37 }
 0x6d5   : > { %8619 = vmatmul.mubr.msk.bf16.gmra.mxu1 %vm652_vm1, %v14533_v58 }
 0x6d6   : > { %8649 = vmatmul.mubr.msk.bf16.gmra.mxu0 %vm652_vm1, %v13069_v11  ;;  %8622 = vmatprep.mubr.msk.bf16.mxu1 %vm652_vm1, %v12725_v44 }
 0x6d7   : > { %8652 = vmatprep.mubr.msk.bf16.mxu0 %vm652_vm1, %v13103_v32 }
 0x6db   : > { %v8460_v34 = vpop.f32.mrf.mxu1 }
 0x6dd   : > { %8623 = vmatmul.mubr.msk.bf16.gmra.mxu1 %vm652_vm1, %v12923_v16  ;;  %v4952_v43 = vpop.f32.mrf.mxu1 }
 0x6de   : > { %8653 = vmatmul.mubr.msk.bf16.gmra.mxu0 %vm652_vm1, %v13105_v36  ;;  %8662 = vmatprep.mubr.msk.bf16.mxu1 %vm652_vm1, %v14487_v63 }
 0x6df   : > { %8656 = vmatprep.mubr.msk.bf16.mxu0 %vm652_vm1, %v12901_v62  ;;  %v8461_v23 = vpop.f32.mrf.mxu1 }
 0x6e1   : > { %v4955_v59 = vpop.f32.mrf.mxu1 }
 0x6e3   : > { %v8494_v15 = vpop.f32.mrf.mxu0 }
 0x6e4   : > { %v13208_v42 = vadd.f32 %v8494_v15, %v8460_v34 }
 0x6e5   : > { %8663 = vmatmul.mubr.msk.bf16.vlgmr.msra.gmra.mxu1 %vm652_vm1, %v14488_v0  ;;  %v5161_v63 = vpop.f32.mrf.mxu0  ;;  %v6921_v0 = vsel %vm1902_vm14, %v6784_v48, 0 }
 0x6e6   : > { %8657 = vmatmul.mubr.msk.bf16.gmra.mxu0 %vm652_vm1, %v12951_v3  ;;  %8666 = vmatprep.mubr.msk.bf16.mxu1 %vm652_vm1, %v14491_v60  ;;  %v13210_v22 = vadd.f32 %v5161_v63, %v4952_v43 }
 0x6e7   : > { %8696 = vmatprep.mubr.msk.bf16.mxu0 %vm652_vm1, %v14521_v45  ;;  %8729 = vmatpush3.bf16.msra.mxu1 %v6519_v57  ;;  %v8464_v55 = vpop.f32.mrf.mxu1  ;;  %v8495_v39 = vpop.f32.mrf.mxu0 }
 0x6e8   : > { %v13212_v27 = vadd.f32 %v8495_v39, %v8461_v23 }
 0x6e9   : > { %v4968_v51 = vpop.f32.mrf.mxu1  ;;  %v5164_v30 = vpop.f32.mrf.mxu0 }
 0x6ea   : > { %v13215_v17 = vadd.f32 %v5164_v30, %v4955_v59 }
 0x6eb   : > { %v8465_v19 = vpop.f32.mrf.mxu1 }
 0x6ed   : > { %8667 = vmatmul.mubr.msk.bf16.gmra.mxu1 %vm652_vm1, %v14493_v4  ;;  %v4971_v60 = vpop.f32.mrf.mxu1 }
 0x6ee   : > { %8697 = vmatmul.mubr.msk.bf16.vlgmr.msra.gmra.mxu0 %vm652_vm1, %v14522_v8  ;;  %8670 = vmatprep.mubr.msk.bf16.mxu1 %vm652_vm1, %v14496_v18  ;;  %v8498_v45 = vpop.f32.mrf.mxu0 }
 0x6ef   : > { %8763 = vmatpush3.bf16.msra.mxu0 %v6921_v0  ;;  %8700 = vmatprep.mubr.msk.bf16.mxu0 %vm652_vm1, %v14523_v26  ;;  %v13225_v46 = vadd.f32 %v8498_v45, %v8464_v55  ;;  %v8468_v6 = vpop.f32.mrf.mxu1 }
 0x6f0   : > { %v5177_v48 = vpop.f32.mrf.mxu0 }
 0x6f1   : > { %v13227_v34 = vadd.f32 %v5177_v48, %v4968_v51  ;;  %v4984_v43 = vpop.f32.mrf.mxu1 }
 0x6f2   : > { %v8499_v4 = vpop.f32.mrf.mxu0 }
 0x6f3   : > { %v13235_v8 = vadd.f32 %v8499_v4, %v8465_v19  ;;  %v8469_v18 = vpop.f32.mrf.mxu1 }
 0x6f4   : > { %v5180_v26 = vpop.f32.mrf.mxu0 }
 0x6f5   : > { %8671 = vmatmul.mubr.msk.bf16.gmra.mxu1 %vm652_vm1, %v14497_v12  ;;  %v13239_v23 = vadd.f32 %v5180_v26, %v4971_v60  ;;  %v4987_v57 = vpop.f32.mrf.mxu1 }
 0x6f6   : > { %8701 = vmatmul.mubr.msk.bf16.gmra.mxu0 %vm652_vm1, %v14524_v50  ;;  %8674 = vmatprep.mubr.msk.bf16.mxu1 %vm652_vm1, %v14501_v31 }
 0x6f7   : > { %8704 = vmatprep.mubr.msk.bf16.mxu0 %vm652_vm1, %v14525_v9 }
 0x6fb   : > { %v8502_v59 = vpop.f32.mrf.mxu0  ;;  %v8472_v50 = vpop.f32.mrf.mxu1 }
 0x6fc   : > { %v13245_v12 = vadd.f32 %v8502_v59, %v8468_v6 }
 0x6fd   : > { %8675 = vmatmul.mubr.msk.bf16.gmra.mxu1 %vm652_vm1, %v14502_v35  ;;  %v5193_v31 = vpop.f32.mrf.mxu0  ;;  %v5000_v9 = vpop.f32.mrf.mxu1 }
 0x6fe   : > { %8705 = vmatmul.mubr.msk.bf16.gmra.mxu0 %vm652_vm1, %v14526_v61  ;;  %8678 = vmatprep.mubr.msk.bf16.mxu1 %vm652_vm1, %v14509_v21  ;;  %v13251_v15 = vadd.f32 %v5193_v31, %v4984_v43 }
 0x6ff   : > { %8708 = vmatprep.mubr.msk.bf16.mxu0 %vm652_vm1, %v14527_v2  ;;  %v8503_v63 = vpop.f32.mrf.mxu0  ;;  %v8473_v55 = vpop.f32.mrf.mxu1 }
 0x700   : > { %v13253_v39 = vadd.f32 %v8503_v63, %v8469_v18 }
 0x701   : > { %v5196_v61 = vpop.f32.mrf.mxu0  ;;  %v5003_v51 = vpop.f32.mrf.mxu1 }
 0x702   : > { %v13255_v0 = vadd.f32 %v5196_v61, %v4987_v57 }
 0x703   : > { %v8476_v2 = vpop.f32.mrf.mxu1 }
 0x704   : > { %v8506_v35 = vpop.f32.mrf.mxu0 }
 0x705   : > { %8679 = vmatmul.mubr.msk.bf16.gmra.mxu1 %vm652_vm1, %v14512_v5  ;;  %v13261_v21 = vadd.f32 %v8506_v35, %v8472_v50  ;;  %v5016_v19 = vpop.f32.mrf.mxu1 }
 0x706   : > { %8709 = vmatmul.mubr.msk.bf16.gmra.mxu0 %vm652_vm1, %v14528_v14  ;;  %8682 = vmatprep.mubr.msk.bf16.mxu1 %vm652_vm1, %v14519_v52  ;;  %v5209_v30 = vpop.f32.mrf.mxu0 }
 0x707   : > { %8712 = vmatprep.mubr.msk.bf16.mxu0 %vm652_vm1, %v14529_v33  ;;  %v13267_v60 = vadd.f32 %v5209_v30, %v5000_v9  ;;  %v8477_v6 = vpop.f32.mrf.mxu1 }
 0x708   : > { %v8507_v45 = vpop.f32.mrf.mxu0 }
 0x709   : > { %v13269_v48 = vadd.f32 %v8507_v45, %v8473_v55  ;;  %v5019_v43 = vpop.f32.mrf.mxu1 }
 0x70a   : > { %v5212_v14 = vpop.f32.mrf.mxu0 }
 0x70b   : > { %v13271_v4 = vadd.f32 %v5212_v14, %v5003_v51  ;;  %v8480_v33 = vpop.f32.mrf.mxu1 }
 0x70d   : > { %v8510_v5 = vpop.f32.mrf.mxu0  ;;  %8683 = vmatmul.mubr.msk.bf16.gmra.mxu1 %vm652_vm1, %v12801_v40  ;;  %v5032_v26 = vpop.f32.mrf.mxu1 }
 0x70e   : > { %8713 = vmatmul.mubr.msk.bf16.gmra.mxu0 %vm652_vm1, %v14530_v53  ;;  %v13277_v52 = vadd.f32 %v8510_v5, %v8476_v2  ;;  %8686 = vmatprep.mubr.msk.bf16.mxu1 %vm652_vm1, %v12805_v49 }
 0x70f   : > { %8716 = vmatprep.mubr.msk.bf16.mxu0 %vm652_vm1, %v14531_v1  ;;  %v5225_v18 = vpop.f32.mrf.mxu0  ;;  %v8481_v50 = vpop.f32.mrf.mxu1 }
 0x710   : > { %v13283_v57 = vadd.f32 %v5225_v18, %v5016_v19 }
 0x711   : > { %v8511_v59 = vpop.f32.mrf.mxu0  ;;  %v5035_v9 = vpop.f32.mrf.mxu1 }
 0x712   : > { %v13285_v31 = vadd.f32 %v8511_v59, %v8477_v6 }
 0x713   : > { %v5228_v53 = vpop.f32.mrf.mxu0 }
 0x714   : > { %v13287_v63 = vadd.f32 %v5228_v53, %v5019_v43  ;;  %v8484_v1 = vpop.f32.mrf.mxu1 }
 0x715   : > { %v8514_v40 = vpop.f32.mrf.mxu0  ;;  %8687 = vmatmul.mubr.msk.bf16.gmra.mxu1 %vm652_vm1, %v12796_v54 }
 0x716   : > { %8717 = vmatmul.mubr.msk.bf16.gmra.mxu0 %vm652_vm1, %v14532_v41  ;;  %v13293_v49 = vadd.f32 %v8514_v40, %v8480_v33  ;;  %8690 = vmatprep.mubr.msk.bf16.mxu1 %vm652_vm1, %v12937_v25  ;;  %v5048_v61 = vpop.f32.mrf.mxu1 }
 0x717   : > { %8720 = vmatprep.mubr.msk.bf16.mxu0 %vm652_vm1, %v14533_v58  ;;  %v5241_v55 = vpop.f32.mrf.mxu0 }
 0x718   : > { %v13299_v51 = vadd.f32 %v5241_v55, %v5032_v26  ;;  %v8485_v2 = vpop.f32.mrf.mxu1 }
 0x719   : > { %v8515_v35 = vpop.f32.mrf.mxu0 }
 0x71a   : > { %v13301_v30 = vadd.f32 %v8515_v35, %v8481_v50  ;;  %v5051_v19 = vpop.f32.mrf.mxu1 }
 0x71b   : > { %v5244_v41 = vpop.f32.mrf.mxu0 }
 0x71c   : > { %v13303_v54 = vadd.f32 %v5244_v41, %v5035_v9  ;;  %v8833_v41 = vld [vmem:[%s9243_s21 + $0x8] sm:$0xff]  }
 0x71d   : > { %v8488_v58 = vpop.f32.mrf.mxu1  ;;  %8691 = vmatmul.mubr.bf16.gmra.mxu1 %v14481_v47 }
 0x71e   : > { %v8518_v45 = vpop.f32.mrf.mxu0  ;;  %8721 = vmatmul.mubr.msk.bf16.gmra.mxu0 %vm652_vm1, %v12725_v44  ;;  %8730 = vmatprep.mubr.msk.bf16.mxu1 %vm652_vm1, %v12836_v38  ;;  %v8832_v44 = vld [vmem:[%s9243_s21] sm:$0xff]  }
 0x71f   : > { %v13308_v25 = vadd.f32 %v8518_v45, %v8484_v1  ;;  %8724 = vmatprep.mubr.msk.bf16.mxu0 %vm652_vm1, %v12923_v16  ;;  %v5064_v14 = vpop.f32.mrf.mxu1  ;;  %v8834_v45 = vld [vmem:[%s9243_s21 + $0x10] sm:$0xff]  }
 0x720   : > { %v5257_v6 = vpop.f32.mrf.mxu0 }
 0x721   : > { %v13314_v43 = vadd.f32 %v5257_v6, %v5048_v61  ;;  %v8489_v33 = vpop.f32.mrf.mxu1 }
 0x722   : > { %v8519_v5 = vpop.f32.mrf.mxu0 }
 0x723   : > { %v13316_v18 = vadd.f32 %v8519_v5, %v8485_v2  ;;  %v5067_v59 = vpop.f32.mrf.mxu1 }
 0x724   : > { %v5260_v26 = vpop.f32.mrf.mxu0 }
 0x725   : > { %v13319_v50 = vadd.f32 %v5260_v26, %v5051_v19  ;;  %v8528_v16 = vpop.f32.mrf.mxu1  ;;  %8731 = vmatmul.mubr.msk.bf16.vlgmr.msra.gmra.mxu1 %vm652_vm1, %v12875_v28 }
 0x726   : > { %v8522_v53 = vpop.f32.mrf.mxu0  ;;  %8725 = vmatmul.mubr.bf16.gmra.mxu0 %v14481_v47  ;;  %v5499_v9 = vadd.f32 %v8528_v16, %v13208_v42  ;;  %8734 = vmatprep.mubr.msk.bf16.mxu1 %vm652_vm1, %v12879_v7  ;;  %v8835_v16 = vld [vmem:[%s9243_s21 + $0x18] sm:$0xff]  }
 0x727   : > { %v13324_v38 = vadd.f32 %v8522_v53, %v8488_v58  ;;  %8764 = vmatprep.mubr.msk.bf16.mxu0 %vm652_vm1, %v8832_v44  ;;  %v5370_v1 = vpop.f32.mrf.mxu1 }
 0x728   : > { %v5273_v40 = vpop.f32.mrf.mxu0  ;;  %v5497_v61 = vadd.f32 %v5370_v1, %v13210_v22 }
 0x729   : > { %v13330_v55 = vadd.f32 %v5273_v40, %v5064_v14  ;;  %v8529_v2 = vpop.f32.mrf.mxu1 }
 0x72a   : > { %v8523_v35 = vpop.f32.mrf.mxu0  ;;  %v5500_v28 = vadd.f32 %v8529_v2, %v13212_v27 }
 0x72b   : > { %v13334_v19 = vadd.f32 %v8523_v35, %v8489_v33  ;;  %v5373_v58 = vpop.f32.mrf.mxu1 }
 0x72c   : > { %v5276_v42 = vpop.f32.mrf.mxu0  ;;  %v5498_v7 = vadd.f32 %v5373_v58, %v13215_v17 }
 0x72d   : > { %v13338_v6 = vadd.f32 %v5276_v42, %v5067_v59  ;;  %v8532_v22 = vpop.f32.mrf.mxu1  ;;  %8735 = vmatmul.mubr.msk.bf16.gmra.mxu1 %vm652_vm1, %v12959_v10 }
 0x72e   : > { %v8562_v5 = vpop.f32.mrf.mxu0  ;;  %8765 = vmatmul.mubr.msk.bf16.vlgmr.msra.gmra.mxu0 %vm652_vm1, %v8833_v41  ;;  %v5503_v27 = vadd.f32 %v8532_v22, %v13225_v46  ;;  %8738 = vmatprep.mubr.msk.bf16.mxu1 %vm652_vm1, %v12961_v20  ;;  %v8838_v22 = vld [vmem:[%s9243_s21 + $0x30] sm:$0xff]  }
 0x72f   : > { %v13344_v14 = vadd.f32 %v8562_v5, %v5499_v9  ;;  %8768 = vmatprep.mubr.msk.bf16.mxu0 %vm652_vm1, %v8834_v45  ;;  %v5386_v44 = vpop.f32.mrf.mxu1  ;;  %v8836_v9 = vld [vmem:[%s9243_s21 + $0x20] sm:$0xff]  }
 0x730   : > { %v5569_v33 = vpop.f32.mrf.mxu0  ;;  %v5501_v26 = vadd.f32 %v5386_v44, %v13227_v34 }
 0x731   : > { %v13350_v17 = vadd.f32 %v5569_v33, %v5497_v61  ;;  %v8533_v53 = vpop.f32.mrf.mxu1 }
 0x732   : > { %v8563_v59 = vpop.f32.mrf.mxu0  ;;  %v5504_v10 = vadd.f32 %v8533_v53, %v13235_v8 }
 0x733   : > { %v13354_v40 = vadd.f32 %v8563_v59, %v5500_v28  ;;  %v5389_v1 = vpop.f32.mrf.mxu1 }
 0x734   : > { %v5572_v46 = vpop.f32.mrf.mxu0  ;;  %v5502_v20 = vadd.f32 %v5389_v1, %v13239_v23 }
 0x735   : > { %v13358_v35 = vadd.f32 %v5572_v46, %v5498_v7  ;;  %v8536_v34 = vpop.f32.mrf.mxu1  ;;  %8739 = vmatmul.mubr.msk.bf16.gmra.mxu1 %vm652_vm1, %v12995_v24  ;;  %v8837_v7 = vld [vmem:[%s9243_s21 + $0x28] sm:$0xff]   ;;  %v8839_v46 = vld [vmem:[%s9243_s21 + $0x38] sm:$0xff]  }
 0x736   : > { %v8566_v2 = vpop.f32.mrf.mxu0  ;;  %8769 = vmatmul.mubr.msk.bf16.gmra.mxu0 %vm652_vm1, %v8835_v16  ;;  %v5507_v8 = vadd.f32 %v8536_v34, %v13245_v12  ;;  %8742 = vmatprep.mubr.msk.bf16.mxu1 %vm652_vm1, %v12997_v56 }
 0x737   : > { %v13364_v61 = vadd.f32 %v8566_v2, %v5503_v27  ;;  %8772 = vmatprep.mubr.msk.bf16.mxu0 %vm652_vm1, %v8836_v9  ;;  %v5402_v28 = vpop.f32.mrf.mxu1 }
 0x738   : > { %v5585_v41 = vpop.f32.mrf.mxu0  ;;  %v5505_v45 = vadd.f32 %v5402_v28, %v13251_v15 }
 0x739   : > { %v13370_v23 = vadd.f32 %v5585_v41, %v5501_v26  ;;  %v8537_v58 = vpop.f32.mrf.mxu1 }
 0x73a   : > { %v8567_v42 = vpop.f32.mrf.mxu0  ;;  %v5508_v24 = vadd.f32 %v8537_v58, %v13253_v39 }
 0x73b   : > { %v13374_v5 = vadd.f32 %v8567_v42, %v5504_v10  ;;  %v5405_v27 = vpop.f32.mrf.mxu1 }
 0x73c   : > { %v5588_v12 = vpop.f32.mrf.mxu0  ;;  %v5506_v56 = vadd.f32 %v5405_v27, %v13255_v0 }
 0x73d   : > { %v13378_v33 = vadd.f32 %v5588_v12, %v5502_v20  ;;  %v8540_v15 = vpop.f32.mrf.mxu1  ;;  %8743 = vmatmul.mubr.msk.bf16.gmra.mxu1 %vm652_vm1, %v13031_v29  ;;  %v8840_v20 = vld [vmem:[%s9243_s21 + $0x40] sm:$0xff]   ;;  %v8842_v12 = vld [vmem:[%s9243_s21 + $0x50] sm:$0xff]  }
 0x73e   : > { %v8570_v44 = vpop.f32.mrf.mxu0  ;;  %8773 = vmatmul.mubr.msk.bf16.gmra.mxu0 %vm652_vm1, %v8837_v7  ;;  %v5511_v39 = vadd.f32 %v8540_v15, %v13261_v21  ;;  %8746 = vmatprep.mubr.msk.bf16.mxu1 %vm652_vm1, %v13033_v13 }
 0x73f   : > { %v13384_v26 = vadd.f32 %v8570_v44, %v5507_v8  ;;  %8776 = vmatprep.mubr.msk.bf16.mxu0 %vm652_vm1, %v8838_v22  ;;  %v5418_v53 = vpop.f32.mrf.mxu1 }
 0x740   : > { %v5601_v59 = vpop.f32.mrf.mxu0  ;;  %v5509_v16 = vadd.f32 %v5418_v53, %v13267_v60 }
 0x741   : > { %v13390_v0 = vadd.f32 %v5601_v59, %v5505_v45  ;;  %v8541_v9 = vpop.f32.mrf.mxu1 }
 0x742   : > { %v8571_v10 = vpop.f32.mrf.mxu0  ;;  %v5512_v29 = vadd.f32 %v8541_v9, %v13269_v48  ;;  %v8843_v9 = vld [vmem:[%s9243_s21 + $0x58] sm:$0xff]  }
 0x743   : > { %v13394_v1 = vadd.f32 %v8571_v10, %v5508_v24  ;;  %v5421_v2 = vpop.f32.mrf.mxu1  ;;  %v8841_v24 = vld [vmem:[%s9243_s21 + $0x48] sm:$0xff]  }
 0x744   : > { %v5604_v21 = vpop.f32.mrf.mxu0  ;;  %v5510_v13 = vadd.f32 %v5421_v2, %v13271_v4 }
 0x745   : > { %v13398_v34 = vadd.f32 %v5604_v21, %v5506_v56  ;;  %v8544_v60 = vpop.f32.mrf.mxu1  ;;  %8747 = vmatmul.mubr.msk.bf16.gmra.mxu1 %vm652_vm1, %v13067_v37 }
 0x746   : > { %v8574_v8 = vpop.f32.mrf.mxu0  ;;  %8777 = vmatmul.mubr.msk.bf16.gmra.mxu0 %vm652_vm1, %v8839_v46  ;;  %v5515_v48 = vadd.f32 %v8544_v60, %v13277_v52  ;;  %8750 = vmatprep.mubr.msk.bf16.mxu1 %vm652_vm1, %v13069_v11 }
 0x747   : > { %v13404_v41 = vadd.f32 %v8574_v8, %v5511_v39  ;;  %8780 = vmatprep.mubr.msk.bf16.mxu0 %vm652_vm1, %v8840_v20  ;;  %v5434_v45 = vpop.f32.mrf.mxu1 }
 0x748   : > { %v5617_v28 = vpop.f32.mrf.mxu0  ;;  %v5513_v42 = vadd.f32 %v5434_v45, %v13283_v57 }
 0x749   : > { %v13410_v4 = vadd.f32 %v5617_v28, %v5509_v16  ;;  %v8545_v7 = vpop.f32.mrf.mxu1 }
 0x74a   : > { %v8575_v58 = vpop.f32.mrf.mxu0  ;;  %v5516_v37 = vadd.f32 %v8545_v7, %v13285_v31  ;;  %v8846_v7 = vld [vmem:[%s9243_s21 + $0x70] sm:$0xff]  }
 0x74b   : > { %v13414_v22 = vadd.f32 %v8575_v58, %v5512_v29  ;;  %v5437_v27 = vpop.f32.mrf.mxu1  ;;  %v8844_v29 = vld [vmem:[%s9243_s21 + $0x60] sm:$0xff]  }
 0x74c   : > { %v5620_v52 = vpop.f32.mrf.mxu0  ;;  %v5514_v11 = vadd.f32 %v5437_v27, %v13287_v63 }
 0x74d   : > { %v13418_v56 = vadd.f32 %v5620_v52, %v5510_v13  ;;  %v8548_v57 = vpop.f32.mrf.mxu1  ;;  %8751 = vmatmul.mubr.msk.bf16.gmra.mxu1 %vm652_vm1, %v13103_v32 }
 0x74e   : > { %v8578_v44 = vpop.f32.mrf.mxu0  ;;  %8781 = vmatmul.mubr.msk.bf16.gmra.mxu0 %vm652_vm1, %v8841_v24  ;;  %v5519_v31 = vadd.f32 %v8548_v57, %v13293_v49  ;;  %8754 = vmatprep.mubr.msk.bf16.mxu1 %vm652_vm1, %v13105_v36 }
 0x74f   : > { %v13424_v15 = vadd.f32 %v8578_v44, %v5515_v48  ;;  %8784 = vmatprep.mubr.msk.bf16.mxu0 %vm652_vm1, %v8842_v12  ;;  %v5450_v59 = vpop.f32.mrf.mxu1 }
 0x750   : > { %v5633_v39 = vpop.f32.mrf.mxu0  ;;  %v5517_v53 = vadd.f32 %v5450_v59, %v13299_v51 }
 0x751   : > { %v13430_v63 = vadd.f32 %v5633_v39, %v5513_v42  ;;  %v8549_v10 = vpop.f32.mrf.mxu1  ;;  %v8845_v42 = vld [vmem:[%s9243_s21 + $0x68] sm:$0xff]   ;;  %v8847_v39 = vld [vmem:[%s9243_s21 + $0x78] sm:$0xff]  }
 0x752   : > { %v8579_v16 = vpop.f32.mrf.mxu0  ;;  %v5520_v32 = vadd.f32 %v8549_v10, %v13301_v30 }
 0x753   : > { %v13434_v46 = vadd.f32 %v8579_v16, %v5516_v37  ;;  %v5453_v20 = vpop.f32.mrf.mxu1 }
 0x754   : > { %v5636_v49 = vpop.f32.mrf.mxu0  ;;  %v5518_v36 = vadd.f32 %v5453_v20, %v13303_v54 }
 0x755   : > { %v13438_v21 = vadd.f32 %v5636_v49, %v5514_v11  ;;  %v8552_v51 = vpop.f32.mrf.mxu1  ;;  %8755 = vmatmul.mubr.msk.bf16.gmra.mxu1 %vm652_vm1, %v12901_v62 }
 0x756   : > { %v8582_v2 = vpop.f32.mrf.mxu0  ;;  %8785 = vmatmul.mubr.msk.bf16.gmra.mxu0 %vm652_vm1, %v8843_v9  ;;  %v5523_v30 = vadd.f32 %v8552_v51, %v13308_v25  ;;  %8758 = vmatprep.mubr.msk.bf16.mxu1 %vm652_vm1, %v12951_v3 }
 0x757   : > { %v13444_v13 = vadd.f32 %v8582_v2, %v5519_v31  ;;  %8788 = vmatprep.mubr.msk.bf16.mxu0 %vm652_vm1, %v8844_v29  ;;  %v5466_v60 = vpop.f32.mrf.mxu1 }
 0x758   : > { %v5649_v8 = vpop.f32.mrf.mxu0  ;;  %v5521_v48 = vadd.f32 %v5466_v60, %v13314_v43 }
 0x759   : > { %v13450_v54 = vadd.f32 %v5649_v8, %v5517_v53  ;;  %v8553_v45 = vpop.f32.mrf.mxu1 }
 0x75a   : > { %v8583_v28 = vpop.f32.mrf.mxu0  ;;  %v5524_v62 = vadd.f32 %v8553_v45, %v13316_v18 }
 0x75b   : > { %v13454_v58 = vadd.f32 %v8583_v28, %v5520_v32  ;;  %v5469_v24 = vpop.f32.mrf.mxu1 }
 0x75c   : > { %v5652_v25 = vpop.f32.mrf.mxu0  ;;  %v5522_v37 = vadd.f32 %v5469_v24, %v13319_v50 }
 0x75d   : > { %v13458_v3 = vadd.f32 %v5652_v25, %v5518_v36  ;;  %v8556_v52 = vpop.f32.mrf.mxu1  ;;  %8759 = vmatmul.mubr.bf16.gmra.mxu1 %v14481_v47 }
 0x75e   : > { %v8586_v12 = vpop.f32.mrf.mxu0  ;;  %8789 = vmatmul.mubr.msk.bf16.gmra.mxu0 %vm652_vm1, %v8845_v42  ;;  %v5527_v27 = vadd.f32 %v8556_v52, %v13324_v38 }
 0x75f   : > { %v13463_v43 = vadd.f32 %v8586_v12, %v5523_v30  ;;  %8792 = vmatprep.mubr.msk.bf16.mxu0 %vm652_vm1, %v8846_v7  ;;  %v5482_v11 = vpop.f32.mrf.mxu1 }
 0x760   : > { %v5665_v18 = vpop.f32.mrf.mxu0  ;;  %v5525_v57 = vadd.f32 %v5482_v11, %v13330_v55 }
 0x761   : > { %v13467_v44 = vadd.f32 %v5665_v18, %v5521_v48  ;;  %v8557_v50 = vpop.f32.mrf.mxu1 }
 0x762   : > { %v8587_v31 = vpop.f32.mrf.mxu0  ;;  %v5528_v53 = vadd.f32 %v8557_v50, %v13334_v19 }
 0x763   : > { %v13471_v59 = vadd.f32 %v8587_v31, %v5524_v62  ;;  %v5485_v16 = vpop.f32.mrf.mxu1 }
 0x764   : > { %v5668_v47 = vpop.f32.mrf.mxu0  ;;  %v5526_v38 = vadd.f32 %v5485_v16, %v13338_v6 }
 0x765   : > { %v13474_v10 = vadd.f32 %v5668_v47, %v5522_v37  ;;  %v8596_v32 = vpop.f32.mrf.mxu1 }
 0x766   : > { %v8590_v9 = vpop.f32.mrf.mxu0  ;;  %8793 = vmatmul.mubr.msk.bf16.gmra.mxu0 %vm652_vm1, %v8847_v39  ;;  %v5897_v55 = vadd.f32 %v8596_v32, %v13344_v14 }
 0x767   : > { %v13478_v29 = vadd.f32 %v8590_v9, %v5527_v27  ;;  %v5768_v20 = vpop.f32.mrf.mxu1 }
 0x768   : > { %v5681_v49 = vpop.f32.mrf.mxu0  ;;  %v5895_v19 = vadd.f32 %v5768_v20, %v13350_v17 }
 0x769   : > { %v13481_v36 = vadd.f32 %v5681_v49, %v5525_v57  ;;  %v8597_v51 = vpop.f32.mrf.mxu1 }
 0x76a   : > { %v8591_v2 = vpop.f32.mrf.mxu0  ;;  %v5898_v6 = vadd.f32 %v8597_v51, %v13354_v40 }
 0x76b   : > { %v13484_v30 = vadd.f32 %v8591_v2, %v5528_v53  ;;  %v5771_v60 = vpop.f32.mrf.mxu1 }
 0x76c   : > { %v5684_v8 = vpop.f32.mrf.mxu0  ;;  %v5896_v28 = vadd.f32 %v5771_v60, %v13358_v35 }
 0x76d   : > { %v13487_v48 = vadd.f32 %v5684_v8, %v5526_v38  ;;  %v8600_v14 = vpop.f32.mrf.mxu1 }
 0x76e   : > { %v8630_v45 = vpop.f32.mrf.mxu0  ;;  %v5901_v62 = vadd.f32 %v8600_v14, %v13364_v61 }
 0x76f   : > { %v13490_v42 = vadd.f32 %v8630_v45, %v5897_v55  ;;  %v5784_v17 = vpop.f32.mrf.mxu1 }
 0x770   : > { %v5967_v7 = vpop.f32.mrf.mxu0  ;;  %v5899_v24 = vadd.f32 %v5784_v17, %v13370_v23 }
 0x771   : > { %v13493_v25 = vadd.f32 %v5967_v7, %v5895_v19  ;;  %v8601_v40 = vpop.f32.mrf.mxu1 }
 0x772   : > { %v8631_v37 = vpop.f32.mrf.mxu0  ;;  %v5902_v52 = vadd.f32 %v8601_v40, %v13374_v5 }
 0x773   : > { %v13496_v12 = vadd.f32 %v8631_v37, %v5898_v6  ;;  %v5787_v35 = vpop.f32.mrf.mxu1 }
 0x774   : > { %v5970_v27 = vpop.f32.mrf.mxu0  ;;  %v5900_v11 = vadd.f32 %v5787_v35, %v13378_v33 }
 0x775   : > { %v13499_v18 = vadd.f32 %v5970_v27, %v5896_v28  ;;  %v8604_v61 = vpop.f32.mrf.mxu1 }
 0x776   : > { %v8634_v57 = vpop.f32.mrf.mxu0  ;;  %v5905_v50 = vadd.f32 %v8604_v61, %v13384_v26 }
 0x777   : > { %v13502_v31 = vadd.f32 %v8634_v57, %v5901_v62  ;;  %v5800_v23 = vpop.f32.mrf.mxu1 }
 0x778   : > { %v5983_v39 = vpop.f32.mrf.mxu0  ;;  %v5903_v47 = vadd.f32 %v5800_v23, %v13390_v0 }
 0x779   : > { %v13505_v53 = vadd.f32 %v5983_v39, %v5899_v24  ;;  %v8605_v5 = vpop.f32.mrf.mxu1 }
 0x77a   : > { %v8635_v16 = vpop.f32.mrf.mxu0  ;;  %v5906_v9 = vadd.f32 %v8605_v5, %v13394_v1 }
 0x77b   : > { %v13508_v38 = vadd.f32 %v8635_v16, %v5902_v52  ;;  %v5803_v33 = vpop.f32.mrf.mxu1 }
 0x77c   : > { %v5986_v32 = vpop.f32.mrf.mxu0  ;;  %v5904_v49 = vadd.f32 %v5803_v33, %v13398_v34 }
 0x77d   : > { %v13511_v55 = vadd.f32 %v5986_v32, %v5900_v11  ;;  %v8608_v26 = vpop.f32.mrf.mxu1 }
 0x77e   : > { %v8638_v20 = vpop.f32.mrf.mxu0  ;;  %v5909_v2 = vadd.f32 %v8608_v26, %v13404_v41 }
 0x77f   : > { %v13514_v19 = vadd.f32 %v8638_v20, %v5905_v50  ;;  %v5816_v0 = vpop.f32.mrf.mxu1 }
 0x780   : > { %v5999_v51 = vpop.f32.mrf.mxu0  ;;  %v5907_v8 = vadd.f32 %v5816_v0, %v13410_v4 }
 0x781   : > { %v13517_v6 = vadd.f32 %v5999_v51, %v5903_v47  ;;  %v8609_v1 = vpop.f32.mrf.mxu1 }
 0x782   : > { %v8639_v60 = vpop.f32.mrf.mxu0  ;;  %v5910_v45 = vadd.f32 %v8609_v1, %v13414_v22 }
 0x783   : > { %v13520_v28 = vadd.f32 %v8639_v60, %v5906_v9  ;;  %v5819_v34 = vpop.f32.mrf.mxu1 }
 0x784   : > { %v6002_v14 = vpop.f32.mrf.mxu0  ;;  %v5908_v7 = vadd.f32 %v5819_v34, %v13418_v56 }
 0x785   : > { %v13523_v62 = vadd.f32 %v6002_v14, %v5904_v49  ;;  %v8612_v41 = vpop.f32.mrf.mxu1 }
 0x786   : > { %v8642_v17 = vpop.f32.mrf.mxu0  ;;  %v5913_v37 = vadd.f32 %v8612_v41, %v13424_v15 }
 0x787   : > { %v13526_v24 = vadd.f32 %v8642_v17, %v5909_v2  ;;  %v5832_v4 = vpop.f32.mrf.mxu1 }
 0x788   : > { %v6015_v40 = vpop.f32.mrf.mxu0  ;;  %v5911_v27 = vadd.f32 %v5832_v4, %v13430_v63 }
 0x789   : > { %v13529_v52 = vadd.f32 %v6015_v40, %v5907_v8  ;;  %v8613_v22 = vpop.f32.mrf.mxu1 }
 0x78a   : > { %v8643_v35 = vpop.f32.mrf.mxu0  ;;  %v5914_v57 = vadd.f32 %v8613_v22, %v13434_v46 }
 0x78b   : > { %v13532_v11 = vadd.f32 %v8643_v35, %v5910_v45  ;;  %v5835_v56 = vpop.f32.mrf.mxu1 }
 0x78c   : > { %v6018_v61 = vpop.f32.mrf.mxu0  ;;  %v5912_v39 = vadd.f32 %v5835_v56, %v13438_v21 }
 0x78d   : > { %v13535_v50 = vadd.f32 %v6018_v61, %v5908_v7  ;;  %v8616_v15 = vpop.f32.mrf.mxu1 }
 0x78e   : > { %v8646_v23 = vpop.f32.mrf.mxu0  ;;  %v5917_v16 = vadd.f32 %v8616_v15, %v13444_v13 }
 0x78f   : > { %v13538_v47 = vadd.f32 %v8646_v23, %v5913_v37  ;;  %v5848_v63 = vpop.f32.mrf.mxu1 }
 0x790   : > { %v6031_v5 = vpop.f32.mrf.mxu0  ;;  %v5915_v32 = vadd.f32 %v5848_v63, %v13450_v54 }
 0x791   : > { %v13541_v9 = vadd.f32 %v6031_v5, %v5911_v27  ;;  %v8617_v46 = vpop.f32.mrf.mxu1 }
 0x792   : > { %v8647_v33 = vpop.f32.mrf.mxu0  ;;  %v5918_v20 = vadd.f32 %v8617_v46, %v13454_v58 }
 0x793   : > { %v13544_v49 = vadd.f32 %v8647_v33, %v5914_v57  ;;  %v5851_v21 = vpop.f32.mrf.mxu1 }
 0x794   : > { %v6034_v26 = vpop.f32.mrf.mxu0  ;;  %v5916_v51 = vadd.f32 %v5851_v21, %v13458_v3 }
 0x795   : > { %14534 = vst [vmem:[#allocation53_spill] sm:$0xff] %v13544_v49  ;;  %v13547_v2 = vadd.f32 %v6034_v26, %v5912_v39  ;;  %v8620_v13 = vpop.f32.mrf.mxu1 }
 0x796   : > { %v8650_v0 = vpop.f32.mrf.mxu0  ;;  %v5921_v60 = vadd.f32 %v8620_v13, %v13463_v43 }
 0x797   : > { %14535 = vst [vmem:[#allocation54_spill] sm:$0xff] %v13547_v2  ;;  %v13550_v8 = vadd.f32 %v8650_v0, %v5917_v16  ;;  %v5864_v54 = vpop.f32.mrf.mxu1 }
 0x798   : > { %v6047_v1 = vpop.f32.mrf.mxu0  ;;  %v5919_v14 = vadd.f32 %v5864_v54, %v13467_v44 }
 0x799   : > { %14536 = vst [vmem:[#allocation36_spill] sm:$0xff] %v13550_v8  ;;  %v13553_v45 = vadd.f32 %v6047_v1, %v5915_v32  ;;  %v8621_v58 = vpop.f32.mrf.mxu1 }
 0x79a   : > { %v8651_v34 = vpop.f32.mrf.mxu0  ;;  %v5922_v17 = vadd.f32 %v8621_v58, %v13471_v59 }
 0x79b   : > { %14537 = vst [vmem:[#allocation55_spill] sm:$0xff] %v13553_v45  ;;  %v13556_v7 = vadd.f32 %v8651_v34, %v5918_v20  ;;  %v5867_v3 = vpop.f32.mrf.mxu1 }
 0x79c   : > { %v6050_v41 = vpop.f32.mrf.mxu0  ;;  %v5920_v40 = vadd.f32 %v5867_v3, %v13474_v10 }
 0x79d   : > { %14538 = vst [vmem:[#allocation61_spill] sm:$0xff] %v13556_v7  ;;  %v13559_v37 = vadd.f32 %v6050_v41, %v5916_v51  ;;  %v8624_v43 = vpop.f32.mrf.mxu1 }
 0x79e   : > { %v8654_v4 = vpop.f32.mrf.mxu0  ;;  %v5925_v35 = vadd.f32 %v8624_v43, %v13478_v29 }
 0x79f   : > { %14539 = vst [vmem:[#allocation47_spill] sm:$0xff] %v13559_v37  ;;  %v13562_v27 = vadd.f32 %v8654_v4, %v5921_v60  ;;  %v5880_v44 = vpop.f32.mrf.mxu1 }
 0x7a0   : > { %v6063_v22 = vpop.f32.mrf.mxu0  ;;  %v5923_v61 = vadd.f32 %v5880_v44, %v13481_v36 }
 0x7a1   : > { %14540 = vst [vmem:[#allocation62_spill] sm:$0xff] %v13562_v27  ;;  %v13565_v57 = vadd.f32 %v6063_v22, %v5919_v14  ;;  %v8625_v59 = vpop.f32.mrf.mxu1 }
 0x7a2   : > { %v8655_v56 = vpop.f32.mrf.mxu0  ;;  %v5926_v23 = vadd.f32 %v8625_v59, %v13484_v30 }
 0x7a3   : > { %14541 = vst [vmem:[#allocation60_spill] sm:$0xff] %v13565_v57  ;;  %v13568_v39 = vadd.f32 %v8655_v56, %v5922_v17  ;;  %v5883_v10 = vpop.f32.mrf.mxu1 }
 0x7a4   : > { %v6066_v15 = vpop.f32.mrf.mxu0  ;;  %v5924_v5 = vadd.f32 %v5883_v10, %v13487_v48 }
 0x7a5   : > { %14542 = vst [vmem:[#allocation66_spill] sm:$0xff] %v13568_v39  ;;  %v13571_v16 = vadd.f32 %v6066_v15, %v5920_v40  ;;  %v13574_v29 = vpop.f32.mrf.mxu1 }
 0x7a6   : > { %v8658_v63 = vpop.f32.mrf.mxu0 }
 0x7a7   : > { %14543 = vst [vmem:[#allocation57_spill] sm:$0xff] %v13571_v16  ;;  %v13576_v32 = vadd.f32 %v8658_v63, %v5925_v35  ;;  %v13578_v46 = vpop.f32.mrf.mxu1 }
 0x7a8   : > { %v6079_v33 = vpop.f32.mrf.mxu0 }
 0x7a9   : > { %14544 = vst [vmem:[#allocation68_spill] sm:$0xff] %v13576_v32  ;;  %v13580_v36 = vadd.f32 %v6079_v33, %v5923_v61  ;;  %v13582_v26 = vpop.f32.mrf.mxu1 }
 0x7aa   : > { %v8659_v20 = vpop.f32.mrf.mxu0 }
 0x7ab   : > { %14545 = vst [vmem:[#allocation63_spill] sm:$0xff] %v13580_v36  ;;  %v13584_v30 = vadd.f32 %v8659_v20, %v5926_v23  ;;  %v13586_v51 = vpop.f32.mrf.mxu1 }
 0x7ac   : > { %v6082_v21 = vpop.f32.mrf.mxu0 }
 0x7ad   : > { %14546 = vst [vmem:[#allocation64_spill] sm:$0xff] %v13584_v30  ;;  %v13588_v0 = vadd.f32 %v6082_v21, %v5924_v5  ;;  %v13592_v13 = vpop.f32.mrf.mxu1 }
 0x7ae   : > { %v13590_v48 = vpop.f32.mrf.mxu0 }
 0x7af   : > { %14547 = vst [vmem:[#allocation70_spill] sm:$0xff] %v13588_v0  ;;  %v13596_v1 = vpop.f32.mrf.mxu1 }
 0x7b0   : > { %v13594_v60 = vpop.f32.mrf.mxu0 }
 0x7b1   : > { %v13600_v14 = vpop.f32.mrf.mxu1 }
 0x7b2   : > { %v13598_v54 = vpop.f32.mrf.mxu0 }
 0x7b3   : > { %v13604_v58 = vpop.f32.mrf.mxu1 }
 0x7b4   : > { %v13602_v34 = vpop.f32.mrf.mxu0 }
 0x7b5   : > { %v13608_v41 = vpop.f32.mrf.mxu1 }
 0x7b6   : > { %v13606_v17 = vpop.f32.mrf.mxu0 }
 0x7b7   : > { %v13612_v40 = vpop.f32.mrf.mxu1 }
 0x7b8   : > { %v13610_v3 = vpop.f32.mrf.mxu0 }
 0x7b9   : > { %v13616_v43 = vpop.f32.mrf.mxu1 }
 0x7ba   : > { %v13614_v4 = vpop.f32.mrf.mxu0 }
 0x7bb   : > { %v13620_v22 = vpop.f32.mrf.mxu1 }
 0x7bc   : > { %v13618_v35 = vpop.f32.mrf.mxu0 }
 0x7bd   : > { %v13624_v61 = vpop.f32.mrf.mxu1 }
 0x7be   : > { %v13622_v44 = vpop.f32.mrf.mxu0 }
 0x7bf   : > { %v13628_v59 = vpop.f32.mrf.mxu1 }
 0x7c0   : > { %v13626_v56 = vpop.f32.mrf.mxu0 }
 0x7c1   : > { %v13632_v15 = vpop.f32.mrf.mxu1 }
 0x7c2   : > { %v13630_v23 = vpop.f32.mrf.mxu0 }
 0x7c3   : > { %v13636_v5 = vpop.f32.mrf.mxu1 }
 0x7c4   : > { %v13634_v10 = vpop.f32.mrf.mxu0 }
 0x7c5   : > { %v13640_v33 = vpop.f32.mrf.mxu1 }
 0x7c6   : > { %v13638_v63 = vpop.f32.mrf.mxu0 }
 0x7c7   : > { %v13644_v21 = vpop.f32.mrf.mxu1 }
 0x7c8   : > { %v13642_v20 = vpop.f32.mrf.mxu0 }
 0x7c9   : > { %v13648_v30 = vpop.f32.mrf.mxu1 }
 0x7ca   : > { %v13646_v0 = vpop.f32.mrf.mxu0  ;;  %14548 = vst [vmem:[#allocation73_spill] sm:$0xff] %v13648_v30 }
 0x7cb   : > { %v13652_v32 = vpop.f32.mrf.mxu1 }
 0x7cc   : > { %v13650_v36 = vpop.f32.mrf.mxu0  ;;  %14549 = vst [vmem:[#allocation76_spill] sm:$0xff] %v13652_v32 }
 0x7cd   : > { %v13656_v39 = vpop.f32.mrf.mxu1 }
 0x7ce   : > { %v13654_v16 = vpop.f32.mrf.mxu0  ;;  %14551 = vst [vmem:[#allocation79_spill] sm:$0xff] %v13656_v39 }
 0x7cf   : > { %14550 = vst [vmem:[#allocation59_spill] sm:$0xff] %v13654_v16  ;;  %v13660_v27 = vpop.f32.mrf.mxu1 }
 0x7d0   : > { %v13658_v57 = vpop.f32.mrf.mxu0  ;;  %14553 = vst [vmem:[#allocation52_spill] sm:$0xff] %v13660_v27 }
 0x7d1   : > { %14552 = vst [vmem:[#allocation69_spill] sm:$0xff] %v13658_v57  ;;  %v13664_v7 = vpop.f32.mrf.mxu1 }
 0x7d2   : > { %v13662_v37 = vpop.f32.mrf.mxu0  ;;  %14555 = vst [vmem:[#allocation56_spill] sm:$0xff] %v13664_v7 }
 0x7d3   : > { %14554 = vst [vmem:[#allocation43_spill] sm:$0xff] %v13662_v37  ;;  %v13668_v8 = vpop.f32.mrf.mxu1 }
 0x7d4   : > { %v13666_v45 = vpop.f32.mrf.mxu0  ;;  %14557 = vst [vmem:[#allocation58_spill] sm:$0xff] %v13668_v8 }
 0x7d5   : > { %14556 = vst [vmem:[#allocation49_spill] sm:$0xff] %v13666_v45  ;;  %v13672_v30 = vpop.f32.mrf.mxu1 }
 0x7d6   : > { %v13670_v2 = vpop.f32.mrf.mxu0  ;;  %14559 = vst [vmem:[#allocation74_spill] sm:$0xff] %v13672_v30 }
 0x7d7   : > { %14558 = vst [vmem:[#allocation35_spill] sm:$0xff] %v13670_v2  ;;  %v13676_v49 = vpop.f32.mrf.mxu1 }
 0x7d8   : > { %v13674_v32 = vpop.f32.mrf.mxu0  ;;  %14561 = vst [vmem:[#allocation45_spill] sm:$0xff] %v13676_v49 }
 0x7d9   : > { %14560 = vst [vmem:[#allocation71_spill] sm:$0xff] %v13674_v32  ;;  %v13680_v57 = vpop.f32.mrf.mxu1 }
 0x7da   : > { %v13678_v39 = vpop.f32.mrf.mxu0  ;;  %14563 = vst [vmem:[#allocation34_spill] sm:$0xff] %v13680_v57 }
 0x7db   : > { %14562 = vst [vmem:[#allocation40_spill] sm:$0xff] %v13678_v39  ;;  %v13684_v37 = vpop.f32.mrf.mxu1 }
 0x7dc   : > { %v13682_v27 = vpop.f32.mrf.mxu0  ;;  %14565 = vst [vmem:[#allocation83_spill] sm:$0xff] %v13684_v37 }
 0x7dd   : > { %14564 = vst [vmem:[#allocation81_spill] sm:$0xff] %v13682_v27  ;;  %v13688_v45 = vpop.f32.mrf.mxu1 }
 0x7de   : > { %v13686_v7 = vpop.f32.mrf.mxu0  ;;  %14567 = vst [vmem:[#allocation86_spill] sm:$0xff] %v13688_v45  ;;  %v6292_v45 = vadd.f32 %v13574_v29, %v13490_v42 }
 0x7df   : > { %14566 = vst [vmem:[#allocation39_spill] sm:$0xff] %v13686_v7  ;;  %v13692_v2 = vpop.f32.mrf.mxu1 }
 0x7e0   : > { %v13690_v8 = vpop.f32.mrf.mxu0  ;;  %14569 = vst [vmem:[#allocation80_spill] sm:$0xff] %v13692_v2 }
 0x7e1   : > { %14568 = vst [vmem:[#allocation87_spill] sm:$0xff] %v13690_v8  ;;  %v13696_v32 = vpop.f32.mrf.mxu1 }
 0x7e2   : > { %v13694_v30 = vpop.f32.mrf.mxu0  ;;  %14571 = vst [vmem:[#allocation51_spill] sm:$0xff] %v13696_v32  ;;  %v6488_v32 = vadd.f32 %v13590_v48, %v6292_v45 }
 0x7e3   : > { %14570 = vst [vmem:[#allocation82_spill] sm:$0xff] %v13694_v30  ;;  %v13700_v39 = vpop.f32.mrf.mxu1  ;;  %v6290_v30 = vadd.f32 %v13578_v46, %v13493_v25  ;;  %v6291_v25 = vadd.f32 %v13586_v51, %v13499_v18  ;;  %v14578_v51 = vld [vmem:[#allocation4_spill] sm:$0xff] }
 0x7e4   : > { %v13698_v49 = vpop.f32.mrf.mxu0  ;;  %14573 = vst [vmem:[#allocation84_spill] sm:$0xff] %v13700_v39  ;;  %v6293_v39 = vadd.f32 %v13582_v26, %v13496_v12  ;;  %v13729_v12 = vld [vmem:[%s13999_s14] ss:$0 sm:$0xff] }
 0x7e5   : > { %14572 = vst [vmem:[#allocation50_spill] sm:$0xff] %v13698_v49  ;;  %v8732_v27 = vpop.f32.mrf.mxu1  ;;  %v6486_v29 = vadd.f32 %v13594_v60, %v6290_v30 }
 0x7e6   : > { %v13702_v57 = vpop.f32.mrf.mxu0  ;;  %v6489_v45 = vadd.f32 %v13598_v54, %v6293_v39 }
 0x7e7   : > { %14574 = vst [vmem:[#allocation38_spill] sm:$0xff] %v13702_v57  ;;  %v6555_v7 = vpop.f32.mrf.mxu1  ;;  %v6296_v57 = vadd.f32 %v13592_v13, %v13502_v31 }
 0x7e8   : > { %v13704_v37 = vpop.f32.mrf.mxu0  ;;  %v6682_v48 = vadd.f32 %v6555_v7, %v6486_v29  ;;  %v6294_v7 = vadd.f32 %v13596_v1, %v13505_v53  ;;  %v6297_v53 = vadd.f32 %v13600_v14, %v13508_v38 }
 0x7e9   : > { %14575 = vst [vmem:[#allocation41_spill] sm:$0xff] %v13704_v37  ;;  %v8733_v2 = vpop.f32.mrf.mxu1  ;;  %v13720_v37 = vld [vmem:[%s14001_s16] ss:$0 sm:$0xff]  ;;  %v6492_v29 = vadd.f32 %v13606_v17, %v6296_v57 }
 0x7ea   : > { %v13708_v8 = vpop.f32.mrf.mxu0  ;;  %v6720_v13 = vadd.f32 %v13729_v12, %v6682_v48 }
 0x7eb   : > { %14576 = vst [vmem:[#allocation42_spill] sm:$0xff] %v13708_v8  ;;  %v6558_v42 = vpop.f32.mrf.mxu1  ;;  %v6684_v8 = vadd.f32 %v8732_v27, %v6488_v32  ;;  %v6487_v27 = vadd.f32 %v13602_v34, %v6291_v25  ;;  %v6685_v32 = vadd.f32 %v8733_v2, %v6489_v45  ;;  %v14579_v34 = vld [vmem:[#allocation2_spill] sm:$0xff] }
 0x7ec   : > { %v13715_v49 = vpop.f32.mrf.mxu0 }
 0x7ed   : > { %14577 = vst [vmem:[#allocation46_spill] sm:$0xff] %v13715_v49  ;;  %v8736_v26 = vpop.f32.mrf.mxu1  ;;  %v6722_v39 = vadd.f32 %v13729_v12, %v6684_v8  ;;  %v6723_v8 = vadd.f32 %v13729_v12, %v6685_v32 }
 0x7ee   : > { %v8766_v46 = vpop.f32.mrf.mxu0  ;;  %v6688_v57 = vadd.f32 %v8736_v26, %v6492_v29 }
 0x7ef   : > { %v6966_v49 = vadd.f32 %v8766_v46, %v13720_v37  ;;  %v6571_v18 = vpop.f32.mrf.mxu1  ;;  %v6683_v46 = vadd.f32 %v6558_v42, %v6487_v27  ;;  %v14580_v27 = vld [vmem:[#allocation5_spill] sm:$0xff] }
 0x7f0   : > { %v6957_v30 = vpop.f32.mrf.mxu0 }
 0x7f1   : > { %v7086_v60 = vadd.f32 %v14578_v51, %v6966_v49  ;;  %v6958_v54 = vadd.f32 %v13720_v37, %v6957_v30  ;;  %v8737_v31 = vpop.f32.mrf.mxu1  ;;  %v6490_v49 = vadd.f32 %v13610_v3, %v6294_v7  ;;  %v6493_v51 = vadd.f32 %v13614_v4, %v6297_v53 }
 0x7f2   : > { %v8767_v16 = vpop.f32.mrf.mxu0  ;;  %v6721_v38 = vadd.f32 %v13729_v12, %v6683_v46 }
 0x7f3   : > { %v7118_v2 = vadd.f32 %v7086_v60, %v6722_v39  ;;  %v7084_v25 = vadd.f32 %v14579_v34, %v6958_v54  ;;  %v6969_v45 = vadd.f32 %v8767_v16, %v13720_v37  ;;  %v6574_v17 = vpop.f32.mrf.mxu1  ;;  %v6295_v39 = vadd.f32 %v13604_v58, %v13511_v55  ;;  %v14581_v54 = vld [vmem:[#allocation3_spill] sm:$0xff] }
 0x7f4   : > { %v6960_v1 = vpop.f32.mrf.mxu0  ;;  %v6686_v14 = vadd.f32 %v6571_v18, %v6490_v49  ;;  %v6726_v58 = vadd.f32 %v13729_v12, %v6688_v57  ;;  %v6689_v4 = vadd.f32 %v8737_v31, %v6493_v51  ;;  %v6298_v49 = vadd.f32 %v13612_v40, %v13517_v6 }
 0x7f5   : > { %v7150_v42 = vmul.f32 0.70710677, %v7118_v2  ;;  %v7116_v48 = vadd.f32 %v7084_v25, %v6720_v13  ;;  %v7087_v16 = vadd.f32 %v14580_v27, %v6969_v45  ;;  %v6961_v30 = vadd.f32 %v13720_v37, %v6960_v1  ;;  %v8740_v32 = vpop.f32.mrf.mxu1  ;;  %v14582_v25 = vld [vmem:[#allocation8_spill] sm:$0xff] }
 0x7f6   : > { %v8770_v3 = vpop.f32.mrf.mxu0  ;;  %v6300_v13 = vadd.f32 %v13608_v41, %v13514_v19  ;;  %v6491_v55 = vadd.f32 %v13618_v35, %v6295_v39  ;;  %v6724_v41 = vadd.f32 %v13729_v12, %v6686_v14  ;;  %v6494_v6 = vadd.f32 %v13626_v56, %v6298_v49 }
 0x7f7   : > { %7182 = vst.msk [vmem:[%s13748_s28 + $0x10] sm:$0xff] %vm652_vm1, %v7150_v42  ;;  %v7148_v26 = vmul.f32 0.70710677, %v7116_v48  ;;  %v7119_v60 = vadd.f32 %v7087_v16, %v6723_v8  ;;  %v7085_v7 = vadd.f32 %v14581_v54, %v6961_v30  ;;  %v6982_v29 = vadd.f32 %v8770_v3, %v13720_v37  ;;  %v6587_v46 = vpop.f32.mrf.mxu1  ;;  %v14583_v42 = vld [vmem:[#allocation6_spill] sm:$0xff] }
 0x7f8   : > { %v6973_v18 = vpop.f32.mrf.mxu0  ;;  %v6496_v19 = vadd.f32 %v13622_v44, %v6300_v13  ;;  %v6687_v35 = vadd.f32 %v6574_v17, %v6491_v55  ;;  %v6301_v16 = vadd.f32 %v13616_v43, %v13520_v28  ;;  %v6727_v40 = vadd.f32 %v13729_v12, %v6689_v4 }
 0x7f9   : > { %7180 = vst.msk [vmem:[%s13748_s28] sm:$0xff] %vm652_vm1, %v7148_v26  ;;  %v7151_v2 = vmul.f32 0.70710677, %v7119_v60  ;;  %v7117_v34 = vadd.f32 %v7085_v7, %v6721_v38  ;;  %v7090_v45 = vadd.f32 %v14582_v25, %v6982_v29  ;;  %v6974_v53 = vadd.f32 %v13720_v37, %v6973_v18  ;;  %v8741_v8 = vpop.f32.mrf.mxu1  ;;  %v14584_v38 = vld [vmem:[#allocation9_spill] sm:$0xff]  ;;  %v14585_v29 = vld [vmem:[#allocation7_spill] sm:$0xff] }
 0x7fa   : > { %v8771_v31 = vpop.f32.mrf.mxu0  ;;  %v6692_v44 = vadd.f32 %v8740_v32, %v6496_v19  ;;  %v6299_v26 = vadd.f32 %v13620_v22, %v13523_v62  ;;  %v6497_v28 = vadd.f32 %v13630_v23, %v6301_v16  ;;  %v6725_v43 = vadd.f32 %v13729_v12, %v6687_v35 }
 0x7fb   : > { %7183 = vst.msk [vmem:[%s13748_s28 + $0x18] sm:$0xff] %vm652_vm1, %v7151_v2  ;;  %v7149_v57 = vmul.f32 0.70710677, %v7117_v34  ;;  %v7122_v1 = vadd.f32 %v7090_v45, %v6726_v58  ;;  %v7088_v48 = vadd.f32 %v14583_v42, %v6974_v53  ;;  %v6985_v27 = vadd.f32 %v8771_v31, %v13720_v37  ;;  %v6590_v30 = vpop.f32.mrf.mxu1  ;;  %v14586_v34 = vld [vmem:[#allocation12_spill] sm:$0xff]  ;;  %v14587_v31 = vld [vmem:[#allocation10_spill] sm:$0xff] }
 0x7fc   : > { %v6976_v17 = vpop.f32.mrf.mxu0  ;;  %v6690_v56 = vadd.f32 %v6587_v46, %v6494_v6  ;;  %v6304_v58 = vadd.f32 %v13624_v61, %v13526_v24  ;;  %v6495_v62 = vadd.f32 %v13634_v10, %v6299_v26  ;;  %v6730_v22 = vadd.f32 %v13729_v12, %v6692_v44  ;;  %v14588_v6 = vld [vmem:[#allocation13_spill] sm:$0xff] }
 0x7fd   : > { %7181 = vst.msk [vmem:[%s13748_s28 + $0x8] sm:$0xff] %vm652_vm1, %v7149_v57  ;;  %v7154_v39 = vmul.f32 0.70710677, %v7122_v1  ;;  %v7120_v51 = vadd.f32 %v7088_v48, %v6724_v41  ;;  %v7091_v14 = vadd.f32 %v14584_v38, %v6985_v27  ;;  %v6977_v3 = vadd.f32 %v13720_v37, %v6976_v17  ;;  %v8744_v60 = vpop.f32.mrf.mxu1 }
 0x7fe   : > { %v8774_v32 = vpop.f32.mrf.mxu0  ;;  %v6693_v23 = vadd.f32 %v8741_v8, %v6497_v28  ;;  %v6302_v53 = vadd.f32 %v13628_v59, %v13529_v52  ;;  %v6500_v24 = vadd.f32 %v13638_v63, %v6304_v58  ;;  %v6728_v61 = vadd.f32 %v13729_v12, %v6690_v56 }
 0x7ff   : > { %7186 = vst.msk [vmem:[%s13748_s28 + $0x30] sm:$0xff] %vm652_vm1, %v7154_v39  ;;  %v7152_v54 = vmul.f32 0.70710677, %v7120_v51  ;;  %v7123_v7 = vadd.f32 %v7091_v14, %v6727_v40  ;;  %v7089_v13 = vadd.f32 %v14585_v29, %v6977_v3  ;;  %v6998_v55 = vadd.f32 %v8774_v32, %v13720_v37  ;;  %v6603_v18 = vpop.f32.mrf.mxu1  ;;  %v14589_v14 = vld [vmem:[#allocation11_spill] sm:$0xff] }
 0x800   : > { %v6989_v4 = vpop.f32.mrf.mxu0  ;;  %v6691_v10 = vadd.f32 %v6590_v30, %v6495_v62  ;;  %v6305_v1 = vadd.f32 %v13632_v15, %v13532_v11  ;;  %v6498_v52 = vadd.f32 %v13642_v20, %v6302_v53  ;;  %v6731_v59 = vadd.f32 %v13729_v12, %v6693_v23 }
 0x801   : > { %7184 = vst.msk [vmem:[%s13748_s28 + $0x20] sm:$0xff] %vm652_vm1, %v7152_v54  ;;  %v7155_v46 = vmul.f32 0.70710677, %v7123_v7  ;;  %v7121_v2 = vadd.f32 %v7089_v13, %v6725_v43  ;;  %v7094_v25 = vadd.f32 %v14586_v34, %v6998_v55  ;;  %v6990_v45 = vadd.f32 %v13720_v37, %v6989_v4  ;;  %v8745_v19 = vpop.f32.mrf.mxu1  ;;  %v14590_v54 = vld [vmem:[#allocation16_spill] sm:$0xff]  ;;  %v14592_v4 = vld [vmem:[#allocation14_spill] sm:$0xff]  ;;  %v14594_v34 = vld [vmem:[#allocation73_spill] sm:$0xff] }
 0x802   : > { %v8775_v49 = vpop.f32.mrf.mxu0  ;;  %v6696_v63 = vadd.f32 %v8744_v60, %v6500_v24  ;;  %v6303_v17 = vadd.f32 %v13636_v5, %v13535_v50  ;;  %v6501_v11 = vadd.f32 %v13646_v0, %v6305_v1  ;;  %v6729_v15 = vadd.f32 %v13729_v12, %v6691_v10  ;;  %v14599_v1 = vld [vmem:[#allocation43_spill] sm:$0xff] }
 0x803   : > { %7187 = vst.msk [vmem:[%s13748_s28 + $0x38] sm:$0xff] %vm652_vm1, %v7155_v46  ;;  %v7153_v41 = vmul.f32 0.70710677, %v7121_v2  ;;  %v7126_v35 = vadd.f32 %v7094_v25, %v6730_v22  ;;  %v7092_v8 = vadd.f32 %v14587_v31, %v6990_v45  ;;  %v7001_v57 = vadd.f32 %v8775_v49, %v13720_v37  ;;  %v6606_v48 = vpop.f32.mrf.mxu1  ;;  %v14593_v2 = vld [vmem:[#allocation53_spill] sm:$0xff]  ;;  %v14597_v31 = vld [vmem:[#allocation54_spill] sm:$0xff] }
 0x804   : > { %v6992_v42 = vpop.f32.mrf.mxu0  ;;  %v6694_v20 = vadd.f32 %v6603_v18, %v6498_v52  ;;  %v6308_v28 = vadd.f32 %v13640_v33, %v13538_v47  ;;  %v6499_v50 = vadd.f32 %v13650_v36, %v6303_v17  ;;  %v6734_v0 = vadd.f32 %v13729_v12, %v6696_v63  ;;  %v14591_v47 = vld [vmem:[#allocation59_spill] sm:$0xff]  ;;  %v14601_v17 = vld [vmem:[#allocation36_spill] sm:$0xff] }
 0x805   : > { %7185 = vst.msk [vmem:[%s13748_s28 + $0x28] sm:$0xff] %vm652_vm1, %v7153_v41  ;;  %v7158_v27 = vmul.f32 0.70710677, %v7126_v35  ;;  %v7124_v16 = vadd.f32 %v7092_v8, %v6728_v61  ;;  %v7095_v40 = vadd.f32 %v14588_v6, %v7001_v57  ;;  %v6993_v44 = vadd.f32 %v13720_v37, %v6992_v42  ;;  %v8748_v39 = vpop.f32.mrf.mxu1  ;;  %v14598_v8 = vld [vmem:[#allocation76_spill] sm:$0xff]  ;;  %v14600_v6 = vld [vmem:[#allocation15_spill] sm:$0xff] }
 0x806   : > { %v8778_v30 = vpop.f32.mrf.mxu0  ;;  %v6697_v5 = vadd.f32 %v8745_v19, %v6501_v11  ;;  %v6306_v13 = vadd.f32 %v13644_v21, %v13541_v9  ;;  %v6504_v33 = vadd.f32 %v14591_v47, %v6308_v28  ;;  %v6732_v36 = vadd.f32 %v13729_v12, %v6694_v20  ;;  %v14595_v9 = vld [vmem:[#allocation69_spill] sm:$0xff]  ;;  %v14602_v11 = vld [vmem:[#allocation79_spill] sm:$0xff]  ;;  %v14604_v28 = vld [vmem:[#allocation20_spill] sm:$0xff] }
 0x807   : > { %7190 = vst.msk [vmem:[%s13748_s28 + $0x50] sm:$0xff] %vm652_vm1, %v7158_v27  ;;  %v7156_v51 = vmul.f32 0.70710677, %v7124_v16  ;;  %v7127_v38 = vadd.f32 %v7095_v40, %v6731_v59  ;;  %v7093_v3 = vadd.f32 %v14589_v14, %v6993_v44  ;;  %v7014_v26 = vadd.f32 %v8778_v30, %v13720_v37  ;;  %v6619_v56 = vpop.f32.mrf.mxu1  ;;  %v14596_v19 = vld [vmem:[#allocation17_spill] sm:$0xff] }
 0x808   : > { %v7005_v43 = vpop.f32.mrf.mxu0  ;;  %v6695_v55 = vadd.f32 %v6606_v48, %v6499_v50  ;;  %v6309_v25 = vadd.f32 %v14594_v34, %v14593_v2  ;;  %v6502_v21 = vadd.f32 %v14595_v9, %v6306_v13  ;;  %v6735_v45 = vadd.f32 %v13729_v12, %v6697_v5  ;;  %v14603_v20 = vld [vmem:[#allocation49_spill] sm:$0xff]  ;;  %v14605_v5 = vld [vmem:[#allocation55_spill] sm:$0xff] }
 0x809   : > { %7188 = vst.msk [vmem:[%s13748_s28 + $0x40] sm:$0xff] %vm652_vm1, %v7156_v51  ;;  %v7159_v32 = vmul.f32 0.70710677, %v7127_v38  ;;  %v7125_v60 = vadd.f32 %v7093_v3, %v6729_v15  ;;  %v7098_v7 = vadd.f32 %v14590_v54, %v7014_v26  ;;  %v7006_v29 = vadd.f32 %v13720_v37, %v7005_v43  ;;  %v8749_v62 = vpop.f32.mrf.mxu1  ;;  %v14606_v43 = vld [vmem:[#allocation52_spill] sm:$0xff] }
 0x80a   : > { %v8779_v58 = vpop.f32.mrf.mxu0  ;;  %v6700_v53 = vadd.f32 %v8748_v39, %v6504_v33  ;;  %v6307_v57 = vadd.f32 %v14598_v8, %v14597_v31  ;;  %v6505_v52 = vadd.f32 %v14599_v1, %v6309_v25  ;;  %v6733_v59 = vadd.f32 %v13729_v12, %v6695_v55 }
 0x80b   : > { %7191 = vst.msk [vmem:[%s13748_s28 + $0x58] sm:$0xff] %vm652_vm1, %v7159_v32  ;;  %v7157_v22 = vmul.f32 0.70710677, %v7125_v60  ;;  %v7130_v23 = vadd.f32 %v7098_v7, %v6734_v0  ;;  %v7096_v18 = vadd.f32 %v14592_v4, %v7006_v29  ;;  %v7017_v46 = vadd.f32 %v8779_v58, %v13720_v37  ;;  %v6622_v61 = vpop.f32.mrf.mxu1  ;;  %v14607_v32 = vld [vmem:[#allocation35_spill] sm:$0xff] }
 0x80c   : > { %v7008_v24 = vpop.f32.mrf.mxu0  ;;  %v6698_v63 = vadd.f32 %v6619_v56, %v6502_v21  ;;  %v6312_v15 = vadd.f32 %v14602_v11, %v14601_v17  ;;  %v6503_v30 = vadd.f32 %v14603_v20, %v6307_v57  ;;  %v6738_v39 = vadd.f32 %v13729_v12, %v6700_v53  ;;  %v14611_v4 = vld [vmem:[#allocation71_spill] sm:$0xff] }
 0x80d   : > { %7189 = vst.msk [vmem:[%s13748_s28 + $0x48] sm:$0xff] %vm652_vm1, %v7157_v22  ;;  %v7162_v10 = vmul.f32 0.70710677, %v7130_v23  ;;  %v7128_v49 = vadd.f32 %v7096_v18, %v6732_v36  ;;  %v7099_v41 = vadd.f32 %v14596_v19, %v7017_v46  ;;  %v7009_v35 = vadd.f32 %v13720_v37, %v7008_v24  ;;  %v8752_v48 = vpop.f32.mrf.mxu1  ;;  %v14608_v36 = vld [vmem:[#allocation18_spill] sm:$0xff]  ;;  %v14610_v22 = vld [vmem:[#allocation56_spill] sm:$0xff] }
 0x80e   : > { %v8782_v42 = vpop.f32.mrf.mxu0  ;;  %v6701_v51 = vadd.f32 %v8749_v62, %v6505_v52  ;;  %v6310_v56 = vadd.f32 %v14606_v43, %v14605_v5  ;;  %v6508_v60 = vadd.f32 %v14607_v32, %v6312_v15  ;;  %v6736_v54 = vadd.f32 %v13729_v12, %v6698_v63  ;;  %v14609_v62 = vld [vmem:[#allocation61_spill] sm:$0xff]  ;;  %v14615_v19 = vld [vmem:[#allocation40_spill] sm:$0xff] }
 0x80f   : > { %7194 = vst.msk [vmem:[%s13748_s28 + $0x70] sm:$0xff] %vm652_vm1, %v7162_v10  ;;  %v7160_v27 = vmul.f32 0.70710677, %v7128_v49  ;;  %v7131_v16 = vadd.f32 %v7099_v41, %v6735_v45  ;;  %v7097_v40 = vadd.f32 %v14600_v6, %v7009_v35  ;;  %v7030_v44 = vadd.f32 %v8782_v42, %v13720_v37  ;;  %v6635_v14 = vpop.f32.mrf.mxu1  ;;  %v14612_v45 = vld [vmem:[#allocation21_spill] sm:$0xff]  ;;  %v14614_v10 = vld [vmem:[#allocation58_spill] sm:$0xff] }
 0x810   : > { %v7021_v38 = vpop.f32.mrf.mxu0  ;;  %v6699_v7 = vadd.f32 %v6622_v61, %v6503_v30  ;;  %v6313_v23 = vadd.f32 %v14610_v22, %v14609_v62  ;;  %v6506_v18 = vadd.f32 %v14611_v4, %v6310_v56  ;;  %v6739_v46 = vadd.f32 %v13729_v12, %v6701_v51  ;;  %v14613_v61 = vld [vmem:[#allocation47_spill] sm:$0xff]  ;;  %v14619_v6 = vld [vmem:[#allocation81_spill] sm:$0xff] }
 0x811   : > { %7192 = vst.msk [vmem:[%s13748_s28 + $0x60] sm:$0xff] %vm652_vm1, %v7160_v27  ;;  %v7163_v3 = vmul.f32 0.70710677, %v7131_v16  ;;  %v7129_v26 = vadd.f32 %v7097_v40, %v6733_v59  ;;  %v7102_v50 = vadd.f32 %v14604_v28, %v7030_v44  ;;  %v7022_v0 = vadd.f32 %v13720_v37, %v7021_v38  ;;  %v8753_v13 = vpop.f32.mrf.mxu1  ;;  %v14616_v59 = vld [vmem:[#allocation19_spill] sm:$0xff]  ;;  %v14618_v27 = vld [vmem:[#allocation74_spill] sm:$0xff] }
 0x812   : > { %v8783_v29 = vpop.f32.mrf.mxu0  ;;  %v6704_v2 = vadd.f32 %v8752_v48, %v6508_v60  ;;  %v6311_v49 = vadd.f32 %v14614_v10, %v14613_v61  ;;  %v6509_v41 = vadd.f32 %v14615_v19, %v6313_v23  ;;  %v6737_v35 = vadd.f32 %v13729_v12, %v6699_v7  ;;  %v14617_v48 = vld [vmem:[#allocation62_spill] sm:$0xff]  ;;  %v14623_v28 = vld [vmem:[#allocation39_spill] sm:$0xff] }
 0x813   : > { %7195 = vst.msk [vmem:[%s13748_s28 + $0x78] sm:$0xff] %vm652_vm1, %v7163_v3  ;;  %v7161_v47 = vmul.f32 0.70710677, %v7129_v26  ;;  %v7134_v33 = vadd.f32 %v7102_v50, %v6738_v39  ;;  %v7100_v55 = vadd.f32 %v14608_v36, %v7022_v0  ;;  %v7033_v58 = vadd.f32 %v8783_v29, %v13720_v37  ;;  %v6638_v25 = vpop.f32.mrf.mxu1  ;;  %v14620_v39 = vld [vmem:[#allocation24_spill] sm:$0xff]  ;;  %v14622_v3 = vld [vmem:[#allocation45_spill] sm:$0xff]  ;;  %v14627_v36 = vld [vmem:[#allocation87_spill] sm:$0xff] }
 0x814   : > { %v7024_v34 = vpop.f32.mrf.mxu0  ;;  %v6702_v31 = vadd.f32 %v6635_v14, %v6506_v18  ;;  %v6316_v16 = vadd.f32 %v14618_v27, %v14617_v48  ;;  %v6507_v40 = vadd.f32 %v14619_v6, %v6311_v49  ;;  %v6742_v44 = vadd.f32 %v13729_v12, %v6704_v2  ;;  %v14621_v14 = vld [vmem:[#allocation60_spill] sm:$0xff] }
 0x815   : > { %7193 = vst.msk [vmem:[%s13748_s28 + $0x68] sm:$0xff] %vm652_vm1, %v7161_v47  ;;  %v7166_v9 = vmul.f32 0.70710677, %v7134_v33  ;;  %v7132_v21 = vadd.f32 %v7100_v55, %v6736_v54  ;;  %v7103_v53 = vadd.f32 %v14612_v45, %v7033_v58  ;;  %v7025_v24 = vadd.f32 %v13720_v37, %v7024_v34  ;;  %v8756_v57 = vpop.f32.mrf.mxu1  ;;  %v14624_v54 = vld [vmem:[#allocation22_spill] sm:$0xff] }
 0x816   : > { %v8786_v8 = vpop.f32.mrf.mxu0  ;;  %v6705_v17 = vadd.f32 %v8753_v13, %v6509_v41  ;;  %v6314_v26 = vadd.f32 %v14622_v3, %v14621_v14  ;;  %v6512_v50 = vadd.f32 %v14623_v28, %v6316_v16  ;;  %v6740_v0 = vadd.f32 %v13729_v12, %v6702_v31  ;;  %v14625_v13 = vld [vmem:[#allocation66_spill] sm:$0xff] }
 0x817   : > { %7198 = vst.msk [vmem:[%s13748_s28 + $0x90] sm:$0xff] %vm652_vm1, %v7166_v9  ;;  %v7164_v1 = vmul.f32 0.70710677, %v7132_v21  ;;  %v7135_v52 = vadd.f32 %v7103_v53, %v6739_v46  ;;  %v7101_v63 = vadd.f32 %v14616_v59, %v7025_v24  ;;  %v7046_v42 = vadd.f32 %v8786_v8, %v13720_v37  ;;  %v6651_v15 = vpop.f32.mrf.mxu1  ;;  %v14626_v47 = vld [vmem:[#allocation34_spill] sm:$0xff]  ;;  %v14628_v46 = vld [vmem:[#allocation25_spill] sm:$0xff]  ;;  %v14630_v9 = vld [vmem:[#allocation83_spill] sm:$0xff] }
 0x818   : > { %v7037_v11 = vpop.f32.mrf.mxu0  ;;  %v6703_v5 = vadd.f32 %v6638_v25, %v6507_v40  ;;  %v6317_v33 = vadd.f32 %v14626_v47, %v14625_v13  ;;  %v6510_v55 = vadd.f32 %v14627_v36, %v6314_v26  ;;  %v6743_v58 = vadd.f32 %v13729_v12, %v6705_v17  ;;  %v14629_v25 = vld [vmem:[#allocation57_spill] sm:$0xff]  ;;  %v14631_v45 = vld [vmem:[#allocation82_spill] sm:$0xff] }
 0x819   : > { %7196 = vst.msk [vmem:[%s13748_s28 + $0x80] sm:$0xff] %vm652_vm1, %v7164_v1  ;;  %v7167_v20 = vmul.f32 0.70710677, %v7135_v52  ;;  %v7133_v30 = vadd.f32 %v7101_v63, %v6737_v35  ;;  %v7106_v51 = vadd.f32 %v14620_v39, %v7046_v42  ;;  %v7038_v38 = vadd.f32 %v13720_v37, %v7037_v11  ;;  %v8757_v56 = vpop.f32.mrf.mxu1  ;;  %v14632_v35 = vld [vmem:[#allocation23_spill] sm:$0xff]  ;;  %v14634_v1 = vld [vmem:[#allocation86_spill] sm:$0xff] }
 0x81a   : > { %v8787_v43 = vpop.f32.mrf.mxu0  ;;  %v6708_v62 = vadd.f32 %v8756_v57, %v6512_v50  ;;  %v6315_v21 = vadd.f32 %v14630_v9, %v14629_v25  ;;  %v6513_v53 = vadd.f32 %v14631_v45, %v6317_v33  ;;  %v6741_v24 = vadd.f32 %v13729_v12, %v6703_v5  ;;  %v14633_v57 = vld [vmem:[#allocation68_spill] sm:$0xff]  ;;  %v14635_v59 = vld [vmem:[#allocation50_spill] sm:$0xff]  ;;  %v14648_v45 = vld [vmem:[#allocation27_spill] sm:$0xff] }
 0x81b   : > { %7199 = vst.msk [vmem:[%s13748_s28 + $0x98] sm:$0xff] %vm652_vm1, %v7167_v20  ;;  %v7165_v32 = vmul.f32 0.70710677, %v7133_v30  ;;  %v7138_v60 = vadd.f32 %v7106_v51, %v6742_v44  ;;  %v7104_v7 = vadd.f32 %v14624_v54, %v7038_v38  ;;  %v7049_v29 = vadd.f32 %v8787_v43, %v13720_v37  ;;  %v6654_v23 = vpop.f32.mrf.mxu1  ;;  %v14636_v44 = vld [vmem:[#allocation28_spill] sm:$0xff]  ;;  %v14639_v39 = vld [vmem:[#allocation38_spill] sm:$0xff]  ;;  %v14643_v54 = vld [vmem:[#allocation41_spill] sm:$0xff] }
 0x81c   : > { %v7040_v22 = vpop.f32.mrf.mxu0  ;;  %v6706_v61 = vadd.f32 %v6651_v15, %v6510_v55  ;;  %v6320_v52 = vadd.f32 %v14634_v1, %v14633_v57  ;;  %v6511_v63 = vadd.f32 %v14635_v59, %v6315_v21  ;;  %v6746_v42 = vadd.f32 %v13729_v12, %v6708_v62  ;;  %v14637_v15 = vld [vmem:[#allocation63_spill] sm:$0xff]  ;;  %v14638_v20 = vld [vmem:[#allocation80_spill] sm:$0xff]  ;;  %v14640_v50 = vld [vmem:[#allocation26_spill] sm:$0xff] }
 0x81d   : > { %7197 = vst.msk [vmem:[%s13748_s28 + $0x88] sm:$0xff] %vm652_vm1, %v7165_v32  ;;  %v7170_v4 = vmul.f32 0.70710677, %v7138_v60  ;;  %v7136_v18 = vadd.f32 %v7104_v7, %v6740_v0  ;;  %v7107_v2 = vadd.f32 %v14628_v46, %v7049_v29  ;;  %v7041_v34 = vadd.f32 %v13720_v37, %v7040_v22  ;;  %v8760_v49 = vpop.f32.mrf.mxu1  ;;  %v14642_v32 = vld [vmem:[#allocation51_spill] sm:$0xff]  ;;  %v14644_v55 = vld [vmem:[#allocation29_spill] sm:$0xff]  ;;  %v14645_v22 = vld [vmem:[#allocation70_spill] sm:$0xff] }
 0x81e   : > { %v8790_v10 = vpop.f32.mrf.mxu0  ;;  %v6709_v48 = vadd.f32 %v8757_v56, %v6513_v53  ;;  %v6318_v30 = vadd.f32 %v14638_v20, %v14637_v15  ;;  %v6516_v51 = vadd.f32 %v14639_v39, %v6320_v52  ;;  %v6744_v38 = vadd.f32 %v13729_v12, %v6706_v61  ;;  %v14641_v56 = vld [vmem:[#allocation64_spill] sm:$0xff]  ;;  %v14652_v20 = vld [vmem:[#allocation33_spill] sm:$0xff] }
 0x81f   : > { %7202 = vst.msk [vmem:[%s13748_s28 + $0xb0] sm:$0xff] %vm652_vm1, %v7170_v4  ;;  %v7168_v19 = vmul.f32 0.70710677, %v7136_v18  ;;  %v7139_v41 = vadd.f32 %v7107_v2, %v6743_v58  ;;  %v7105_v31 = vadd.f32 %v14632_v35, %v7041_v34  ;;  %v7062_v8 = vadd.f32 %v8790_v10, %v13720_v37  ;;  %v6667_v16 = vpop.f32.mrf.mxu1  ;;  %v14647_v18 = vld [vmem:[#allocation42_spill] sm:$0xff]  ;;  %v14650_v57 = vld [vmem:[#allocation32_spill] sm:$0xff] }
 0x820   : > { %v7053_v27 = vpop.f32.mrf.mxu0  ;;  %v6707_v14 = vadd.f32 %v6654_v23, %v6511_v63  ;;  %v6321_v60 = vadd.f32 %v14642_v32, %v14641_v56  ;;  %v6514_v7 = vadd.f32 %v14643_v54, %v6318_v30  ;;  %v6747_v29 = vadd.f32 %v13729_v12, %v6709_v48  ;;  %v14646_v23 = vld [vmem:[#allocation84_spill] sm:$0xff]  ;;  %v14649_v10 = vld [vmem:[#allocation46_spill] sm:$0xff] }
 0x821   : > { %7200 = vst.msk [vmem:[%s13748_s28 + $0xa0] sm:$0xff] %vm652_vm1, %v7168_v19  ;;  %v7171_v6 = vmul.f32 0.70710677, %v7139_v41  ;;  %v7137_v40 = vadd.f32 %v7105_v31, %v6741_v24  ;;  %v7110_v17 = vadd.f32 %v14636_v44, %v7062_v8  ;;  %v7054_v11 = vadd.f32 %v13720_v37, %v7053_v27  ;;  %v8761_v43 = vpop.f32.mrf.mxu1 }
 0x822   : > { %v8791_v3 = vpop.f32.mrf.mxu0  ;;  %v6712_v13 = vadd.f32 %v8760_v49, %v6516_v51  ;;  %v6319_v4 = vadd.f32 %v14646_v23, %v14645_v22  ;;  %v6517_v46 = vadd.f32 %v14647_v18, %v6321_v60  ;;  %v6745_v2 = vadd.f32 %v13729_v12, %v6707_v14 }
 0x823   : > { %7203 = vst.msk [vmem:[%s13748_s28 + $0xb8] sm:$0xff] %vm652_vm1, %v7171_v6  ;;  %v7169_v26 = vmul.f32 0.70710677, %v7137_v40  ;;  %v7142_v28 = vadd.f32 %v7110_v17, %v6746_v42  ;;  %v7108_v0 = vadd.f32 %v14640_v50, %v7054_v11  ;;  %v7065_v5 = vadd.f32 %v8791_v3, %v13720_v37  ;;  %v6670_v61 = vpop.f32.mrf.mxu1  ;;  %v14653_v3 = vld [vmem:[#allocation31_spill] sm:$0xff] }
 0x824   : > { %v7056_v47 = vpop.f32.mrf.mxu0  ;;  %v6710_v34 = vadd.f32 %v6667_v16, %v6514_v7  ;;  %v6515_v49 = vadd.f32 %v14649_v10, %v6319_v4  ;;  %v6750_v19 = vadd.f32 %v13729_v12, %v6712_v13  ;;  %v6713_v41 = vadd.f32 %v8761_v43, %v6517_v46  ;;  %v14651_v16 = vld [vmem:[#allocation30_spill] sm:$0xff] }
 0x825   : > { %7201 = vst.msk [vmem:[%s13748_s28 + $0xa8] sm:$0xff] %vm652_vm1, %v7169_v26  ;;  %v7174_v33 = vmul.f32 0.70710677, %v7142_v28  ;;  %v7140_v36 = vadd.f32 %v7108_v0, %v6744_v38  ;;  %v7111_v58 = vadd.f32 %v14644_v55, %v7065_v5  ;;  %v7057_v62 = vadd.f32 %v13720_v37, %v7056_v47 }
 0x826   : > { %v8794_v25 = vpop.f32.mrf.mxu0  ;;  %v6748_v59 = vadd.f32 %v13729_v12, %v6710_v34  ;;  %v6711_v63 = vadd.f32 %v6670_v61, %v6515_v49  ;;  %v6751_v44 = vadd.f32 %v13729_v12, %v6713_v41 }
 0x827   : > { %7206 = vst.msk [vmem:[%s13748_s28 + $0xd0] sm:$0xff] %vm652_vm1, %v7174_v33  ;;  %v7172_v9 = vmul.f32 0.70710677, %v7140_v36  ;;  %v7143_v21 = vadd.f32 %v7111_v58, %v6747_v29  ;;  %v7109_v53 = vadd.f32 %v14648_v45, %v7057_v62  ;;  %v7078_v24 = vadd.f32 %v8794_v25, %v13720_v37 }
 0x828   : > { %v7069_v35 = vpop.f32.mrf.mxu0  ;;  %v6749_v51 = vadd.f32 %v13729_v12, %v6711_v63 }
 0x829   : > { %7204 = vst.msk [vmem:[%s13748_s28 + $0xc0] sm:$0xff] %vm652_vm1, %v7172_v9  ;;  %v7175_v31 = vmul.f32 0.70710677, %v7143_v21  ;;  %v7141_v8 = vadd.f32 %v7109_v53, %v6745_v2  ;;  %v7114_v1 = vadd.f32 %v14650_v57, %v7078_v24  ;;  %v7070_v52 = vadd.f32 %v13720_v37, %v7069_v35 }
 0x82a   : > { %v8795_v42 = vpop.f32.mrf.mxu0 }
 0x82b   : > { %7207 = vst.msk [vmem:[%s13748_s28 + $0xd8] sm:$0xff] %vm652_vm1, %v7175_v31  ;;  %v7173_v48 = vmul.f32 0.70710677, %v7141_v8  ;;  %v7146_v27 = vadd.f32 %v7114_v1, %v6750_v19  ;;  %v7112_v6 = vadd.f32 %v14651_v16, %v7070_v52  ;;  %v7081_v40 = vadd.f32 %v8795_v42, %v13720_v37 }
 0x82c   : > { %v7072_v17 = vpop.f32.mrf.mxu0 }
 0x82d   : > { %7205 = vst.msk [vmem:[%s13748_s28 + $0xc8] sm:$0xff] %vm652_vm1, %v7173_v48  ;;  %v7178_v11 = vmul.f32 0.70710677, %v7146_v27  ;;  %v7144_v15 = vadd.f32 %v7112_v6, %v6748_v59  ;;  %v7115_v30 = vadd.f32 %v14652_v20, %v7081_v40  ;;  %v7073_v39 = vadd.f32 %v13720_v37, %v7072_v17 }
 0x82f   : > { %7210 = vst.msk [vmem:[%s13748_s28 + $0xf0] sm:$0xff] %vm652_vm1, %v7178_v11  ;;  %v7176_v38 = vmul.f32 0.70710677, %v7144_v15  ;;  %v7147_v14 = vadd.f32 %v7115_v30, %v6751_v44  ;;  %v7113_v26 = vadd.f32 %v14653_v3, %v7073_v39 }
 0x831   : > { %7208 = vst.msk [vmem:[%s13748_s28 + $0xe0] sm:$0xff] %vm652_vm1, %v7176_v38  ;;  %v7179_v28 = vmul.f32 0.70710677, %v7147_v14  ;;  %v7145_v50 = vadd.f32 %v7113_v26, %v6749_v51 }
 0x833   : > { %7211 = vst.msk [vmem:[%s13748_s28 + $0xf8] sm:$0xff] %vm652_vm1, %v7179_v28  ;;  %v7177_v0 = vmul.f32 0.70710677, %v7145_v50 }
 0x835   : > { %7209 = vst.msk [vmem:[%s13748_s28 + $0xe8] sm:$0xff] %vm652_vm1, %v7177_v0 }
 0x836 PF: > { %s27_s24 = sadd.s32 1, %s9115_s24  }
 0x837   : > { %p24_p4 = scmp.ge.s32.totalorder %s27_s24, 4  }
 0x839   :  { %26 = sbr.rel (!%p24_p4) target bundleno = 3 (0x3), region = 124 }

</bundles_post_ra>
